<compile_context>
chip_gen: v7x
topology: tpu7x:2x2x1
jax: 0.10.0
libtpu: 0.0.40
codegen_flags: <defaults>
</compile_context>

<pallas_src>
import math
import functools

import jax
import jax.numpy as jnp
from jax.experimental import pallas as pl
from jax.experimental.pallas import tpu as pltpu


# ----------------------------------------------------------------------------
# Pallas kernels: MXU matmul with fused scale/bias (+residual) (+ReLU) epilogue
# ----------------------------------------------------------------------------
def _mm_kernel(a_ref, b_ref, s_ref, c_ref, o_ref, *, relu):
    acc = jnp.dot(a_ref[...], b_ref[...], preferred_element_type=jnp.float32)
    acc = acc * s_ref[...] + c_ref[...]
    if relu:
        acc = jnp.maximum(acc, 0.0)
    o_ref[...] = acc.astype(o_ref.dtype)


def _mm_res_kernel(a_ref, b_ref, s_ref, c_ref, r_ref, o_ref, *, relu):
    acc = jnp.dot(a_ref[...], b_ref[...], preferred_element_type=jnp.float32)
    acc = acc * s_ref[...] + c_ref[...] + r_ref[...].astype(jnp.float32)
    if relu:
        acc = jnp.maximum(acc, 0.0)
    o_ref[...] = acc.astype(o_ref.dtype)


# ----------------------------------------------------------------------------
# Tiling helpers
# ----------------------------------------------------------------------------
_TM_MAX = 256  # keeps A/out tiles small enough for v7x's 64 MiB VMEM with headroom


@functools.lru_cache(maxsize=None)
def _tn_max():
    # 256-wide N tiles fill the 2x256x256 MXUs on v6e/v7x; v5e's 4x128x128 is fine at 128.
    try:
        kind = jax.devices()[0].device_kind.lower()
    except Exception:
        return 256
    if ("v2" in kind) or ("v3" in kind) or ("v4" in kind) or ("v5" in kind):
        return 128
    return 256


def _pick_tm(M):
    """Return (TM, padded_M)."""
    if M <= _TM_MAX:
        return M, M
    for t in (_TM_MAX, 128, 64, 32, 16):
        if M % t == 0:
            return t, M
    Mp = ((M + _TM_MAX - 1) // _TM_MAX) * _TM_MAX
    return _TM_MAX, Mp


def _pick_tn(N):
    tn = _tn_max()
    if N % tn == 0:
        return tn
    if N % 128 == 0:
        return 128
    return N  # full-N block (e.g. the 64-channel stem)


# ----------------------------------------------------------------------------
# Pallas wrapper: out = relu?( (a @ b) * scale + bias (+ residual) )
# a: (M, K) bf16, b: (K, N) bf16, scale/bias: (N,) f32, out: (M, N) bf16
# ----------------------------------------------------------------------------
def matmul_scale_bias(a, b, scale, bias, residual=None, relu=False):
    M, K = a.shape
    K2, N = b.shape
    assert K == K2

    a = a.astype(jnp.bfloat16)
    b = b.astype(jnp.bfloat16)
    if residual is not None:
        residual = residual.astype(jnp.bfloat16)

    TM, Mp = _pick_tm(M)
    if Mp != M:
        a = jnp.pad(a, ((0, Mp - M), (0, 0)))
        if residual is not None:
            residual = jnp.pad(residual, ((0, Mp - M), (0, 0)))
    TN = _pick_tn(N)

    scale2 = scale.reshape(1, N).astype(jnp.float32)
    bias2 = bias.reshape(1, N).astype(jnp.float32)

    in_specs = [
        pl.BlockSpec((TM, K), lambda i, j: (i, 0)),
        pl.BlockSpec((K, TN), lambda i, j: (0, j)),
        pl.BlockSpec((1, TN), lambda i, j: (0, j)),
        pl.BlockSpec((1, TN), lambda i, j: (0, j)),
    ]
    args = [a, b, scale2, bias2]
    if residual is not None:
        in_specs.append(pl.BlockSpec((TM, TN), lambda i, j: (i, j)))
        args.append(residual)
        kernel = functools.partial(_mm_res_kernel, relu=relu)
    else:
        kernel = functools.partial(_mm_kernel, relu=relu)

    res_bytes = residual.size * 2 if residual is not None else 0
    cost = pl.CostEstimate(
        flops=2 * Mp * K * N,
        transcendentals=0,
        bytes_accessed=a.size * 2 + b.size * 2 + res_bytes + Mp * N * 2 + 2 * N * 4,
    )

    out = pl.pallas_call(
        kernel,
        out_shape=jax.ShapeDtypeStruct((Mp, N), jnp.bfloat16),
        grid=(Mp // TM, N // TN),
        in_specs=in_specs,
        out_specs=pl.BlockSpec((TM, TN), lambda i, j: (i, j)),
        compiler_params=pltpu.CompilerParams(
            dimension_semantics=("parallel", "parallel")),
        cost_estimate=cost,
    )(*args)

    if Mp != M:
        out = out[:M]
    return out


# ----------------------------------------------------------------------------
# Conv lowering (im2col only where unavoidable) + max-pool
# ----------------------------------------------------------------------------
def _im2col(x, kh, kw, stride, pad):
    # x: NHWC -> (N*Ho*Wo, kh*kw*C) with patch order (dh, dw, c)
    if pad:
        x = jnp.pad(x, ((0, 0), (pad, pad), (pad, pad), (0, 0)))
    N, Hp, Wp, C = x.shape
    Ho = (Hp - kh) // stride + 1
    Wo = (Wp - kw) // stride + 1
    cols = []
    for dh in range(kh):
        for dw in range(kw):
            cols.append(x[:, dh:dh + (Ho - 1) * stride + 1:stride,
                          dw:dw + (Wo - 1) * stride + 1:stride, :])
    patches = jnp.stack(cols, axis=3)  # (N, Ho, Wo, kh*kw, C)
    return patches.reshape(N * Ho * Wo, kh * kw * C), (N, Ho, Wo)


def conv_scale_bias(x, w, scale, bias, stride=1, pad=0, relu=False, residual=None):
    """Conv with fused per-channel scale/bias/ReLU (Pallas matmul backend)."""
    kh, kw, cin, cout = w.shape
    if kh == 1 and kw == 1 and pad == 0:
        # 1x1 conv: no im2col, just (optionally strided) reshape.
        xs = x if stride == 1 else x[:, ::stride, ::stride, :]
        N, Ho, Wo, _ = xs.shape
        a = xs.reshape(N * Ho * Wo, cin)
    else:
        a, (N, Ho, Wo) = _im2col(x, kh, kw, stride, pad)
    b = w.reshape(kh * kw * cin, cout)
    r = residual.reshape(N * Ho * Wo, cout) if residual is not None else None
    out = matmul_scale_bias(a, b, scale, bias, residual=r, relu=relu)
    return out.reshape(N, Ho, Wo, cout)


def maxpool_3x3_s2_p1(x):
    # Fused 9-way maximum tree over strided views (no 9x HBM materialization).
    N, H, W, C = x.shape
    xp = jnp.pad(x, ((0, 0), (1, 1), (1, 1), (0, 0)), constant_values=-jnp.inf)
    Ho = (H + 2 - 3) // 2 + 1
    Wo = (W + 2 - 3) // 2 + 1
    out = None
    for dh in range(3):
        for dw in range(3):
            v = xp[:, dh:dh + (Ho - 1) * 2 + 1:2, dw:dw + (Wo - 1) * 2 + 1:2, :]
            out = v if out is None else jnp.maximum(out, v)
    return out


# ----------------------------------------------------------------------------
# Deterministic parameter construction (synthetic weights, no checkpoint),
# with BN / normalization / mask-conv folding done once at init time.
# ----------------------------------------------------------------------------
class _KeyGen:
    def __init__(self, seed):
        self.key = jax.random.PRNGKey(seed)

    def __call__(self):
        self.key, k = jax.random.split(self.key)
        return k


def _fold_bn(gamma, beta, mean, var, eps=1e-5):
    scale = gamma / jnp.sqrt(var + eps)
    return scale, beta - mean * scale


def _init_conv(kg, kh, kw, cin, cout):
    fan_in = kh * kw * cin
    return (jax.random.normal(kg(), (kh, kw, cin, cout), jnp.float32)
            * (1.0 / math.sqrt(fan_in)))


def _init_bn(kg, c):
    gamma = 1.0 + 0.1 * jax.random.normal(kg(), (c,), jnp.float32)
    beta = 0.1 * jax.random.normal(kg(), (c,), jnp.float32)
    mean = 0.1 * jax.random.normal(kg(), (c,), jnp.float32)
    var = 1.0 + 0.1 * jnp.abs(jax.random.normal(kg(), (c,), jnp.float32))
    return _fold_bn(gamma, beta, mean, var)


def _fused_conv(kg, kh, kw, cin, cout):
    w = _init_conv(kg, kh, kw, cin, cout)
    s, b = _init_bn(kg, cout)
    return {'w': w.astype(jnp.bfloat16), 's': s, 'b': b}


def _init_bottleneck(kg, cin, cmid, cout, stride):
    p = {
        'c1': _fused_conv(kg, 1, 1, cin, cmid),
        'c2': _fused_conv(kg, 3, 3, cmid, cmid),
        'c3': _fused_conv(kg, 1, 1, cmid, cout),
        'stride': stride,
    }
    if stride != 1 or cin != cout:
        p['cd'] = _fused_conv(kg, 1, 1, cin, cout)
    return p


def init_basenet(seed=0):
    kg = _KeyGen(seed)
    w1 = _init_conv(kg, 7, 7, 3, 64)          # resnet.conv1 (no bias)
    wm = _init_conv(kg, 7, 7, 1, 64)          # conv1_m weight
    bm = 0.1 * jax.random.normal(kg(), (64,), jnp.float32)   # conv1_m bias
    s1, b1 = _init_bn(kg, 64)                 # resnet.bn1 folded

    mean = jnp.array([0.485, 0.456, 0.406], jnp.float32)
    std = jnp.array([0.229, 0.224, 0.225], jnp.float32)

    # Fold 1/std into conv1's weights (exact: zero padding of (x-mean) matches
    # zero padding of the normalized input in the reference).
    w1n = w1 / std[None, None, :, None]

    params = {
        'mean': mean,
        # use_mask=True stem: one merged 7x7x4x64 conv over concat([x-mean, m]).
        # relu(bn1(conv1(xn) + conv1_m(m))) == relu(s1*conv_merged + (s1*bm + b1))
        'stem_mask': {
            'w': jnp.concatenate([w1n, wm], axis=2).astype(jnp.bfloat16),
            's': s1, 'b': s1 * bm + b1,
        },
        # use_mask=False stem.
        'stem': {'w': w1n.astype(jnp.bfloat16), 's': s1, 'b': b1},
    }

    def make_layer(cin, cmid, cout, blocks, stride):
        layer = [_init_bottleneck(kg, cin, cmid, cout, stride)]
        for _ in range(blocks - 1):
            layer.append(_init_bottleneck(kg, cout, cmid, cout, 1))
        return layer

    params['res2'] = make_layer(64, 64, 256, 3, 1)       # resnet.layer1
    params['res3'] = make_layer(256, 128, 512, 4, 2)     # resnet.layer2
    params['res4'] = make_layer(512, 256, 1024, 6, 2)    # resnet.layer3
    return params


# ----------------------------------------------------------------------------
# Forward
# ----------------------------------------------------------------------------
def _bottleneck(x, p):
    c1, c2, c3 = p['c1'], p['c2'], p['c3']
    out = conv_scale_bias(x, c1['w'], c1['s'], c1['b'], stride=1, pad=0, relu=True)
    out = conv_scale_bias(out, c2['w'], c2['s'], c2['b'], stride=p['stride'],
                          pad=1, relu=True)
    if 'cd' in p:
        cd = p['cd']
        identity = conv_scale_bias(x, cd['w'], cd['s'], cd['b'],
                                   stride=p['stride'], pad=0, relu=False)
    else:
        identity = x
    # fused: relu(bn3(conv3(out)) + identity)
    return conv_scale_bias(out, c3['w'], c3['s'], c3['b'], stride=1, pad=0,
                           relu=True, residual=identity)


def basenet_forward(params, x_nchw, m_nchw=None, use_mask=True):
    x = jnp.transpose(x_nchw, (0, 2, 3, 1))                       # -> NHWC
    xc = (x - params['mean']).astype(jnp.bfloat16)                # mean fold (fused)

    if use_mask:
        m = jnp.transpose(m_nchw, (0, 2, 3, 1)).astype(jnp.bfloat16)
        inp = jnp.concatenate([xc, m], axis=-1)                   # (N,H,W,4)
        st = params['stem_mask']
    else:
        inp = xc
        st = params['stem']

    y = conv_scale_bias(inp, st['w'], st['s'], st['b'],
                        stride=2, pad=3, relu=True)               # merged stem
    y = maxpool_3x3_s2_p1(y)

    for p in params['res2']:
        y = _bottleneck(y, p)
    r3 = y
    for p in params['res3']:
        r3 = _bottleneck(r3, p)
    x4 = r3
    for p in params['res4']:
        x4 = _bottleneck(x4, p)

    # return NCHW (f32) like the PyTorch module
    return (jnp.transpose(x4, (0, 3, 1, 2)).astype(jnp.float32),
            jnp.transpose(r3, (0, 3, 1, 2)).astype(jnp.float32))


# ----------------------------------------------------------------------------
if __name__ == "__main__":
    params = init_basenet(seed=0)

    key = jax.random.PRNGKey(0)
    kx, km = jax.random.split(key)
    x = jax.random.normal(kx, (2, 3, 16, 16), jnp.float32)   # frame (NCHW)
    m = jax.random.normal(km, (2, 1, 16, 16), jnp.float32)   # mask  (NCHW)

    fwd = jax.jit(lambda xx, mm: basenet_forward(params, xx, mm, use_mask=True))
    x4, r3 = fwd(x, m)
    jax.block_until_ready((x4, r3))

    assert x4.shape == (2, 1024, 1, 1), x4.shape   # res4 output
    assert r3.shape == (2, 512, 2, 2), r3.shape    # res3 output
    assert bool(jnp.all(jnp.isfinite(x4))) and bool(jnp.all(jnp.isfinite(r3)))
    print("KERNEL_OK")
</pallas_src>

<mosaic_0001>
module attributes {stable_mosaic.version = 11 : i64} {
  func.func @_mm_kernel(%arg0: i32, %arg1: i32, %arg2: memref<128x196xbf16, #tpu.memory_space<vmem>>, %arg3: memref<196x64xbf16, #tpu.memory_space<vmem>>, %arg4: memref<1x64xf32, #tpu.memory_space<vmem>>, %arg5: memref<1x64xf32, #tpu.memory_space<vmem>>, %arg6: memref<128x64xbf16, #tpu.memory_space<vmem>>) attributes {dimension_semantics = [#tpu.dimension_semantics<parallel>, #tpu.dimension_semantics<parallel>], iteration_bounds = array<i64: 1, 1>, scalar_prefetch = 0 : i64, scratch_operands = 0 : i64, tpu.core_type = #tpu.core_type<tc>, window_params = [{transform_indices = @transform_0, window_bounds = array<i64: 128, 196>}, {transform_indices = @transform_1, window_bounds = array<i64: 196, 64>}, {transform_indices = @transform_2, window_bounds = array<i64: 1, 64>}, {transform_indices = @transform_3, window_bounds = array<i64: 1, 64>}, {transform_indices = @transform_4, window_bounds = array<i64: 128, 64>}]} {
    %c0 = arith.constant 0 : index
    %c0_0 = arith.constant 0 : index
    %0 = vector.load %arg2[%c0, %c0_0] : memref<128x196xbf16, #tpu.memory_space<vmem>>, vector<128x196xbf16>
    %c0_1 = arith.constant 0 : index
    %c0_2 = arith.constant 0 : index
    %1 = vector.load %arg3[%c0_1, %c0_2] : memref<196x64xbf16, #tpu.memory_space<vmem>>, vector<196x64xbf16>
    %cst = arith.constant dense<0.000000e+00> : vector<128x64xf32>
    %2 = tpu.matmul %0, %1, %cst {dimension_numbers = #tpu.dot_dimension_numbers<[1], [0], [0], [1], [0, 0, 1, 1], [], []>} : vector<128x196xbf16>, vector<196x64xbf16>, vector<128x64xf32> -> vector<128x64xf32>
    %c0_3 = arith.constant 0 : index
    %c0_4 = arith.constant 0 : index
    %3 = vector.load %arg4[%c0_3, %c0_4] : memref<1x64xf32, #tpu.memory_space<vmem>>, vector<1x64xf32>
    %4 = vector.broadcast %3 : vector<1x64xf32> to vector<128x64xf32>
    %5 = arith.mulf %2, %4 : vector<128x64xf32>
    %c0_5 = arith.constant 0 : index
    %c0_6 = arith.constant 0 : index
    %6 = vector.load %arg5[%c0_5, %c0_6] : memref<1x64xf32, #tpu.memory_space<vmem>>, vector<1x64xf32>
    %7 = vector.broadcast %6 : vector<1x64xf32> to vector<128x64xf32>
    %8 = arith.addf %5, %7 : vector<128x64xf32>
    %cst_7 = arith.constant 0.000000e+00 : f32
    %9 = vector.broadcast %cst_7 : f32 to vector<128x64xf32>
    %10 = arith.maximumf %8, %9 : vector<128x64xf32>
    %11 = arith.truncf %10 : vector<128x64xf32> to vector<128x64xbf16>
    %c0_8 = arith.constant 0 : index
    %c0_9 = arith.constant 0 : index
    %12 = vector.load %arg6[%c0_8, %c0_9] : memref<128x64xbf16, #tpu.memory_space<vmem>>, vector<128x64xbf16>
    tpu.vector_store %arg6[%c0_8, %c0_9], %11 {strides = array<i32>} : memref<128x64xbf16, #tpu.memory_space<vmem>>, vector<128x64xbf16>,
    return
  }
  func.func @transform_0(%arg0: i32, %arg1: i32) -> (i32, i32) {
    %c0_i32 = arith.constant 0 : i32
    %c0_i32_0 = arith.constant 0 : i32
    return %arg0, %c0_i32 : i32, i32
  }
  func.func @transform_1(%arg0: i32, %arg1: i32) -> (i32, i32) {
    %c0_i32 = arith.constant 0 : i32
    %c0_i32_0 = arith.constant 0 : i32
    return %c0_i32, %arg1 : i32, i32
  }
  func.func @transform_2(%arg0: i32, %arg1: i32) -> (i32, i32) {
    %c0_i32 = arith.constant 0 : i32
    %c0_i32_0 = arith.constant 0 : i32
    return %c0_i32, %arg1 : i32, i32
  }
  func.func @transform_3(%arg0: i32, %arg1: i32) -> (i32, i32) {
    %c0_i32 = arith.constant 0 : i32
    %c0_i32_0 = arith.constant 0 : i32
    return %c0_i32, %arg1 : i32, i32
  }
  func.func @transform_4(%arg0: i32, %arg1: i32) -> (i32, i32) {
    %c0_i32 = arith.constant 0 : i32
    return %arg0, %arg1 : i32, i32
  }
}

module attributes {stable_mosaic.version = 11 : i64} {
  func.func @_mm_kernel(%arg0: i32, %arg1: i32, %arg2: memref<32x64xbf16, #tpu.memory_space<vmem>>, %arg3: memref<64x64xbf16, #tpu.memory_space<vmem>>, %arg4: memref<1x64xf32, #tpu.memory_space<vmem>>, %arg5: memref<1x64xf32, #tpu.memory_space<vmem>>, %arg6: memref<32x64xbf16, #tpu.memory_space<vmem>>) attributes {dimension_semantics = [#tpu.dimension_semantics<parallel>, #tpu.dimension_semantics<parallel>], iteration_bounds = array<i64: 1, 1>, scalar_prefetch = 0 : i64, scratch_operands = 0 : i64, tpu.core_type = #tpu.core_type<tc>, window_params = [{transform_indices = @transform_0, window_bounds = array<i64: 32, 64>}, {transform_indices = @transform_1, window_bounds = array<i64: 64, 64>}, {transform_indices = @transform_2, window_bounds = array<i64: 1, 64>}, {transform_indices = @transform_3, window_bounds = array<i64: 1, 64>}, {transform_indices = @transform_4, window_bounds = array<i64: 32, 64>}]} {
    %c0 = arith.constant 0 : index
    %c0_0 = arith.constant 0 : index
    %0 = vector.load %arg2[%c0, %c0_0] : memref<32x64xbf16, #tpu.memory_space<vmem>>, vector<32x64xbf16>
    %c0_1 = arith.constant 0 : index
    %c0_2 = arith.constant 0 : index
    %1 = vector.load %arg3[%c0_1, %c0_2] : memref<64x64xbf16, #tpu.memory_space<vmem>>, vector<64x64xbf16>
    %cst = arith.constant dense<0.000000e+00> : vector<32x64xf32>
    %2 = tpu.matmul %0, %1, %cst {dimension_numbers = #tpu.dot_dimension_numbers<[1], [0], [0], [1], [0, 0, 1, 1], [], []>} : vector<32x64xbf16>, vector<64x64xbf16>, vector<32x64xf32> -> vector<32x64xf32>
    %c0_3 = arith.constant 0 : index
    %c0_4 = arith.constant 0 : index
    %3 = vector.load %arg4[%c0_3, %c0_4] : memref<1x64xf32, #tpu.memory_space<vmem>>, vector<1x64xf32>
    %4 = vector.broadcast %3 : vector<1x64xf32> to vector<32x64xf32>
    %5 = arith.mulf %2, %4 : vector<32x64xf32>
    %c0_5 = arith.constant 0 : index
    %c0_6 = arith.constant 0 : index
    %6 = vector.load %arg5[%c0_5, %c0_6] : memref<1x64xf32, #tpu.memory_space<vmem>>, vector<1x64xf32>
    %7 = vector.broadcast %6 : vector<1x64xf32> to vector<32x64xf32>
    %8 = arith.addf %5, %7 : vector<32x64xf32>
    %cst_7 = arith.constant 0.000000e+00 : f32
    %9 = vector.broadcast %cst_7 : f32 to vector<32x64xf32>
    %10 = arith.maximumf %8, %9 : vector<32x64xf32>
    %11 = arith.truncf %10 : vector<32x64xf32> to vector<32x64xbf16>
    %c0_8 = arith.constant 0 : index
    %c0_9 = arith.constant 0 : index
    %12 = vector.load %arg6[%c0_8, %c0_9] : memref<32x64xbf16, #tpu.memory_space<vmem>>, vector<32x64xbf16>
    tpu.vector_store %arg6[%c0_8, %c0_9], %11 {strides = array<i32>} : memref<32x64xbf16, #tpu.memory_space<vmem>>, vector<32x64xbf16>,
    return
  }
  func.func @transform_0(%arg0: i32, %arg1: i32) -> (i32, i32) {
    %c0_i32 = arith.constant 0 : i32
    %c0_i32_0 = arith.constant 0 : i32
    return %arg0, %c0_i32 : i32, i32
  }
  func.func @transform_1(%arg0: i32, %arg1: i32) -> (i32, i32) {
    %c0_i32 = arith.constant 0 : i32
    %c0_i32_0 = arith.constant 0 : i32
    return %c0_i32, %arg1 : i32, i32
  }
  func.func @transform_2(%arg0: i32, %arg1: i32) -> (i32, i32) {
    %c0_i32 = arith.constant 0 : i32
    %c0_i32_0 = arith.constant 0 : i32
    return %c0_i32, %arg1 : i32, i32
  }
  func.func @transform_3(%arg0: i32, %arg1: i32) -> (i32, i32) {
    %c0_i32 = arith.constant 0 : i32
    %c0_i32_0 = arith.constant 0 : i32
    return %c0_i32, %arg1 : i32, i32
  }
  func.func @transform_4(%arg0: i32, %arg1: i32) -> (i32, i32) {
    %c0_i32 = arith.constant 0 : i32
    return %arg0, %arg1 : i32, i32
  }
}

module attributes {stable_mosaic.version = 11 : i64} {
  func.func @_mm_kernel(%arg0: i32, %arg1: i32, %arg2: memref<32x576xbf16, #tpu.memory_space<vmem>>, %arg3: memref<576x64xbf16, #tpu.memory_space<vmem>>, %arg4: memref<1x64xf32, #tpu.memory_space<vmem>>, %arg5: memref<1x64xf32, #tpu.memory_space<vmem>>, %arg6: memref<32x64xbf16, #tpu.memory_space<vmem>>) attributes {dimension_semantics = [#tpu.dimension_semantics<parallel>, #tpu.dimension_semantics<parallel>], iteration_bounds = array<i64: 1, 1>, scalar_prefetch = 0 : i64, scratch_operands = 0 : i64, tpu.core_type = #tpu.core_type<tc>, window_params = [{transform_indices = @transform_0, window_bounds = array<i64: 32, 576>}, {transform_indices = @transform_1, window_bounds = array<i64: 576, 64>}, {transform_indices = @transform_2, window_bounds = array<i64: 1, 64>}, {transform_indices = @transform_3, window_bounds = array<i64: 1, 64>}, {transform_indices = @transform_4, window_bounds = array<i64: 32, 64>}]} {
    %c0 = arith.constant 0 : index
    %c0_0 = arith.constant 0 : index
    %0 = vector.load %arg2[%c0, %c0_0] : memref<32x576xbf16, #tpu.memory_space<vmem>>, vector<32x576xbf16>
    %c0_1 = arith.constant 0 : index
    %c0_2 = arith.constant 0 : index
    %1 = vector.load %arg3[%c0_1, %c0_2] : memref<576x64xbf16, #tpu.memory_space<vmem>>, vector<576x64xbf16>
    %cst = arith.constant dense<0.000000e+00> : vector<32x64xf32>
    %2 = tpu.matmul %0, %1, %cst {dimension_numbers = #tpu.dot_dimension_numbers<[1], [0], [0], [1], [0, 0, 1, 1], [], []>} : vector<32x576xbf16>, vector<576x64xbf16>, vector<32x64xf32> -> vector<32x64xf32>
    %c0_3 = arith.constant 0 : index
    %c0_4 = arith.constant 0 : index
    %3 = vector.load %arg4[%c0_3, %c0_4] : memref<1x64xf32, #tpu.memory_space<vmem>>, vector<1x64xf32>
    %4 = vector.broadcast %3 : vector<1x64xf32> to vector<32x64xf32>
    %5 = arith.mulf %2, %4 : vector<32x64xf32>
    %c0_5 = arith.constant 0 : index
    %c0_6 = arith.constant 0 : index
    %6 = vector.load %arg5[%c0_5, %c0_6] : memref<1x64xf32, #tpu.memory_space<vmem>>, vector<1x64xf32>
    %7 = vector.broadcast %6 : vector<1x64xf32> to vector<32x64xf32>
    %8 = arith.addf %5, %7 : vector<32x64xf32>
    %cst_7 = arith.constant 0.000000e+00 : f32
    %9 = vector.broadcast %cst_7 : f32 to vector<32x64xf32>
    %10 = arith.maximumf %8, %9 : vector<32x64xf32>
    %11 = arith.truncf %10 : vector<32x64xf32> to vector<32x64xbf16>
    %c0_8 = arith.constant 0 : index
    %c0_9 = arith.constant 0 : index
    %12 = vector.load %arg6[%c0_8, %c0_9] : memref<32x64xbf16, #tpu.memory_space<vmem>>, vector<32x64xbf16>
    tpu.vector_store %arg6[%c0_8, %c0_9], %11 {strides = array<i32>} : memref<32x64xbf16, #tpu.memory_space<vmem>>, vector<32x64xbf16>,
    return
  }
  func.func @transform_0(%arg0: i32, %arg1: i32) -> (i32, i32) {
    %c0_i32 = arith.constant 0 : i32
    %c0_i32_0 = arith.constant 0 : i32
    return %arg0, %c0_i32 : i32, i32
  }
  func.func @transform_1(%arg0: i32, %arg1: i32) -> (i32, i32) {
    %c0_i32 = arith.constant 0 : i32
    %c0_i32_0 = arith.constant 0 : i32
    return %c0_i32, %arg1 : i32, i32
  }
  func.func @transform_2(%arg0: i32, %arg1: i32) -> (i32, i32) {
    %c0_i32 = arith.constant 0 : i32
    %c0_i32_0 = arith.constant 0 : i32
    return %c0_i32, %arg1 : i32, i32
  }
  func.func @transform_3(%arg0: i32, %arg1: i32) -> (i32, i32) {
    %c0_i32 = arith.constant 0 : i32
    %c0_i32_0 = arith.constant 0 : i32
    return %c0_i32, %arg1 : i32, i32
  }
  func.func @transform_4(%arg0: i32, %arg1: i32) -> (i32, i32) {
    %c0_i32 = arith.constant 0 : i32
    return %arg0, %arg1 : i32, i32
  }
}

module attributes {stable_mosaic.version = 11 : i64} {
  func.func @_mm_kernel(%arg0: i32, %arg1: i32, %arg2: memref<32x64xbf16, #tpu.memory_space<vmem>>, %arg3: memref<64x256xbf16, #tpu.memory_space<vmem>>, %arg4: memref<1x256xf32, #tpu.memory_space<vmem>>, %arg5: memref<1x256xf32, #tpu.memory_space<vmem>>, %arg6: memref<32x256xbf16, #tpu.memory_space<vmem>>) attributes {dimension_semantics = [#tpu.dimension_semantics<parallel>, #tpu.dimension_semantics<parallel>], iteration_bounds = array<i64: 1, 1>, scalar_prefetch = 0 : i64, scratch_operands = 0 : i64, tpu.core_type = #tpu.core_type<tc>, window_params = [{transform_indices = @transform_0, window_bounds = array<i64: 32, 64>}, {transform_indices = @transform_1, window_bounds = array<i64: 64, 256>}, {transform_indices = @transform_2, window_bounds = array<i64: 1, 256>}, {transform_indices = @transform_3, window_bounds = array<i64: 1, 256>}, {transform_indices = @transform_4, window_bounds = array<i64: 32, 256>}]} {
    %c0 = arith.constant 0 : index
    %c0_0 = arith.constant 0 : index
    %0 = vector.load %arg2[%c0, %c0_0] : memref<32x64xbf16, #tpu.memory_space<vmem>>, vector<32x64xbf16>
    %c0_1 = arith.constant 0 : index
    %c0_2 = arith.constant 0 : index
    %1 = vector.load %arg3[%c0_1, %c0_2] : memref<64x256xbf16, #tpu.memory_space<vmem>>, vector<64x256xbf16>
    %cst = arith.constant dense<0.000000e+00> : vector<32x256xf32>
    %2 = tpu.matmul %0, %1, %cst {dimension_numbers = #tpu.dot_dimension_numbers<[1], [0], [0], [1], [0, 0, 1, 1], [], []>} : vector<32x64xbf16>, vector<64x256xbf16>, vector<32x256xf32> -> vector<32x256xf32>
    %c0_3 = arith.constant 0 : index
    %c0_4 = arith.constant 0 : index
    %3 = vector.load %arg4[%c0_3, %c0_4] : memref<1x256xf32, #tpu.memory_space<vmem>>, vector<1x256xf32>
    %4 = vector.broadcast %3 : vector<1x256xf32> to vector<32x256xf32>
    %5 = arith.mulf %2, %4 : vector<32x256xf32>
    %c0_5 = arith.constant 0 : index
    %c0_6 = arith.constant 0 : index
    %6 = vector.load %arg5[%c0_5, %c0_6] : memref<1x256xf32, #tpu.memory_space<vmem>>, vector<1x256xf32>
    %7 = vector.broadcast %6 : vector<1x256xf32> to vector<32x256xf32>
    %8 = arith.addf %5, %7 : vector<32x256xf32>
    %9 = arith.truncf %8 : vector<32x256xf32> to vector<32x256xbf16>
    %c0_7 = arith.constant 0 : index
    %c0_8 = arith.constant 0 : index
    %10 = vector.load %arg6[%c0_7, %c0_8] : memref<32x256xbf16, #tpu.memory_space<vmem>>, vector<32x256xbf16>
    tpu.vector_store %arg6[%c0_7, %c0_8], %9 {strides = array<i32>} : memref<32x256xbf16, #tpu.memory_space<vmem>>, vector<32x256xbf16>,
    return
  }
  func.func @transform_0(%arg0: i32, %arg1: i32) -> (i32, i32) {
    %c0_i32 = arith.constant 0 : i32
    %c0_i32_0 = arith.constant 0 : i32
    return %arg0, %c0_i32 : i32, i32
  }
  func.func @transform_1(%arg0: i32, %arg1: i32) -> (i32, i32) {
    %c0_i32 = arith.constant 0 : i32
    %c0_i32_0 = arith.constant 0 : i32
    return %c0_i32, %arg1 : i32, i32
  }
  func.func @transform_2(%arg0: i32, %arg1: i32) -> (i32, i32) {
    %c0_i32 = arith.constant 0 : i32
    %c0_i32_0 = arith.constant 0 : i32
    return %c0_i32, %arg1 : i32, i32
  }
  func.func @transform_3(%arg0: i32, %arg1: i32) -> (i32, i32) {
    %c0_i32 = arith.constant 0 : i32
    %c0_i32_0 = arith.constant 0 : i32
    return %c0_i32, %arg1 : i32, i32
  }
  func.func @transform_4(%arg0: i32, %arg1: i32) -> (i32, i32) {
    %c0_i32 = arith.constant 0 : i32
    return %arg0, %arg1 : i32, i32
  }
}

module attributes {stable_mosaic.version = 11 : i64} {
  func.func @_mm_res_kernel(%arg0: i32, %arg1: i32, %arg2: memref<32x64xbf16, #tpu.memory_space<vmem>>, %arg3: memref<64x256xbf16, #tpu.memory_space<vmem>>, %arg4: memref<1x256xf32, #tpu.memory_space<vmem>>, %arg5: memref<1x256xf32, #tpu.memory_space<vmem>>, %arg6: memref<32x256xbf16, #tpu.memory_space<vmem>>, %arg7: memref<32x256xbf16, #tpu.memory_space<vmem>>) attributes {dimension_semantics = [#tpu.dimension_semantics<parallel>, #tpu.dimension_semantics<parallel>], iteration_bounds = array<i64: 1, 1>, scalar_prefetch = 0 : i64, scratch_operands = 0 : i64, tpu.core_type = #tpu.core_type<tc>, window_params = [{transform_indices = @transform_0, window_bounds = array<i64: 32, 64>}, {transform_indices = @transform_1, window_bounds = array<i64: 64, 256>}, {transform_indices = @transform_2, window_bounds = array<i64: 1, 256>}, {transform_indices = @transform_3, window_bounds = array<i64: 1, 256>}, {transform_indices = @transform_4, window_bounds = array<i64: 32, 256>}, {transform_indices = @transform_5, window_bounds = array<i64: 32, 256>}]} {
    %c0 = arith.constant 0 : index
    %c0_0 = arith.constant 0 : index
    %0 = vector.load %arg2[%c0, %c0_0] : memref<32x64xbf16, #tpu.memory_space<vmem>>, vector<32x64xbf16>
    %c0_1 = arith.constant 0 : index
    %c0_2 = arith.constant 0 : index
    %1 = vector.load %arg3[%c0_1, %c0_2] : memref<64x256xbf16, #tpu.memory_space<vmem>>, vector<64x256xbf16>
    %cst = arith.constant dense<0.000000e+00> : vector<32x256xf32>
    %2 = tpu.matmul %0, %1, %cst {dimension_numbers = #tpu.dot_dimension_numbers<[1], [0], [0], [1], [0, 0, 1, 1], [], []>} : vector<32x64xbf16>, vector<64x256xbf16>, vector<32x256xf32> -> vector<32x256xf32>
    %c0_3 = arith.constant 0 : index
    %c0_4 = arith.constant 0 : index
    %3 = vector.load %arg4[%c0_3, %c0_4] : memref<1x256xf32, #tpu.memory_space<vmem>>, vector<1x256xf32>
    %4 = vector.broadcast %3 : vector<1x256xf32> to vector<32x256xf32>
    %5 = arith.mulf %2, %4 : vector<32x256xf32>
    %c0_5 = arith.constant 0 : index
    %c0_6 = arith.constant 0 : index
    %6 = vector.load %arg5[%c0_5, %c0_6] : memref<1x256xf32, #tpu.memory_space<vmem>>, vector<1x256xf32>
    %7 = vector.broadcast %6 : vector<1x256xf32> to vector<32x256xf32>
    %8 = arith.addf %5, %7 : vector<32x256xf32>
    %c0_7 = arith.constant 0 : index
    %c0_8 = arith.constant 0 : index
    %9 = vector.load %arg6[%c0_7, %c0_8] : memref<32x256xbf16, #tpu.memory_space<vmem>>, vector<32x256xbf16>
    %10 = arith.extf %9 : vector<32x256xbf16> to vector<32x256xf32>
    %11 = arith.addf %8, %10 : vector<32x256xf32>
    %cst_9 = arith.constant 0.000000e+00 : f32
    %12 = vector.broadcast %cst_9 : f32 to vector<32x256xf32>
    %13 = arith.maximumf %11, %12 : vector<32x256xf32>
    %14 = arith.truncf %13 : vector<32x256xf32> to vector<32x256xbf16>
    %c0_10 = arith.constant 0 : index
    %c0_11 = arith.constant 0 : index
    %15 = vector.load %arg7[%c0_10, %c0_11] : memref<32x256xbf16, #tpu.memory_space<vmem>>, vector<32x256xbf16>
    tpu.vector_store %arg7[%c0_10, %c0_11], %14 {strides = array<i32>} : memref<32x256xbf16, #tpu.memory_space<vmem>>, vector<32x256xbf16>,
    return
  }
  func.func @transform_0(%arg0: i32, %arg1: i32) -> (i32, i32) {
    %c0_i32 = arith.constant 0 : i32
    %c0_i32_0 = arith.constant 0 : i32
    return %arg0, %c0_i32 : i32, i32
  }
  func.func @transform_1(%arg0: i32, %arg1: i32) -> (i32, i32) {
    %c0_i32 = arith.constant 0 : i32
    %c0_i32_0 = arith.constant 0 : i32
    return %c0_i32, %arg1 : i32, i32
  }
  func.func @transform_2(%arg0: i32, %arg1: i32) -> (i32, i32) {
    %c0_i32 = arith.constant 0 : i32
    %c0_i32_0 = arith.constant 0 : i32
    return %c0_i32, %arg1 : i32, i32
  }
  func.func @transform_3(%arg0: i32, %arg1: i32) -> (i32, i32) {
    %c0_i32 = arith.constant 0 : i32
    %c0_i32_0 = arith.constant 0 : i32
    return %c0_i32, %arg1 : i32, i32
  }
  func.func @transform_4(%arg0: i32, %arg1: i32) -> (i32, i32) {
    %c0_i32 = arith.constant 0 : i32
    return %arg0, %arg1 : i32, i32
  }
  func.func @transform_5(%arg0: i32, %arg1: i32) -> (i32, i32) {
    %c0_i32 = arith.constant 0 : i32
    return %arg0, %arg1 : i32, i32
  }
}

module attributes {stable_mosaic.version = 11 : i64} {
  func.func @_mm_kernel(%arg0: i32, %arg1: i32, %arg2: memref<32x256xbf16, #tpu.memory_space<vmem>>, %arg3: memref<256x64xbf16, #tpu.memory_space<vmem>>, %arg4: memref<1x64xf32, #tpu.memory_space<vmem>>, %arg5: memref<1x64xf32, #tpu.memory_space<vmem>>, %arg6: memref<32x64xbf16, #tpu.memory_space<vmem>>) attributes {dimension_semantics = [#tpu.dimension_semantics<parallel>, #tpu.dimension_semantics<parallel>], iteration_bounds = array<i64: 1, 1>, scalar_prefetch = 0 : i64, scratch_operands = 0 : i64, tpu.core_type = #tpu.core_type<tc>, window_params = [{transform_indices = @transform_0, window_bounds = array<i64: 32, 256>}, {transform_indices = @transform_1, window_bounds = array<i64: 256, 64>}, {transform_indices = @transform_2, window_bounds = array<i64: 1, 64>}, {transform_indices = @transform_3, window_bounds = array<i64: 1, 64>}, {transform_indices = @transform_4, window_bounds = array<i64: 32, 64>}]} {
    %c0 = arith.constant 0 : index
    %c0_0 = arith.constant 0 : index
    %0 = vector.load %arg2[%c0, %c0_0] : memref<32x256xbf16, #tpu.memory_space<vmem>>, vector<32x256xbf16>
    %c0_1 = arith.constant 0 : index
    %c0_2 = arith.constant 0 : index
    %1 = vector.load %arg3[%c0_1, %c0_2] : memref<256x64xbf16, #tpu.memory_space<vmem>>, vector<256x64xbf16>
    %cst = arith.constant dense<0.000000e+00> : vector<32x64xf32>
    %2 = tpu.matmul %0, %1, %cst {dimension_numbers = #tpu.dot_dimension_numbers<[1], [0], [0], [1], [0, 0, 1, 1], [], []>} : vector<32x256xbf16>, vector<256x64xbf16>, vector<32x64xf32> -> vector<32x64xf32>
    %c0_3 = arith.constant 0 : index
    %c0_4 = arith.constant 0 : index
    %3 = vector.load %arg4[%c0_3, %c0_4] : memref<1x64xf32, #tpu.memory_space<vmem>>, vector<1x64xf32>
    %4 = vector.broadcast %3 : vector<1x64xf32> to vector<32x64xf32>
    %5 = arith.mulf %2, %4 : vector<32x64xf32>
    %c0_5 = arith.constant 0 : index
    %c0_6 = arith.constant 0 : index
    %6 = vector.load %arg5[%c0_5, %c0_6] : memref<1x64xf32, #tpu.memory_space<vmem>>, vector<1x64xf32>
    %7 = vector.broadcast %6 : vector<1x64xf32> to vector<32x64xf32>
    %8 = arith.addf %5, %7 : vector<32x64xf32>
    %cst_7 = arith.constant 0.000000e+00 : f32
    %9 = vector.broadcast %cst_7 : f32 to vector<32x64xf32>
    %10 = arith.maximumf %8, %9 : vector<32x64xf32>
    %11 = arith.truncf %10 : vector<32x64xf32> to vector<32x64xbf16>
    %c0_8 = arith.constant 0 : index
    %c0_9 = arith.constant 0 : index
    %12 = vector.load %arg6[%c0_8, %c0_9] : memref<32x64xbf16, #tpu.memory_space<vmem>>, vector<32x64xbf16>
    tpu.vector_store %arg6[%c0_8, %c0_9], %11 {strides = array<i32>} : memref<32x64xbf16, #tpu.memory_space<vmem>>, vector<32x64xbf16>,
    return
  }
  func.func @transform_0(%arg0: i32, %arg1: i32) -> (i32, i32) {
    %c0_i32 = arith.constant 0 : i32
    %c0_i32_0 = arith.constant 0 : i32
    return %arg0, %c0_i32 : i32, i32
  }
  func.func @transform_1(%arg0: i32, %arg1: i32) -> (i32, i32) {
    %c0_i32 = arith.constant 0 : i32
    %c0_i32_0 = arith.constant 0 : i32
    return %c0_i32, %arg1 : i32, i32
  }
  func.func @transform_2(%arg0: i32, %arg1: i32) -> (i32, i32) {
    %c0_i32 = arith.constant 0 : i32
    %c0_i32_0 = arith.constant 0 : i32
    return %c0_i32, %arg1 : i32, i32
  }
  func.func @transform_3(%arg0: i32, %arg1: i32) -> (i32, i32) {
    %c0_i32 = arith.constant 0 : i32
    %c0_i32_0 = arith.constant 0 : i32
    return %c0_i32, %arg1 : i32, i32
  }
  func.func @transform_4(%arg0: i32, %arg1: i32) -> (i32, i32) {
    %c0_i32 = arith.constant 0 : i32
    return %arg0, %arg1 : i32, i32
  }
}

module attributes {stable_mosaic.version = 11 : i64} {
  func.func @_mm_kernel(%arg0: i32, %arg1: i32, %arg2: memref<8x256xbf16, #tpu.memory_space<vmem>>, %arg3: memref<256x256xbf16, #tpu.memory_space<vmem>>, %arg4: memref<1x256xf32, #tpu.memory_space<vmem>>, %arg5: memref<1x256xf32, #tpu.memory_space<vmem>>, %arg6: memref<8x256xbf16, #tpu.memory_space<vmem>>) attributes {dimension_semantics = [#tpu.dimension_semantics<parallel>, #tpu.dimension_semantics<parallel>], iteration_bounds = array<i64: 1, 2>, scalar_prefetch = 0 : i64, scratch_operands = 0 : i64, tpu.core_type = #tpu.core_type<tc>, window_params = [{transform_indices = @transform_0, window_bounds = array<i64: 8, 256>}, {transform_indices = @transform_1, window_bounds = array<i64: 256, 256>}, {transform_indices = @transform_2, window_bounds = array<i64: 1, 256>}, {transform_indices = @transform_3, window_bounds = array<i64: 1, 256>}, {transform_indices = @transform_4, window_bounds = array<i64: 8, 256>}]} {
    %c0 = arith.constant 0 : index
    %c0_0 = arith.constant 0 : index
    %0 = vector.load %arg2[%c0, %c0_0] : memref<8x256xbf16, #tpu.memory_space<vmem>>, vector<8x256xbf16>
    %c0_1 = arith.constant 0 : index
    %c0_2 = arith.constant 0 : index
    %1 = vector.load %arg3[%c0_1, %c0_2] : memref<256x256xbf16, #tpu.memory_space<vmem>>, vector<256x256xbf16>
    %cst = arith.constant dense<0.000000e+00> : vector<8x256xf32>
    %2 = tpu.matmul %0, %1, %cst {dimension_numbers = #tpu.dot_dimension_numbers<[1], [0], [0], [1], [0, 0, 1, 1], [], []>} : vector<8x256xbf16>, vector<256x256xbf16>, vector<8x256xf32> -> vector<8x256xf32>
    %c0_3 = arith.constant 0 : index
    %c0_4 = arith.constant 0 : index
    %3 = vector.load %arg4[%c0_3, %c0_4] : memref<1x256xf32, #tpu.memory_space<vmem>>, vector<1x256xf32>
    %4 = vector.broadcast %3 : vector<1x256xf32> to vector<8x256xf32>
    %5 = arith.mulf %2, %4 : vector<8x256xf32>
    %c0_5 = arith.constant 0 : index
    %c0_6 = arith.constant 0 : index
    %6 = vector.load %arg5[%c0_5, %c0_6] : memref<1x256xf32, #tpu.memory_space<vmem>>, vector<1x256xf32>
    %7 = vector.broadcast %6 : vector<1x256xf32> to vector<8x256xf32>
    %8 = arith.addf %5, %7 : vector<8x256xf32>
    %9 = arith.truncf %8 : vector<8x256xf32> to vector<8x256xbf16>
    %c0_7 = arith.constant 0 : index
    %c0_8 = arith.constant 0 : index
    %10 = vector.load %arg6[%c0_7, %c0_8] : memref<8x256xbf16, #tpu.memory_space<vmem>>, vector<8x256xbf16>
    tpu.vector_store %arg6[%c0_7, %c0_8], %9 {strides = array<i32>} : memref<8x256xbf16, #tpu.memory_space<vmem>>, vector<8x256xbf16>,
    return
  }
  func.func @transform_0(%arg0: i32, %arg1: i32) -> (i32, i32) {
    %c0_i32 = arith.constant 0 : i32
    %c0_i32_0 = arith.constant 0 : i32
    return %arg0, %c0_i32 : i32, i32
  }
  func.func @transform_1(%arg0: i32, %arg1: i32) -> (i32, i32) {
    %c0_i32 = arith.constant 0 : i32
    %c0_i32_0 = arith.constant 0 : i32
    return %c0_i32, %arg1 : i32, i32
  }
  func.func @transform_2(%arg0: i32, %arg1: i32) -> (i32, i32) {
    %c0_i32 = arith.constant 0 : i32
    %c0_i32_0 = arith.constant 0 : i32
    return %c0_i32, %arg1 : i32, i32
  }
  func.func @transform_3(%arg0: i32, %arg1: i32) -> (i32, i32) {
    %c0_i32 = arith.constant 0 : i32
    %c0_i32_0 = arith.constant 0 : i32
    return %c0_i32, %arg1 : i32, i32
  }
  func.func @transform_4(%arg0: i32, %arg1: i32) -> (i32, i32) {
    %c0_i32 = arith.constant 0 : i32
    return %arg0, %arg1 : i32, i32
  }
}

module attributes {stable_mosaic.version = 11 : i64} {
  func.func @_mm_kernel(%arg0: i32, %arg1: i32, %arg2: memref<32x256xbf16, #tpu.memory_space<vmem>>, %arg3: memref<256x128xbf16, #tpu.memory_space<vmem>>, %arg4: memref<1x128xf32, #tpu.memory_space<vmem>>, %arg5: memref<1x128xf32, #tpu.memory_space<vmem>>, %arg6: memref<32x128xbf16, #tpu.memory_space<vmem>>) attributes {dimension_semantics = [#tpu.dimension_semantics<parallel>, #tpu.dimension_semantics<parallel>], iteration_bounds = array<i64: 1, 1>, scalar_prefetch = 0 : i64, scratch_operands = 0 : i64, tpu.core_type = #tpu.core_type<tc>, window_params = [{transform_indices = @transform_0, window_bounds = array<i64: 32, 256>}, {transform_indices = @transform_1, window_bounds = array<i64: 256, 128>}, {transform_indices = @transform_2, window_bounds = array<i64: 1, 128>}, {transform_indices = @transform_3, window_bounds = array<i64: 1, 128>}, {transform_indices = @transform_4, window_bounds = array<i64: 32, 128>}]} {
    %c0 = arith.constant 0 : index
    %c0_0 = arith.constant 0 : index
    %0 = vector.load %arg2[%c0, %c0_0] : memref<32x256xbf16, #tpu.memory_space<vmem>>, vector<32x256xbf16>
    %c0_1 = arith.constant 0 : index
    %c0_2 = arith.constant 0 : index
    %1 = vector.load %arg3[%c0_1, %c0_2] : memref<256x128xbf16, #tpu.memory_space<vmem>>, vector<256x128xbf16>
    %cst = arith.constant dense<0.000000e+00> : vector<32x128xf32>
    %2 = tpu.matmul %0, %1, %cst {dimension_numbers = #tpu.dot_dimension_numbers<[1], [0], [0], [1], [0, 0, 1, 1], [], []>} : vector<32x256xbf16>, vector<256x128xbf16>, vector<32x128xf32> -> vector<32x128xf32>
    %c0_3 = arith.constant 0 : index
    %c0_4 = arith.constant 0 : index
    %3 = vector.load %arg4[%c0_3, %c0_4] : memref<1x128xf32, #tpu.memory_space<vmem>>, vector<1x128xf32>
    %4 = vector.broadcast %3 : vector<1x128xf32> to vector<32x128xf32>
    %5 = arith.mulf %2, %4 : vector<32x128xf32>
    %c0_5 = arith.constant 0 : index
    %c0_6 = arith.constant 0 : index
    %6 = vector.load %arg5[%c0_5, %c0_6] : memref<1x128xf32, #tpu.memory_space<vmem>>, vector<1x128xf32>
    %7 = vector.broadcast %6 : vector<1x128xf32> to vector<32x128xf32>
    %8 = arith.addf %5, %7 : vector<32x128xf32>
    %cst_7 = arith.constant 0.000000e+00 : f32
    %9 = vector.broadcast %cst_7 : f32 to vector<32x128xf32>
    %10 = arith.maximumf %8, %9 : vector<32x128xf32>
    %11 = arith.truncf %10 : vector<32x128xf32> to vector<32x128xbf16>
    %c0_8 = arith.constant 0 : index
    %c0_9 = arith.constant 0 : index
    %12 = vector.load %arg6[%c0_8, %c0_9] : memref<32x128xbf16, #tpu.memory_space<vmem>>, vector<32x128xbf16>
    tpu.vector_store %arg6[%c0_8, %c0_9], %11 {strides = array<i32>} : memref<32x128xbf16, #tpu.memory_space<vmem>>, vector<32x128xbf16>,
    return
  }
  func.func @transform_0(%arg0: i32, %arg1: i32) -> (i32, i32) {
    %c0_i32 = arith.constant 0 : i32
    %c0_i32_0 = arith.constant 0 : i32
    return %arg0, %c0_i32 : i32, i32
  }
  func.func @transform_1(%arg0: i32, %arg1: i32) -> (i32, i32) {
    %c0_i32 = arith.constant 0 : i32
    %c0_i32_0 = arith.constant 0 : i32
    return %c0_i32, %arg1 : i32, i32
  }
  func.func @transform_2(%arg0: i32, %arg1: i32) -> (i32, i32) {
    %c0_i32 = arith.constant 0 : i32
    %c0_i32_0 = arith.constant 0 : i32
    return %c0_i32, %arg1 : i32, i32
  }
  func.func @transform_3(%arg0: i32, %arg1: i32) -> (i32, i32) {
    %c0_i32 = arith.constant 0 : i32
    %c0_i32_0 = arith.constant 0 : i32
    return %c0_i32, %arg1 : i32, i32
  }
  func.func @transform_4(%arg0: i32, %arg1: i32) -> (i32, i32) {
    %c0_i32 = arith.constant 0 : i32
    return %arg0, %arg1 : i32, i32
  }
}

module attributes {stable_mosaic.version = 11 : i64} {
  func.func @_mm_kernel(%arg0: i32, %arg1: i32, %arg2: memref<8x1152xbf16, #tpu.memory_space<vmem>>, %arg3: memref<1152x128xbf16, #tpu.memory_space<vmem>>, %arg4: memref<1x128xf32, #tpu.memory_space<vmem>>, %arg5: memref<1x128xf32, #tpu.memory_space<vmem>>, %arg6: memref<8x128xbf16, #tpu.memory_space<vmem>>) attributes {dimension_semantics = [#tpu.dimension_semantics<parallel>, #tpu.dimension_semantics<parallel>], iteration_bounds = array<i64: 1, 1>, scalar_prefetch = 0 : i64, scratch_operands = 0 : i64, tpu.core_type = #tpu.core_type<tc>, window_params = [{transform_indices = @transform_0, window_bounds = array<i64: 8, 1152>}, {transform_indices = @transform_1, window_bounds = array<i64: 1152, 128>}, {transform_indices = @transform_2, window_bounds = array<i64: 1, 128>}, {transform_indices = @transform_3, window_bounds = array<i64: 1, 128>}, {transform_indices = @transform_4, window_bounds = array<i64: 8, 128>}]} {
    %c0 = arith.constant 0 : index
    %c0_0 = arith.constant 0 : index
    %0 = vector.load %arg2[%c0, %c0_0] : memref<8x1152xbf16, #tpu.memory_space<vmem>>, vector<8x1152xbf16>
    %c0_1 = arith.constant 0 : index
    %c0_2 = arith.constant 0 : index
    %1 = vector.load %arg3[%c0_1, %c0_2] : memref<1152x128xbf16, #tpu.memory_space<vmem>>, vector<1152x128xbf16>
    %cst = arith.constant dense<0.000000e+00> : vector<8x128xf32>
    %2 = tpu.matmul %0, %1, %cst {dimension_numbers = #tpu.dot_dimension_numbers<[1], [0], [0], [1], [0, 0, 1, 1], [], []>} : vector<8x1152xbf16>, vector<1152x128xbf16>, vector<8x128xf32> -> vector<8x128xf32>
    %c0_3 = arith.constant 0 : index
    %c0_4 = arith.constant 0 : index
    %3 = vector.load %arg4[%c0_3, %c0_4] : memref<1x128xf32, #tpu.memory_space<vmem>>, vector<1x128xf32>
    %4 = vector.broadcast %3 : vector<1x128xf32> to vector<8x128xf32>
    %5 = arith.mulf %2, %4 : vector<8x128xf32>
    %c0_5 = arith.constant 0 : index
    %c0_6 = arith.constant 0 : index
    %6 = vector.load %arg5[%c0_5, %c0_6] : memref<1x128xf32, #tpu.memory_space<vmem>>, vector<1x128xf32>
    %7 = vector.broadcast %6 : vector<1x128xf32> to vector<8x128xf32>
    %8 = arith.addf %5, %7 : vector<8x128xf32>
    %cst_7 = arith.constant 0.000000e+00 : f32
    %9 = vector.broadcast %cst_7 : f32 to vector<8x128xf32>
    %10 = arith.maximumf %8, %9 : vector<8x128xf32>
    %11 = arith.truncf %10 : vector<8x128xf32> to vector<8x128xbf16>
    %c0_8 = arith.constant 0 : index
    %c0_9 = arith.constant 0 : index
    %12 = vector.load %arg6[%c0_8, %c0_9] : memref<8x128xbf16, #tpu.memory_space<vmem>>, vector<8x128xbf16>
    tpu.vector_store %arg6[%c0_8, %c0_9], %11 {strides = array<i32>} : memref<8x128xbf16, #tpu.memory_space<vmem>>, vector<8x128xbf16>,
    return
  }
  func.func @transform_0(%arg0: i32, %arg1: i32) -> (i32, i32) {
    %c0_i32 = arith.constant 0 : i32
    %c0_i32_0 = arith.constant 0 : i32
    return %arg0, %c0_i32 : i32, i32
  }
  func.func @transform_1(%arg0: i32, %arg1: i32) -> (i32, i32) {
    %c0_i32 = arith.constant 0 : i32
    %c0_i32_0 = arith.constant 0 : i32
    return %c0_i32, %arg1 : i32, i32
  }
  func.func @transform_2(%arg0: i32, %arg1: i32) -> (i32, i32) {
    %c0_i32 = arith.constant 0 : i32
    %c0_i32_0 = arith.constant 0 : i32
    return %c0_i32, %arg1 : i32, i32
  }
  func.func @transform_3(%arg0: i32, %arg1: i32) -> (i32, i32) {
    %c0_i32 = arith.constant 0 : i32
    %c0_i32_0 = arith.constant 0 : i32
    return %c0_i32, %arg1 : i32, i32
  }
  func.func @transform_4(%arg0: i32, %arg1: i32) -> (i32, i32) {
    %c0_i32 = arith.constant 0 : i32
    return %arg0, %arg1 : i32, i32
  }
}

module attributes {stable_mosaic.version = 11 : i64} {
  func.func @_mm_res_kernel(%arg0: i32, %arg1: i32, %arg2: memref<8x128xbf16, #tpu.memory_space<vmem>>, %arg3: memref<128x256xbf16, #tpu.memory_space<vmem>>, %arg4: memref<1x256xf32, #tpu.memory_space<vmem>>, %arg5: memref<1x256xf32, #tpu.memory_space<vmem>>, %arg6: memref<8x256xbf16, #tpu.memory_space<vmem>>, %arg7: memref<8x256xbf16, #tpu.memory_space<vmem>>) attributes {dimension_semantics = [#tpu.dimension_semantics<parallel>, #tpu.dimension_semantics<parallel>], iteration_bounds = array<i64: 1, 2>, scalar_prefetch = 0 : i64, scratch_operands = 0 : i64, tpu.core_type = #tpu.core_type<tc>, window_params = [{transform_indices = @transform_0, window_bounds = array<i64: 8, 128>}, {transform_indices = @transform_1, window_bounds = array<i64: 128, 256>}, {transform_indices = @transform_2, window_bounds = array<i64: 1, 256>}, {transform_indices = @transform_3, window_bounds = array<i64: 1, 256>}, {transform_indices = @transform_4, window_bounds = array<i64: 8, 256>}, {transform_indices = @transform_5, window_bounds = array<i64: 8, 256>}]} {
    %c0 = arith.constant 0 : index
    %c0_0 = arith.constant 0 : index
    %0 = vector.load %arg2[%c0, %c0_0] : memref<8x128xbf16, #tpu.memory_space<vmem>>, vector<8x128xbf16>
    %c0_1 = arith.constant 0 : index
    %c0_2 = arith.constant 0 : index
    %1 = vector.load %arg3[%c0_1, %c0_2] : memref<128x256xbf16, #tpu.memory_space<vmem>>, vector<128x256xbf16>
    %cst = arith.constant dense<0.000000e+00> : vector<8x256xf32>
    %2 = tpu.matmul %0, %1, %cst {dimension_numbers = #tpu.dot_dimension_numbers<[1], [0], [0], [1], [0, 0, 1, 1], [], []>} : vector<8x128xbf16>, vector<128x256xbf16>, vector<8x256xf32> -> vector<8x256xf32>
    %c0_3 = arith.constant 0 : index
    %c0_4 = arith.constant 0 : index
    %3 = vector.load %arg4[%c0_3, %c0_4] : memref<1x256xf32, #tpu.memory_space<vmem>>, vector<1x256xf32>
    %4 = vector.broadcast %3 : vector<1x256xf32> to vector<8x256xf32>
    %5 = arith.mulf %2, %4 : vector<8x256xf32>
    %c0_5 = arith.constant 0 : index
    %c0_6 = arith.constant 0 : index
    %6 = vector.load %arg5[%c0_5, %c0_6] : memref<1x256xf32, #tpu.memory_space<vmem>>, vector<1x256xf32>
    %7 = vector.broadcast %6 : vector<1x256xf32> to vector<8x256xf32>
    %8 = arith.addf %5, %7 : vector<8x256xf32>
    %c0_7 = arith.constant 0 : index
    %c0_8 = arith.constant 0 : index
    %9 = vector.load %arg6[%c0_7, %c0_8] : memref<8x256xbf16, #tpu.memory_space<vmem>>, vector<8x256xbf16>
    %10 = arith.extf %9 : vector<8x256xbf16> to vector<8x256xf32>
    %11 = arith.addf %8, %10 : vector<8x256xf32>
    %cst_9 = arith.constant 0.000000e+00 : f32
    %12 = vector.broadcast %cst_9 : f32 to vector<8x256xf32>
    %13 = arith.maximumf %11, %12 : vector<8x256xf32>
    %14 = arith.truncf %13 : vector<8x256xf32> to vector<8x256xbf16>
    %c0_10 = arith.constant 0 : index
    %c0_11 = arith.constant 0 : index
    %15 = vector.load %arg7[%c0_10, %c0_11] : memref<8x256xbf16, #tpu.memory_space<vmem>>, vector<8x256xbf16>
    tpu.vector_store %arg7[%c0_10, %c0_11], %14 {strides = array<i32>} : memref<8x256xbf16, #tpu.memory_space<vmem>>, vector<8x256xbf16>,
    return
  }
  func.func @transform_0(%arg0: i32, %arg1: i32) -> (i32, i32) {
    %c0_i32 = arith.constant 0 : i32
    %c0_i32_0 = arith.constant 0 : i32
    return %arg0, %c0_i32 : i32, i32
  }
  func.func @transform_1(%arg0: i32, %arg1: i32) -> (i32, i32) {
    %c0_i32 = arith.constant 0 : i32
    %c0_i32_0 = arith.constant 0 : i32
    return %c0_i32, %arg1 : i32, i32
  }
  func.func @transform_2(%arg0: i32, %arg1: i32) -> (i32, i32) {
    %c0_i32 = arith.constant 0 : i32
    %c0_i32_0 = arith.constant 0 : i32
    return %c0_i32, %arg1 : i32, i32
  }
  func.func @transform_3(%arg0: i32, %arg1: i32) -> (i32, i32) {
    %c0_i32 = arith.constant 0 : i32
    %c0_i32_0 = arith.constant 0 : i32
    return %c0_i32, %arg1 : i32, i32
  }
  func.func @transform_4(%arg0: i32, %arg1: i32) -> (i32, i32) {
    %c0_i32 = arith.constant 0 : i32
    return %arg0, %arg1 : i32, i32
  }
  func.func @transform_5(%arg0: i32, %arg1: i32) -> (i32, i32) {
    %c0_i32 = arith.constant 0 : i32
    return %arg0, %arg1 : i32, i32
  }
}

module attributes {stable_mosaic.version = 11 : i64} {
  func.func @_mm_kernel(%arg0: i32, %arg1: i32, %arg2: memref<8x512xbf16, #tpu.memory_space<vmem>>, %arg3: memref<512x128xbf16, #tpu.memory_space<vmem>>, %arg4: memref<1x128xf32, #tpu.memory_space<vmem>>, %arg5: memref<1x128xf32, #tpu.memory_space<vmem>>, %arg6: memref<8x128xbf16, #tpu.memory_space<vmem>>) attributes {dimension_semantics = [#tpu.dimension_semantics<parallel>, #tpu.dimension_semantics<parallel>], iteration_bounds = array<i64: 1, 1>, scalar_prefetch = 0 : i64, scratch_operands = 0 : i64, tpu.core_type = #tpu.core_type<tc>, window_params = [{transform_indices = @transform_0, window_bounds = array<i64: 8, 512>}, {transform_indices = @transform_1, window_bounds = array<i64: 512, 128>}, {transform_indices = @transform_2, window_bounds = array<i64: 1, 128>}, {transform_indices = @transform_3, window_bounds = array<i64: 1, 128>}, {transform_indices = @transform_4, window_bounds = array<i64: 8, 128>}]} {
    %c0 = arith.constant 0 : index
    %c0_0 = arith.constant 0 : index
    %0 = vector.load %arg2[%c0, %c0_0] : memref<8x512xbf16, #tpu.memory_space<vmem>>, vector<8x512xbf16>
    %c0_1 = arith.constant 0 : index
    %c0_2 = arith.constant 0 : index
    %1 = vector.load %arg3[%c0_1, %c0_2] : memref<512x128xbf16, #tpu.memory_space<vmem>>, vector<512x128xbf16>
    %cst = arith.constant dense<0.000000e+00> : vector<8x128xf32>
    %2 = tpu.matmul %0, %1, %cst {dimension_numbers = #tpu.dot_dimension_numbers<[1], [0], [0], [1], [0, 0, 1, 1], [], []>} : vector<8x512xbf16>, vector<512x128xbf16>, vector<8x128xf32> -> vector<8x128xf32>
    %c0_3 = arith.constant 0 : index
    %c0_4 = arith.constant 0 : index
    %3 = vector.load %arg4[%c0_3, %c0_4] : memref<1x128xf32, #tpu.memory_space<vmem>>, vector<1x128xf32>
    %4 = vector.broadcast %3 : vector<1x128xf32> to vector<8x128xf32>
    %5 = arith.mulf %2, %4 : vector<8x128xf32>
    %c0_5 = arith.constant 0 : index
    %c0_6 = arith.constant 0 : index
    %6 = vector.load %arg5[%c0_5, %c0_6] : memref<1x128xf32, #tpu.memory_space<vmem>>, vector<1x128xf32>
    %7 = vector.broadcast %6 : vector<1x128xf32> to vector<8x128xf32>
    %8 = arith.addf %5, %7 : vector<8x128xf32>
    %cst_7 = arith.constant 0.000000e+00 : f32
    %9 = vector.broadcast %cst_7 : f32 to vector<8x128xf32>
    %10 = arith.maximumf %8, %9 : vector<8x128xf32>
    %11 = arith.truncf %10 : vector<8x128xf32> to vector<8x128xbf16>
    %c0_8 = arith.constant 0 : index
    %c0_9 = arith.constant 0 : index
    %12 = vector.load %arg6[%c0_8, %c0_9] : memref<8x128xbf16, #tpu.memory_space<vmem>>, vector<8x128xbf16>
    tpu.vector_store %arg6[%c0_8, %c0_9], %11 {strides = array<i32>} : memref<8x128xbf16, #tpu.memory_space<vmem>>, vector<8x128xbf16>,
    return
  }
  func.func @transform_0(%arg0: i32, %arg1: i32) -> (i32, i32) {
    %c0_i32 = arith.constant 0 : i32
    %c0_i32_0 = arith.constant 0 : i32
    return %arg0, %c0_i32 : i32, i32
  }
  func.func @transform_1(%arg0: i32, %arg1: i32) -> (i32, i32) {
    %c0_i32 = arith.constant 0 : i32
    %c0_i32_0 = arith.constant 0 : i32
    return %c0_i32, %arg1 : i32, i32
  }
  func.func @transform_2(%arg0: i32, %arg1: i32) -> (i32, i32) {
    %c0_i32 = arith.constant 0 : i32
    %c0_i32_0 = arith.constant 0 : i32
    return %c0_i32, %arg1 : i32, i32
  }
  func.func @transform_3(%arg0: i32, %arg1: i32) -> (i32, i32) {
    %c0_i32 = arith.constant 0 : i32
    %c0_i32_0 = arith.constant 0 : i32
    return %c0_i32, %arg1 : i32, i32
  }
  func.func @transform_4(%arg0: i32, %arg1: i32) -> (i32, i32) {
    %c0_i32 = arith.constant 0 : i32
    return %arg0, %arg1 : i32, i32
  }
}

module attributes {stable_mosaic.version = 11 : i64} {
  func.func @_mm_kernel(%arg0: i32, %arg1: i32, %arg2: memref<8x512xbf16, #tpu.memory_space<vmem>>, %arg3: memref<512x256xbf16, #tpu.memory_space<vmem>>, %arg4: memref<1x256xf32, #tpu.memory_space<vmem>>, %arg5: memref<1x256xf32, #tpu.memory_space<vmem>>, %arg6: memref<8x256xbf16, #tpu.memory_space<vmem>>) attributes {dimension_semantics = [#tpu.dimension_semantics<parallel>, #tpu.dimension_semantics<parallel>], iteration_bounds = array<i64: 1, 1>, scalar_prefetch = 0 : i64, scratch_operands = 0 : i64, tpu.core_type = #tpu.core_type<tc>, window_params = [{transform_indices = @transform_0, window_bounds = array<i64: 8, 512>}, {transform_indices = @transform_1, window_bounds = array<i64: 512, 256>}, {transform_indices = @transform_2, window_bounds = array<i64: 1, 256>}, {transform_indices = @transform_3, window_bounds = array<i64: 1, 256>}, {transform_indices = @transform_4, window_bounds = array<i64: 8, 256>}]} {
    %c0 = arith.constant 0 : index
    %c0_0 = arith.constant 0 : index
    %0 = vector.load %arg2[%c0, %c0_0] : memref<8x512xbf16, #tpu.memory_space<vmem>>, vector<8x512xbf16>
    %c0_1 = arith.constant 0 : index
    %c0_2 = arith.constant 0 : index
    %1 = vector.load %arg3[%c0_1, %c0_2] : memref<512x256xbf16, #tpu.memory_space<vmem>>, vector<512x256xbf16>
    %cst = arith.constant dense<0.000000e+00> : vector<8x256xf32>
    %2 = tpu.matmul %0, %1, %cst {dimension_numbers = #tpu.dot_dimension_numbers<[1], [0], [0], [1], [0, 0, 1, 1], [], []>} : vector<8x512xbf16>, vector<512x256xbf16>, vector<8x256xf32> -> vector<8x256xf32>
    %c0_3 = arith.constant 0 : index
    %c0_4 = arith.constant 0 : index
    %3 = vector.load %arg4[%c0_3, %c0_4] : memref<1x256xf32, #tpu.memory_space<vmem>>, vector<1x256xf32>
    %4 = vector.broadcast %3 : vector<1x256xf32> to vector<8x256xf32>
    %5 = arith.mulf %2, %4 : vector<8x256xf32>
    %c0_5 = arith.constant 0 : index
    %c0_6 = arith.constant 0 : index
    %6 = vector.load %arg5[%c0_5, %c0_6] : memref<1x256xf32, #tpu.memory_space<vmem>>, vector<1x256xf32>
    %7 = vector.broadcast %6 : vector<1x256xf32> to vector<8x256xf32>
    %8 = arith.addf %5, %7 : vector<8x256xf32>
    %cst_7 = arith.constant 0.000000e+00 : f32
    %9 = vector.broadcast %cst_7 : f32 to vector<8x256xf32>
    %10 = arith.maximumf %8, %9 : vector<8x256xf32>
    %11 = arith.truncf %10 : vector<8x256xf32> to vector<8x256xbf16>
    %c0_8 = arith.constant 0 : index
    %c0_9 = arith.constant 0 : index
    %12 = vector.load %arg6[%c0_8, %c0_9] : memref<8x256xbf16, #tpu.memory_space<vmem>>, vector<8x256xbf16>
    tpu.vector_store %arg6[%c0_8, %c0_9], %11 {strides = array<i32>} : memref<8x256xbf16, #tpu.memory_space<vmem>>, vector<8x256xbf16>,
    return
  }
  func.func @transform_0(%arg0: i32, %arg1: i32) -> (i32, i32) {
    %c0_i32 = arith.constant 0 : i32
    %c0_i32_0 = arith.constant 0 : i32
    return %arg0, %c0_i32 : i32, i32
  }
  func.func @transform_1(%arg0: i32, %arg1: i32) -> (i32, i32) {
    %c0_i32 = arith.constant 0 : i32
    %c0_i32_0 = arith.constant 0 : i32
    return %c0_i32, %arg1 : i32, i32
  }
  func.func @transform_2(%arg0: i32, %arg1: i32) -> (i32, i32) {
    %c0_i32 = arith.constant 0 : i32
    %c0_i32_0 = arith.constant 0 : i32
    return %c0_i32, %arg1 : i32, i32
  }
  func.func @transform_3(%arg0: i32, %arg1: i32) -> (i32, i32) {
    %c0_i32 = arith.constant 0 : i32
    %c0_i32_0 = arith.constant 0 : i32
    return %c0_i32, %arg1 : i32, i32
  }
  func.func @transform_4(%arg0: i32, %arg1: i32) -> (i32, i32) {
    %c0_i32 = arith.constant 0 : i32
    return %arg0, %arg1 : i32, i32
  }
}

module attributes {stable_mosaic.version = 11 : i64} {
  func.func @_mm_kernel(%arg0: i32, %arg1: i32, %arg2: memref<2x2304xbf16, #tpu.memory_space<vmem>>, %arg3: memref<2304x256xbf16, #tpu.memory_space<vmem>>, %arg4: memref<1x256xf32, #tpu.memory_space<vmem>>, %arg5: memref<1x256xf32, #tpu.memory_space<vmem>>, %arg6: memref<2x256xbf16, #tpu.memory_space<vmem>>) attributes {dimension_semantics = [#tpu.dimension_semantics<parallel>, #tpu.dimension_semantics<parallel>], iteration_bounds = array<i64: 1, 1>, scalar_prefetch = 0 : i64, scratch_operands = 0 : i64, tpu.core_type = #tpu.core_type<tc>, window_params = [{transform_indices = @transform_0, window_bounds = array<i64: 2, 2304>}, {transform_indices = @transform_1, window_bounds = array<i64: 2304, 256>}, {transform_indices = @transform_2, window_bounds = array<i64: 1, 256>}, {transform_indices = @transform_3, window_bounds = array<i64: 1, 256>}, {transform_indices = @transform_4, window_bounds = array<i64: 2, 256>}]} {
    %c0 = arith.constant 0 : index
    %c0_0 = arith.constant 0 : index
    %0 = vector.load %arg2[%c0, %c0_0] : memref<2x2304xbf16, #tpu.memory_space<vmem>>, vector<2x2304xbf16>
    %c0_1 = arith.constant 0 : index
    %c0_2 = arith.constant 0 : index
    %1 = vector.load %arg3[%c0_1, %c0_2] : memref<2304x256xbf16, #tpu.memory_space<vmem>>, vector<2304x256xbf16>
    %cst = arith.constant dense<0.000000e+00> : vector<2x256xf32>
    %2 = tpu.matmul %0, %1, %cst {dimension_numbers = #tpu.dot_dimension_numbers<[1], [0], [0], [1], [0, 0, 1, 1], [], []>} : vector<2x2304xbf16>, vector<2304x256xbf16>, vector<2x256xf32> -> vector<2x256xf32>
    %c0_3 = arith.constant 0 : index
    %c0_4 = arith.constant 0 : index
    %3 = vector.load %arg4[%c0_3, %c0_4] : memref<1x256xf32, #tpu.memory_space<vmem>>, vector<1x256xf32>
    %4 = vector.broadcast %3 : vector<1x256xf32> to vector<2x256xf32>
    %5 = arith.mulf %2, %4 : vector<2x256xf32>
    %c0_5 = arith.constant 0 : index
    %c0_6 = arith.constant 0 : index
    %6 = vector.load %arg5[%c0_5, %c0_6] : memref<1x256xf32, #tpu.memory_space<vmem>>, vector<1x256xf32>
    %7 = vector.broadcast %6 : vector<1x256xf32> to vector<2x256xf32>
    %8 = arith.addf %5, %7 : vector<2x256xf32>
    %cst_7 = arith.constant 0.000000e+00 : f32
    %9 = vector.broadcast %cst_7 : f32 to vector<2x256xf32>
    %10 = arith.maximumf %8, %9 : vector<2x256xf32>
    %11 = arith.truncf %10 : vector<2x256xf32> to vector<2x256xbf16>
    %c0_8 = arith.constant 0 : index
    %c0_9 = arith.constant 0 : index
    %12 = vector.load %arg6[%c0_8, %c0_9] : memref<2x256xbf16, #tpu.memory_space<vmem>>, vector<2x256xbf16>
    tpu.vector_store %arg6[%c0_8, %c0_9], %11 {strides = array<i32>} : memref<2x256xbf16, #tpu.memory_space<vmem>>, vector<2x256xbf16>,
    return
  }
  func.func @transform_0(%arg0: i32, %arg1: i32) -> (i32, i32) {
    %c0_i32 = arith.constant 0 : i32
    %c0_i32_0 = arith.constant 0 : i32
    return %arg0, %c0_i32 : i32, i32
  }
  func.func @transform_1(%arg0: i32, %arg1: i32) -> (i32, i32) {
    %c0_i32 = arith.constant 0 : i32
    %c0_i32_0 = arith.constant 0 : i32
    return %c0_i32, %arg1 : i32, i32
  }
  func.func @transform_2(%arg0: i32, %arg1: i32) -> (i32, i32) {
    %c0_i32 = arith.constant 0 : i32
    %c0_i32_0 = arith.constant 0 : i32
    return %c0_i32, %arg1 : i32, i32
  }
  func.func @transform_3(%arg0: i32, %arg1: i32) -> (i32, i32) {
    %c0_i32 = arith.constant 0 : i32
    %c0_i32_0 = arith.constant 0 : i32
    return %c0_i32, %arg1 : i32, i32
  }
  func.func @transform_4(%arg0: i32, %arg1: i32) -> (i32, i32) {
    %c0_i32 = arith.constant 0 : i32
    return %arg0, %arg1 : i32, i32
  }
}

module attributes {stable_mosaic.version = 11 : i64} {
  func.func @_mm_kernel(%arg0: i32, %arg1: i32, %arg2: memref<2x512xbf16, #tpu.memory_space<vmem>>, %arg3: memref<512x256xbf16, #tpu.memory_space<vmem>>, %arg4: memref<1x256xf32, #tpu.memory_space<vmem>>, %arg5: memref<1x256xf32, #tpu.memory_space<vmem>>, %arg6: memref<2x256xbf16, #tpu.memory_space<vmem>>) attributes {dimension_semantics = [#tpu.dimension_semantics<parallel>, #tpu.dimension_semantics<parallel>], iteration_bounds = array<i64: 1, 4>, scalar_prefetch = 0 : i64, scratch_operands = 0 : i64, tpu.core_type = #tpu.core_type<tc>, window_params = [{transform_indices = @transform_0, window_bounds = array<i64: 2, 512>}, {transform_indices = @transform_1, window_bounds = array<i64: 512, 256>}, {transform_indices = @transform_2, window_bounds = array<i64: 1, 256>}, {transform_indices = @transform_3, window_bounds = array<i64: 1, 256>}, {transform_indices = @transform_4, window_bounds = array<i64: 2, 256>}]} {
    %c0 = arith.constant 0 : index
    %c0_0 = arith.constant 0 : index
    %0 = vector.load %arg2[%c0, %c0_0] : memref<2x512xbf16, #tpu.memory_space<vmem>>, vector<2x512xbf16>
    %c0_1 = arith.constant 0 : index
    %c0_2 = arith.constant 0 : index
    %1 = vector.load %arg3[%c0_1, %c0_2] : memref<512x256xbf16, #tpu.memory_space<vmem>>, vector<512x256xbf16>
    %cst = arith.constant dense<0.000000e+00> : vector<2x256xf32>
    %2 = tpu.matmul %0, %1, %cst {dimension_numbers = #tpu.dot_dimension_numbers<[1], [0], [0], [1], [0, 0, 1, 1], [], []>} : vector<2x512xbf16>, vector<512x256xbf16>, vector<2x256xf32> -> vector<2x256xf32>
    %c0_3 = arith.constant 0 : index
    %c0_4 = arith.constant 0 : index
    %3 = vector.load %arg4[%c0_3, %c0_4] : memref<1x256xf32, #tpu.memory_space<vmem>>, vector<1x256xf32>
    %4 = vector.broadcast %3 : vector<1x256xf32> to vector<2x256xf32>
    %5 = arith.mulf %2, %4 : vector<2x256xf32>
    %c0_5 = arith.constant 0 : index
    %c0_6 = arith.constant 0 : index
    %6 = vector.load %arg5[%c0_5, %c0_6] : memref<1x256xf32, #tpu.memory_space<vmem>>, vector<1x256xf32>
    %7 = vector.broadcast %6 : vector<1x256xf32> to vector<2x256xf32>
    %8 = arith.addf %5, %7 : vector<2x256xf32>
    %9 = arith.truncf %8 : vector<2x256xf32> to vector<2x256xbf16>
    %c0_7 = arith.constant 0 : index
    %c0_8 = arith.constant 0 : index
    %10 = vector.load %arg6[%c0_7, %c0_8] : memref<2x256xbf16, #tpu.memory_space<vmem>>, vector<2x256xbf16>
    tpu.vector_store %arg6[%c0_7, %c0_8], %9 {strides = array<i32>} : memref<2x256xbf16, #tpu.memory_space<vmem>>, vector<2x256xbf16>,
    return
  }
  func.func @transform_0(%arg0: i32, %arg1: i32) -> (i32, i32) {
    %c0_i32 = arith.constant 0 : i32
    %c0_i32_0 = arith.constant 0 : i32
    return %arg0, %c0_i32 : i32, i32
  }
  func.func @transform_1(%arg0: i32, %arg1: i32) -> (i32, i32) {
    %c0_i32 = arith.constant 0 : i32
    %c0_i32_0 = arith.constant 0 : i32
    return %c0_i32, %arg1 : i32, i32
  }
  func.func @transform_2(%arg0: i32, %arg1: i32) -> (i32, i32) {
    %c0_i32 = arith.constant 0 : i32
    %c0_i32_0 = arith.constant 0 : i32
    return %c0_i32, %arg1 : i32, i32
  }
  func.func @transform_3(%arg0: i32, %arg1: i32) -> (i32, i32) {
    %c0_i32 = arith.constant 0 : i32
    %c0_i32_0 = arith.constant 0 : i32
    return %c0_i32, %arg1 : i32, i32
  }
  func.func @transform_4(%arg0: i32, %arg1: i32) -> (i32, i32) {
    %c0_i32 = arith.constant 0 : i32
    return %arg0, %arg1 : i32, i32
  }
}

module attributes {stable_mosaic.version = 11 : i64} {
  func.func @_mm_res_kernel(%arg0: i32, %arg1: i32, %arg2: memref<2x256xbf16, #tpu.memory_space<vmem>>, %arg3: memref<256x256xbf16, #tpu.memory_space<vmem>>, %arg4: memref<1x256xf32, #tpu.memory_space<vmem>>, %arg5: memref<1x256xf32, #tpu.memory_space<vmem>>, %arg6: memref<2x256xbf16, #tpu.memory_space<vmem>>, %arg7: memref<2x256xbf16, #tpu.memory_space<vmem>>) attributes {dimension_semantics = [#tpu.dimension_semantics<parallel>, #tpu.dimension_semantics<parallel>], iteration_bounds = array<i64: 1, 4>, scalar_prefetch = 0 : i64, scratch_operands = 0 : i64, tpu.core_type = #tpu.core_type<tc>, window_params = [{transform_indices = @transform_0, window_bounds = array<i64: 2, 256>}, {transform_indices = @transform_1, window_bounds = array<i64: 256, 256>}, {transform_indices = @transform_2, window_bounds = array<i64: 1, 256>}, {transform_indices = @transform_3, window_bounds = array<i64: 1, 256>}, {transform_indices = @transform_4, window_bounds = array<i64: 2, 256>}, {transform_indices = @transform_5, window_bounds = array<i64: 2, 256>}]} {
    %c0 = arith.constant 0 : index
    %c0_0 = arith.constant 0 : index
    %0 = vector.load %arg2[%c0, %c0_0] : memref<2x256xbf16, #tpu.memory_space<vmem>>, vector<2x256xbf16>
    %c0_1 = arith.constant 0 : index
    %c0_2 = arith.constant 0 : index
    %1 = vector.load %arg3[%c0_1, %c0_2] : memref<256x256xbf16, #tpu.memory_space<vmem>>, vector<256x256xbf16>
    %cst = arith.constant dense<0.000000e+00> : vector<2x256xf32>
    %2 = tpu.matmul %0, %1, %cst {dimension_numbers = #tpu.dot_dimension_numbers<[1], [0], [0], [1], [0, 0, 1, 1], [], []>} : vector<2x256xbf16>, vector<256x256xbf16>, vector<2x256xf32> -> vector<2x256xf32>
    %c0_3 = arith.constant 0 : index
    %c0_4 = arith.constant 0 : index
    %3 = vector.load %arg4[%c0_3, %c0_4] : memref<1x256xf32, #tpu.memory_space<vmem>>, vector<1x256xf32>
    %4 = vector.broadcast %3 : vector<1x256xf32> to vector<2x256xf32>
    %5 = arith.mulf %2, %4 : vector<2x256xf32>
    %c0_5 = arith.constant 0 : index
    %c0_6 = arith.constant 0 : index
    %6 = vector.load %arg5[%c0_5, %c0_6] : memref<1x256xf32, #tpu.memory_space<vmem>>, vector<1x256xf32>
    %7 = vector.broadcast %6 : vector<1x256xf32> to vector<2x256xf32>
    %8 = arith.addf %5, %7 : vector<2x256xf32>
    %c0_7 = arith.constant 0 : index
    %c0_8 = arith.constant 0 : index
    %9 = vector.load %arg6[%c0_7, %c0_8] : memref<2x256xbf16, #tpu.memory_space<vmem>>, vector<2x256xbf16>
    %10 = arith.extf %9 : vector<2x256xbf16> to vector<2x256xf32>
    %11 = arith.addf %8, %10 : vector<2x256xf32>
    %cst_9 = arith.constant 0.000000e+00 : f32
    %12 = vector.broadcast %cst_9 : f32 to vector<2x256xf32>
    %13 = arith.maximumf %11, %12 : vector<2x256xf32>
    %14 = arith.truncf %13 : vector<2x256xf32> to vector<2x256xbf16>
    %c0_10 = arith.constant 0 : index
    %c0_11 = arith.constant 0 : index
    %15 = vector.load %arg7[%c0_10, %c0_11] : memref<2x256xbf16, #tpu.memory_space<vmem>>, vector<2x256xbf16>
    tpu.vector_store %arg7[%c0_10, %c0_11], %14 {strides = array<i32>} : memref<2x256xbf16, #tpu.memory_space<vmem>>, vector<2x256xbf16>,
    return
  }
  func.func @transform_0(%arg0: i32, %arg1: i32) -> (i32, i32) {
    %c0_i32 = arith.constant 0 : i32
    %c0_i32_0 = arith.constant 0 : i32
    return %arg0, %c0_i32 : i32, i32
  }
  func.func @transform_1(%arg0: i32, %arg1: i32) -> (i32, i32) {
    %c0_i32 = arith.constant 0 : i32
    %c0_i32_0 = arith.constant 0 : i32
    return %c0_i32, %arg1 : i32, i32
  }
  func.func @transform_2(%arg0: i32, %arg1: i32) -> (i32, i32) {
    %c0_i32 = arith.constant 0 : i32
    %c0_i32_0 = arith.constant 0 : i32
    return %c0_i32, %arg1 : i32, i32
  }
  func.func @transform_3(%arg0: i32, %arg1: i32) -> (i32, i32) {
    %c0_i32 = arith.constant 0 : i32
    %c0_i32_0 = arith.constant 0 : i32
    return %c0_i32, %arg1 : i32, i32
  }
  func.func @transform_4(%arg0: i32, %arg1: i32) -> (i32, i32) {
    %c0_i32 = arith.constant 0 : i32
    return %arg0, %arg1 : i32, i32
  }
  func.func @transform_5(%arg0: i32, %arg1: i32) -> (i32, i32) {
    %c0_i32 = arith.constant 0 : i32
    return %arg0, %arg1 : i32, i32
  }
}

module attributes {stable_mosaic.version = 11 : i64} {
  func.func @_mm_kernel(%arg0: i32, %arg1: i32, %arg2: memref<2x1024xbf16, #tpu.memory_space<vmem>>, %arg3: memref<1024x256xbf16, #tpu.memory_space<vmem>>, %arg4: memref<1x256xf32, #tpu.memory_space<vmem>>, %arg5: memref<1x256xf32, #tpu.memory_space<vmem>>, %arg6: memref<2x256xbf16, #tpu.memory_space<vmem>>) attributes {dimension_semantics = [#tpu.dimension_semantics<parallel>, #tpu.dimension_semantics<parallel>], iteration_bounds = array<i64: 1, 1>, scalar_prefetch = 0 : i64, scratch_operands = 0 : i64, tpu.core_type = #tpu.core_type<tc>, window_params = [{transform_indices = @transform_0, window_bounds = array<i64: 2, 1024>}, {transform_indices = @transform_1, window_bounds = array<i64: 1024, 256>}, {transform_indices = @transform_2, window_bounds = array<i64: 1, 256>}, {transform_indices = @transform_3, window_bounds = array<i64: 1, 256>}, {transform_indices = @transform_4, window_bounds = array<i64: 2, 256>}]} {
    %c0 = arith.constant 0 : index
    %c0_0 = arith.constant 0 : index
    %0 = vector.load %arg2[%c0, %c0_0] : memref<2x1024xbf16, #tpu.memory_space<vmem>>, vector<2x1024xbf16>
    %c0_1 = arith.constant 0 : index
    %c0_2 = arith.constant 0 : index
    %1 = vector.load %arg3[%c0_1, %c0_2] : memref<1024x256xbf16, #tpu.memory_space<vmem>>, vector<1024x256xbf16>
    %cst = arith.constant dense<0.000000e+00> : vector<2x256xf32>
    %2 = tpu.matmul %0, %1, %cst {dimension_numbers = #tpu.dot_dimension_numbers<[1], [0], [0], [1], [0, 0, 1, 1], [], []>} : vector<2x1024xbf16>, vector<1024x256xbf16>, vector<2x256xf32> -> vector<2x256xf32>
    %c0_3 = arith.constant 0 : index
    %c0_4 = arith.constant 0 : index
    %3 = vector.load %arg4[%c0_3, %c0_4] : memref<1x256xf32, #tpu.memory_space<vmem>>, vector<1x256xf32>
    %4 = vector.broadcast %3 : vector<1x256xf32> to vector<2x256xf32>
    %5 = arith.mulf %2, %4 : vector<2x256xf32>
    %c0_5 = arith.constant 0 : index
    %c0_6 = arith.constant 0 : index
    %6 = vector.load %arg5[%c0_5, %c0_6] : memref<1x256xf32, #tpu.memory_space<vmem>>, vector<1x256xf32>
    %7 = vector.broadcast %6 : vector<1x256xf32> to vector<2x256xf32>
    %8 = arith.addf %5, %7 : vector<2x256xf32>
    %cst_7 = arith.constant 0.000000e+00 : f32
    %9 = vector.broadcast %cst_7 : f32 to vector<2x256xf32>
    %10 = arith.maximumf %8, %9 : vector<2x256xf32>
    %11 = arith.truncf %10 : vector<2x256xf32> to vector<2x256xbf16>
    %c0_8 = arith.constant 0 : index
    %c0_9 = arith.constant 0 : index
    %12 = vector.load %arg6[%c0_8, %c0_9] : memref<2x256xbf16, #tpu.memory_space<vmem>>, vector<2x256xbf16>
    tpu.vector_store %arg6[%c0_8, %c0_9], %11 {strides = array<i32>} : memref<2x256xbf16, #tpu.memory_space<vmem>>, vector<2x256xbf16>,
    return
  }
  func.func @transform_0(%arg0: i32, %arg1: i32) -> (i32, i32) {
    %c0_i32 = arith.constant 0 : i32
    %c0_i32_0 = arith.constant 0 : i32
    return %arg0, %c0_i32 : i32, i32
  }
  func.func @transform_1(%arg0: i32, %arg1: i32) -> (i32, i32) {
    %c0_i32 = arith.constant 0 : i32
    %c0_i32_0 = arith.constant 0 : i32
    return %c0_i32, %arg1 : i32, i32
  }
  func.func @transform_2(%arg0: i32, %arg1: i32) -> (i32, i32) {
    %c0_i32 = arith.constant 0 : i32
    %c0_i32_0 = arith.constant 0 : i32
    return %c0_i32, %arg1 : i32, i32
  }
  func.func @transform_3(%arg0: i32, %arg1: i32) -> (i32, i32) {
    %c0_i32 = arith.constant 0 : i32
    %c0_i32_0 = arith.constant 0 : i32
    return %c0_i32, %arg1 : i32, i32
  }
  func.func @transform_4(%arg0: i32, %arg1: i32) -> (i32, i32) {
    %c0_i32 = arith.constant 0 : i32
    return %arg0, %arg1 : i32, i32
  }
}

</mosaic_0001>

<bundles_post_ra>
// kernel: _lambda_.48
= control target key start
LH: loop header
LB: loop body
LE: loop exit
PB: predicated region body
PF: predicated region fallthrough
CT: control target
= control target key end

     0   :  { %v614_v0 = vmov 0   ;;  %vm206_vm0 = vcmask 556032   ;;  %vm231_vm1 = vcmask 1041408   ;;  %vm458_vm2 = vcmask 519168   ;;  %s867_s1 = inlined_call_operand.vmem [shape: bf16[196,64], index: 1, kind: input, shape index: {}]   ;;  %s868_s0 = inlined_call_operand.vmem [shape: bf16[128,196], index: 0, kind: input, shape index: {}]   ;;  %s869_s2 = inlined_call_operand.vmem [shape: f32[1,64], index: 2, kind: input, shape index: {}]   ;;  %s870_s3 = inlined_call_operand.vmem [shape: f32[1,64], index: 3, kind: input, shape index: {}]   ;;  %s871_s4 = inlined_call_operand.vmem [shape: bf16[128,64], index: 4, kind: output, shape index: {}]  }
   0x1   :  { %235 = vmatprep.subr.bf16.mxu0 %v614_v0  ;;  %550 = vmatprep.subr.bf16.mxu1 %v614_v0  ;;  %v577_v1 = vld [vmem:[%s867_s1] sm:$0xff]   ;;  %v578_v2 = vld [vmem:[%s867_s1 + $0x8] sm:$0xff]   ;;  %v579_v3 = vld [vmem:[%s867_s1 + $0x10] sm:$0xff]  }
   0x2   :  { %236 = vmatpush1.bf16.msra.mxu0 %v577_v1  ;;  %563 = vmatpush1.bf16.msra.mxu1 %v577_v1  ;;  %v580_v4 = vld [vmem:[%s867_s1 + $0x18] sm:$0xff]   ;;  %v592_v5 = vld [vmem:[%s868_s0 + $0x4] ss:$8 sps:$4 sm:$0xff]   ;;  %v583_v9 = vld [vmem:[%s867_s1 + $0x30] sm:$0xff]  }
   0x3   :  { %237 = vmatprep.subr.bf16.mxu0 %v614_v0  ;;  %551 = vmatprep.subr.bf16.mxu1 %v614_v0  ;;  %v581_v6 = vld [vmem:[%s867_s1 + $0x20] sm:$0xff]   ;;  %v582_v8 = vld [vmem:[%s867_s1 + $0x28] sm:$0xff]   ;;  %v584_v10 = vld [vmem:[%s867_s1 + $0x38] sm:$0xff]  }
   0x4   :  { %v595_v7 = vld [vmem:[%s868_s0 + $0x44] ss:$8 sps:$4 sm:$0xff]   ;;  %508 = vmatprep.mubr.msk.bf16.mxu0 %vm206_vm0, %v592_v5  ;;  %v587_v13 = vld [vmem:[%s867_s1 + $0x50] sm:$0xff]   ;;  %v588_v14 = vld [vmem:[%s867_s1 + $0x58] sm:$0xff]  }
   0x5   :  { %512 = vmatprep.mubr.msk.bf16.mxu1 %vm206_vm0, %v595_v7  ;;  %v585_v11 = vld [vmem:[%s867_s1 + $0x40] sm:$0xff]   ;;  %v586_v12 = vld [vmem:[%s867_s1 + $0x48] sm:$0xff]   ;;  %v596_v19 = vld [vmem:[%s868_s0 + $0x14] ss:$8 sps:$4 sm:$0xff]  }
   0x6   :  { %238 = vmatpush1.bf16.msra.mxu0 %v578_v2  ;;  %564 = vmatpush1.bf16.msra.mxu1 %v578_v2  ;;  %v589_v15 = vld [vmem:[%s867_s1 + $0x60] ss:$0 sps:$4 sm:$0x33]   ;;  %v598_v20 = vld [vmem:[%s868_s0 + $0x54] ss:$8 sps:$4 sm:$0xff]  }
   0x7   :  { %239 = vmatprep.subr.bf16.mxu0 %v614_v0  ;;  %552 = vmatprep.subr.bf16.mxu1 %v614_v0  ;;  %v233_v16 = vsel %vm231_vm1, %v589_v15, 0  ;;  %v590_v17 = vld [vmem:[%s868_s0] ss:$8 sps:$4 sm:$0xff]   ;;  %v600_v21 = vld [vmem:[%s868_s0 + $0x10] ss:$8 sps:$4 sm:$0xff]  }
   0x8   :  { %v593_v18 = vld [vmem:[%s868_s0 + $0x40] ss:$8 sps:$4 sm:$0xff]   ;;  %v601_v22 = vld [vmem:[%s868_s0 + $0x50] ss:$8 sps:$4 sm:$0xff]   ;;  %v602_v23 = vld [vmem:[%s868_s0 + $0x24] ss:$8 sps:$4 sm:$0xff]  }
   0x9   :  { %v604_v24 = vld [vmem:[%s868_s0 + $0x64] ss:$8 sps:$4 sm:$0xff]   ;;  %v606_v25 = vld [vmem:[%s868_s0 + $0x20] ss:$8 sps:$4 sm:$0xff]   ;;  %v608_v27 = vld [vmem:[%s868_s0 + $0x34] ss:$8 sps:$4 sm:$0xff]  }
   0xa   :  { %240 = vmatpush1.bf16.msra.mxu0 %v579_v3  ;;  %565 = vmatpush1.bf16.msra.mxu1 %v579_v3  ;;  %v607_v26 = vld [vmem:[%s868_s0 + $0x60] ss:$8 sps:$4 sm:$0xff]   ;;  %v610_v28 = vld [vmem:[%s868_s0 + $0x74] ss:$8 sps:$4 sm:$0xff]   ;;  %v612_v29 = vld [vmem:[%s868_s0 + $0x30] ss:$8 sps:$4 sm:$0xff]  }
   0xb   :  { %241 = vmatprep.subr.bf16.mxu0 %v614_v0  ;;  %553 = vmatprep.subr.bf16.mxu1 %v614_v0  ;;  %v613_v30 = vld [vmem:[%s868_s0 + $0x70] ss:$8 sps:$4 sm:$0xff]   ;;  %v764_v31 = vld [vmem:[%s869_s2] ss:$0 sm:$0xff] }
   0xc   :  { %v769_v33 = vld [vmem:[%s870_s3] ss:$0 sm:$0xff] }
   0xe   :  { %242 = vmatpush1.bf16.msra.mxu0 %v580_v4  ;;  %566 = vmatpush1.bf16.msra.mxu1 %v580_v4 }
   0xf   :  { %243 = vmatprep.subr.bf16.mxu0 %v614_v0  ;;  %554 = vmatprep.subr.bf16.mxu1 %v614_v0 }
  0x12   :  { %244 = vmatpush1.bf16.msra.mxu0 %v581_v6  ;;  %567 = vmatpush1.bf16.msra.mxu1 %v581_v6 }
  0x13   :  { %245 = vmatprep.subr.bf16.mxu0 %v614_v0  ;;  %555 = vmatprep.subr.bf16.mxu1 %v614_v0 }
  0x16   :  { %246 = vmatpush1.bf16.msra.mxu0 %v582_v8  ;;  %568 = vmatpush1.bf16.msra.mxu1 %v582_v8 }
  0x17   :  { %247 = vmatprep.subr.bf16.mxu0 %v614_v0  ;;  %556 = vmatprep.subr.bf16.mxu1 %v614_v0 }
  0x1a   :  { %248 = vmatpush1.bf16.msra.mxu0 %v583_v9  ;;  %569 = vmatpush1.bf16.msra.mxu1 %v583_v9 }
  0x1b   :  { %249 = vmatprep.subr.bf16.mxu0 %v614_v0  ;;  %557 = vmatprep.subr.bf16.mxu1 %v614_v0 }
  0x1e   :  { %250 = vmatpush1.bf16.msra.mxu0 %v584_v10  ;;  %570 = vmatpush1.bf16.msra.mxu1 %v584_v10 }
  0x1f   :  { %251 = vmatprep.subr.bf16.mxu0 %v614_v0  ;;  %558 = vmatprep.subr.bf16.mxu1 %v614_v0 }
  0x22   :  { %252 = vmatpush1.bf16.msra.mxu0 %v585_v11  ;;  %571 = vmatpush1.bf16.msra.mxu1 %v585_v11 }
  0x23   :  { %253 = vmatprep.subr.bf16.mxu0 %v614_v0  ;;  %559 = vmatprep.subr.bf16.mxu1 %v614_v0 }
  0x26   :  { %254 = vmatpush1.bf16.msra.mxu0 %v586_v12  ;;  %572 = vmatpush1.bf16.msra.mxu1 %v586_v12 }
  0x27   :  { %255 = vmatprep.subr.bf16.mxu0 %v614_v0  ;;  %560 = vmatprep.subr.bf16.mxu1 %v614_v0 }
  0x2a   :  { %256 = vmatpush1.bf16.msra.mxu0 %v587_v13  ;;  %573 = vmatpush1.bf16.msra.mxu1 %v587_v13 }
  0x2b   :  { %257 = vmatprep.subr.bf16.mxu0 %v614_v0  ;;  %561 = vmatprep.subr.bf16.mxu1 %v614_v0 }
  0x2e   :  { %258 = vmatpush1.bf16.msra.mxu0 %v588_v14  ;;  %574 = vmatpush1.bf16.msra.mxu1 %v588_v14 }
  0x2f   :  { %259 = vmatprep.subr.bf16.mxu0 %v614_v0  ;;  %562 = vmatprep.subr.bf16.mxu1 %v614_v0 }
  0x32   :  { %260 = vmatpush1.bf16.msra.mxu0 %v233_v16  ;;  %575 = vmatpush1.bf16.msra.mxu1 %v233_v16 }
  0x35   :  { %268 = vmatmul.mubr.bf16.vlgmr.msra.gmra.mrb[0].mxu0 %v590_v17  ;;  %300 = vmatmul.mubr.bf16.vlgmr.msra.gmra.mrb[0].mxu1 %v593_v18 }
  0x36   :  { %509 = vmatprep.mubr.msk.bf16.mxu0 %vm206_vm0, %v596_v19  ;;  %513 = vmatprep.mubr.msk.bf16.mxu1 %vm206_vm0, %v598_v20 }
  0x3d   :  { %276 = vmatmul.mubr.bf16.gmra.mrb[4].mxu0 %v600_v21  ;;  %308 = vmatmul.mubr.bf16.gmra.mrb[4].mxu1 %v601_v22 }
  0x3e   :  { %510 = vmatprep.mubr.msk.bf16.mxu0 %vm206_vm0, %v602_v23  ;;  %514 = vmatprep.mubr.msk.bf16.mxu1 %vm206_vm0, %v604_v24 }
  0x45   :  { %284 = vmatmul.mubr.bf16.gmra.mrb[8].mxu0 %v606_v25  ;;  %316 = vmatmul.mubr.bf16.gmra.mrb[8].mxu1 %v607_v26 }
  0x46   :  { %511 = vmatprep.mubr.msk.bf16.mxu0 %vm206_vm0, %v608_v27  ;;  %515 = vmatprep.mubr.msk.bf16.mxu1 %vm206_vm0, %v610_v28 }
  0x4d   :  { %292 = vmatmul.mubr.bf16.gmra.mrb[12].mxu0 %v612_v29  ;;  %324 = vmatmul.mubr.bf16.gmra.mrb[12].mxu1 %v613_v30 }
 0x108   :  { %v269_v32 = vpop.f32.mrb[0].mxu0  ;;  %v301_v34 = vpop.f32.mrb[0].mxu1 }
 0x109   :  { %v339_v35 = vmul.f32 %v764_v31, %v269_v32  ;;  %v347_v36 = vmul.f32 %v764_v31, %v301_v34  ;;  %v271_v37 = vpop.f32.mrb[1].mxu0  ;;  %v303_v38 = vpop.f32.mrb[1].mxu1 }
 0x10a   :  { %v272_v39 = vpop.f32.mrb[2].mxu0  ;;  %v304_v40 = vpop.f32.mrb[2].mxu1 }
 0x10b   :  { %v362_v41 = vadd.f32 %v769_v33, %v339_v35  ;;  %v370_v42 = vadd.f32 %v769_v33, %v347_v36  ;;  %v340_v43 = vmul.f32 %v764_v31, %v272_v39  ;;  %v348_v44 = vmul.f32 %v764_v31, %v304_v40  ;;  %v274_v45 = vpop.f32.mrb[3].mxu0  ;;  %v306_v46 = vpop.f32.mrb[3].mxu1 }
 0x10d   :  { %v378_v47 = vmax.f32 %v362_v41, 0.0  ;;  %v386_v48 = vmax.f32 %v370_v42, 0.0  ;;  %v363_v49 = vadd.f32 %v769_v33, %v340_v43  ;;  %v371_v50 = vadd.f32 %v769_v33, %v348_v44 }
 0x10f   :  { %v534_v51 = vpack.c.bf16 %v378_v47, %v378_v47  ;;  %v542_v52 = vpack.c.bf16 %v386_v48, %v386_v48  ;;  %v379_v53 = vmax.f32 %v363_v49, 0.0  ;;  %v387_v54 = vmax.f32 %v371_v50, 0.0 }
 0x110   :  { %v277_v55 = vpop.f32.mrb[4].mxu0  ;;  %v309_v56 = vpop.f32.mrb[4].mxu1 }
 0x111   :  { %459 = vst.msk [vmem:[%s871_s4] sm:$0xf] %vm458_vm2, %v534_v51  ;;  %467 = vst.msk [vmem:[%s871_s4 + $0x20] sm:$0xf] %vm458_vm2, %v542_v52  ;;  %v535_v57 = vpack.c.bf16 %v379_v53, %v379_v53  ;;  %v543_v58 = vpack.c.bf16 %v387_v54, %v387_v54  ;;  %v341_v59 = vmul.f32 %v764_v31, %v277_v55  ;;  %v279_v61 = vpop.f32.mrb[5].mxu0  ;;  %v311_v62 = vpop.f32.mrb[5].mxu1 }
 0x112   :  { %v349_v60 = vmul.f32 %v764_v31, %v309_v56  ;;  %v280_v63 = vpop.f32.mrb[6].mxu0  ;;  %v312_v0 = vpop.f32.mrb[6].mxu1 }
 0x113   :  { %460 = vst.msk [vmem:[%s871_s4 + $0x4] sm:$0xf] %vm458_vm2, %v535_v57  ;;  %468 = vst.msk [vmem:[%s871_s4 + $0x24] sm:$0xf] %vm458_vm2, %v543_v58  ;;  %v364_v1 = vadd.f32 %v769_v33, %v341_v59  ;;  %v342_v3 = vmul.f32 %v764_v31, %v280_v63  ;;  %v350_v4 = vmul.f32 %v764_v31, %v312_v0  ;;  %v282_v5 = vpop.f32.mrb[7].mxu0  ;;  %v314_v6 = vpop.f32.mrb[7].mxu1 }
 0x114   :  { %v372_v2 = vadd.f32 %v769_v33, %v349_v60 }
 0x115   :  { %v380_v7 = vmax.f32 %v364_v1, 0.0  ;;  %v365_v9 = vadd.f32 %v769_v33, %v342_v3  ;;  %v373_v10 = vadd.f32 %v769_v33, %v350_v4 }
 0x116   :  { %v388_v8 = vmax.f32 %v372_v2, 0.0 }
 0x117   :  { %v536_v11 = vpack.c.bf16 %v380_v7, %v380_v7  ;;  %v381_v13 = vmax.f32 %v365_v9, 0.0  ;;  %v389_v14 = vmax.f32 %v373_v10, 0.0 }
 0x118   :  { %v544_v12 = vpack.c.bf16 %v388_v8, %v388_v8  ;;  %v285_v15 = vpop.f32.mrb[8].mxu0  ;;  %v317_v16 = vpop.f32.mrb[8].mxu1 }
 0x119   :  { %461 = vst.msk [vmem:[%s871_s4 + $0x8] sm:$0xf] %vm458_vm2, %v536_v11  ;;  %v537_v17 = vpack.c.bf16 %v381_v13, %v381_v13  ;;  %v545_v18 = vpack.c.bf16 %v389_v14, %v389_v14  ;;  %v343_v19 = vmul.f32 %v764_v31, %v285_v15  ;;  %v351_v20 = vmul.f32 %v764_v31, %v317_v16  ;;  %v287_v21 = vpop.f32.mrb[9].mxu0  ;;  %v319_v22 = vpop.f32.mrb[9].mxu1 }
 0x11a   :  { %469 = vst.msk [vmem:[%s871_s4 + $0x28] sm:$0xf] %vm458_vm2, %v544_v12  ;;  %v288_v23 = vpop.f32.mrb[10].mxu0  ;;  %v320_v24 = vpop.f32.mrb[10].mxu1 }
 0x11b   :  { %462 = vst.msk [vmem:[%s871_s4 + $0xc] sm:$0xf] %vm458_vm2, %v537_v17  ;;  %470 = vst.msk [vmem:[%s871_s4 + $0x2c] sm:$0xf] %vm458_vm2, %v545_v18  ;;  %v366_v25 = vadd.f32 %v769_v33, %v343_v19  ;;  %v374_v26 = vadd.f32 %v769_v33, %v351_v20  ;;  %v344_v27 = vmul.f32 %v764_v31, %v288_v23  ;;  %v290_v29 = vpop.f32.mrb[11].mxu0  ;;  %v322_v30 = vpop.f32.mrb[11].mxu1 }
 0x11c   :  { %v352_v28 = vmul.f32 %v764_v31, %v320_v24 }
 0x11d   :  { %v382_v32 = vmax.f32 %v366_v25, 0.0  ;;  %v390_v34 = vmax.f32 %v374_v26, 0.0  ;;  %v367_v35 = vadd.f32 %v769_v33, %v344_v27 }
 0x11e   :  { %v375_v36 = vadd.f32 %v769_v33, %v352_v28 }
 0x11f   :  { %v538_v37 = vpack.c.bf16 %v382_v32, %v382_v32  ;;  %v546_v38 = vpack.c.bf16 %v390_v34, %v390_v34  ;;  %v383_v39 = vmax.f32 %v367_v35, 0.0 }
 0x120   :  { %v391_v40 = vmax.f32 %v375_v36, 0.0  ;;  %v293_v41 = vpop.f32.mrb[12].mxu0  ;;  %v325_v42 = vpop.f32.mrb[12].mxu1 }
 0x121   :  { %463 = vst.msk [vmem:[%s871_s4 + $0x10] sm:$0xf] %vm458_vm2, %v538_v37  ;;  %471 = vst.msk [vmem:[%s871_s4 + $0x30] sm:$0xf] %vm458_vm2, %v546_v38  ;;  %v539_v43 = vpack.c.bf16 %v383_v39, %v383_v39  ;;  %v345_v45 = vmul.f32 %v764_v31, %v293_v41  ;;  %v353_v46 = vmul.f32 %v764_v31, %v325_v42  ;;  %v295_v47 = vpop.f32.mrb[13].mxu0  ;;  %v327_v48 = vpop.f32.mrb[13].mxu1 }
 0x122   :  { %v547_v44 = vpack.c.bf16 %v391_v40, %v391_v40  ;;  %v296_v49 = vpop.f32.mrb[14].mxu0  ;;  %v328_v50 = vpop.f32.mrb[14].mxu1 }
 0x123   :  { %464 = vst.msk [vmem:[%s871_s4 + $0x14] sm:$0xf] %vm458_vm2, %v539_v43  ;;  %v368_v51 = vadd.f32 %v769_v33, %v345_v45  ;;  %v376_v52 = vadd.f32 %v769_v33, %v353_v46  ;;  %v346_v53 = vmul.f32 %v764_v31, %v296_v49  ;;  %v354_v54 = vmul.f32 %v764_v31, %v328_v50  ;;  %v298_v55 = vpop.f32.mrb[15].mxu0  ;;  %v330_v56 = vpop.f32.mrb[15].mxu1 }
 0x124   :  { %472 = vst.msk [vmem:[%s871_s4 + $0x34] sm:$0xf] %vm458_vm2, %v547_v44 }
 0x125   :  { %v384_v57 = vmax.f32 %v368_v51, 0.0  ;;  %v392_v58 = vmax.f32 %v376_v52, 0.0  ;;  %v369_v59 = vadd.f32 %v769_v33, %v346_v53  ;;  %v377_v60 = vadd.f32 %v769_v33, %v354_v54 }
 0x127   :  { %v540_v61 = vpack.c.bf16 %v384_v57, %v384_v57  ;;  %v548_v62 = vpack.c.bf16 %v392_v58, %v392_v58  ;;  %v385_v63 = vmax.f32 %v369_v59, 0.0  ;;  %v393_v0 = vmax.f32 %v377_v60, 0.0 }
 0x129   :  { %465 = vst.msk [vmem:[%s871_s4 + $0x18] sm:$0xf] %vm458_vm2, %v540_v61  ;;  %473 = vst.msk [vmem:[%s871_s4 + $0x38] sm:$0xf] %vm458_vm2, %v548_v62  ;;  %v541_v31 = vpack.c.bf16 %v385_v63, %v385_v63  ;;  %v549_v1 = vpack.c.bf16 %v393_v0, %v393_v0 }
 0x12b   :  { %466 = vst.msk [vmem:[%s871_s4 + $0x1c] sm:$0xf] %vm458_vm2, %v541_v31  ;;  %474 = vst.msk [vmem:[%s871_s4 + $0x3c] sm:$0xf] %vm458_vm2, %v549_v1 }

// kernel: _lambda_.49
= control target key start
LH: loop header
LB: loop body
LE: loop exit
PB: predicated region body
PF: predicated region fallthrough
CT: control target
= control target key end

     0   :  { %vm64_vm0 = vcmask 523264   ;;  %vm162_vm1 = vcmask 519168   ;;  %s274_s1 = inlined_call_operand.vmem [shape: bf16[64,64], index: 1, kind: input, shape index: {}]   ;;  %s275_s0 = inlined_call_operand.vmem [shape: bf16[32,64], index: 0, kind: input, shape index: {}]   ;;  %s276_s2 = inlined_call_operand.vmem [shape: f32[1,64], index: 2, kind: input, shape index: {}]   ;;  %s277_s3 = inlined_call_operand.vmem [shape: f32[1,64], index: 3, kind: input, shape index: {}]   ;;  %s278_s4 = inlined_call_operand.vmem [shape: bf16[32,64], index: 4, kind: output, shape index: {}]  }
   0x1   :  { %v207_v0 = vld [vmem:[%s274_s1] sm:$0xff]   ;;  %v208_v1 = vld [vmem:[%s274_s1 + $0x8] sm:$0xff]   ;;  %v209_v2 = vld [vmem:[%s274_s1 + $0x10] sm:$0xff]  }
   0x2   :  { %195 = vmatprep.subr.bf16.mxu0 %v207_v0  ;;  %v211_v3 = vld [vmem:[%s275_s0] sm:$0xff]   ;;  %v210_v4 = vld [vmem:[%s274_s1 + $0x18] sm:$0xff]   ;;  %v212_v5 = vld [vmem:[%s275_s0 + $0x8] sm:$0xff]  }
   0x3   :  { %196 = vmatpush3.bf16.msra.mxu0 %v207_v0  ;;  %203 = vmatprep.mubr.msk.bf16.mxu0 %vm64_vm0, %v211_v3  ;;  %v179_v6 = vld [vmem:[%s276_s2] ss:$0 sm:$0xff] }
   0x4   :  { %197 = vmatprep.subr.bf16.mxu0 %v208_v1  ;;  %v180_v8 = vld [vmem:[%s277_s3] ss:$0 sm:$0xff] }
   0x7   :  { %198 = vmatpush3.bf16.msra.mxu0 %v208_v1 }
   0x8   :  { %199 = vmatprep.subr.bf16.mxu0 %v209_v2 }
   0xb   :  { %200 = vmatpush3.bf16.msra.mxu0 %v209_v2 }
   0xc   :  { %201 = vmatprep.subr.bf16.mxu0 %v210_v4 }
   0xf   :  { %202 = vmatpush3.bf16.msra.mxu0 %v210_v4 }
  0x12   :  { %204 = vmatmul.mubr.msk.bf16.vlgmr.msra.gmra.mrb[0].mxu0 %vm64_vm0, %v212_v5 }
  0xe5   :  { %v205_v7 = vpop.f32.mrb[0].mxu0 }
  0xe6   :  { %v129_v9 = vmul.f32 %v205_v7, %v179_v6  ;;  %v105_v10 = vpop.f32.mrb[1].mxu0 }
  0xe7   :  { %v127_v11 = vmul.f32 %v179_v6, %v105_v10  ;;  %v206_v12 = vpop.f32.mrb[2].mxu0 }
  0xe8   :  { %v140_v13 = vadd.f32 %v180_v8, %v129_v9  ;;  %v130_v14 = vmul.f32 %v206_v12, %v179_v6  ;;  %v108_v15 = vpop.f32.mrb[3].mxu0 }
  0xe9   :  { %v138_v16 = vadd.f32 %v180_v8, %v127_v11  ;;  %v128_v17 = vmul.f32 %v179_v6, %v108_v15 }
  0xea   :  { %v144_v18 = vmax.f32 %v140_v13, 0.0  ;;  %v141_v19 = vadd.f32 %v180_v8, %v130_v14 }
  0xeb   :  { %v142_v20 = vmax.f32 %v138_v16, 0.0  ;;  %v139_v21 = vadd.f32 %v180_v8, %v128_v17 }
  0xec   :  { %v187_v22 = vpack.c.bf16 %v144_v18, %v144_v18  ;;  %v145_v23 = vmax.f32 %v141_v19, 0.0 }
  0xed   :  { %v185_v24 = vpack.c.bf16 %v142_v20, %v142_v20  ;;  %v143_v25 = vmax.f32 %v139_v21, 0.0 }
  0xee   :  { %165 = vst.msk [vmem:[%s278_s4 + $0x8] sm:$0xf] %vm162_vm1, %v187_v22  ;;  %v188_v26 = vpack.c.bf16 %v145_v23, %v145_v23 }
  0xef   :  { %163 = vst.msk [vmem:[%s278_s4] sm:$0xf] %vm162_vm1, %v185_v24  ;;  %v186_v27 = vpack.c.bf16 %v143_v25, %v143_v25 }
  0xf0   :  { %166 = vst.msk [vmem:[%s278_s4 + $0xc] sm:$0xf] %vm162_vm1, %v188_v26 }
  0xf1   :  { %164 = vst.msk [vmem:[%s278_s4 + $0x4] sm:$0xf] %vm162_vm1, %v186_v27 }

// kernel: _lambda_.50
= control target key start
LH: loop header
LB: loop body
LE: loop exit
PB: predicated region body
PF: predicated region fallthrough
CT: control target
= control target key end

     0   :  { %vm368_vm0 = vcmask 523264   ;;  %vm564_vm1 = vcmask 519168   ;;  %s936_s1 = inlined_call_operand.vmem [shape: bf16[576,64], index: 1, kind: input, shape index: {}]   ;;  %s937_s0 = inlined_call_operand.vmem [shape: bf16[32,576], index: 0, kind: input, shape index: {}]   ;;  %s938_s2 = inlined_call_operand.vmem [shape: f32[1,64], index: 2, kind: input, shape index: {}]   ;;  %s939_s3 = inlined_call_operand.vmem [shape: f32[1,64], index: 3, kind: input, shape index: {}]   ;;  %s940_s4 = inlined_call_operand.vmem [shape: bf16[32,64], index: 4, kind: output, shape index: {}]  }
   0x1   :  { %v705_v0 = vld [vmem:[%s936_s1 + $0x40] sm:$0xff]   ;;  %v709_v4 = vld [vmem:[%s936_s1 + $0x48] sm:$0xff]   ;;  %v713_v8 = vld [vmem:[%s936_s1 + $0x50] sm:$0xff]  }
   0x2   :  { %v706_v1 = vld [vmem:[%s936_s1 + $0xc0] sm:$0xff]   ;;  %631 = vmatprep.subr.bf16.mxu0 %v705_v0  ;;  %v710_v5 = vld [vmem:[%s936_s1 + $0xc8] sm:$0xff]   ;;  %v714_v9 = vld [vmem:[%s936_s1 + $0xd0] sm:$0xff]  }
   0x3   :  { %v707_v2 = vld [vmem:[%s936_s1] sm:$0xff]   ;;  %659 = vmatprep.subr.bf16.mxu1 %v706_v1  ;;  %v711_v6 = vld [vmem:[%s936_s1 + $0x8] sm:$0xff]   ;;  %v715_v10 = vld [vmem:[%s936_s1 + $0x10] sm:$0xff]  }
   0x4   :  { %v708_v3 = vld [vmem:[%s936_s1 + $0x80] sm:$0xff]   ;;  %632 = vmatpush3.bf16.msra.mxu0 %v707_v2  ;;  %v712_v7 = vld [vmem:[%s936_s1 + $0x88] sm:$0xff]   ;;  %v716_v11 = vld [vmem:[%s936_s1 + $0x90] sm:$0xff]  }
   0x5   :  { %660 = vmatpush3.bf16.msra.mxu1 %v708_v3  ;;  %633 = vmatprep.subr.bf16.mxu0 %v709_v4  ;;  %v717_v12 = vld [vmem:[%s936_s1 + $0x58] sm:$0xff]   ;;  %v721_v16 = vld [vmem:[%s936_s1 + $0x60] sm:$0xff]   ;;  %v725_v20 = vld [vmem:[%s936_s1 + $0x68] sm:$0xff]  }
   0x6   :  { %661 = vmatprep.subr.bf16.mxu1 %v710_v5  ;;  %v718_v13 = vld [vmem:[%s936_s1 + $0xd8] sm:$0xff]   ;;  %v722_v17 = vld [vmem:[%s936_s1 + $0xe0] sm:$0xff]   ;;  %v726_v21 = vld [vmem:[%s936_s1 + $0xe8] sm:$0xff]  }
   0x7   :  { %v719_v14 = vld [vmem:[%s936_s1 + $0x18] sm:$0xff]   ;;  %v723_v18 = vld [vmem:[%s936_s1 + $0x20] sm:$0xff]   ;;  %v727_v22 = vld [vmem:[%s936_s1 + $0x28] sm:$0xff]  }
   0x8   :  { %634 = vmatpush3.bf16.msra.mxu0 %v711_v6  ;;  %v720_v15 = vld [vmem:[%s936_s1 + $0x98] sm:$0xff]   ;;  %v724_v19 = vld [vmem:[%s936_s1 + $0xa0] sm:$0xff]   ;;  %v728_v23 = vld [vmem:[%s936_s1 + $0xa8] sm:$0xff]  }
   0x9   :  { %662 = vmatpush3.bf16.msra.mxu1 %v712_v7  ;;  %635 = vmatprep.subr.bf16.mxu0 %v713_v8  ;;  %v729_v24 = vld [vmem:[%s936_s1 + $0x70] sm:$0xff]   ;;  %v733_v28 = vld [vmem:[%s936_s1 + $0x78] sm:$0xff]   ;;  %v742_v35 = vld [vmem:[%s937_s0 + $0xc] ss:$20 sps:$4 sm:$0xff]  }
   0xa   :  { %663 = vmatprep.subr.bf16.mxu1 %v714_v9  ;;  %v730_v25 = vld [vmem:[%s936_s1 + $0xf0] sm:$0xff]   ;;  %v734_v29 = vld [vmem:[%s936_s1 + $0xf8] sm:$0xff]   ;;  %v743_v36 = vld [vmem:[%s936_s1 + $0x100] sm:$0xff]   ;;  %456 = vmatprep.mubr.bf16.mxu1 %v742_v35 }
   0xb   :  { %v731_v26 = vld [vmem:[%s936_s1 + $0x30] sm:$0xff]   ;;  %v735_v30 = vld [vmem:[%s936_s1 + $0x38] sm:$0xff]   ;;  %v744_v37 = vld [vmem:[%s936_s1 + $0x108] sm:$0xff]  }
   0xc   :  { %636 = vmatpush3.bf16.msra.mxu0 %v715_v10  ;;  %v732_v27 = vld [vmem:[%s936_s1 + $0xb0] sm:$0xff]   ;;  %v736_v31 = vld [vmem:[%s936_s1 + $0xb8] sm:$0xff]   ;;  %v745_v38 = vld [vmem:[%s937_s0 + $0x2c] ss:$20 sps:$4 sm:$0xff]  }
   0xd   :  { %664 = vmatpush3.bf16.msra.mxu1 %v716_v11  ;;  %637 = vmatprep.subr.bf16.mxu0 %v717_v12  ;;  %v737_v32 = vld [vmem:[%s937_s0] ss:$20 sps:$4 sm:$0xff]   ;;  %v739_v33 = vld [vmem:[%s937_s0 + $0x4] ss:$20 sps:$4 sm:$0xff]   ;;  %v740_v34 = vld [vmem:[%s937_s0 + $0x8] ss:$20 sps:$4 sm:$0xff]  }
   0xe   :  { %665 = vmatprep.subr.bf16.mxu1 %v718_v13  ;;  %407 = vmatprep.mubr.bf16.mxu0 %v739_v33  ;;  %v747_v39 = vld [vmem:[%s937_s0 + $0x34] ss:$20 sps:$4 sm:$0xff]   ;;  %v750_v42 = vld [vmem:[%s937_s0 + $0x30] ss:$20 sps:$4 sm:$0xff]   ;;  %v752_v44 = vld [vmem:[%s936_s1 + $0x118] sm:$0xff]  }
   0xf   :  { %v749_v40 = vld [vmem:[%s937_s0 + $0x28] ss:$20 sps:$4 sm:$0xff]   ;;  %v751_v41 = vld [vmem:[%s936_s1 + $0x110] sm:$0xff]   ;;  %v754_v45 = vld [vmem:[%s937_s0 + $0x38] ss:$20 sps:$4 sm:$0xff]  }
  0x10   :  { %638 = vmatpush3.bf16.msra.mxu0 %v719_v14  ;;  %v753_v43 = vld [vmem:[%s937_s0 + $0x10] ss:$20 sps:$4 sm:$0xff]   ;;  %v621_v11 = vld [vmem:[%s938_s2] ss:$0 sm:$0xff] }
  0x11   :  { %666 = vmatpush3.bf16.msra.mxu1 %v720_v15  ;;  %639 = vmatprep.subr.bf16.mxu0 %v721_v16  ;;  %v622_v14 = vld [vmem:[%s939_s3] ss:$0 sm:$0xff] }
  0x12   :  { %667 = vmatprep.subr.bf16.mxu1 %v722_v17 }
  0x14   :  { %640 = vmatpush3.bf16.msra.mxu0 %v723_v18 }
  0x15   :  { %668 = vmatpush3.bf16.msra.mxu1 %v724_v19  ;;  %641 = vmatprep.subr.bf16.mxu0 %v725_v20 }
  0x16   :  { %669 = vmatprep.subr.bf16.mxu1 %v726_v21 }
  0x18   :  { %642 = vmatpush3.bf16.msra.mxu0 %v727_v22 }
  0x19   :  { %670 = vmatpush3.bf16.msra.mxu1 %v728_v23  ;;  %643 = vmatprep.subr.bf16.mxu0 %v729_v24 }
  0x1a   :  { %671 = vmatprep.subr.bf16.mxu1 %v730_v25 }
  0x1c   :  { %644 = vmatpush3.bf16.msra.mxu0 %v731_v26 }
  0x1d   :  { %672 = vmatpush3.bf16.msra.mxu1 %v732_v27  ;;  %645 = vmatprep.subr.bf16.mxu0 %v733_v28 }
  0x1e   :  { %673 = vmatprep.subr.bf16.mxu1 %v734_v29 }
  0x20   :  { %646 = vmatpush3.bf16.msra.mxu0 %v735_v30 }
  0x21   :  { %674 = vmatpush3.bf16.msra.mxu1 %v736_v31  ;;  %693 = vmatprep.subr.bf16.mxu0 %v743_v36 }
  0x23   :  { %408 = vmatmul.mubr.bf16.vlgmr.msra.gmra.mrb[0].mxu0 %v737_v32 }
  0x24   :  { %457 = vmatmul.mubr.bf16.vlgmr.msra.gmra.mrb[0].mxu1 %v740_v34  ;;  %694 = vmatpush3.bf16.msra.mxu0 %v743_v36 }
  0x25   :  { %695 = vmatprep.subr.bf16.mxu0 %v744_v37  ;;  %415 = vmatprep.mubr.bf16.mxu0 %v745_v38 }
  0x26   :  { %464 = vmatprep.mubr.bf16.mxu1 %v747_v39 }
  0x28   :  { %696 = vmatpush3.bf16.msra.mxu0 %v744_v37 }
  0x29   :  { %697 = vmatprep.subr.bf16.mxu0 %v751_v41 }
  0x2b   :  { %416 = vmatmul.mubr.bf16.gmra.mrb[4].mxu0 %v749_v40 }
  0x2c   :  { %465 = vmatmul.mubr.bf16.gmra.mrb[4].mxu1 %v750_v42  ;;  %701 = vmatprep.mubr.msk.bf16.mxu0 %vm368_vm0, %v753_v43 }
  0x2d   :  { %698 = vmatpush3.bf16.msra.mxu0 %v751_v41 }
  0x2e   :  { %699 = vmatprep.subr.bf16.mxu0 %v752_v44 }
  0x31   :  { %700 = vmatpush3.bf16.msra.mxu0 %v752_v44 }
  0x34   :  { %702 = vmatmul.mubr.msk.bf16.vlgmr.msra.gmra.mrb[8].mxu0 %vm368_vm0, %v754_v45 }
  0xf6   :  { %v647_v46 = vpop.f32.mrb[0].mxu0 }
  0xf7   :  { %v675_v47 = vpop.f32.mrb[0].mxu1  ;;  %v648_v48 = vpop.f32.mrb[1].mxu0 }
  0xf8   :  { %v649_v49 = vadd.f32 %v648_v48, %v647_v46  ;;  %v676_v50 = vpop.f32.mrb[1].mxu1  ;;  %v650_v51 = vpop.f32.mrb[2].mxu0 }
  0xf9   :  { %v677_v52 = vadd.f32 %v676_v50, %v675_v47  ;;  %v678_v53 = vpop.f32.mrb[2].mxu1  ;;  %v651_v54 = vpop.f32.mrb[3].mxu0 }
  0xfa   :  { %v652_v55 = vadd.f32 %v651_v54, %v650_v51  ;;  %v679_v56 = vpop.f32.mrb[3].mxu1 }
  0xfb   :  { %v680_v57 = vadd.f32 %v679_v56, %v678_v53  ;;  %v459_v58 = vadd.f32 %v677_v52, %v649_v49 }
  0xfd   :  { %v462_v59 = vadd.f32 %v680_v57, %v652_v55 }
  0xfe   :  { %v653_v60 = vpop.f32.mrb[4].mxu0 }
  0xff   :  { %v681_v61 = vpop.f32.mrb[4].mxu1  ;;  %v654_v62 = vpop.f32.mrb[5].mxu0 }
 0x100   :  { %v655_v63 = vadd.f32 %v654_v62, %v653_v60  ;;  %v682_v0 = vpop.f32.mrb[5].mxu1  ;;  %v656_v1 = vpop.f32.mrb[6].mxu0 }
 0x101   :  { %v683_v2 = vadd.f32 %v682_v0, %v681_v61  ;;  %v684_v3 = vpop.f32.mrb[6].mxu1  ;;  %v657_v4 = vpop.f32.mrb[7].mxu0 }
 0x102   :  { %v658_v5 = vadd.f32 %v657_v4, %v656_v1  ;;  %v685_v6 = vpop.f32.mrb[7].mxu1 }
 0x103   :  { %v686_v7 = vadd.f32 %v685_v6, %v684_v3  ;;  %v467_v8 = vadd.f32 %v683_v2, %v655_v63 }
 0x105   :  { %v470_v9 = vadd.f32 %v686_v7, %v658_v5 }
 0x107   :  { %v703_v10 = vpop.f32.mrb[8].mxu0 }
 0x108   :  { %v516_v12 = vadd.f32 %v703_v10, %v467_v8  ;;  %v507_v13 = vpop.f32.mrb[9].mxu0 }
 0x109   :  { %v508_v15 = vadd.f32 %v507_v13, %v459_v58  ;;  %v704_v16 = vpop.f32.mrb[10].mxu0 }
 0x10a   :  { %v531_v17 = vmul.f32 %v621_v11, %v516_v12  ;;  %v519_v18 = vadd.f32 %v704_v16, %v470_v9  ;;  %v510_v19 = vpop.f32.mrb[11].mxu0 }
 0x10b   :  { %v529_v20 = vmul.f32 %v621_v11, %v508_v15  ;;  %v511_v21 = vadd.f32 %v510_v19, %v462_v59 }
 0x10c   :  { %v542_v22 = vadd.f32 %v622_v14, %v531_v17  ;;  %v532_v23 = vmul.f32 %v621_v11, %v519_v18 }
 0x10d   :  { %v540_v24 = vadd.f32 %v622_v14, %v529_v20  ;;  %v530_v25 = vmul.f32 %v621_v11, %v511_v21 }
 0x10e   :  { %v546_v26 = vmax.f32 %v542_v22, 0.0  ;;  %v543_v27 = vadd.f32 %v622_v14, %v532_v23 }
 0x10f   :  { %v544_v28 = vmax.f32 %v540_v24, 0.0  ;;  %v541_v29 = vadd.f32 %v622_v14, %v530_v25 }
 0x110   :  { %v629_v30 = vpack.c.bf16 %v546_v26, %v546_v26  ;;  %v547_v31 = vmax.f32 %v543_v27, 0.0 }
 0x111   :  { %v627_v32 = vpack.c.bf16 %v544_v28, %v544_v28  ;;  %v545_v33 = vmax.f32 %v541_v29, 0.0 }
 0x112   :  { %567 = vst.msk [vmem:[%s940_s4 + $0x8] sm:$0xf] %vm564_vm1, %v629_v30  ;;  %v630_v34 = vpack.c.bf16 %v547_v31, %v547_v31 }
 0x113   :  { %565 = vst.msk [vmem:[%s940_s4] sm:$0xf] %vm564_vm1, %v627_v32  ;;  %v628_v35 = vpack.c.bf16 %v545_v33, %v545_v33 }
 0x114   :  { %568 = vst.msk [vmem:[%s940_s4 + $0xc] sm:$0xf] %vm564_vm1, %v630_v34 }
 0x115   :  { %566 = vst.msk [vmem:[%s940_s4 + $0x4] sm:$0xf] %vm564_vm1, %v628_v35 }

// kernel: _lambda_.51
= control target key start
LH: loop header
LB: loop body
LE: loop exit
PB: predicated region body
PF: predicated region fallthrough
CT: control target
= control target key end

     0   :  { %v255_v1 = vmov 0   ;;  %vm80_vm0 = vcmask 523264   ;;  %v142_v11 = vlaneseq  ;;  %s329_s1 = inlined_call_operand.vmem [shape: bf16[64,256], index: 1, kind: input, shape index: {}]   ;;  %s330_s0 = inlined_call_operand.vmem [shape: bf16[32,64], index: 0, kind: input, shape index: {}]   ;;  %s331_s2 = inlined_call_operand.vmem [shape: f32[1,256], index: 2, kind: input, shape index: {}]   ;;  %s332_s3 = inlined_call_operand.vmem [shape: f32[1,256], index: 3, kind: input, shape index: {}]   ;;  %s333_s4 = inlined_call_operand.vmem [shape: bf16[32,256], index: 4, kind: output, shape index: {}]  }
   0x1   :  { %v241_v0 = vld [vmem:[%s329_s1 + $0x4] ss:$8 sps:$4 sm:$0xff]   ;;  %119 = vmatprep.mubr.bf16.mxu0 %v255_v1  ;;  %129 = vmatprep.mubr.bf16.mxu1 %v255_v1  ;;  %v243_v2 = vld [vmem:[%s329_s1] ss:$8 sps:$4 sm:$0xff]   ;;  %v244_v3 = vld [vmem:[%s329_s1 + $0x14] ss:$8 sps:$4 sm:$0xff]  }
   0x2   :  { %87 = vmatprep.subr.bf16.mxu0 %v241_v0  ;;  %232 = vmatprep.subr.bf16.mxu1 %v241_v0  ;;  %v246_v4 = vld [vmem:[%s329_s1 + $0x10] ss:$8 sps:$4 sm:$0xff]   ;;  %v247_v5 = vld [vmem:[%s329_s1 + $0x24] ss:$8 sps:$4 sm:$0xff]   ;;  %v249_v6 = vld [vmem:[%s329_s1 + $0x20] ss:$8 sps:$4 sm:$0xff]  }
   0x3   :  { %88 = vmatpush1.bf16.msra.mxu0 %v243_v2  ;;  %236 = vmatpush1.bf16.msra.mxu1 %v243_v2  ;;  %v250_v7 = vld [vmem:[%s329_s1 + $0x34] ss:$8 sps:$4 sm:$0xff]   ;;  %v252_v8 = vld [vmem:[%s329_s1 + $0x30] ss:$8 sps:$4 sm:$0xff]   ;;  %v253_v9 = vld [vmem:[%s330_s0] sm:$0xff]   ;;  %v143_v12 = vshrl.u32 %v142_v11, 7 }
   0x4   :  { %89 = vmatprep.subr.bf16.mxu0 %v244_v3  ;;  %233 = vmatprep.subr.bf16.mxu1 %v244_v3  ;;  %v254_v10 = vld [vmem:[%s330_s0 + $0x8] sm:$0xff]   ;;  %v140_v14 = vld [vmem:[%s331_s2] sm:$0x3] }
   0x5   :  { %v144_v13 = vsub.s32 0, %v143_v12  ;;  %v148_v15 = vsub.s32 1, %v143_v12  ;;  %v160_v16 = vld [vmem:[%s332_s3] sm:$0x3] }
   0x7   :  { %90 = vmatpush1.bf16.msra.mxu0 %v246_v4  ;;  %237 = vmatpush1.bf16.msra.mxu1 %v246_v4  ;;  %v145_v17 = vrot.slane %v140_v14, %v144_v13  ;;  %v149_v18 = vrot.slane %v140_v14, %v148_v15  ;;  %v165_v19 = vrot.slane %v160_v16, %v144_v13 }
   0x8   :  { %91 = vmatprep.subr.bf16.mxu0 %v247_v5  ;;  %234 = vmatprep.subr.bf16.mxu1 %v247_v5  ;;  %v169_v22 = vrot.slane %v160_v16, %v148_v15 }
   0xb   :  { %92 = vmatpush1.bf16.msra.mxu0 %v249_v6  ;;  %238 = vmatpush1.bf16.msra.mxu1 %v249_v6 }
   0xc   :  { %93 = vmatprep.subr.bf16.mxu0 %v250_v7  ;;  %235 = vmatprep.subr.bf16.mxu1 %v250_v7 }
   0xf   :  { %94 = vmatpush1.bf16.msra.mxu0 %v252_v8  ;;  %239 = vmatpush1.bf16.msra.mxu1 %v252_v8 }
  0x12   :  { %222 = vmatmul.mubr.msk.bf16.vlgmr.msra.gmra.mrb[0].mxu0 %vm80_vm0, %v253_v9  ;;  %223 = vmatmul.mubr.msk.bf16.vlgmr.msra.gmra.mrb[0].mxu1 %vm80_vm0, %v254_v10 }
  0xe5   :  { %v121_v20 = vpop.f32.mrb[0].mxu0  ;;  %v131_v21 = vpop.f32.mrb[0].mxu1 }
  0xe6   :  { %v152_v23 = vmul.f32 %v145_v17, %v121_v20  ;;  %v156_v24 = vmul.f32 %v145_v17, %v131_v21  ;;  %v123_v25 = vpop.f32.mrb[1].mxu0  ;;  %v133_v26 = vpop.f32.mrb[1].mxu1 }
  0xe7   :  { %v153_v27 = vmul.f32 %v149_v18, %v123_v25  ;;  %v157_v28 = vmul.f32 %v149_v18, %v133_v26  ;;  %v125_v29 = vpop.f32.mrb[2].mxu0  ;;  %v135_v30 = vpop.f32.mrb[2].mxu1 }
  0xe8   :  { %v172_v31 = vadd.f32 %v165_v19, %v152_v23  ;;  %v176_v32 = vadd.f32 %v165_v19, %v156_v24  ;;  %v154_v33 = vmul.f32 %v145_v17, %v125_v29  ;;  %v158_v34 = vmul.f32 %v145_v17, %v135_v30  ;;  %v127_v35 = vpop.f32.mrb[3].mxu0  ;;  %v137_v36 = vpop.f32.mrb[3].mxu1 }
  0xe9   :  { %v173_v37 = vadd.f32 %v169_v22, %v153_v27  ;;  %v177_v38 = vadd.f32 %v169_v22, %v157_v28  ;;  %v155_v39 = vmul.f32 %v149_v18, %v127_v35  ;;  %v159_v40 = vmul.f32 %v149_v18, %v137_v36 }
  0xea   :  { %v174_v41 = vadd.f32 %v165_v19, %v154_v33  ;;  %v178_v42 = vadd.f32 %v165_v19, %v158_v34 }
  0xeb   :  { %v228_v43 = vpack.c.bf16 %v173_v37, %v172_v31  ;;  %v230_v44 = vpack.c.bf16 %v177_v38, %v176_v32  ;;  %v175_v45 = vadd.f32 %v169_v22, %v155_v39  ;;  %v179_v46 = vadd.f32 %v169_v22, %v159_v40 }
  0xed   :  { %204 = vst [vmem:[%s333_s4] sm:$0xff] %v228_v43  ;;  %206 = vst [vmem:[%s333_s4 + $0x10] sm:$0xff] %v230_v44  ;;  %v229_v47 = vpack.c.bf16 %v175_v45, %v174_v41  ;;  %v231_v48 = vpack.c.bf16 %v179_v46, %v178_v42 }
  0xef   :  { %205 = vst [vmem:[%s333_s4 + $0x8] sm:$0xff] %v229_v47  ;;  %207 = vst [vmem:[%s333_s4 + $0x18] sm:$0xff] %v231_v48 }

// kernel: _lambda_.52
= control target key start
LH: loop header
LB: loop body
LE: loop exit
PB: predicated region body
PF: predicated region fallthrough
CT: control target
= control target key end

     0   :  { %v286_v1 = vmov 0   ;;  %vm83_vm0 = vcmask 523264   ;;  %v145_v11 = vlaneseq  ;;  %s377_s1 = inlined_call_operand.vmem [shape: bf16[64,256], index: 1, kind: input, shape index: {}]   ;;  %s378_s0 = inlined_call_operand.vmem [shape: bf16[32,64], index: 0, kind: input, shape index: {}]   ;;  %s379_s2 = inlined_call_operand.vmem [shape: f32[1,256], index: 2, kind: input, shape index: {}]   ;;  %s380_s3 = inlined_call_operand.vmem [shape: f32[1,256], index: 3, kind: input, shape index: {}]   ;;  %s381_s4 = inlined_call_operand.vmem [shape: bf16[32,256], index: 4, kind: input, shape index: {}]   ;;  %s382_s5 = inlined_call_operand.vmem [shape: bf16[32,256], index: 5, kind: output, shape index: {}]  }
   0x1   :  { %v272_v0 = vld [vmem:[%s377_s1 + $0x4] ss:$8 sps:$4 sm:$0xff]   ;;  %122 = vmatprep.mubr.bf16.mxu0 %v286_v1  ;;  %132 = vmatprep.mubr.bf16.mxu1 %v286_v1  ;;  %v274_v2 = vld [vmem:[%s377_s1] ss:$8 sps:$4 sm:$0xff]   ;;  %v275_v3 = vld [vmem:[%s377_s1 + $0x14] ss:$8 sps:$4 sm:$0xff]  }
   0x2   :  { %90 = vmatprep.subr.bf16.mxu0 %v272_v0  ;;  %263 = vmatprep.subr.bf16.mxu1 %v272_v0  ;;  %v277_v4 = vld [vmem:[%s377_s1 + $0x10] ss:$8 sps:$4 sm:$0xff]   ;;  %v278_v5 = vld [vmem:[%s377_s1 + $0x24] ss:$8 sps:$4 sm:$0xff]   ;;  %v280_v6 = vld [vmem:[%s377_s1 + $0x20] ss:$8 sps:$4 sm:$0xff]  }
   0x3   :  { %91 = vmatpush1.bf16.msra.mxu0 %v274_v2  ;;  %267 = vmatpush1.bf16.msra.mxu1 %v274_v2  ;;  %v281_v7 = vld [vmem:[%s377_s1 + $0x34] ss:$8 sps:$4 sm:$0xff]   ;;  %v283_v8 = vld [vmem:[%s377_s1 + $0x30] ss:$8 sps:$4 sm:$0xff]   ;;  %v284_v9 = vld [vmem:[%s378_s0] sm:$0xff]   ;;  %v146_v12 = vshrl.u32 %v145_v11, 7 }
   0x4   :  { %92 = vmatprep.subr.bf16.mxu0 %v275_v3  ;;  %264 = vmatprep.subr.bf16.mxu1 %v275_v3  ;;  %v285_v10 = vld [vmem:[%s378_s0 + $0x8] sm:$0xff]   ;;  %v143_v14 = vld [vmem:[%s379_s2] sm:$0x3]  ;;  %v185_v19 = vld [vmem:[%s381_s4 + $0x10] sm:$0xff] }
   0x5   :  { %v147_v13 = vsub.s32 0, %v146_v12  ;;  %v151_v15 = vsub.s32 1, %v146_v12  ;;  %v163_v16 = vld [vmem:[%s380_s3] sm:$0x3]  ;;  %v184_v21 = vld [vmem:[%s381_s4 + $0x8] sm:$0xff]  ;;  %v186_v22 = vld [vmem:[%s381_s4 + $0x18] sm:$0xff]  ;;  %v191_v28 = vunpack.c.l.bf16 %v185_v19  ;;  %v192_v30 = vunpack.c.h.bf16 %v185_v19 }
   0x6   :  { %v183_v18 = vld [vmem:[%s381_s4] sm:$0xff]  ;;  %v189_v35 = vunpack.c.l.bf16 %v184_v21  ;;  %v193_v36 = vunpack.c.l.bf16 %v186_v22  ;;  %v190_v41 = vunpack.c.h.bf16 %v184_v21  ;;  %v194_v42 = vunpack.c.h.bf16 %v186_v22 }
   0x7   :  { %93 = vmatpush1.bf16.msra.mxu0 %v277_v4  ;;  %268 = vmatpush1.bf16.msra.mxu1 %v277_v4  ;;  %v148_v17 = vrot.slane %v143_v14, %v147_v13  ;;  %v152_v20 = vrot.slane %v143_v14, %v151_v15  ;;  %v168_v23 = vrot.slane %v163_v16, %v147_v13  ;;  %v187_v26 = vunpack.c.l.bf16 %v183_v18 }
   0x8   :  { %94 = vmatprep.subr.bf16.mxu0 %v278_v5  ;;  %265 = vmatprep.subr.bf16.mxu1 %v278_v5  ;;  %v172_v24 = vrot.slane %v163_v16, %v151_v15  ;;  %v188_v29 = vunpack.c.h.bf16 %v183_v18 }
   0xb   :  { %95 = vmatpush1.bf16.msra.mxu0 %v280_v6  ;;  %269 = vmatpush1.bf16.msra.mxu1 %v280_v6 }
   0xc   :  { %96 = vmatprep.subr.bf16.mxu0 %v281_v7  ;;  %266 = vmatprep.subr.bf16.mxu1 %v281_v7 }
   0xf   :  { %97 = vmatpush1.bf16.msra.mxu0 %v283_v8  ;;  %270 = vmatpush1.bf16.msra.mxu1 %v283_v8 }
  0x12   :  { %253 = vmatmul.mubr.msk.bf16.vlgmr.msra.gmra.mrb[0].mxu0 %vm83_vm0, %v284_v9  ;;  %254 = vmatmul.mubr.msk.bf16.vlgmr.msra.gmra.mrb[0].mxu1 %vm83_vm0, %v285_v10 }
  0xe5   :  { %v124_v25 = vpop.f32.mrb[0].mxu0  ;;  %v134_v27 = vpop.f32.mrb[0].mxu1 }
  0xe6   :  { %v155_v31 = vmul.f32 %v148_v17, %v124_v25  ;;  %v159_v32 = vmul.f32 %v148_v17, %v134_v27  ;;  %v126_v33 = vpop.f32.mrb[1].mxu0  ;;  %v136_v34 = vpop.f32.mrb[1].mxu1 }
  0xe7   :  { %v156_v37 = vmul.f32 %v152_v20, %v126_v33  ;;  %v160_v38 = vmul.f32 %v152_v20, %v136_v34  ;;  %v128_v39 = vpop.f32.mrb[2].mxu0  ;;  %v138_v40 = vpop.f32.mrb[2].mxu1 }
  0xe8   :  { %v175_v43 = vadd.f32 %v168_v23, %v155_v31  ;;  %v179_v44 = vadd.f32 %v168_v23, %v159_v32  ;;  %v157_v45 = vmul.f32 %v148_v17, %v128_v39  ;;  %v161_v46 = vmul.f32 %v148_v17, %v138_v40  ;;  %v130_v47 = vpop.f32.mrb[3].mxu0  ;;  %v140_v48 = vpop.f32.mrb[3].mxu1 }
  0xe9   :  { %v176_v49 = vadd.f32 %v172_v24, %v156_v37  ;;  %v180_v50 = vadd.f32 %v172_v24, %v160_v38  ;;  %v158_v51 = vmul.f32 %v152_v20, %v130_v47  ;;  %v162_v52 = vmul.f32 %v152_v20, %v140_v48 }
  0xea   :  { %v195_v53 = vadd.f32 %v187_v26, %v175_v43  ;;  %v199_v54 = vadd.f32 %v191_v28, %v179_v44  ;;  %v177_v55 = vadd.f32 %v168_v23, %v157_v45  ;;  %v181_v56 = vadd.f32 %v168_v23, %v161_v46 }
  0xeb   :  { %v196_v57 = vadd.f32 %v188_v29, %v176_v49  ;;  %v200_v58 = vadd.f32 %v192_v30, %v180_v50  ;;  %v178_v59 = vadd.f32 %v172_v24, %v158_v51  ;;  %v182_v60 = vadd.f32 %v172_v24, %v162_v52 }
  0xec   :  { %v203_v61 = vmax.f32 %v195_v53, 0.0  ;;  %v207_v62 = vmax.f32 %v199_v54, 0.0  ;;  %v197_v63 = vadd.f32 %v189_v35, %v177_v55  ;;  %v201_v0 = vadd.f32 %v193_v36, %v181_v56 }
  0xed   :  { %v204_v1 = vmax.f32 %v196_v57, 0.0  ;;  %v208_v2 = vmax.f32 %v200_v58, 0.0  ;;  %v198_v3 = vadd.f32 %v190_v41, %v178_v59  ;;  %v202_v4 = vadd.f32 %v194_v42, %v182_v60 }
  0xee   :  { %v205_v5 = vmax.f32 %v197_v63, 0.0  ;;  %v209_v6 = vmax.f32 %v201_v0, 0.0 }
  0xef   :  { %v259_v7 = vpack.c.bf16 %v204_v1, %v203_v61  ;;  %v261_v8 = vpack.c.bf16 %v208_v2, %v207_v62  ;;  %v206_v9 = vmax.f32 %v198_v3, 0.0  ;;  %v210_v10 = vmax.f32 %v202_v4, 0.0 }
  0xf1   :  { %235 = vst [vmem:[%s382_s5] sm:$0xff] %v259_v7  ;;  %237 = vst [vmem:[%s382_s5 + $0x10] sm:$0xff] %v261_v8  ;;  %v260_v11 = vpack.c.bf16 %v206_v9, %v205_v5  ;;  %v262_v12 = vpack.c.bf16 %v210_v10, %v209_v6 }
  0xf3   :  { %236 = vst [vmem:[%s382_s5 + $0x8] sm:$0xff] %v260_v11  ;;  %238 = vst [vmem:[%s382_s5 + $0x18] sm:$0xff] %v262_v12 }

// kernel: _lambda_.53
= control target key start
LH: loop header
LB: loop body
LE: loop exit
PB: predicated region body
PF: predicated region fallthrough
CT: control target
= control target key end

     0   :  { %vm261_vm0 = vcmask 519168   ;;  %s469_s1 = inlined_call_operand.vmem [shape: bf16[256,64], index: 1, kind: input, shape index: {}]   ;;  %s470_s0 = inlined_call_operand.vmem [shape: bf16[32,256], index: 0, kind: input, shape index: {}]   ;;  %s471_s2 = inlined_call_operand.vmem [shape: f32[1,64], index: 2, kind: input, shape index: {}]   ;;  %s472_s3 = inlined_call_operand.vmem [shape: f32[1,64], index: 3, kind: input, shape index: {}]   ;;  %s473_s4 = inlined_call_operand.vmem [shape: bf16[32,64], index: 4, kind: output, shape index: {}]  }
   0x1   :  { %v344_v0 = vld [vmem:[%s469_s1 + $0x40] sm:$0xff]   ;;  %v346_v2 = vld [vmem:[%s469_s1 + $0x48] sm:$0xff]   ;;  %v348_v4 = vld [vmem:[%s469_s1 + $0x50] sm:$0xff]  }
   0x2   :  { %v345_v1 = vld [vmem:[%s469_s1] sm:$0xff]   ;;  %300 = vmatprep.subr.bf16.mxu0 %v344_v0  ;;  %328 = vmatprep.subr.bf16.mxu1 %v344_v0  ;;  %v347_v3 = vld [vmem:[%s469_s1 + $0x8] sm:$0xff]   ;;  %v349_v5 = vld [vmem:[%s469_s1 + $0x10] sm:$0xff]  }
   0x3   :  { %301 = vmatpush3.bf16.msra.mxu0 %v345_v1  ;;  %336 = vmatpush3.bf16.msra.mxu1 %v345_v1  ;;  %v350_v6 = vld [vmem:[%s469_s1 + $0x58] sm:$0xff]   ;;  %v352_v8 = vld [vmem:[%s469_s1 + $0x60] sm:$0xff]   ;;  %v354_v10 = vld [vmem:[%s469_s1 + $0x68] sm:$0xff]  }
   0x4   :  { %302 = vmatprep.subr.bf16.mxu0 %v346_v2  ;;  %329 = vmatprep.subr.bf16.mxu1 %v346_v2  ;;  %v351_v7 = vld [vmem:[%s469_s1 + $0x18] sm:$0xff]   ;;  %v353_v9 = vld [vmem:[%s469_s1 + $0x20] sm:$0xff]   ;;  %v355_v13 = vld [vmem:[%s469_s1 + $0x28] sm:$0xff]  }
   0x5   :  { %v362_v11 = vld [vmem:[%s470_s0 + $0x4] ss:$8 sps:$4 sm:$0xff]   ;;  %v365_v12 = vld [vmem:[%s470_s0 + $0x14] ss:$8 sps:$4 sm:$0xff]   ;;  %v360_v18 = vld [vmem:[%s470_s0] ss:$8 sps:$4 sm:$0xff]  }
   0x6   :  { %v356_v14 = vld [vmem:[%s469_s1 + $0x70] sm:$0xff]   ;;  %202 = vmatprep.mubr.bf16.mxu0 %v362_v11  ;;  %210 = vmatprep.mubr.bf16.mxu1 %v365_v12  ;;  %v358_v16 = vld [vmem:[%s469_s1 + $0x78] sm:$0xff]   ;;  %v290_v23 = vld [vmem:[%s471_s2] ss:$0 sm:$0xff] }
   0x7   :  { %303 = vmatpush3.bf16.msra.mxu0 %v347_v3  ;;  %337 = vmatpush3.bf16.msra.mxu1 %v347_v3  ;;  %v357_v15 = vld [vmem:[%s469_s1 + $0x30] sm:$0xff]   ;;  %v359_v17 = vld [vmem:[%s469_s1 + $0x38] sm:$0xff]   ;;  %v291_v29 = vld [vmem:[%s472_s3] ss:$0 sm:$0xff] }
   0x8   :  { %304 = vmatprep.subr.bf16.mxu0 %v348_v4  ;;  %330 = vmatprep.subr.bf16.mxu1 %v348_v4  ;;  %v363_v19 = vld [vmem:[%s470_s0 + $0x10] ss:$8 sps:$4 sm:$0xff]  }
   0xb   :  { %305 = vmatpush3.bf16.msra.mxu0 %v349_v5  ;;  %338 = vmatpush3.bf16.msra.mxu1 %v349_v5 }
   0xc   :  { %306 = vmatprep.subr.bf16.mxu0 %v350_v6  ;;  %331 = vmatprep.subr.bf16.mxu1 %v350_v6 }
   0xf   :  { %307 = vmatpush3.bf16.msra.mxu0 %v351_v7  ;;  %339 = vmatpush3.bf16.msra.mxu1 %v351_v7 }
  0x10   :  { %308 = vmatprep.subr.bf16.mxu0 %v352_v8  ;;  %332 = vmatprep.subr.bf16.mxu1 %v352_v8 }
  0x13   :  { %309 = vmatpush3.bf16.msra.mxu0 %v353_v9  ;;  %340 = vmatpush3.bf16.msra.mxu1 %v353_v9 }
  0x14   :  { %310 = vmatprep.subr.bf16.mxu0 %v354_v10  ;;  %333 = vmatprep.subr.bf16.mxu1 %v354_v10 }
  0x17   :  { %311 = vmatpush3.bf16.msra.mxu0 %v355_v13  ;;  %341 = vmatpush3.bf16.msra.mxu1 %v355_v13 }
  0x18   :  { %312 = vmatprep.subr.bf16.mxu0 %v356_v14  ;;  %334 = vmatprep.subr.bf16.mxu1 %v356_v14 }
  0x1b   :  { %313 = vmatpush3.bf16.msra.mxu0 %v357_v15  ;;  %342 = vmatpush3.bf16.msra.mxu1 %v357_v15 }
  0x1c   :  { %314 = vmatprep.subr.bf16.mxu0 %v358_v16  ;;  %335 = vmatprep.subr.bf16.mxu1 %v358_v16 }
  0x1f   :  { %315 = vmatpush3.bf16.msra.mxu0 %v359_v17  ;;  %343 = vmatpush3.bf16.msra.mxu1 %v359_v17 }
  0x22   :  { %203 = vmatmul.mubr.bf16.vlgmr.msra.gmra.mrb[0].mxu0 %v360_v18  ;;  %211 = vmatmul.mubr.bf16.vlgmr.msra.gmra.mrb[0].mxu1 %v363_v19 }
  0xf5   :  { %v316_v20 = vpop.f32.mrb[0].mxu0  ;;  %v322_v21 = vpop.f32.mrb[0].mxu1 }
  0xf6   :  { %v317_v22 = vpop.f32.mrb[1].mxu0  ;;  %v323_v24 = vpop.f32.mrb[1].mxu1 }
  0xf7   :  { %v318_v25 = vadd.f32 %v317_v22, %v316_v20  ;;  %v324_v26 = vadd.f32 %v323_v24, %v322_v21  ;;  %v319_v27 = vpop.f32.mrb[2].mxu0  ;;  %v325_v28 = vpop.f32.mrb[2].mxu1 }
  0xf8   :  { %v320_v30 = vpop.f32.mrb[3].mxu0  ;;  %v326_v31 = vpop.f32.mrb[3].mxu1 }
  0xf9   :  { %v226_v32 = vmul.f32 %v318_v25, %v290_v23  ;;  %v228_v33 = vmul.f32 %v324_v26, %v290_v23  ;;  %v321_v34 = vadd.f32 %v320_v30, %v319_v27  ;;  %v327_v35 = vadd.f32 %v326_v31, %v325_v28 }
  0xfb   :  { %v237_v36 = vadd.f32 %v291_v29, %v226_v32  ;;  %v239_v37 = vadd.f32 %v291_v29, %v228_v33  ;;  %v227_v38 = vmul.f32 %v321_v34, %v290_v23  ;;  %v229_v39 = vmul.f32 %v327_v35, %v290_v23 }
  0xfd   :  { %v241_v40 = vmax.f32 %v237_v36, 0.0  ;;  %v243_v41 = vmax.f32 %v239_v37, 0.0  ;;  %v238_v42 = vadd.f32 %v291_v29, %v227_v38  ;;  %v240_v43 = vadd.f32 %v291_v29, %v229_v39 }
  0xff   :  { %v296_v44 = vpack.c.bf16 %v241_v40, %v241_v40  ;;  %v298_v45 = vpack.c.bf16 %v243_v41, %v243_v41  ;;  %v242_v46 = vmax.f32 %v238_v42, 0.0  ;;  %v244_v47 = vmax.f32 %v240_v43, 0.0 }
 0x101   :  { %262 = vst.msk [vmem:[%s473_s4] sm:$0xf] %vm261_vm0, %v296_v44  ;;  %264 = vst.msk [vmem:[%s473_s4 + $0x8] sm:$0xf] %vm261_vm0, %v298_v45  ;;  %v297_v48 = vpack.c.bf16 %v242_v46, %v242_v46  ;;  %v299_v49 = vpack.c.bf16 %v244_v47, %v244_v47 }
 0x103   :  { %263 = vst.msk [vmem:[%s473_s4 + $0x4] sm:$0xf] %vm261_vm0, %v297_v48  ;;  %265 = vst.msk [vmem:[%s473_s4 + $0xc] sm:$0xf] %vm261_vm0, %v299_v49 }

// kernel: _lambda_.61
= control target key start
LH: loop header
LB: loop body
LE: loop exit
PB: predicated region body
PF: predicated region fallthrough
CT: control target
= control target key end

     0   :  { %s1045_s15 = smov 0   ;;  %s1047_s16 = smov 0   ;;  %s1227_s0 = inlined_call_operand.vmem [shape: bf16[8,256], index: 0, kind: input, shape index: {}]   ;;  %s1228_s1 = inlined_call_operand.vmem [shape: bf16[256,512], index: 1, kind: input, shape index: {}]   ;;  %s1229_s2 = inlined_call_operand.vmem [shape: f32[1,512], index: 2, kind: input, shape index: {}]   ;;  %s1230_s3 = inlined_call_operand.vmem [shape: f32[1,512], index: 3, kind: input, shape index: {}]   ;;  %s1231_s4 = inlined_call_operand.vmem [shape: bf16[8,512], index: 4, kind: output, shape index: {}]  }
   0x1   :  { %s1049_s17 = smov 0   ;;  %s1051_s18 = smov 0  }
   0x2   :  { %s1053_s19 = smov 0  }
   0x3 LB: > { %s23_s20 = sadd.s32 1, %s1014_s18  ;;  %p66_p1 = scmp.ne.s32.totalorder %s1006_s16, %s1002_s15  ;;  %s1018_s19 = sphi %s1053_s19, %s14_s19   ;;  %s1014_s18 = sphi %s1051_s18, %s1235_s18   ;;  %s1010_s17 = sphi %s1049_s17, %s1234_s17   ;;  %s1006_s16 = sphi %s1047_s16, %s1233_s16   ;;  %s1002_s15 = sphi %s1045_s15, %s1232_s15  }
   0x4   : > { %p24_p0 = scmp.ge.s32.totalorder %s23_s20, 2  ;;  %p67_p2 = scmp.eq.s32.totalorder %s1018_s19, 0 }
   0x5   : > { %s59_s22 = sadd.s32 1, %s1006_s16  ;;  %p841_p5 = scmp.ge.s32.totalorder %s1018_s19, 2 }
   0x6   : > { %s1237_s20 = smov (%p24_p0, %s23_s20), 0  ;;  %p68_p3 = por %p67_p2, %p66_p1 }
   0x7   : > { %s56_s21 = ssub.s32 %s1014_s18, %s1237_s20  ;;  %180 = sbr.rel (%p841_p5) target bundleno = 34 (0x22), region = 20 }
   0x8   : > { %p57_p4 = scmp.eq.s32.totalorder %s56_s21, 0 }
   0xa   : > { %s1080_s23 = scalar_select %p57_p4, %s1006_s16, %s59_s22  }
   0xe   : > { %183 = sbr.rel (!%p68_p3) target bundleno = 34 (0x22), region = 24  ;;  %s185_s24 = sand.u32 (%p68_p3), 1, %s1006_s16  }
   0xf   : > { %s888_s25 = sshll.u32 (%p68_p3), %s1014_s18, 3  ;;  %s842_s26 = sshll.u32 (%p68_p3), %s185_s24, 8 }
  0x10   : > { %s1088_s29 = scalar_lea.vmem (%p68_p3), %s1228_s1, %s888_s25  ;;  %s1093_s30 = scalar_lea.vmem (%p68_p3), [#allocation2], %s842_s26 }
  0x11   : > { %v280_v0 = vld [vmem:[%s1088_s29] sm:$0xff] (%p68_p3)  ;;  %v282_v1 = vld [vmem:[%s1088_s29 + $0x10] sm:$0xff] (%p68_p3) }
  0x12   : > { %v284_v2 = vld [vmem:[%s1088_s29 + $0x20] sm:$0xff] (%p68_p3)  ;;  %281 = vst [vmem:[%s1093_s30] sm:$0xff] (%p68_p3), %v280_v0  ;;  %283 = vst [vmem:[%s1093_s30 + $0x8] sm:$0xff] (%p68_p3), %v282_v1  ;;  %v286_v3 = vld [vmem:[%s1088_s29 + $0x30] sm:$0xff] (%p68_p3) }
  0x13   : > { %285 = vst [vmem:[%s1093_s30 + $0x10] sm:$0xff] (%p68_p3), %v284_v2  ;;  %v288_v4 = vld [vmem:[%s1088_s29 + $0x40] sm:$0xff] (%p68_p3)  ;;  %v290_v5 = vld [vmem:[%s1088_s29 + $0x50] sm:$0xff] (%p68_p3)  ;;  %287 = vst [vmem:[%s1093_s30 + $0x18] sm:$0xff] (%p68_p3), %v286_v3 }
  0x14   : > { %289 = vst [vmem:[%s1093_s30 + $0x20] sm:$0xff] (%p68_p3), %v288_v4  ;;  %291 = vst [vmem:[%s1093_s30 + $0x28] sm:$0xff] (%p68_p3), %v290_v5  ;;  %v292_v6 = vld [vmem:[%s1088_s29 + $0x60] sm:$0xff] (%p68_p3)  ;;  %v294_v7 = vld [vmem:[%s1088_s29 + $0x70] sm:$0xff] (%p68_p3) }
  0x15   : > { %v296_v8 = vld [vmem:[%s1088_s29 + $0x80] sm:$0xff]  ;;  %293 = vst [vmem:[%s1093_s30 + $0x30] sm:$0xff] %v292_v6  ;;  %295 = vst [vmem:[%s1093_s30 + $0x38] sm:$0xff] %v294_v7  ;;  %v298_v9 = vld [vmem:[%s1088_s29 + $0x90] sm:$0xff] }
  0x16   : > { %297 = vst [vmem:[%s1093_s30 + $0x40] sm:$0xff] %v296_v8  ;;  %v300_v10 = vld [vmem:[%s1088_s29 + $0xa0] sm:$0xff]  ;;  %v302_v11 = vld [vmem:[%s1088_s29 + $0xb0] sm:$0xff]  ;;  %299 = vst [vmem:[%s1093_s30 + $0x48] sm:$0xff] %v298_v9 }
  0x17   : > { %301 = vst [vmem:[%s1093_s30 + $0x50] sm:$0xff] %v300_v10  ;;  %303 = vst [vmem:[%s1093_s30 + $0x58] sm:$0xff] %v302_v11  ;;  %v304_v12 = vld [vmem:[%s1088_s29 + $0xc0] sm:$0xff]  ;;  %v306_v13 = vld [vmem:[%s1088_s29 + $0xd0] sm:$0xff] }
  0x18   : > { %v308_v14 = vld [vmem:[%s1088_s29 + $0xe0] sm:$0xff]  ;;  %305 = vst [vmem:[%s1093_s30 + $0x60] sm:$0xff] %v304_v12  ;;  %307 = vst [vmem:[%s1093_s30 + $0x68] sm:$0xff] %v306_v13  ;;  %v310_v15 = vld [vmem:[%s1088_s29 + $0xf0] sm:$0xff] }
  0x19   : > { %309 = vst [vmem:[%s1093_s30 + $0x70] sm:$0xff] %v308_v14  ;;  %v312_v16 = vld [vmem:[%s1088_s29 + $0x100] sm:$0xff]  ;;  %v314_v17 = vld [vmem:[%s1088_s29 + $0x110] sm:$0xff]  ;;  %311 = vst [vmem:[%s1093_s30 + $0x78] sm:$0xff] %v310_v15 }
  0x1a   : > { %313 = vst [vmem:[%s1093_s30 + $0x80] sm:$0xff] %v312_v16  ;;  %315 = vst [vmem:[%s1093_s30 + $0x88] sm:$0xff] %v314_v17  ;;  %v316_v18 = vld [vmem:[%s1088_s29 + $0x120] sm:$0xff]  ;;  %v318_v19 = vld [vmem:[%s1088_s29 + $0x130] sm:$0xff] }
  0x1b   : > { %v320_v20 = vld [vmem:[%s1088_s29 + $0x140] sm:$0xff]  ;;  %317 = vst [vmem:[%s1093_s30 + $0x90] sm:$0xff] %v316_v18  ;;  %319 = vst [vmem:[%s1093_s30 + $0x98] sm:$0xff] %v318_v19  ;;  %v322_v21 = vld [vmem:[%s1088_s29 + $0x150] sm:$0xff] }
  0x1c   : > { %321 = vst [vmem:[%s1093_s30 + $0xa0] sm:$0xff] %v320_v20  ;;  %v324_v22 = vld [vmem:[%s1088_s29 + $0x160] sm:$0xff]  ;;  %v326_v23 = vld [vmem:[%s1088_s29 + $0x170] sm:$0xff]  ;;  %323 = vst [vmem:[%s1093_s30 + $0xa8] sm:$0xff] %v322_v21 }
  0x1d   : > { %325 = vst [vmem:[%s1093_s30 + $0xb0] sm:$0xff] %v324_v22  ;;  %327 = vst [vmem:[%s1093_s30 + $0xb8] sm:$0xff] %v326_v23  ;;  %v328_v24 = vld [vmem:[%s1088_s29 + $0x180] sm:$0xff]  ;;  %v330_v25 = vld [vmem:[%s1088_s29 + $0x190] sm:$0xff] }
  0x1e   : > { %v332_v26 = vld [vmem:[%s1088_s29 + $0x1a0] sm:$0xff]  ;;  %329 = vst [vmem:[%s1093_s30 + $0xc0] sm:$0xff] %v328_v24  ;;  %331 = vst [vmem:[%s1093_s30 + $0xc8] sm:$0xff] %v330_v25  ;;  %v334_v27 = vld [vmem:[%s1088_s29 + $0x1b0] sm:$0xff] }
  0x1f   : > { %333 = vst [vmem:[%s1093_s30 + $0xd0] sm:$0xff] %v332_v26  ;;  %v336_v28 = vld [vmem:[%s1088_s29 + $0x1c0] sm:$0xff]  ;;  %v338_v29 = vld [vmem:[%s1088_s29 + $0x1d0] sm:$0xff]  ;;  %335 = vst [vmem:[%s1093_s30 + $0xd8] sm:$0xff] %v334_v27 }
  0x20   : > { %337 = vst [vmem:[%s1093_s30 + $0xe0] sm:$0xff] %v336_v28  ;;  %339 = vst [vmem:[%s1093_s30 + $0xe8] sm:$0xff] %v338_v29  ;;  %v340_v30 = vld [vmem:[%s1088_s29 + $0x1e0] sm:$0xff]  ;;  %v342_v31 = vld [vmem:[%s1088_s29 + $0x1f0] sm:$0xff] }
  0x21   : > { %341 = vst [vmem:[%s1093_s30 + $0xf0] sm:$0xff] %v340_v30  ;;  %343 = vst [vmem:[%s1093_s30 + $0xf8] sm:$0xff] %v342_v31 }
  0x22 PF: > { %p845_p6 = scmp.ge.s32.totalorder %s1018_s19, 1  ;;  %p364_p7 = scmp.lt.s32.totalorder %s1018_s19, 3 }
  0x24   : > { %p365_p8 = pnand %p845_p6, %p364_p7 }
  0x25   : > { %s371_s5 = sand.u32 (!%p365_p8), 1, %s1002_s15   ;;  %v1162_v32 = vld [vmem:[%s1227_s0] sm:$0xff] (!%p365_p8)  ;;  %s847_s10 = sshll.u32 (!%p365_p8), %s1010_s17, 1  ;;  %v682_v3 = vlaneseq (!%p365_p8) }
  0x26   : > { %368 = sbr.rel (%p365_p8) target bundleno = 325 (0x145), region = 70  ;;  %s846_s8 = sshll.u32 (!%p365_p8), %s371_s5, 8  ;;  %v852_v33 = vcombine.high (!%p365_p8), %v1162_v32, %v1162_v32  ;;  %v851_v2 = vcombine.low (!%p365_p8), %v1162_v32, %v1162_v32 }
  0x27   : > { %s1166_s9 = scalar_lea.vmem (!%p365_p8), [#allocation2], %s846_s8  ;;  %p420_p9 = scmp.lt.s32.totalorder (!%p365_p8), %s847_s10, 3  ;;  %v683_v4 = vshrl.u32 (!%p365_p8), %v682_v3, 7 }
  0x28   : > { %v930_v34 = vld [vmem:[%s1166_s9 + $0x4] ss:$8 sps:$4 sm:$0xff] (!%p365_p8)   ;;  %671 = vmatprep.mubr.bf16.mxu0 (!%p365_p8), %v852_v33  ;;  %v932_v35 = vld [vmem:[%s1166_s9] ss:$8 sps:$4 sm:$0xff] (!%p365_p8)   ;;  %v933_v36 = vld [vmem:[%s1166_s9 + $0x14] ss:$8 sps:$4 sm:$0xff] (!%p365_p8)  }
  0x29   : > { %639 = vmatprep.subr.bf16.mxu0 (!%p365_p8), %v930_v34  ;;  %v935_v37 = vld [vmem:[%s1166_s9 + $0x10] ss:$8 sps:$4 sm:$0xff] (!%p365_p8)   ;;  %v936_v38 = vld [vmem:[%s1166_s9 + $0x24] ss:$8 sps:$4 sm:$0xff] (!%p365_p8)   ;;  %v938_v39 = vld [vmem:[%s1166_s9 + $0x20] ss:$8 sps:$4 sm:$0xff] (!%p365_p8)  }
  0x2a   : > { %640 = vmatpush1.bf16.msra.mxu0 (!%p365_p8), %v932_v35  ;;  %v939_v40 = vld [vmem:[%s1166_s9 + $0x34] ss:$8 sps:$4 sm:$0xff] (!%p365_p8)   ;;  %v941_v41 = vld [vmem:[%s1166_s9 + $0x30] ss:$8 sps:$4 sm:$0xff] (!%p365_p8)   ;;  %v942_v42 = vld [vmem:[%s1166_s9 + $0x44] ss:$8 sps:$4 sm:$0xff] (!%p365_p8)  }
  0x2b   : > { %641 = vmatprep.subr.bf16.mxu0 (!%p365_p8), %v933_v36  ;;  %v944_v43 = vld [vmem:[%s1166_s9 + $0x40] ss:$8 sps:$4 sm:$0xff] (!%p365_p8)   ;;  %v945_v44 = vld [vmem:[%s1166_s9 + $0x54] ss:$8 sps:$4 sm:$0xff] (!%p365_p8)   ;;  %v947_v45 = vld [vmem:[%s1166_s9 + $0x50] ss:$8 sps:$4 sm:$0xff] (!%p365_p8)  }
  0x2c   : > { %v948_v46 = vld [vmem:[%s1166_s9 + $0x64] ss:$8 sps:$4 sm:$0xff] (!%p365_p8)   ;;  %v950_v47 = vld [vmem:[%s1166_s9 + $0x60] ss:$8 sps:$4 sm:$0xff] (!%p365_p8)   ;;  %v951_v48 = vld [vmem:[%s1166_s9 + $0x74] ss:$8 sps:$4 sm:$0xff] (!%p365_p8)  }
  0x2d   : > { %v953_v49 = vld [vmem:[%s1166_s9 + $0x70] ss:$8 sps:$4 sm:$0xff]   ;;  %v954_v50 = vld [vmem:[%s1166_s9 + $0x84] ss:$8 sps:$4 sm:$0xff]   ;;  %v956_v51 = vld [vmem:[%s1166_s9 + $0x80] ss:$8 sps:$4 sm:$0xff]  }
  0x2e   : > { %642 = vmatpush1.bf16.msra.mxu0 %v935_v37  ;;  %v957_v52 = vld [vmem:[%s1166_s9 + $0x94] ss:$8 sps:$4 sm:$0xff]   ;;  %v959_v53 = vld [vmem:[%s1166_s9 + $0x90] ss:$8 sps:$4 sm:$0xff]   ;;  %v960_v54 = vld [vmem:[%s1166_s9 + $0xa4] ss:$8 sps:$4 sm:$0xff]  }
  0x2f   : > { %643 = vmatprep.subr.bf16.mxu0 %v936_v38  ;;  %v962_v55 = vld [vmem:[%s1166_s9 + $0xa0] ss:$8 sps:$4 sm:$0xff]   ;;  %v963_v56 = vld [vmem:[%s1166_s9 + $0xb4] ss:$8 sps:$4 sm:$0xff]   ;;  %v965_v57 = vld [vmem:[%s1166_s9 + $0xb0] ss:$8 sps:$4 sm:$0xff]  }
  0x30   : > { %v966_v58 = vld [vmem:[%s1166_s9 + $0xc4] ss:$8 sps:$4 sm:$0xff]   ;;  %v968_v59 = vld [vmem:[%s1166_s9 + $0xc0] ss:$8 sps:$4 sm:$0xff]   ;;  %v969_v60 = vld [vmem:[%s1166_s9 + $0xd4] ss:$8 sps:$4 sm:$0xff]  }
  0x31   : > { %v971_v61 = vld [vmem:[%s1166_s9 + $0xd0] ss:$8 sps:$4 sm:$0xff]   ;;  %v972_v62 = vld [vmem:[%s1166_s9 + $0xe4] ss:$8 sps:$4 sm:$0xff]   ;;  %v974_v63 = vld [vmem:[%s1166_s9 + $0xe0] ss:$8 sps:$4 sm:$0xff]  }
  0x32   : > { %644 = vmatpush1.bf16.msra.mxu0 %v938_v39  ;;  %v975_v0 = vld [vmem:[%s1166_s9 + $0xf4] ss:$8 sps:$4 sm:$0xff]   ;;  %v977_v1 = vld [vmem:[%s1166_s9 + $0xf0] ss:$8 sps:$4 sm:$0xff]   ;;  %s1239_s10 = smov (!%p420_p9, %s847_s10), 3  ;;  %v684_v5 = vsub.s32 0, %v683_v4 }
  0x33   : > { %645 = vmatprep.subr.bf16.mxu0 %v939_v40  ;;  %s422_s13 = scalar_lea.vmem %s1229_s2, %s1239_s10  ;;  %s427_s21 = scalar_lea.vmem %s1230_s3, %s1239_s10  ;;  %v688_v7 = vsub.s32 1, %v683_v4 }
  0x34   : > { %v680_v6 = vld [vmem:[%s422_s13] sm:$0x3]  ;;  %s850_s17 = sshll.u32 %s1239_s10, 2 }
  0x35   : > { %v694_v8 = vld [vmem:[%s427_s21] sm:$0x3]  ;;  %v685_v9 = vrot.slane %v680_v6, %v684_v5  ;;  %v689_v10 = vrot.slane %v680_v6, %v688_v7  ;;  %s437_s25 = scalar_lea.vmem %s1231_s4, %s850_s17 }
  0x36   : > { %646 = vmatpush1.bf16.msra.mxu0 %v941_v41  ;;  %v699_v11 = vrot.slane %v694_v8, %v684_v5  ;;  %v703_v13 = vrot.slane %v694_v8, %v688_v7 }
  0x37   : > { %647 = vmatprep.subr.bf16.mxu0 %v942_v42 }
  0x3a   : > { %648 = vmatpush1.bf16.msra.mxu0 %v944_v43 }
  0x3b   : > { %649 = vmatprep.subr.bf16.mxu0 %v945_v44 }
  0x3e   : > { %650 = vmatpush1.bf16.msra.mxu0 %v947_v45 }
  0x3f   : > { %651 = vmatprep.subr.bf16.mxu0 %v948_v46 }
  0x42   : > { %652 = vmatpush1.bf16.msra.mxu0 %v950_v47 }
  0x43   : > { %653 = vmatprep.subr.bf16.mxu0 %v951_v48 }
  0x46   : > { %654 = vmatpush1.bf16.msra.mxu0 %v953_v49 }
  0x47   : > { %655 = vmatprep.subr.bf16.mxu0 %v954_v50 }
  0x4a   : > { %656 = vmatpush1.bf16.msra.mxu0 %v956_v51 }
  0x4b   : > { %657 = vmatprep.subr.bf16.mxu0 %v957_v52 }
  0x4e   : > { %658 = vmatpush1.bf16.msra.mxu0 %v959_v53 }
  0x4f   : > { %659 = vmatprep.subr.bf16.mxu0 %v960_v54 }
  0x52   : > { %660 = vmatpush1.bf16.msra.mxu0 %v962_v55 }
  0x53   : > { %661 = vmatprep.subr.bf16.mxu0 %v963_v56 }
  0x56   : > { %662 = vmatpush1.bf16.msra.mxu0 %v965_v57 }
  0x57   : > { %663 = vmatprep.subr.bf16.mxu0 %v966_v58 }
  0x5a   : > { %664 = vmatpush1.bf16.msra.mxu0 %v968_v59 }
  0x5b   : > { %665 = vmatprep.subr.bf16.mxu0 %v969_v60 }
  0x5e   : > { %666 = vmatpush1.bf16.msra.mxu0 %v971_v61 }
  0x5f   : > { %667 = vmatprep.subr.bf16.mxu0 %v972_v62 }
  0x62   : > { %668 = vmatpush1.bf16.msra.mxu0 %v974_v63 }
  0x63   : > { %669 = vmatprep.subr.bf16.mxu0 %v975_v0 }
  0x66   : > { %670 = vmatpush1.bf16.msra.mxu0 %v977_v1 }
  0x69   : > { %672 = vmatmul.mubr.bf16.vlgmr.msra.gmra.mrb[0].mxu0 %v851_v2 }
 0x13c   : > { %v673_v12 = vpop.f32.mrb[0].mxu0 }
 0x13d   : > { %v692_v14 = vmul.f32 %v685_v9, %v673_v12  ;;  %v675_v15 = vpop.f32.mrb[1].mxu0 }
 0x13e   : > { %v693_v16 = vmul.f32 %v689_v10, %v675_v15  ;;  %v677_v17 = vpop.f32.mrb[2].mxu0 }
 0x13f   : > { %v706_v18 = vadd.f32 %v699_v11, %v692_v14  ;;  %v678_v19 = vpop.f32.mrb[3].mxu0 }
 0x140   : > { %v707_v20 = vadd.f32 %v703_v13, %v693_v16 }
 0x142   : > { %v889_v21 = vpack.c.bf16 %v707_v20, %v706_v18 }
 0x144   : > { %716 = vst [vmem:[%s437_s25] sm:$0xff] %v889_v21 }
 0x145 PF: > { %s14_s19 = sadd.s32 1, %s1018_s19   ;;  %s1232_s15 = smov %s1006_s16 }
 0x146   : > { %p11_p10 = scmp.ge.s32.totalorder %s14_s19, 4   ;;  %s1233_s16 = smov %s1080_s23 }
 0x147   : > { %s1234_s17 = smov %s1014_s18  ;;  %s1235_s18 = smov %s1237_s20 }
 0x148   :  { %13 = sbr.rel (!%p11_p10) target bundleno = 3 (0x3), region = 118 }

// kernel: _lambda_.59
= control target key start
LH: loop header
LB: loop body
LE: loop exit
PB: predicated region body
PF: predicated region fallthrough
CT: control target
= control target key end

     0   :  { %s473_s1 = inlined_call_operand.vmem [shape: bf16[256,128], index: 1, kind: input, shape index: {}]   ;;  %s474_s0 = inlined_call_operand.vmem [shape: bf16[32,256], index: 0, kind: input, shape index: {}]   ;;  %s475_s2 = inlined_call_operand.vmem [shape: f32[1,128], index: 2, kind: input, shape index: {}]   ;;  %s476_s3 = inlined_call_operand.vmem [shape: f32[1,128], index: 3, kind: input, shape index: {}]   ;;  %s477_s4 = inlined_call_operand.vmem [shape: bf16[32,128], index: 4, kind: output, shape index: {}]  }
   0x1   :  { %v354_v0 = vld [vmem:[%s473_s1 + $0x40] sm:$0xff]   ;;  %v356_v2 = vld [vmem:[%s473_s1 + $0x48] sm:$0xff]   ;;  %v358_v4 = vld [vmem:[%s473_s1 + $0x50] sm:$0xff]  }
   0x2   :  { %v355_v1 = vld [vmem:[%s473_s1] sm:$0xff]   ;;  %310 = vmatprep.subr.bf16.mxu0 %v354_v0  ;;  %338 = vmatprep.subr.bf16.mxu1 %v354_v0  ;;  %v357_v3 = vld [vmem:[%s473_s1 + $0x8] sm:$0xff]   ;;  %v359_v5 = vld [vmem:[%s473_s1 + $0x10] sm:$0xff]  }
   0x3   :  { %311 = vmatpush3.bf16.msra.mxu0 %v355_v1  ;;  %346 = vmatpush3.bf16.msra.mxu1 %v355_v1  ;;  %v360_v6 = vld [vmem:[%s473_s1 + $0x58] sm:$0xff]   ;;  %v362_v8 = vld [vmem:[%s473_s1 + $0x60] sm:$0xff]   ;;  %v364_v10 = vld [vmem:[%s473_s1 + $0x68] sm:$0xff]  }
   0x4   :  { %312 = vmatprep.subr.bf16.mxu0 %v356_v2  ;;  %339 = vmatprep.subr.bf16.mxu1 %v356_v2  ;;  %v361_v7 = vld [vmem:[%s473_s1 + $0x18] sm:$0xff]   ;;  %v363_v9 = vld [vmem:[%s473_s1 + $0x20] sm:$0xff]   ;;  %v365_v13 = vld [vmem:[%s473_s1 + $0x28] sm:$0xff]  }
   0x5   :  { %v372_v11 = vld [vmem:[%s474_s0 + $0x4] ss:$8 sps:$4 sm:$0xff]   ;;  %v375_v12 = vld [vmem:[%s474_s0 + $0x14] ss:$8 sps:$4 sm:$0xff]   ;;  %v370_v18 = vld [vmem:[%s474_s0] ss:$8 sps:$4 sm:$0xff]  }
   0x6   :  { %v366_v14 = vld [vmem:[%s473_s1 + $0x70] sm:$0xff]   ;;  %202 = vmatprep.mubr.bf16.mxu0 %v372_v11  ;;  %210 = vmatprep.mubr.bf16.mxu1 %v375_v12  ;;  %v368_v16 = vld [vmem:[%s473_s1 + $0x78] sm:$0xff]   ;;  %v289_v23 = vld [vmem:[%s475_s2] ss:$0 sm:$0xff] }
   0x7   :  { %313 = vmatpush3.bf16.msra.mxu0 %v357_v3  ;;  %347 = vmatpush3.bf16.msra.mxu1 %v357_v3  ;;  %v367_v15 = vld [vmem:[%s473_s1 + $0x30] sm:$0xff]   ;;  %v369_v17 = vld [vmem:[%s473_s1 + $0x38] sm:$0xff]   ;;  %v290_v29 = vld [vmem:[%s476_s3] ss:$0 sm:$0xff] }
   0x8   :  { %314 = vmatprep.subr.bf16.mxu0 %v358_v4  ;;  %340 = vmatprep.subr.bf16.mxu1 %v358_v4  ;;  %v373_v19 = vld [vmem:[%s474_s0 + $0x10] ss:$8 sps:$4 sm:$0xff]  }
   0xb   :  { %315 = vmatpush3.bf16.msra.mxu0 %v359_v5  ;;  %348 = vmatpush3.bf16.msra.mxu1 %v359_v5 }
   0xc   :  { %316 = vmatprep.subr.bf16.mxu0 %v360_v6  ;;  %341 = vmatprep.subr.bf16.mxu1 %v360_v6 }
   0xf   :  { %317 = vmatpush3.bf16.msra.mxu0 %v361_v7  ;;  %349 = vmatpush3.bf16.msra.mxu1 %v361_v7 }
  0x10   :  { %318 = vmatprep.subr.bf16.mxu0 %v362_v8  ;;  %342 = vmatprep.subr.bf16.mxu1 %v362_v8 }
  0x13   :  { %319 = vmatpush3.bf16.msra.mxu0 %v363_v9  ;;  %350 = vmatpush3.bf16.msra.mxu1 %v363_v9 }
  0x14   :  { %320 = vmatprep.subr.bf16.mxu0 %v364_v10  ;;  %343 = vmatprep.subr.bf16.mxu1 %v364_v10 }
  0x17   :  { %321 = vmatpush3.bf16.msra.mxu0 %v365_v13  ;;  %351 = vmatpush3.bf16.msra.mxu1 %v365_v13 }
  0x18   :  { %322 = vmatprep.subr.bf16.mxu0 %v366_v14  ;;  %344 = vmatprep.subr.bf16.mxu1 %v366_v14 }
  0x1b   :  { %323 = vmatpush3.bf16.msra.mxu0 %v367_v15  ;;  %352 = vmatpush3.bf16.msra.mxu1 %v367_v15 }
  0x1c   :  { %324 = vmatprep.subr.bf16.mxu0 %v368_v16  ;;  %345 = vmatprep.subr.bf16.mxu1 %v368_v16 }
  0x1f   :  { %325 = vmatpush3.bf16.msra.mxu0 %v369_v17  ;;  %353 = vmatpush3.bf16.msra.mxu1 %v369_v17 }
  0x22   :  { %203 = vmatmul.mubr.bf16.vlgmr.msra.gmra.mrb[0].mxu0 %v370_v18  ;;  %211 = vmatmul.mubr.bf16.vlgmr.msra.gmra.mrb[0].mxu1 %v373_v19 }
  0xf5   :  { %v326_v20 = vpop.f32.mrb[0].mxu0  ;;  %v332_v21 = vpop.f32.mrb[0].mxu1 }
  0xf6   :  { %v327_v22 = vpop.f32.mrb[1].mxu0  ;;  %v333_v24 = vpop.f32.mrb[1].mxu1 }
  0xf7   :  { %v328_v25 = vadd.f32 %v327_v22, %v326_v20  ;;  %v334_v26 = vadd.f32 %v333_v24, %v332_v21  ;;  %v329_v27 = vpop.f32.mrb[2].mxu0  ;;  %v335_v28 = vpop.f32.mrb[2].mxu1 }
  0xf8   :  { %v330_v30 = vpop.f32.mrb[3].mxu0  ;;  %v336_v31 = vpop.f32.mrb[3].mxu1 }
  0xf9   :  { %v226_v32 = vmul.f32 %v328_v25, %v289_v23  ;;  %v228_v33 = vmul.f32 %v334_v26, %v289_v23  ;;  %v331_v34 = vadd.f32 %v330_v30, %v329_v27  ;;  %v337_v35 = vadd.f32 %v336_v31, %v335_v28 }
  0xfb   :  { %v237_v36 = vadd.f32 %v290_v29, %v226_v32  ;;  %v239_v37 = vadd.f32 %v290_v29, %v228_v33  ;;  %v227_v38 = vmul.f32 %v331_v34, %v289_v23  ;;  %v229_v39 = vmul.f32 %v337_v35, %v289_v23 }
  0xfd   :  { %v238_v40 = vadd.f32 %v290_v29, %v227_v38  ;;  %v240_v41 = vadd.f32 %v290_v29, %v229_v39  ;;  %v241_v42 = vmax.f32 %v237_v36, 0.0  ;;  %v243_v43 = vmax.f32 %v239_v37, 0.0 }
  0xff   :  { %v242_v44 = vmax.f32 %v238_v40, 0.0  ;;  %v244_v45 = vmax.f32 %v240_v41, 0.0 }
 0x101   :  { %v302_v46 = vpack.c.bf16 %v242_v44, %v241_v42  ;;  %v307_v47 = vpack.c.bf16 %v244_v45, %v243_v43 }
 0x103   :  { %303 = vst [vmem:[%s477_s4] sm:$0xff] %v302_v46   ;;  %309 = vst [vmem:[%s477_s4 + $0x8] sm:$0xff] %v307_v47  }

// kernel: _lambda_.62
= control target key start
LH: loop header
LB: loop body
LE: loop exit
PB: predicated region body
PF: predicated region fallthrough
CT: control target
= control target key end

     0   :  { %s929_s18 = smov 0   ;;  %s931_s19 = smov 0   ;;  %s1029_s0 = inlined_call_operand.vmem [shape: bf16[8,128], index: 0, kind: input, shape index: {}]   ;;  %s1030_s1 = inlined_call_operand.vmem [shape: bf16[128,512], index: 1, kind: input, shape index: {}]   ;;  %s1031_s2 = inlined_call_operand.vmem [shape: f32[1,512], index: 2, kind: input, shape index: {}]   ;;  %s1032_s3 = inlined_call_operand.vmem [shape: f32[1,512], index: 3, kind: input, shape index: {}]   ;;  %s1033_s4 = inlined_call_operand.vmem [shape: bf16[8,512], index: 4, kind: input, shape index: {}]   ;;  %s1034_s5 = inlined_call_operand.vmem [shape: bf16[8,512], index: 5, kind: output, shape index: {}]  }
   0x1   :  { %s933_s20 = smov 0   ;;  %s935_s21 = smov 0  }
   0x2   :  { %s937_s22 = smov 0  }
   0x3 LB: > { %s24_s23 = sadd.s32 1, %s892_s21  ;;  %p67_p1 = scmp.ne.s32.totalorder %s884_s19, %s880_s18  ;;  %s896_s22 = sphi %s937_s22, %s15_s22   ;;  %s892_s21 = sphi %s935_s21, %s1038_s21   ;;  %s888_s20 = sphi %s933_s20, %s1037_s20   ;;  %s884_s19 = sphi %s931_s19, %s1036_s19   ;;  %s880_s18 = sphi %s929_s18, %s1035_s18  }
   0x4   : > { %p25_p0 = scmp.ge.s32.totalorder %s24_s23, 2  ;;  %p68_p2 = scmp.eq.s32.totalorder %s896_s22, 0 }
   0x5   : > { %s60_s25 = sadd.s32 1, %s884_s19  ;;  %p760_p5 = scmp.ge.s32.totalorder %s896_s22, 2 }
   0x6   : > { %s1040_s23 = smov (%p25_p0, %s24_s23), 0  ;;  %p69_p3 = por %p68_p2, %p67_p1 }
   0x7   : > { %s57_s24 = ssub.s32 %s892_s21, %s1040_s23  ;;  %208 = sbr.rel (%p760_p5) target bundleno = 26 (0x1a), region = 20 }
   0x8   : > { %p58_p4 = scmp.eq.s32.totalorder %s57_s24, 0 }
   0xa   : > { %s964_s26 = scalar_select %p58_p4, %s884_s19, %s60_s25  }
   0xe   : > { %211 = sbr.rel (!%p69_p3) target bundleno = 26 (0x1a), region = 24  ;;  %s213_s27 = sand.u32 (%p69_p3), 1, %s884_s19  }
   0xf   : > { %s791_s28 = sshll.u32 (%p69_p3), %s892_s21, 3  ;;  %s761_s29 = sshll.u32 (%p69_p3), %s213_s27, 7 }
  0x10   : > { %s972_s7 = scalar_lea.vmem (%p69_p3), %s1030_s1, %s791_s28  ;;  %s215_s8 = scalar_lea.vmem (%p69_p3), [#allocation2], %s761_s29 }
  0x11   : > { %v276_v0 = vld [vmem:[%s972_s7] sm:$0xff] (%p69_p3)  ;;  %v278_v1 = vld [vmem:[%s972_s7 + $0x10] sm:$0xff] (%p69_p3) }
  0x12   : > { %v280_v2 = vld [vmem:[%s972_s7 + $0x20] sm:$0xff] (%p69_p3)  ;;  %277 = vst [vmem:[%s215_s8] sm:$0xff] (%p69_p3), %v276_v0  ;;  %279 = vst [vmem:[%s215_s8 + $0x8] sm:$0xff] (%p69_p3), %v278_v1  ;;  %v282_v3 = vld [vmem:[%s972_s7 + $0x30] sm:$0xff] (%p69_p3) }
  0x13   : > { %281 = vst [vmem:[%s215_s8 + $0x10] sm:$0xff] (%p69_p3), %v280_v2  ;;  %v284_v4 = vld [vmem:[%s972_s7 + $0x40] sm:$0xff] (%p69_p3)  ;;  %v286_v5 = vld [vmem:[%s972_s7 + $0x50] sm:$0xff] (%p69_p3)  ;;  %283 = vst [vmem:[%s215_s8 + $0x18] sm:$0xff] (%p69_p3), %v282_v3 }
  0x14   : > { %285 = vst [vmem:[%s215_s8 + $0x20] sm:$0xff] (%p69_p3), %v284_v4  ;;  %287 = vst [vmem:[%s215_s8 + $0x28] sm:$0xff] (%p69_p3), %v286_v5  ;;  %v288_v6 = vld [vmem:[%s972_s7 + $0x60] sm:$0xff] (%p69_p3)  ;;  %v290_v7 = vld [vmem:[%s972_s7 + $0x70] sm:$0xff] (%p69_p3) }
  0x15   : > { %v292_v8 = vld [vmem:[%s972_s7 + $0x80] sm:$0xff]  ;;  %289 = vst [vmem:[%s215_s8 + $0x30] sm:$0xff] %v288_v6  ;;  %291 = vst [vmem:[%s215_s8 + $0x38] sm:$0xff] %v290_v7  ;;  %v294_v9 = vld [vmem:[%s972_s7 + $0x90] sm:$0xff] }
  0x16   : > { %293 = vst [vmem:[%s215_s8 + $0x40] sm:$0xff] %v292_v8  ;;  %v296_v10 = vld [vmem:[%s972_s7 + $0xa0] sm:$0xff]  ;;  %v298_v11 = vld [vmem:[%s972_s7 + $0xb0] sm:$0xff]  ;;  %295 = vst [vmem:[%s215_s8 + $0x48] sm:$0xff] %v294_v9 }
  0x17   : > { %297 = vst [vmem:[%s215_s8 + $0x50] sm:$0xff] %v296_v10  ;;  %299 = vst [vmem:[%s215_s8 + $0x58] sm:$0xff] %v298_v11  ;;  %v300_v12 = vld [vmem:[%s972_s7 + $0xc0] sm:$0xff]  ;;  %v302_v13 = vld [vmem:[%s972_s7 + $0xd0] sm:$0xff] }
  0x18   : > { %v304_v14 = vld [vmem:[%s972_s7 + $0xe0] sm:$0xff]  ;;  %301 = vst [vmem:[%s215_s8 + $0x60] sm:$0xff] %v300_v12  ;;  %303 = vst [vmem:[%s215_s8 + $0x68] sm:$0xff] %v302_v13  ;;  %v306_v15 = vld [vmem:[%s972_s7 + $0xf0] sm:$0xff] }
  0x19   : > { %305 = vst [vmem:[%s215_s8 + $0x70] sm:$0xff] %v304_v14  ;;  %307 = vst [vmem:[%s215_s8 + $0x78] sm:$0xff] %v306_v15 }
  0x1a PF: > { %p764_p6 = scmp.ge.s32.totalorder %s896_s22, 1  ;;  %p341_p7 = scmp.lt.s32.totalorder %s896_s22, 3 }
  0x1c   : > { %p342_p8 = pnand %p764_p6, %p341_p7 }
  0x1d   : > { %s348_s9 = sand.u32 (!%p342_p8), 1, %s880_s18   ;;  %v898_v16 = vmov (!%p342_p8), 0   ;;  %v436_v33 = vld [vmem:[%s1029_s0] sm:$0xf] (!%p342_p8)  ;;  %s766_s14 = sshll.u32 (!%p342_p8), %s888_s20, 1  ;;  %v576_v34 = vlaneseq (!%p342_p8) }
  0x1e   : > { %345 = sbr.rel (%p342_p8) target bundleno = 289 (0x121), region = 74  ;;  %s765_s10 = sshll.u32 (!%p342_p8), %s348_s9, 7  ;;  %565 = vmatprep.mubr.bf16.mxu0 (!%p342_p8), %v898_v16 }
  0x1f   : > { %s350_s11 = scalar_lea.vmem (!%p342_p8), [#allocation2], %s765_s10  ;;  %p406_p9 = scmp.lt.s32.totalorder (!%p342_p8), %s766_s14, 3  ;;  %v577_v35 = vshrl.u32 (!%p342_p8), %v576_v34, 7 }
  0x20   : > { %v834_v17 = vld [vmem:[%s350_s11 + $0x4] ss:$8 sps:$4 sm:$0xff] (!%p342_p8)   ;;  %v836_v18 = vld [vmem:[%s350_s11] ss:$8 sps:$4 sm:$0xff] (!%p342_p8)   ;;  %v837_v19 = vld [vmem:[%s350_s11 + $0x14] ss:$8 sps:$4 sm:$0xff] (!%p342_p8)  }
  0x21   : > { %533 = vmatprep.subr.bf16.mxu0 (!%p342_p8), %v834_v17  ;;  %v839_v20 = vld [vmem:[%s350_s11 + $0x10] ss:$8 sps:$4 sm:$0xff] (!%p342_p8)   ;;  %v840_v21 = vld [vmem:[%s350_s11 + $0x24] ss:$8 sps:$4 sm:$0xff] (!%p342_p8)   ;;  %v842_v22 = vld [vmem:[%s350_s11 + $0x20] ss:$8 sps:$4 sm:$0xff] (!%p342_p8)  }
  0x22   : > { %534 = vmatpush1.bf16.msra.mxu0 (!%p342_p8), %v836_v18  ;;  %v843_v23 = vld [vmem:[%s350_s11 + $0x34] ss:$8 sps:$4 sm:$0xff] (!%p342_p8)   ;;  %v845_v24 = vld [vmem:[%s350_s11 + $0x30] ss:$8 sps:$4 sm:$0xff] (!%p342_p8)   ;;  %v846_v25 = vld [vmem:[%s350_s11 + $0x44] ss:$8 sps:$4 sm:$0xff] (!%p342_p8)  }
  0x23   : > { %535 = vmatprep.subr.bf16.mxu0 (!%p342_p8), %v837_v19  ;;  %v848_v26 = vld [vmem:[%s350_s11 + $0x40] ss:$8 sps:$4 sm:$0xff] (!%p342_p8)   ;;  %v849_v27 = vld [vmem:[%s350_s11 + $0x54] ss:$8 sps:$4 sm:$0xff] (!%p342_p8)   ;;  %v851_v28 = vld [vmem:[%s350_s11 + $0x50] ss:$8 sps:$4 sm:$0xff] (!%p342_p8)  }
  0x24   : > { %v852_v29 = vld [vmem:[%s350_s11 + $0x64] ss:$8 sps:$4 sm:$0xff] (!%p342_p8)   ;;  %v854_v30 = vld [vmem:[%s350_s11 + $0x60] ss:$8 sps:$4 sm:$0xff] (!%p342_p8)   ;;  %v855_v31 = vld [vmem:[%s350_s11 + $0x74] ss:$8 sps:$4 sm:$0xff] (!%p342_p8)  }
  0x25   : > { %v857_v32 = vld [vmem:[%s350_s11 + $0x70] ss:$8 sps:$4 sm:$0xff]   ;;  %s1042_s14 = smov (!%p406_p9, %s766_s14), 3  ;;  %v578_v36 = vsub.s32 0, %v577_v35  ;;  %v582_v38 = vsub.s32 1, %v577_v35 }
  0x26   : > { %536 = vmatpush1.bf16.msra.mxu0 %v839_v20  ;;  %s408_s17 = scalar_lea.vmem %s1031_s2, %s1042_s14  ;;  %s769_s18 = sshll.u32 %s1042_s14, 2 }
  0x27   : > { %537 = vmatprep.subr.bf16.mxu0 %v840_v21  ;;  %s413_s27 = scalar_lea.vmem %s1032_s3, %s1042_s14  ;;  %v574_v37 = vld [vmem:[%s408_s17] sm:$0x3]  ;;  %s423_s29 = scalar_lea.vmem %s1033_s4, %s769_s18 }
  0x28   : > { %v588_v39 = vld [vmem:[%s413_s27] sm:$0x3]  ;;  %v579_v40 = vrot.slane %v574_v37, %v578_v36  ;;  %v583_v42 = vrot.slane %v574_v37, %v582_v38  ;;  %s433_s7 = scalar_lea.vmem %s1034_s5, %s769_s18 }
  0x29   : > { %v602_v41 = vld [vmem:[%s423_s29] sm:$0xff]  ;;  %v593_v43 = vrot.slane %v588_v39, %v578_v36  ;;  %v597_v45 = vrot.slane %v588_v39, %v582_v38 }
  0x2a   : > { %538 = vmatpush1.bf16.msra.mxu0 %v842_v22  ;;  %v603_v47 = vunpack.c.l.bf16 %v602_v41  ;;  %v604_v50 = vunpack.c.h.bf16 %v602_v41 }
  0x2b   : > { %539 = vmatprep.subr.bf16.mxu0 %v843_v23 }
  0x2e   : > { %540 = vmatpush1.bf16.msra.mxu0 %v845_v24 }
  0x2f   : > { %541 = vmatprep.subr.bf16.mxu0 %v846_v25 }
  0x32   : > { %542 = vmatpush1.bf16.msra.mxu0 %v848_v26 }
  0x33   : > { %543 = vmatprep.subr.bf16.mxu0 %v849_v27 }
  0x36   : > { %544 = vmatpush1.bf16.msra.mxu0 %v851_v28 }
  0x37   : > { %545 = vmatprep.subr.bf16.mxu0 %v852_v29 }
  0x3a   : > { %546 = vmatpush1.bf16.msra.mxu0 %v854_v30 }
  0x3b   : > { %547 = vmatprep.subr.bf16.mxu0 %v855_v31 }
  0x3e   : > { %548 = vmatpush1.bf16.msra.mxu0 %v857_v32 }
  0x41   : > { %566 = vmatmul.mubr.bf16.vlgmr.msra.gmra.mrb[0].mxu0 %v436_v33 }
 0x114   : > { %v567_v44 = vpop.f32.mrb[0].mxu0 }
 0x115   : > { %v586_v46 = vmul.f32 %v579_v40, %v567_v44  ;;  %v569_v48 = vpop.f32.mrb[1].mxu0 }
 0x116   : > { %v587_v49 = vmul.f32 %v583_v42, %v569_v48  ;;  %v571_v51 = vpop.f32.mrb[2].mxu0 }
 0x117   : > { %v600_v52 = vadd.f32 %v593_v43, %v586_v46  ;;  %v572_v53 = vpop.f32.mrb[3].mxu0 }
 0x118   : > { %v601_v54 = vadd.f32 %v597_v45, %v587_v49 }
 0x119   : > { %v605_v55 = vadd.f32 %v603_v47, %v600_v52 }
 0x11a   : > { %v606_v56 = vadd.f32 %v604_v50, %v601_v54 }
 0x11b   : > { %v607_v57 = vmax.f32 %v605_v55, 0.0 }
 0x11c   : > { %v608_v58 = vmax.f32 %v606_v56, 0.0 }
 0x11e   : > { %v792_v59 = vpack.c.bf16 %v608_v58, %v607_v57 }
 0x120   : > { %617 = vst [vmem:[%s433_s7] sm:$0xff] %v792_v59 }
 0x121 PF: > { %s15_s22 = sadd.s32 1, %s896_s22   ;;  %s1035_s18 = smov %s884_s19 }
 0x122   : > { %p12_p10 = scmp.ge.s32.totalorder %s15_s22, 4   ;;  %s1036_s19 = smov %s964_s26 }
 0x123   : > { %s1037_s20 = smov %s892_s21  ;;  %s1038_s21 = smov %s1040_s23 }
 0x124   :  { %14 = sbr.rel (!%p12_p10) target bundleno = 3 (0x3), region = 125 }

// kernel: _lambda_.63
= control target key start
LH: loop header
LB: loop body
LE: loop exit
PB: predicated region body
PF: predicated region fallthrough
CT: control target
= control target key end

     0   :  { %s647_s1 = inlined_call_operand.vmem [shape: bf16[512,128], index: 1, kind: input, shape index: {}]   ;;  %s648_s0 = inlined_call_operand.vmem [shape: bf16[8,512], index: 0, kind: input, shape index: {}]   ;;  %s649_s2 = inlined_call_operand.vmem [shape: f32[1,128], index: 2, kind: input, shape index: {}]   ;;  %s650_s3 = inlined_call_operand.vmem [shape: f32[1,128], index: 3, kind: input, shape index: {}]   ;;  %s651_s4 = inlined_call_operand.vmem [shape: bf16[8,128], index: 4, kind: output, shape index: {}]  }
   0x1   :  { %v475_v0 = vld [vmem:[%s647_s1 + $0x40] sm:$0xff]   ;;  %v479_v4 = vld [vmem:[%s647_s1 + $0x48] sm:$0xff]   ;;  %v483_v8 = vld [vmem:[%s647_s1 + $0x50] sm:$0xff]  }
   0x2   :  { %v476_v1 = vld [vmem:[%s647_s1 + $0xc0] sm:$0xff]   ;;  %431 = vmatprep.subr.bf16.mxu0 %v475_v0  ;;  %v480_v5 = vld [vmem:[%s647_s1 + $0xc8] sm:$0xff]   ;;  %v484_v9 = vld [vmem:[%s647_s1 + $0xd0] sm:$0xff]  }
   0x3   :  { %v477_v2 = vld [vmem:[%s647_s1] sm:$0xff]   ;;  %453 = vmatprep.subr.bf16.mxu1 %v476_v1  ;;  %v481_v6 = vld [vmem:[%s647_s1 + $0x8] sm:$0xff]   ;;  %v485_v10 = vld [vmem:[%s647_s1 + $0x10] sm:$0xff]  }
   0x4   :  { %v478_v3 = vld [vmem:[%s647_s1 + $0x80] sm:$0xff]   ;;  %432 = vmatpush3.bf16.msra.mxu0 %v477_v2  ;;  %v482_v7 = vld [vmem:[%s647_s1 + $0x88] sm:$0xff]   ;;  %v486_v11 = vld [vmem:[%s647_s1 + $0x90] sm:$0xff]  }
   0x5   :  { %454 = vmatpush3.bf16.msra.mxu1 %v478_v3  ;;  %433 = vmatprep.subr.bf16.mxu0 %v479_v4  ;;  %v487_v12 = vld [vmem:[%s647_s1 + $0x58] sm:$0xff]   ;;  %v491_v16 = vld [vmem:[%s647_s1 + $0x60] sm:$0xff]   ;;  %v495_v20 = vld [vmem:[%s647_s1 + $0x68] sm:$0xff]  }
   0x6   :  { %455 = vmatprep.subr.bf16.mxu1 %v480_v5  ;;  %v488_v13 = vld [vmem:[%s647_s1 + $0xd8] sm:$0xff]   ;;  %v492_v17 = vld [vmem:[%s647_s1 + $0xe0] sm:$0xff]   ;;  %v496_v21 = vld [vmem:[%s647_s1 + $0xe8] sm:$0xff]  }
   0x7   :  { %v489_v14 = vld [vmem:[%s647_s1 + $0x18] sm:$0xff]   ;;  %v493_v18 = vld [vmem:[%s647_s1 + $0x20] sm:$0xff]   ;;  %v497_v22 = vld [vmem:[%s647_s1 + $0x28] sm:$0xff]  }
   0x8   :  { %434 = vmatpush3.bf16.msra.mxu0 %v481_v6  ;;  %v490_v15 = vld [vmem:[%s647_s1 + $0x98] sm:$0xff]   ;;  %v494_v19 = vld [vmem:[%s647_s1 + $0xa0] sm:$0xff]   ;;  %v498_v23 = vld [vmem:[%s647_s1 + $0xa8] sm:$0xff]  }
   0x9   :  { %456 = vmatpush3.bf16.msra.mxu1 %v482_v7  ;;  %435 = vmatprep.subr.bf16.mxu0 %v483_v8  ;;  %v499_v24 = vld [vmem:[%s647_s1 + $0x70] sm:$0xff]   ;;  %v503_v28 = vld [vmem:[%s647_s1 + $0x78] sm:$0xff]   ;;  %v18_v32 = vld [vmem:[%s648_s0] sm:$0xff] }
   0xa   :  { %457 = vmatprep.subr.bf16.mxu1 %v484_v9  ;;  %v500_v25 = vld [vmem:[%s647_s1 + $0xf0] sm:$0xff]   ;;  %v504_v29 = vld [vmem:[%s647_s1 + $0xf8] sm:$0xff]   ;;  %v19_v33 = vld [vmem:[%s648_s0 + $0x8] sm:$0xff]  ;;  %v393_v34 = vcombine.low %v18_v32, %v18_v32  ;;  %v394_v35 = vcombine.high %v18_v32, %v18_v32 }
   0xb   :  { %v501_v26 = vld [vmem:[%s647_s1 + $0x30] sm:$0xff]   ;;  %v505_v30 = vld [vmem:[%s647_s1 + $0x38] sm:$0xff]   ;;  %v395_v36 = vcombine.low %v19_v33, %v19_v33  ;;  %v396_v37 = vcombine.high %v19_v33, %v19_v33  ;;  %v429_v46 = vld [vmem:[%s649_s2] ss:$0 sm:$0xff] }
   0xc   :  { %436 = vmatpush3.bf16.msra.mxu0 %v485_v10  ;;  %v502_v27 = vld [vmem:[%s647_s1 + $0xb0] sm:$0xff]   ;;  %v506_v31 = vld [vmem:[%s647_s1 + $0xb8] sm:$0xff]   ;;  %322 = vmatprep.mubr.bf16.mxu0 %v394_v35  ;;  %v430_v50 = vld [vmem:[%s650_s3] ss:$0 sm:$0xff] }
   0xd   :  { %458 = vmatpush3.bf16.msra.mxu1 %v486_v11  ;;  %437 = vmatprep.subr.bf16.mxu0 %v487_v12 }
   0xe   :  { %459 = vmatprep.subr.bf16.mxu1 %v488_v13  ;;  %362 = vmatprep.mubr.bf16.mxu1 %v396_v37 }
  0x10   :  { %438 = vmatpush3.bf16.msra.mxu0 %v489_v14 }
  0x11   :  { %460 = vmatpush3.bf16.msra.mxu1 %v490_v15  ;;  %439 = vmatprep.subr.bf16.mxu0 %v491_v16 }
  0x12   :  { %461 = vmatprep.subr.bf16.mxu1 %v492_v17 }
  0x14   :  { %440 = vmatpush3.bf16.msra.mxu0 %v493_v18 }
  0x15   :  { %462 = vmatpush3.bf16.msra.mxu1 %v494_v19  ;;  %441 = vmatprep.subr.bf16.mxu0 %v495_v20 }
  0x16   :  { %463 = vmatprep.subr.bf16.mxu1 %v496_v21 }
  0x18   :  { %442 = vmatpush3.bf16.msra.mxu0 %v497_v22 }
  0x19   :  { %464 = vmatpush3.bf16.msra.mxu1 %v498_v23  ;;  %443 = vmatprep.subr.bf16.mxu0 %v499_v24 }
  0x1a   :  { %465 = vmatprep.subr.bf16.mxu1 %v500_v25 }
  0x1c   :  { %444 = vmatpush3.bf16.msra.mxu0 %v501_v26 }
  0x1d   :  { %466 = vmatpush3.bf16.msra.mxu1 %v502_v27  ;;  %445 = vmatprep.subr.bf16.mxu0 %v503_v28 }
  0x1e   :  { %467 = vmatprep.subr.bf16.mxu1 %v504_v29 }
  0x20   :  { %446 = vmatpush3.bf16.msra.mxu0 %v505_v30 }
  0x21   :  { %468 = vmatpush3.bf16.msra.mxu1 %v506_v31 }
  0x23   :  { %323 = vmatmul.mubr.bf16.vlgmr.msra.gmra.mrb[0].mxu0 %v393_v34 }
  0x24   :  { %363 = vmatmul.mubr.bf16.vlgmr.msra.gmra.mrb[0].mxu1 %v395_v36 }
  0xf6   :  { %v447_v38 = vpop.f32.mrb[0].mxu0 }
  0xf7   :  { %v469_v39 = vpop.f32.mrb[0].mxu1  ;;  %v448_v40 = vpop.f32.mrb[1].mxu0 }
  0xf8   :  { %v470_v41 = vpop.f32.mrb[1].mxu1  ;;  %v449_v42 = vadd.f32 %v448_v40, %v447_v38  ;;  %v450_v44 = vpop.f32.mrb[2].mxu0 }
  0xf9   :  { %v471_v43 = vadd.f32 %v470_v41, %v469_v39  ;;  %v472_v45 = vpop.f32.mrb[2].mxu1  ;;  %v451_v47 = vpop.f32.mrb[3].mxu0 }
  0xfa   :  { %v473_v48 = vpop.f32.mrb[3].mxu1 }
  0xfb   :  { %v365_v49 = vadd.f32 %v471_v43, %v449_v42 }
  0xfd   :  { %v377_v51 = vmul.f32 %v429_v46, %v365_v49 }
  0xff   :  { %v385_v52 = vadd.f32 %v430_v50, %v377_v51 }
 0x101   :  { %v386_v53 = vmax.f32 %v385_v52, 0.0 }
 0x103   :  { %v387_v54 = vpack.c.bf16 %v386_v53, %v386_v53 }
 0x105   :  { %388 = vst [vmem:[%s651_s4] sm:$0xf] %v387_v54 }

// kernel: _lambda_.60
= control target key start
LH: loop header
LB: loop body
LE: loop exit
PB: predicated region body
PF: predicated region fallthrough
CT: control target
= control target key end

     0   :  { %vm1138_vm0 = vmmov 0   ;;  %s1404_s1 = inlined_call_operand.vmem [shape: bf16[1152,128], index: 1, kind: input, shape index: {}]   ;;  %s1405_s0 = inlined_call_operand.vmem [shape: bf16[8,1152], index: 0, kind: input, shape index: {}]   ;;  %s1406_s2 = inlined_call_operand.vmem [shape: f32[1,128], index: 2, kind: input, shape index: {}]   ;;  %s1407_s3 = inlined_call_operand.vmem [shape: f32[1,128], index: 3, kind: input, shape index: {}]   ;;  %s1408_s4 = inlined_call_operand.vmem [shape: bf16[8,128], index: 4, kind: output, shape index: {}]  }
   0x1   :  { %v1056_v0 = vld [vmem:[%s1404_s1 + $0x40] sm:$0xff]   ;;  %v1060_v4 = vld [vmem:[%s1404_s1 + $0x48] sm:$0xff]   ;;  %v1064_v8 = vld [vmem:[%s1404_s1 + $0x50] sm:$0xff]  }
   0x2   :  { %v1057_v1 = vld [vmem:[%s1404_s1 + $0xc0] sm:$0xff]   ;;  %937 = vmatprep.subr.bf16.mxu0 %v1056_v0  ;;  %v1061_v5 = vld [vmem:[%s1404_s1 + $0xc8] sm:$0xff]   ;;  %v1065_v9 = vld [vmem:[%s1404_s1 + $0xd0] sm:$0xff]  }
   0x3   :  { %v1058_v2 = vld [vmem:[%s1404_s1] sm:$0xff]   ;;  %959 = vmatprep.subr.bf16.mxu1 %v1057_v1  ;;  %v1062_v6 = vld [vmem:[%s1404_s1 + $0x8] sm:$0xff]   ;;  %v1066_v10 = vld [vmem:[%s1404_s1 + $0x10] sm:$0xff]  }
   0x4   :  { %v1059_v3 = vld [vmem:[%s1404_s1 + $0x80] sm:$0xff]   ;;  %938 = vmatpush3.bf16.msra.mxu0 %v1058_v2  ;;  %v1063_v7 = vld [vmem:[%s1404_s1 + $0x88] sm:$0xff]   ;;  %v1067_v11 = vld [vmem:[%s1404_s1 + $0x90] sm:$0xff]  }
   0x5   :  { %960 = vmatpush3.bf16.msra.mxu1 %v1059_v3  ;;  %939 = vmatprep.subr.bf16.mxu0 %v1060_v4  ;;  %v1068_v12 = vld [vmem:[%s1404_s1 + $0x58] sm:$0xff]   ;;  %v1072_v16 = vld [vmem:[%s1404_s1 + $0x60] sm:$0xff]   ;;  %v1076_v20 = vld [vmem:[%s1404_s1 + $0x68] sm:$0xff]  }
   0x6   :  { %961 = vmatprep.subr.bf16.mxu1 %v1061_v5  ;;  %v1069_v13 = vld [vmem:[%s1404_s1 + $0xd8] sm:$0xff]   ;;  %v1073_v17 = vld [vmem:[%s1404_s1 + $0xe0] sm:$0xff]   ;;  %v1077_v21 = vld [vmem:[%s1404_s1 + $0xe8] sm:$0xff]  }
   0x7   :  { %v1070_v14 = vld [vmem:[%s1404_s1 + $0x18] sm:$0xff]   ;;  %v1074_v18 = vld [vmem:[%s1404_s1 + $0x20] sm:$0xff]   ;;  %v1078_v22 = vld [vmem:[%s1404_s1 + $0x28] sm:$0xff]  }
   0x8   :  { %940 = vmatpush3.bf16.msra.mxu0 %v1062_v6  ;;  %v1071_v15 = vld [vmem:[%s1404_s1 + $0x98] sm:$0xff]   ;;  %v1075_v19 = vld [vmem:[%s1404_s1 + $0xa0] sm:$0xff]   ;;  %v1079_v23 = vld [vmem:[%s1404_s1 + $0xa8] sm:$0xff]  }
   0x9   :  { %962 = vmatpush3.bf16.msra.mxu1 %v1063_v7  ;;  %941 = vmatprep.subr.bf16.mxu0 %v1064_v8  ;;  %v1080_v24 = vld [vmem:[%s1404_s1 + $0x70] sm:$0xff]   ;;  %v1084_v28 = vld [vmem:[%s1404_s1 + $0x78] sm:$0xff]   ;;  %v18_v32 = vld [vmem:[%s1405_s0] sm:$0xff] }
   0xa   :  { %963 = vmatprep.subr.bf16.mxu1 %v1065_v9  ;;  %v1081_v25 = vld [vmem:[%s1404_s1 + $0xf0] sm:$0xff]   ;;  %v1085_v29 = vld [vmem:[%s1404_s1 + $0xf8] sm:$0xff]   ;;  %v19_v33 = vld [vmem:[%s1405_s0 + $0x8] sm:$0xff]  ;;  %v854_v34 = vcombine.low %v18_v32, %v18_v32  ;;  %v855_v35 = vcombine.high %v18_v32, %v18_v32 }
   0xb   :  { %v1082_v26 = vld [vmem:[%s1404_s1 + $0x30] sm:$0xff]   ;;  %v1086_v30 = vld [vmem:[%s1404_s1 + $0x38] sm:$0xff]   ;;  %v856_v36 = vcombine.low %v19_v33, %v19_v33  ;;  %v857_v37 = vcombine.high %v19_v33, %v19_v33  ;;  %v1092_v38 = vld [vmem:[%s1404_s1 + $0x140] sm:$0xff]  }
   0xc   :  { %942 = vmatpush3.bf16.msra.mxu0 %v1066_v10  ;;  %v1083_v27 = vld [vmem:[%s1404_s1 + $0xb0] sm:$0xff]   ;;  %v1087_v31 = vld [vmem:[%s1404_s1 + $0xb8] sm:$0xff]   ;;  %v1093_v39 = vld [vmem:[%s1404_s1 + $0x100] sm:$0xff]   ;;  %663 = vmatprep.mubr.bf16.mxu0 %v855_v35 }
   0xd   :  { %964 = vmatpush3.bf16.msra.mxu1 %v1067_v11  ;;  %943 = vmatprep.subr.bf16.mxu0 %v1068_v12  ;;  %v1094_v40 = vld [vmem:[%s1404_s1 + $0x1c0] sm:$0xff]   ;;  %v1096_v42 = vld [vmem:[%s1404_s1 + $0x148] sm:$0xff]   ;;  %v1100_v46 = vld [vmem:[%s1404_s1 + $0x150] sm:$0xff]  }
   0xe   :  { %965 = vmatprep.subr.bf16.mxu1 %v1069_v13  ;;  %703 = vmatprep.mubr.bf16.mxu1 %v857_v37  ;;  %v1095_v41 = vld [vmem:[%s1404_s1 + $0x180] sm:$0xff]   ;;  %v1097_v43 = vld [vmem:[%s1404_s1 + $0x108] sm:$0xff]   ;;  %v1101_v47 = vld [vmem:[%s1404_s1 + $0x110] sm:$0xff]   ;;  %v1137_v13 = vmov 0.0  }
   0xf   :  { %v1098_v44 = vld [vmem:[%s1404_s1 + $0x1c8] sm:$0xff]   ;;  %v1102_v48 = vld [vmem:[%s1404_s1 + $0x1d0] sm:$0xff]   ;;  %v1104_v50 = vld [vmem:[%s1404_s1 + $0x158] sm:$0xff]  }
  0x10   :  { %944 = vmatpush3.bf16.msra.mxu0 %v1070_v14  ;;  %v1099_v45 = vld [vmem:[%s1404_s1 + $0x188] sm:$0xff]   ;;  %v1103_v49 = vld [vmem:[%s1404_s1 + $0x190] sm:$0xff]   ;;  %v1105_v51 = vld [vmem:[%s1404_s1 + $0x118] sm:$0xff]  }
  0x11   :  { %966 = vmatpush3.bf16.msra.mxu1 %v1071_v15  ;;  %945 = vmatprep.subr.bf16.mxu0 %v1072_v16  ;;  %v1106_v52 = vld [vmem:[%s1404_s1 + $0x1d8] sm:$0xff]   ;;  %v1108_v54 = vld [vmem:[%s1404_s1 + $0x160] sm:$0xff]   ;;  %v1112_v58 = vld [vmem:[%s1404_s1 + $0x168] sm:$0xff]  }
  0x12   :  { %967 = vmatprep.subr.bf16.mxu1 %v1073_v17  ;;  %v1107_v53 = vld [vmem:[%s1404_s1 + $0x198] sm:$0xff]   ;;  %v1109_v55 = vld [vmem:[%s1404_s1 + $0x120] sm:$0xff]   ;;  %v1113_v59 = vld [vmem:[%s1404_s1 + $0x128] sm:$0xff]  }
  0x13   :  { %v1110_v56 = vld [vmem:[%s1404_s1 + $0x1e0] sm:$0xff]   ;;  %v1114_v60 = vld [vmem:[%s1404_s1 + $0x1e8] sm:$0xff]   ;;  %v1116_v62 = vld [vmem:[%s1404_s1 + $0x170] sm:$0xff]  }
  0x14   :  { %946 = vmatpush3.bf16.msra.mxu0 %v1074_v18  ;;  %v1111_v57 = vld [vmem:[%s1404_s1 + $0x1a0] sm:$0xff]   ;;  %v1115_v61 = vld [vmem:[%s1404_s1 + $0x1a8] sm:$0xff]   ;;  %v1117_v63 = vld [vmem:[%s1404_s1 + $0x130] sm:$0xff]  }
  0x15   :  { %968 = vmatpush3.bf16.msra.mxu1 %v1075_v19  ;;  %947 = vmatprep.subr.bf16.mxu0 %v1076_v20  ;;  %v1118_v0 = vld [vmem:[%s1404_s1 + $0x1f0] sm:$0xff]   ;;  %v1120_v2 = vld [vmem:[%s1404_s1 + $0x178] sm:$0xff]   ;;  %v1128_v12 = vld [vmem:[%s1404_s1 + $0x200] sm:$0xff]  }
  0x16   :  { %969 = vmatprep.subr.bf16.mxu1 %v1077_v21  ;;  %v1119_v1 = vld [vmem:[%s1404_s1 + $0x1b0] sm:$0xff]   ;;  %v1121_v3 = vld [vmem:[%s1404_s1 + $0x138] sm:$0xff]   ;;  %v1129_v14 = vld [vmem:[%s1404_s1 + $0x208] sm:$0xff]  }
  0x17   :  { %v1122_v4 = vld [vmem:[%s1404_s1 + $0x1f8] sm:$0xff]   ;;  %v20_v5 = vld [vmem:[%s1405_s0 + $0x10] sm:$0xff]  ;;  %v1132_v17 = vld [vmem:[%s1404_s1 + $0x220] sm:$0xff]  }
  0x18   :  { %948 = vmatpush3.bf16.msra.mxu0 %v1078_v22  ;;  %v859_v6 = vcombine.high %v20_v5, %v20_v5  ;;  %v1125_v7 = vld [vmem:[%s1404_s1 + $0x1b8] sm:$0xff]   ;;  %v858_v8 = vcombine.low %v20_v5, %v20_v5  ;;  %v1130_v15 = vld [vmem:[%s1404_s1 + $0x210] sm:$0xff]   ;;  %v1133_v18 = vld [vmem:[%s1404_s1 + $0x228] sm:$0xff]  }
  0x19   :  { %970 = vmatpush3.bf16.msra.mxu1 %v1079_v23  ;;  %949 = vmatprep.subr.bf16.mxu0 %v1080_v24  ;;  %v21_v9 = vld [vmem:[%s1405_s0 + $0x18] sm:$0xff]  ;;  %v1134_v19 = vld [vmem:[%s1404_s1 + $0x230] sm:$0xff]   ;;  %v1136_v21 = vld [vmem:[%s1405_s0 + $0x20] ss:$0 sps:$4 sm:$0xff]  }
  0x1a   :  { %971 = vmatprep.subr.bf16.mxu1 %v1081_v25  ;;  %v860_v10 = vcombine.low %v21_v9, %v21_v9  ;;  %v861_v11 = vcombine.high %v21_v9, %v21_v9  ;;  %v1131_v16 = vld [vmem:[%s1404_s1 + $0x218] sm:$0xff]  }
  0x1b   :  { %v1135_v20 = vld [vmem:[%s1404_s1 + $0x238] sm:$0xff]  }
  0x1c   :  { %950 = vmatpush3.bf16.msra.mxu0 %v1082_v26 }
  0x1d   :  { %972 = vmatpush3.bf16.msra.mxu1 %v1083_v27  ;;  %951 = vmatprep.subr.bf16.mxu0 %v1084_v28 }
  0x1e   :  { %973 = vmatprep.subr.bf16.mxu1 %v1085_v29 }
  0x20   :  { %952 = vmatpush3.bf16.msra.mxu0 %v1086_v30 }
  0x21   :  { %974 = vmatpush3.bf16.msra.mxu1 %v1087_v31  ;;  %981 = vmatprep.subr.bf16.mxu0 %v1092_v38 }
  0x22   :  { %1003 = vmatprep.subr.bf16.mxu1 %v1094_v40 }
  0x23   :  { %664 = vmatmul.mubr.bf16.vlgmr.msra.gmra.mrb[0].mxu0 %v854_v34 }
  0x24   :  { %704 = vmatmul.mubr.bf16.vlgmr.msra.gmra.mrb[0].mxu1 %v856_v36  ;;  %982 = vmatpush3.bf16.msra.mxu0 %v1093_v39 }
  0x25   :  { %1004 = vmatpush3.bf16.msra.mxu1 %v1095_v41  ;;  %983 = vmatprep.subr.bf16.mxu0 %v1096_v42 }
  0x26   :  { %1005 = vmatprep.subr.bf16.mxu1 %v1098_v44  ;;  %743 = vmatprep.mubr.bf16.mxu0 %v859_v6 }
  0x27   :  { %783 = vmatprep.mubr.bf16.mxu1 %v861_v11 }
  0x28   :  { %984 = vmatpush3.bf16.msra.mxu0 %v1097_v43 }
  0x29   :  { %1006 = vmatpush3.bf16.msra.mxu1 %v1099_v45  ;;  %985 = vmatprep.subr.bf16.mxu0 %v1100_v46  ;;  %v935_v46 = vld [vmem:[%s1406_s2] ss:$0 sm:$0xff] }
  0x2a   :  { %1007 = vmatprep.subr.bf16.mxu1 %v1102_v48 }
  0x2c   :  { %986 = vmatpush3.bf16.msra.mxu0 %v1101_v47 }
  0x2d   :  { %1008 = vmatpush3.bf16.msra.mxu1 %v1103_v49  ;;  %987 = vmatprep.subr.bf16.mxu0 %v1104_v50  ;;  %v936_v49 = vld [vmem:[%s1407_s3] ss:$0 sm:$0xff] }
  0x2e   :  { %1009 = vmatprep.subr.bf16.mxu1 %v1106_v52 }
  0x30   :  { %988 = vmatpush3.bf16.msra.mxu0 %v1105_v51 }
  0x31   :  { %1010 = vmatpush3.bf16.msra.mxu1 %v1107_v53  ;;  %989 = vmatprep.subr.bf16.mxu0 %v1108_v54 }
  0x32   :  { %1011 = vmatprep.subr.bf16.mxu1 %v1110_v56 }
  0x34   :  { %990 = vmatpush3.bf16.msra.mxu0 %v1109_v55 }
  0x35   :  { %1012 = vmatpush3.bf16.msra.mxu1 %v1111_v57  ;;  %991 = vmatprep.subr.bf16.mxu0 %v1112_v58 }
  0x36   :  { %1013 = vmatprep.subr.bf16.mxu1 %v1114_v60 }
  0x38   :  { %992 = vmatpush3.bf16.msra.mxu0 %v1113_v59 }
  0x39   :  { %1014 = vmatpush3.bf16.msra.mxu1 %v1115_v61  ;;  %993 = vmatprep.subr.bf16.mxu0 %v1116_v62 }
  0x3a   :  { %1015 = vmatprep.subr.bf16.mxu1 %v1118_v0 }
  0x3c   :  { %994 = vmatpush3.bf16.msra.mxu0 %v1117_v63 }
  0x3d   :  { %1016 = vmatpush3.bf16.msra.mxu1 %v1119_v1  ;;  %995 = vmatprep.subr.bf16.mxu0 %v1120_v2 }
  0x3e   :  { %1017 = vmatprep.subr.bf16.mxu1 %v1122_v4 }
  0x40   :  { %996 = vmatpush3.bf16.msra.mxu0 %v1121_v3 }
  0x41   :  { %1018 = vmatpush3.bf16.msra.mxu1 %v1125_v7  ;;  %1034 = vmatprep.subr.bf16.mxu0 %v1137_v13 }
  0x43   :  { %744 = vmatmul.mubr.bf16.vlgmr.msra.gmra.mrb[4].mxu0 %v858_v8 }
  0x44   :  { %1035 = vmatpush3.bf16.msra.mxu0 %v1128_v12  ;;  %784 = vmatmul.mubr.bf16.vlgmr.msra.gmra.mrb[4].mxu1 %v860_v10 }
  0x45   :  { %1036 = vmatprep.subr.bf16.mxu0 %v1137_v13  ;;  %1050 = vmatprep.mubr.msk.bf16.mxu0 %vm1138_vm0, %v1137_v13 }
  0x48   :  { %1037 = vmatpush3.bf16.msra.mxu0 %v1129_v14 }
  0x49   :  { %1038 = vmatprep.subr.bf16.mxu0 %v1137_v13 }
  0x4c   :  { %1039 = vmatpush3.bf16.msra.mxu0 %v1130_v15 }
  0x4d   :  { %1040 = vmatprep.subr.bf16.mxu0 %v1137_v13 }
  0x50   :  { %1041 = vmatpush3.bf16.msra.mxu0 %v1131_v16 }
  0x51   :  { %1042 = vmatprep.subr.bf16.mxu0 %v1137_v13 }
  0x54   :  { %1043 = vmatpush3.bf16.msra.mxu0 %v1132_v17 }
  0x55   :  { %1044 = vmatprep.subr.bf16.mxu0 %v1137_v13 }
  0x58   :  { %1045 = vmatpush3.bf16.msra.mxu0 %v1133_v18 }
  0x59   :  { %1046 = vmatprep.subr.bf16.mxu0 %v1137_v13 }
  0x5c   :  { %1047 = vmatpush3.bf16.msra.mxu0 %v1134_v19 }
  0x5d   :  { %1048 = vmatprep.subr.bf16.mxu0 %v1137_v13 }
  0x60   :  { %1049 = vmatpush3.bf16.msra.mxu0 %v1135_v20 }
  0x63   :  { %1051 = vmatmul.mubr.bf16.vlgmr.msra.gmra.mrb[8].mxu0 %v1136_v21 }
  0xf6   :  { %v953_v22 = vpop.f32.mrb[0].mxu0 }
  0xf7   :  { %v975_v23 = vpop.f32.mrb[0].mxu1  ;;  %v954_v24 = vpop.f32.mrb[1].mxu0 }
  0xf8   :  { %v976_v25 = vpop.f32.mrb[1].mxu1  ;;  %v955_v26 = vadd.f32 %v954_v24, %v953_v22  ;;  %v956_v28 = vpop.f32.mrb[2].mxu0 }
  0xf9   :  { %v977_v27 = vadd.f32 %v976_v25, %v975_v23  ;;  %v978_v29 = vpop.f32.mrb[2].mxu1  ;;  %v957_v30 = vpop.f32.mrb[3].mxu0 }
  0xfa   :  { %v979_v31 = vpop.f32.mrb[3].mxu1 }
  0xfb   :  { %v706_v32 = vadd.f32 %v977_v27, %v955_v26 }
 0x116   :  { %v997_v33 = vpop.f32.mrb[4].mxu0 }
 0x117   :  { %v998_v34 = vpop.f32.mrb[5].mxu0  ;;  %v1019_v35 = vpop.f32.mrb[4].mxu1 }
 0x118   :  { %v999_v36 = vadd.f32 %v998_v34, %v997_v33  ;;  %v1000_v37 = vpop.f32.mrb[6].mxu0  ;;  %v1020_v38 = vpop.f32.mrb[5].mxu1 }
 0x119   :  { %v1001_v39 = vpop.f32.mrb[7].mxu0  ;;  %v1021_v40 = vadd.f32 %v1020_v38, %v1019_v35  ;;  %v1022_v41 = vpop.f32.mrb[6].mxu1 }
 0x11a   :  { %v746_v42 = vadd.f32 %v999_v36, %v706_v32  ;;  %v1023_v43 = vpop.f32.mrb[7].mxu1 }
 0x11c   :  { %v786_v44 = vadd.f32 %v1021_v40, %v746_v42 }
 0x136   :  { %v825_v45 = vpop.f32.mrb[8].mxu0 }
 0x137   :  { %v826_v47 = vadd.f32 %v825_v45, %v786_v44  ;;  %v1052_v48 = vpop.f32.mrb[9].mxu0 }
 0x138   :  { %v828_v50 = vpop.f32.mrb[10].mxu0 }
 0x139   :  { %v838_v51 = vmul.f32 %v935_v46, %v826_v47  ;;  %v1053_v52 = vpop.f32.mrb[11].mxu0 }
 0x13b   :  { %v846_v53 = vadd.f32 %v936_v49, %v838_v51 }
 0x13d   :  { %v847_v54 = vmax.f32 %v846_v53, 0.0 }
 0x13f   :  { %v848_v55 = vpack.c.bf16 %v847_v54, %v847_v54 }
 0x141   :  { %849 = vst [vmem:[%s1408_s4] sm:$0xf] %v848_v55 }

// kernel: _lambda_.72
= control target key start
LH: loop header
LB: loop body
LE: loop exit
PB: predicated region body
PF: predicated region fallthrough
CT: control target
= control target key end

     0   :  { %s946_s1 = inlined_call_operand.vmem [shape: bf16[512,256], index: 1, kind: input, shape index: {}]   ;;  %s947_s0 = inlined_call_operand.vmem [shape: bf16[8,512], index: 0, kind: input, shape index: {}]   ;;  %s948_s2 = inlined_call_operand.vmem [shape: f32[1,256], index: 2, kind: input, shape index: {}]   ;;  %s949_s3 = inlined_call_operand.vmem [shape: f32[1,256], index: 3, kind: input, shape index: {}]   ;;  %s950_s4 = inlined_call_operand.vmem [shape: bf16[8,256], index: 4, kind: output, shape index: {}]  }
   0x1   :  { %v614_v0 = vld [vmem:[%s946_s1 + $0x4] ss:$8 sps:$4 sm:$0xff]   ;;  %v618_v2 = vld [vmem:[%s946_s1] ss:$8 sps:$4 sm:$0xff]   ;;  %v620_v4 = vld [vmem:[%s946_s1 + $0x14] ss:$8 sps:$4 sm:$0xff]  }
   0x2   :  { %v616_v1 = vld [vmem:[%s946_s1 + $0x104] ss:$8 sps:$4 sm:$0xff]   ;;  %417 = vmatprep.subr.bf16.mxu1 %v614_v0  ;;  %v619_v3 = vld [vmem:[%s946_s1 + $0x100] ss:$8 sps:$4 sm:$0xff]   ;;  %v622_v5 = vld [vmem:[%s946_s1 + $0x114] ss:$8 sps:$4 sm:$0xff]  }
   0x3   :  { %458 = vmatprep.subr.bf16.mxu0 %v616_v1  ;;  %418 = vmatpush1.bf16.msra.mxu1 %v618_v2  ;;  %v624_v6 = vld [vmem:[%s946_s1 + $0x10] ss:$8 sps:$4 sm:$0xff]   ;;  %v626_v8 = vld [vmem:[%s946_s1 + $0x24] ss:$8 sps:$4 sm:$0xff]   ;;  %v630_v10 = vld [vmem:[%s946_s1 + $0x20] ss:$8 sps:$4 sm:$0xff]  }
   0x4   :  { %459 = vmatpush1.bf16.msra.mxu0 %v619_v3  ;;  %419 = vmatprep.subr.bf16.mxu1 %v620_v4  ;;  %v625_v7 = vld [vmem:[%s946_s1 + $0x110] ss:$8 sps:$4 sm:$0xff]   ;;  %v628_v9 = vld [vmem:[%s946_s1 + $0x124] ss:$8 sps:$4 sm:$0xff]   ;;  %v631_v11 = vld [vmem:[%s946_s1 + $0x120] ss:$8 sps:$4 sm:$0xff]  }
   0x5   :  { %460 = vmatprep.subr.bf16.mxu0 %v622_v5  ;;  %v632_v12 = vld [vmem:[%s946_s1 + $0x34] ss:$8 sps:$4 sm:$0xff]   ;;  %v636_v14 = vld [vmem:[%s946_s1 + $0x30] ss:$8 sps:$4 sm:$0xff]   ;;  %v638_v16 = vld [vmem:[%s946_s1 + $0x44] ss:$8 sps:$4 sm:$0xff]  }
   0x6   :  { %v634_v13 = vld [vmem:[%s946_s1 + $0x134] ss:$8 sps:$4 sm:$0xff]   ;;  %v637_v15 = vld [vmem:[%s946_s1 + $0x130] ss:$8 sps:$4 sm:$0xff]   ;;  %v640_v17 = vld [vmem:[%s946_s1 + $0x144] ss:$8 sps:$4 sm:$0xff]  }
   0x7   :  { %420 = vmatpush1.bf16.msra.mxu1 %v624_v6  ;;  %v642_v18 = vld [vmem:[%s946_s1 + $0x40] ss:$8 sps:$4 sm:$0xff]   ;;  %v644_v20 = vld [vmem:[%s946_s1 + $0x54] ss:$8 sps:$4 sm:$0xff]   ;;  %v648_v22 = vld [vmem:[%s946_s1 + $0x50] ss:$8 sps:$4 sm:$0xff]   ;;  %v501_v6 = vlaneseq }
   0x8   :  { %461 = vmatpush1.bf16.msra.mxu0 %v625_v7  ;;  %421 = vmatprep.subr.bf16.mxu1 %v626_v8  ;;  %v643_v19 = vld [vmem:[%s946_s1 + $0x140] ss:$8 sps:$4 sm:$0xff]   ;;  %v646_v21 = vld [vmem:[%s946_s1 + $0x154] ss:$8 sps:$4 sm:$0xff]   ;;  %v649_v23 = vld [vmem:[%s946_s1 + $0x150] ss:$8 sps:$4 sm:$0xff]  }
   0x9   :  { %462 = vmatprep.subr.bf16.mxu0 %v628_v9  ;;  %v650_v24 = vld [vmem:[%s946_s1 + $0x64] ss:$8 sps:$4 sm:$0xff]   ;;  %v654_v26 = vld [vmem:[%s946_s1 + $0x60] ss:$8 sps:$4 sm:$0xff]   ;;  %v656_v28 = vld [vmem:[%s946_s1 + $0x74] ss:$8 sps:$4 sm:$0xff]  }
   0xa   :  { %v652_v25 = vld [vmem:[%s946_s1 + $0x164] ss:$8 sps:$4 sm:$0xff]   ;;  %v655_v27 = vld [vmem:[%s946_s1 + $0x160] ss:$8 sps:$4 sm:$0xff]   ;;  %v658_v29 = vld [vmem:[%s946_s1 + $0x174] ss:$8 sps:$4 sm:$0xff]  }
   0xb   :  { %422 = vmatpush1.bf16.msra.mxu1 %v630_v10  ;;  %v660_v30 = vld [vmem:[%s946_s1 + $0x70] ss:$8 sps:$4 sm:$0xff]   ;;  %v662_v32 = vld [vmem:[%s946_s1 + $0x84] ss:$8 sps:$4 sm:$0xff]   ;;  %v666_v34 = vld [vmem:[%s946_s1 + $0x80] ss:$8 sps:$4 sm:$0xff]  }
   0xc   :  { %463 = vmatpush1.bf16.msra.mxu0 %v631_v11  ;;  %423 = vmatprep.subr.bf16.mxu1 %v632_v12  ;;  %v661_v31 = vld [vmem:[%s946_s1 + $0x170] ss:$8 sps:$4 sm:$0xff]   ;;  %v664_v33 = vld [vmem:[%s946_s1 + $0x184] ss:$8 sps:$4 sm:$0xff]   ;;  %v667_v35 = vld [vmem:[%s946_s1 + $0x180] ss:$8 sps:$4 sm:$0xff]  }
   0xd   :  { %464 = vmatprep.subr.bf16.mxu0 %v634_v13  ;;  %v668_v36 = vld [vmem:[%s946_s1 + $0x94] ss:$8 sps:$4 sm:$0xff]   ;;  %v672_v38 = vld [vmem:[%s946_s1 + $0x90] ss:$8 sps:$4 sm:$0xff]   ;;  %v674_v40 = vld [vmem:[%s946_s1 + $0xa4] ss:$8 sps:$4 sm:$0xff]  }
   0xe   :  { %v670_v37 = vld [vmem:[%s946_s1 + $0x194] ss:$8 sps:$4 sm:$0xff]   ;;  %v673_v39 = vld [vmem:[%s946_s1 + $0x190] ss:$8 sps:$4 sm:$0xff]   ;;  %v676_v41 = vld [vmem:[%s946_s1 + $0x1a4] ss:$8 sps:$4 sm:$0xff]  }
   0xf   :  { %424 = vmatpush1.bf16.msra.mxu1 %v636_v14  ;;  %v678_v42 = vld [vmem:[%s946_s1 + $0xa0] ss:$8 sps:$4 sm:$0xff]   ;;  %v680_v44 = vld [vmem:[%s946_s1 + $0xb4] ss:$8 sps:$4 sm:$0xff]   ;;  %v684_v49 = vld [vmem:[%s946_s1 + $0xb0] ss:$8 sps:$4 sm:$0xff]  }
  0x10   :  { %465 = vmatpush1.bf16.msra.mxu0 %v637_v15  ;;  %425 = vmatprep.subr.bf16.mxu1 %v638_v16  ;;  %v679_v43 = vld [vmem:[%s946_s1 + $0x1a0] ss:$8 sps:$4 sm:$0xff]   ;;  %v682_v45 = vld [vmem:[%s946_s1 + $0x1b4] ss:$8 sps:$4 sm:$0xff]   ;;  %v685_v50 = vld [vmem:[%s946_s1 + $0x1b0] ss:$8 sps:$4 sm:$0xff]  }
  0x11   :  { %466 = vmatprep.subr.bf16.mxu0 %v640_v17  ;;  %v17_v46 = vld [vmem:[%s947_s0] sm:$0xff]  ;;  %v18_v48 = vld [vmem:[%s947_s0 + $0x8] sm:$0xff]  ;;  %v692_v56 = vld [vmem:[%s946_s1 + $0xd4] ss:$8 sps:$4 sm:$0xff]   ;;  %v502_v7 = vshrl.u32 %v501_v6, 7 }
  0x12   :  { %v543_v47 = vcombine.high %v17_v46, %v17_v46  ;;  %v545_v51 = vcombine.high %v18_v48, %v18_v48  ;;  %v686_v52 = vld [vmem:[%s946_s1 + $0xc4] ss:$8 sps:$4 sm:$0xff]   ;;  %v690_v54 = vld [vmem:[%s946_s1 + $0xc0] ss:$8 sps:$4 sm:$0xff]   ;;  %v694_v57 = vld [vmem:[%s946_s1 + $0x1d4] ss:$8 sps:$4 sm:$0xff]   ;;  %v542_v4 = vcombine.low %v17_v46, %v17_v46  ;;  %v544_v5 = vcombine.low %v18_v48, %v18_v48 }
  0x13   :  { %426 = vmatpush1.bf16.msra.mxu1 %v642_v18  ;;  %v688_v53 = vld [vmem:[%s946_s1 + $0x1c4] ss:$8 sps:$4 sm:$0xff]   ;;  %v691_v55 = vld [vmem:[%s946_s1 + $0x1c0] ss:$8 sps:$4 sm:$0xff]   ;;  %v696_v58 = vld [vmem:[%s946_s1 + $0xd0] ss:$8 sps:$4 sm:$0xff]  }
  0x14   :  { %467 = vmatpush1.bf16.msra.mxu0 %v643_v19  ;;  %427 = vmatprep.subr.bf16.mxu1 %v644_v20  ;;  %v697_v59 = vld [vmem:[%s946_s1 + $0x1d0] ss:$8 sps:$4 sm:$0xff]   ;;  %v698_v60 = vld [vmem:[%s946_s1 + $0xe4] ss:$8 sps:$4 sm:$0xff]   ;;  %v702_v62 = vld [vmem:[%s946_s1 + $0xe0] ss:$8 sps:$4 sm:$0xff]  }
  0x15   :  { %468 = vmatprep.subr.bf16.mxu0 %v646_v21  ;;  %449 = vmatprep.mubr.bf16.mxu1 %v543_v47  ;;  %v700_v61 = vld [vmem:[%s946_s1 + $0x1e4] ss:$8 sps:$4 sm:$0xff]   ;;  %v703_v63 = vld [vmem:[%s946_s1 + $0x1e0] ss:$8 sps:$4 sm:$0xff]   ;;  %v704_v0 = vld [vmem:[%s946_s1 + $0xf4] ss:$8 sps:$4 sm:$0xff]  }
  0x16   :  { %490 = vmatprep.mubr.bf16.mxu0 %v545_v51  ;;  %v706_v1 = vld [vmem:[%s946_s1 + $0x1f4] ss:$8 sps:$4 sm:$0xff]   ;;  %v708_v2 = vld [vmem:[%s946_s1 + $0xf0] ss:$8 sps:$4 sm:$0xff]   ;;  %v503_v8 = vsub.s32 0, %v502_v7  ;;  %v507_v10 = vsub.s32 1, %v502_v7 }
  0x17   :  { %428 = vmatpush1.bf16.msra.mxu1 %v648_v22  ;;  %v709_v3 = vld [vmem:[%s946_s1 + $0x1f0] ss:$8 sps:$4 sm:$0xff]   ;;  %v499_v9 = vld [vmem:[%s948_s2] sm:$0x3] }
  0x18   :  { %469 = vmatpush1.bf16.msra.mxu0 %v649_v23  ;;  %429 = vmatprep.subr.bf16.mxu1 %v650_v24  ;;  %v513_v11 = vld [vmem:[%s949_s3] sm:$0x3]  ;;  %v504_v12 = vrot.slane %v499_v9, %v503_v8  ;;  %v508_v15 = vrot.slane %v499_v9, %v507_v10 }
  0x19   :  { %470 = vmatprep.subr.bf16.mxu0 %v652_v25  ;;  %v518_v17 = vrot.slane %v513_v11, %v503_v8  ;;  %v522_v21 = vrot.slane %v513_v11, %v507_v10 }
  0x1b   :  { %430 = vmatpush1.bf16.msra.mxu1 %v654_v26 }
  0x1c   :  { %471 = vmatpush1.bf16.msra.mxu0 %v655_v27  ;;  %431 = vmatprep.subr.bf16.mxu1 %v656_v28 }
  0x1d   :  { %472 = vmatprep.subr.bf16.mxu0 %v658_v29 }
  0x1f   :  { %432 = vmatpush1.bf16.msra.mxu1 %v660_v30 }
  0x20   :  { %473 = vmatpush1.bf16.msra.mxu0 %v661_v31  ;;  %433 = vmatprep.subr.bf16.mxu1 %v662_v32 }
  0x21   :  { %474 = vmatprep.subr.bf16.mxu0 %v664_v33 }
  0x23   :  { %434 = vmatpush1.bf16.msra.mxu1 %v666_v34 }
  0x24   :  { %475 = vmatpush1.bf16.msra.mxu0 %v667_v35  ;;  %435 = vmatprep.subr.bf16.mxu1 %v668_v36 }
  0x25   :  { %476 = vmatprep.subr.bf16.mxu0 %v670_v37 }
  0x27   :  { %436 = vmatpush1.bf16.msra.mxu1 %v672_v38 }
  0x28   :  { %477 = vmatpush1.bf16.msra.mxu0 %v673_v39  ;;  %437 = vmatprep.subr.bf16.mxu1 %v674_v40 }
  0x29   :  { %478 = vmatprep.subr.bf16.mxu0 %v676_v41 }
  0x2b   :  { %438 = vmatpush1.bf16.msra.mxu1 %v678_v42 }
  0x2c   :  { %479 = vmatpush1.bf16.msra.mxu0 %v679_v43  ;;  %439 = vmatprep.subr.bf16.mxu1 %v680_v44 }
  0x2d   :  { %480 = vmatprep.subr.bf16.mxu0 %v682_v45 }
  0x2f   :  { %440 = vmatpush1.bf16.msra.mxu1 %v684_v49 }
  0x30   :  { %481 = vmatpush1.bf16.msra.mxu0 %v685_v50  ;;  %441 = vmatprep.subr.bf16.mxu1 %v686_v52 }
  0x31   :  { %482 = vmatprep.subr.bf16.mxu0 %v688_v53 }
  0x33   :  { %442 = vmatpush1.bf16.msra.mxu1 %v690_v54 }
  0x34   :  { %483 = vmatpush1.bf16.msra.mxu0 %v691_v55  ;;  %443 = vmatprep.subr.bf16.mxu1 %v692_v56 }
  0x35   :  { %484 = vmatprep.subr.bf16.mxu0 %v694_v57 }
  0x37   :  { %444 = vmatpush1.bf16.msra.mxu1 %v696_v58 }
  0x38   :  { %485 = vmatpush1.bf16.msra.mxu0 %v697_v59  ;;  %445 = vmatprep.subr.bf16.mxu1 %v698_v60 }
  0x39   :  { %486 = vmatprep.subr.bf16.mxu0 %v700_v61 }
  0x3b   :  { %446 = vmatpush1.bf16.msra.mxu1 %v702_v62 }
  0x3c   :  { %487 = vmatpush1.bf16.msra.mxu0 %v703_v63  ;;  %447 = vmatprep.subr.bf16.mxu1 %v704_v0 }
  0x3d   :  { %488 = vmatprep.subr.bf16.mxu0 %v706_v1 }
  0x3f   :  { %448 = vmatpush1.bf16.msra.mxu1 %v708_v2 }
  0x40   :  { %489 = vmatpush1.bf16.msra.mxu0 %v709_v3 }
  0x42   :  { %450 = vmatmul.mubr.bf16.vlgmr.msra.gmra.mrb[0].mxu1 %v542_v4 }
  0x43   :  { %491 = vmatmul.mubr.bf16.vlgmr.msra.gmra.mrb[0].mxu0 %v544_v5 }
 0x115   :  { %v451_v13 = vpop.f32.mrb[0].mxu1 }
 0x116   :  { %v492_v14 = vpop.f32.mrb[0].mxu0  ;;  %v453_v18 = vpop.f32.mrb[1].mxu1 }
 0x117   :  { %v493_v16 = vadd.f32 %v492_v14, %v451_v13  ;;  %v494_v19 = vpop.f32.mrb[1].mxu0  ;;  %v455_v22 = vpop.f32.mrb[2].mxu1 }
 0x118   :  { %v495_v20 = vadd.f32 %v494_v19, %v453_v18  ;;  %v496_v23 = vpop.f32.mrb[2].mxu0  ;;  %v456_v25 = vpop.f32.mrb[3].mxu1 }
 0x119   :  { %v511_v24 = vmul.f32 %v504_v12, %v493_v16  ;;  %v497_v26 = vpop.f32.mrb[3].mxu0 }
 0x11a   :  { %v512_v27 = vmul.f32 %v508_v15, %v495_v20 }
 0x11b   :  { %v525_v28 = vadd.f32 %v518_v17, %v511_v24 }
 0x11c   :  { %v526_v29 = vadd.f32 %v522_v21, %v512_v27 }
 0x11d   :  { %v527_v30 = vmax.f32 %v525_v28, 0.0 }
 0x11e   :  { %v528_v31 = vmax.f32 %v526_v29, 0.0 }
 0x120   :  { %v611_v32 = vpack.c.bf16 %v528_v31, %v527_v30 }
 0x122   :  { %537 = vst [vmem:[%s950_s4] sm:$0xff] %v611_v32 }

// kernel: _lambda_.73
= control target key start
LH: loop header
LB: loop body
LE: loop exit
PB: predicated region body
PF: predicated region fallthrough
CT: control target
= control target key end

     0   :  { %v3069_v36 = vmov 1966171168   ;;  %v315_v38 = vlaneseq  ;;  %s4054_s1 = inlined_call_operand.vmem [shape: bf16[2304,256], index: 1, kind: input, shape index: {}]   ;;  %s4055_s0 = inlined_call_operand.vmem [shape: bf16[2,2304], index: 0, kind: input, shape index: {}]   ;;  %s4056_s2 = inlined_call_operand.vmem [shape: f32[1,256], index: 2, kind: input, shape index: {}]   ;;  %s4057_s3 = inlined_call_operand.vmem [shape: f32[1,256], index: 3, kind: input, shape index: {}]   ;;  %s4058_s4 = inlined_call_operand.vmem [shape: bf16[2,256], index: 4, kind: output, shape index: {}]  }
   0x1   :  { %v2635_v0 = vld [vmem:[%s4054_s1 + $0x4] ss:$8 sps:$4 sm:$0xff]   ;;  %v2639_v2 = vld [vmem:[%s4054_s1] ss:$8 sps:$4 sm:$0xff]   ;;  %v2641_v4 = vld [vmem:[%s4054_s1 + $0x14] ss:$8 sps:$4 sm:$0xff]   ;;  %v313_v37 = vunpack.c.l.s4 %v3069_v36 }
   0x2   :  { %v2637_v1 = vld [vmem:[%s4054_s1 + $0x404] ss:$8 sps:$4 sm:$0xff]   ;;  %1889 = vmatprep.subr.bf16.mxu1 %v2635_v0  ;;  %v2640_v3 = vld [vmem:[%s4054_s1 + $0x400] ss:$8 sps:$4 sm:$0xff]   ;;  %v2643_v5 = vld [vmem:[%s4054_s1 + $0x414] ss:$8 sps:$4 sm:$0xff]  }
   0x3   :  { %2053 = vmatprep.subr.bf16.mxu0 %v2637_v1  ;;  %1890 = vmatpush1.bf16.msra.mxu1 %v2639_v2  ;;  %v2645_v6 = vld [vmem:[%s4054_s1 + $0x10] ss:$8 sps:$4 sm:$0xff]   ;;  %v2647_v8 = vld [vmem:[%s4054_s1 + $0x24] ss:$8 sps:$4 sm:$0xff]   ;;  %v2651_v10 = vld [vmem:[%s4054_s1 + $0x20] ss:$8 sps:$4 sm:$0xff]   ;;  %v314_v42 = vunpack.c.0.s8 %v313_v37 }
   0x4   :  { %2054 = vmatpush1.bf16.msra.mxu0 %v2640_v3  ;;  %1891 = vmatprep.subr.bf16.mxu1 %v2641_v4  ;;  %v2646_v7 = vld [vmem:[%s4054_s1 + $0x410] ss:$8 sps:$4 sm:$0xff]   ;;  %v2649_v9 = vld [vmem:[%s4054_s1 + $0x424] ss:$8 sps:$4 sm:$0xff]   ;;  %v2652_v11 = vld [vmem:[%s4054_s1 + $0x420] ss:$8 sps:$4 sm:$0xff]  }
   0x5   :  { %2055 = vmatprep.subr.bf16.mxu0 %v2643_v5  ;;  %v2653_v12 = vld [vmem:[%s4054_s1 + $0x34] ss:$8 sps:$4 sm:$0xff]   ;;  %v2657_v14 = vld [vmem:[%s4054_s1 + $0x30] ss:$8 sps:$4 sm:$0xff]   ;;  %v2659_v16 = vld [vmem:[%s4054_s1 + $0x44] ss:$8 sps:$4 sm:$0xff]  }
   0x6   :  { %v2655_v13 = vld [vmem:[%s4054_s1 + $0x434] ss:$8 sps:$4 sm:$0xff]   ;;  %v2658_v15 = vld [vmem:[%s4054_s1 + $0x430] ss:$8 sps:$4 sm:$0xff]   ;;  %v2661_v17 = vld [vmem:[%s4054_s1 + $0x444] ss:$8 sps:$4 sm:$0xff]  }
   0x7   :  { %1892 = vmatpush1.bf16.msra.mxu1 %v2645_v6  ;;  %v2663_v18 = vld [vmem:[%s4054_s1 + $0x40] ss:$8 sps:$4 sm:$0xff]   ;;  %v2665_v20 = vld [vmem:[%s4054_s1 + $0x54] ss:$8 sps:$4 sm:$0xff]   ;;  %v2669_v22 = vld [vmem:[%s4054_s1 + $0x50] ss:$8 sps:$4 sm:$0xff]  }
   0x8   :  { %2056 = vmatpush1.bf16.msra.mxu0 %v2646_v7  ;;  %1893 = vmatprep.subr.bf16.mxu1 %v2647_v8  ;;  %v2664_v19 = vld [vmem:[%s4054_s1 + $0x440] ss:$8 sps:$4 sm:$0xff]   ;;  %v2667_v21 = vld [vmem:[%s4054_s1 + $0x454] ss:$8 sps:$4 sm:$0xff]   ;;  %v2670_v23 = vld [vmem:[%s4054_s1 + $0x450] ss:$8 sps:$4 sm:$0xff]  }
   0x9   :  { %2057 = vmatprep.subr.bf16.mxu0 %v2649_v9  ;;  %v2671_v24 = vld [vmem:[%s4054_s1 + $0x64] ss:$8 sps:$4 sm:$0xff]   ;;  %v2675_v26 = vld [vmem:[%s4054_s1 + $0x60] ss:$8 sps:$4 sm:$0xff]   ;;  %v2677_v28 = vld [vmem:[%s4054_s1 + $0x74] ss:$8 sps:$4 sm:$0xff]  }
   0xa   :  { %v2673_v25 = vld [vmem:[%s4054_s1 + $0x464] ss:$8 sps:$4 sm:$0xff]   ;;  %v2676_v27 = vld [vmem:[%s4054_s1 + $0x460] ss:$8 sps:$4 sm:$0xff]   ;;  %v2679_v29 = vld [vmem:[%s4054_s1 + $0x474] ss:$8 sps:$4 sm:$0xff]  }
   0xb   :  { %1894 = vmatpush1.bf16.msra.mxu1 %v2651_v10  ;;  %v2681_v30 = vld [vmem:[%s4054_s1 + $0x70] ss:$8 sps:$4 sm:$0xff]   ;;  %v2683_v32 = vld [vmem:[%s4054_s1 + $0x84] ss:$8 sps:$4 sm:$0xff]   ;;  %v2687_v34 = vld [vmem:[%s4054_s1 + $0x80] ss:$8 sps:$4 sm:$0xff]  }
   0xc   :  { %2058 = vmatpush1.bf16.msra.mxu0 %v2652_v11  ;;  %1895 = vmatprep.subr.bf16.mxu1 %v2653_v12  ;;  %v2682_v31 = vld [vmem:[%s4054_s1 + $0x470] ss:$8 sps:$4 sm:$0xff]   ;;  %v2685_v33 = vld [vmem:[%s4054_s1 + $0x484] ss:$8 sps:$4 sm:$0xff]   ;;  %v2688_v35 = vld [vmem:[%s4054_s1 + $0x480] ss:$8 sps:$4 sm:$0xff]  }
   0xd   :  { %2059 = vmatprep.subr.bf16.mxu0 %v2655_v13  ;;  %v2689_v39 = vld [vmem:[%s4054_s1 + $0x94] ss:$8 sps:$4 sm:$0xff]   ;;  %v2693_v41 = vld [vmem:[%s4054_s1 + $0x90] ss:$8 sps:$4 sm:$0xff]   ;;  %v3212_v43 = vshrl.u32 %v315_v38, 7  ;;  %v3241_v52 = vld [vmem:[%s4055_s0] sm:$0xff] }
   0xe   :  { %v2691_v40 = vld [vmem:[%s4054_s1 + $0x494] ss:$8 sps:$4 sm:$0xff]   ;;  %v2694_v44 = vld [vmem:[%s4054_s1 + $0x490] ss:$8 sps:$4 sm:$0xff]   ;;  %v2695_v45 = vld [vmem:[%s4054_s1 + $0xa4] ss:$8 sps:$4 sm:$0xff]  }
   0xf   :  { %1896 = vmatpush1.bf16.msra.mxu1 %v2657_v14  ;;  %v2697_v46 = vld [vmem:[%s4054_s1 + $0x4a4] ss:$8 sps:$4 sm:$0xff]   ;;  %v2699_v47 = vld [vmem:[%s4054_s1 + $0xa0] ss:$8 sps:$4 sm:$0xff]   ;;  %v3230_v49 = vsub.s32 %v314_v42, %v3212_v43  ;;  %v2701_v50 = vld [vmem:[%s4054_s1 + $0xb4] ss:$8 sps:$4 sm:$0xff]  }
  0x10   :  { %2060 = vmatpush1.bf16.msra.mxu0 %v2658_v15  ;;  %1897 = vmatprep.subr.bf16.mxu1 %v2659_v16  ;;  %v2700_v48 = vld [vmem:[%s4054_s1 + $0x4a0] ss:$8 sps:$4 sm:$0xff]   ;;  %v2703_v51 = vld [vmem:[%s4054_s1 + $0x4b4] ss:$8 sps:$4 sm:$0xff]   ;;  %v2705_v53 = vld [vmem:[%s4054_s1 + $0xb0] ss:$8 sps:$4 sm:$0xff]  }
  0x11   :  { %2061 = vmatprep.subr.bf16.mxu0 %v2661_v17  ;;  %v318_v54 = vrot.slane %v3241_v52, %v3230_v49  ;;  %v2706_v55 = vld [vmem:[%s4054_s1 + $0x4b0] ss:$8 sps:$4 sm:$0xff]   ;;  %v3254_v56 = vld [vmem:[%s4055_s0 + $0x8] sm:$0xff]  ;;  %v2713_v1 = vld [vmem:[%s4054_s1 + $0xd4] ss:$8 sps:$4 sm:$0xff]  }
  0x12   :  { %v2707_v57 = vld [vmem:[%s4054_s1 + $0xc4] ss:$8 sps:$4 sm:$0xff]   ;;  %v367_v60 = vrot.slane %v3254_v56, %v3230_v49  ;;  %v2711_v63 = vld [vmem:[%s4054_s1 + $0xc0] ss:$8 sps:$4 sm:$0xff]   ;;  %v2715_v2 = vld [vmem:[%s4054_s1 + $0x4d4] ss:$8 sps:$4 sm:$0xff]  }
  0x13   :  { %1898 = vmatpush1.bf16.msra.mxu1 %v2663_v18  ;;  %v2709_v58 = vld [vmem:[%s4054_s1 + $0x4c4] ss:$8 sps:$4 sm:$0xff]   ;;  %v326_v59 = vcombine.high %v318_v54, %v318_v54  ;;  %v2712_v0 = vld [vmem:[%s4054_s1 + $0x4c0] ss:$8 sps:$4 sm:$0xff]   ;;  %v2717_v4 = vld [vmem:[%s4054_s1 + $0xd0] ss:$8 sps:$4 sm:$0xff]   ;;  %v3315_v16 = vrot.slane %v318_v54, %v3230_v49 }
  0x14   :  { %2062 = vmatpush1.bf16.msra.mxu0 %v2664_v19  ;;  %1899 = vmatprep.subr.bf16.mxu1 %v2665_v20  ;;  %v375_v62 = vcombine.high %v367_v60, %v367_v60  ;;  %v2718_v5 = vld [vmem:[%s4054_s1 + $0x4d0] ss:$8 sps:$4 sm:$0xff]   ;;  %v2719_v6 = vld [vmem:[%s4054_s1 + $0xe4] ss:$8 sps:$4 sm:$0xff]   ;;  %v2723_v8 = vld [vmem:[%s4054_s1 + $0xe0] ss:$8 sps:$4 sm:$0xff]   ;;  %v3318_v17 = vrot.slane %v367_v60, %v3230_v49 }
  0x15   :  { %2063 = vmatprep.subr.bf16.mxu0 %v2667_v21  ;;  %v348_v61 = vrot.slane %v326_v59, %v3230_v49  ;;  %v2721_v7 = vld [vmem:[%s4054_s1 + $0x4e4] ss:$8 sps:$4 sm:$0xff]   ;;  %v2724_v9 = vld [vmem:[%s4054_s1 + $0x4e0] ss:$8 sps:$4 sm:$0xff]   ;;  %v2725_v10 = vld [vmem:[%s4054_s1 + $0xf4] ss:$8 sps:$4 sm:$0xff]  }
  0x16   :  { %v397_v3 = vrot.slane %v375_v62, %v3230_v49  ;;  %v2727_v11 = vld [vmem:[%s4054_s1 + $0x4f4] ss:$8 sps:$4 sm:$0xff]   ;;  %v2729_v12 = vld [vmem:[%s4054_s1 + $0xf0] ss:$8 sps:$4 sm:$0xff]   ;;  %v2734_v14 = vld [vmem:[%s4054_s1 + $0x104] ss:$8 sps:$4 sm:$0xff]  }
  0x17   :  { %1900 = vmatpush1.bf16.msra.mxu1 %v2669_v22  ;;  %1921 = vmatprep.mubr.bf16.mxu1 %v348_v61  ;;  %v2730_v13 = vld [vmem:[%s4054_s1 + $0x4f0] ss:$8 sps:$4 sm:$0xff]   ;;  %v2738_v15 = vld [vmem:[%s4054_s1 + $0x504] ss:$8 sps:$4 sm:$0xff]   ;;  %v2732_v18 = vld [vmem:[%s4054_s1 + $0x100] ss:$8 sps:$4 sm:$0xff]   ;;  %v358_v22 = vcombine.high %v348_v61, %v348_v61 }
  0x18   :  { %2064 = vmatpush1.bf16.msra.mxu0 %v2670_v23  ;;  %1901 = vmatprep.subr.bf16.mxu1 %v2671_v24  ;;  %v2736_v19 = vld [vmem:[%s4054_s1 + $0x500] ss:$8 sps:$4 sm:$0xff]   ;;  %v2741_v20 = vld [vmem:[%s4054_s1 + $0x114] ss:$8 sps:$4 sm:$0xff]   ;;  %v407_v23 = vcombine.high %v397_v3, %v397_v3  ;;  %v2739_v24 = vld [vmem:[%s4054_s1 + $0x110] ss:$8 sps:$4 sm:$0xff]  }
  0x19   :  { %2065 = vmatprep.subr.bf16.mxu0 %v2673_v25  ;;  %2085 = vmatprep.mubr.bf16.mxu0 %v397_v3  ;;  %v2744_v21 = vld [vmem:[%s4054_s1 + $0x514] ss:$8 sps:$4 sm:$0xff]   ;;  %v2742_v25 = vld [vmem:[%s4054_s1 + $0x510] ss:$8 sps:$4 sm:$0xff]   ;;  %v2757_v36 = vld [vmem:[%s4054_s1 + $0x140] ss:$8 sps:$4 sm:$0xff]  }
  0x1a   :  { %v2760_v37 = vld [vmem:[%s4054_s1 + $0x540] ss:$8 sps:$4 sm:$0xff]   ;;  %v2765_v38 = vld [vmem:[%s4054_s1 + $0x154] ss:$8 sps:$4 sm:$0xff]   ;;  %v2771_v42 = vld [vmem:[%s4054_s1 + $0x164] ss:$8 sps:$4 sm:$0xff]  }
  0x1b   :  { %1902 = vmatpush1.bf16.msra.mxu1 %v2675_v26  ;;  %v2747_v26 = vld [vmem:[%s4054_s1 + $0x124] ss:$8 sps:$4 sm:$0xff]   ;;  %v2792_v59 = vld [vmem:[%s4054_s1 + $0x594] ss:$8 sps:$4 sm:$0xff]   ;;  %v2787_v60 = vld [vmem:[%s4054_s1 + $0x190] ss:$8 sps:$4 sm:$0xff]  }
  0x1c   :  { %2066 = vmatpush1.bf16.msra.mxu0 %v2676_v27  ;;  %1903 = vmatprep.subr.bf16.mxu1 %v2677_v28  ;;  %v2750_v27 = vld [vmem:[%s4054_s1 + $0x524] ss:$8 sps:$4 sm:$0xff]   ;;  %v2745_v28 = vld [vmem:[%s4054_s1 + $0x120] ss:$8 sps:$4 sm:$0xff]   ;;  %v2790_v61 = vld [vmem:[%s4054_s1 + $0x590] ss:$8 sps:$4 sm:$0xff]  }
  0x1d   :  { %2067 = vmatprep.subr.bf16.mxu0 %v2679_v29  ;;  %v2748_v29 = vld [vmem:[%s4054_s1 + $0x520] ss:$8 sps:$4 sm:$0xff]   ;;  %v2786_v54 = vld [vmem:[%s4054_s1 + $0x584] ss:$8 sps:$4 sm:$0xff]   ;;  %v2804_v3 = vld [vmem:[%s4054_s1 + $0x5b4] ss:$8 sps:$4 sm:$0xff]  }
  0x1e   :  { %v2795_v62 = vld [vmem:[%s4054_s1 + $0x1a4] ss:$8 sps:$4 sm:$0xff]  }
  0x1f   :  { %1904 = vmatpush1.bf16.msra.mxu1 %v2681_v30  ;;  %v2753_v30 = vld [vmem:[%s4054_s1 + $0x134] ss:$8 sps:$4 sm:$0xff]  }
  0x20   :  { %2068 = vmatpush1.bf16.msra.mxu0 %v2682_v31  ;;  %1905 = vmatprep.subr.bf16.mxu1 %v2683_v32  ;;  %v2756_v31 = vld [vmem:[%s4054_s1 + $0x534] ss:$8 sps:$4 sm:$0xff]   ;;  %v2751_v32 = vld [vmem:[%s4054_s1 + $0x130] ss:$8 sps:$4 sm:$0xff]  }
  0x21   :  { %2069 = vmatprep.subr.bf16.mxu0 %v2685_v33  ;;  %v2754_v33 = vld [vmem:[%s4054_s1 + $0x530] ss:$8 sps:$4 sm:$0xff]  }
  0x23   :  { %1906 = vmatpush1.bf16.msra.mxu1 %v2687_v34  ;;  %v2759_v34 = vld [vmem:[%s4054_s1 + $0x144] ss:$8 sps:$4 sm:$0xff]  }
  0x24   :  { %2070 = vmatpush1.bf16.msra.mxu0 %v2688_v35  ;;  %1907 = vmatprep.subr.bf16.mxu1 %v2689_v39  ;;  %v2762_v35 = vld [vmem:[%s4054_s1 + $0x544] ss:$8 sps:$4 sm:$0xff]   ;;  %v2768_v39 = vld [vmem:[%s4054_s1 + $0x554] ss:$8 sps:$4 sm:$0xff]  }
  0x25   :  { %2071 = vmatprep.subr.bf16.mxu0 %v2691_v40  ;;  %v2763_v40 = vld [vmem:[%s4054_s1 + $0x150] ss:$8 sps:$4 sm:$0xff]  }
  0x27   :  { %1908 = vmatpush1.bf16.msra.mxu1 %v2693_v41  ;;  %v2766_v41 = vld [vmem:[%s4054_s1 + $0x550] ss:$8 sps:$4 sm:$0xff]  }
  0x28   :  { %2072 = vmatpush1.bf16.msra.mxu0 %v2694_v44  ;;  %1909 = vmatprep.subr.bf16.mxu1 %v2695_v45  ;;  %v2774_v44 = vld [vmem:[%s4054_s1 + $0x564] ss:$8 sps:$4 sm:$0xff]   ;;  %v2769_v45 = vld [vmem:[%s4054_s1 + $0x160] ss:$8 sps:$4 sm:$0xff]  }
  0x29   :  { %2073 = vmatprep.subr.bf16.mxu0 %v2697_v46  ;;  %v2772_v46 = vld [vmem:[%s4054_s1 + $0x560] ss:$8 sps:$4 sm:$0xff]  }
  0x2b   :  { %1910 = vmatpush1.bf16.msra.mxu1 %v2699_v47  ;;  %v2777_v47 = vld [vmem:[%s4054_s1 + $0x174] ss:$8 sps:$4 sm:$0xff]  }
  0x2c   :  { %2074 = vmatpush1.bf16.msra.mxu0 %v2700_v48  ;;  %1911 = vmatprep.subr.bf16.mxu1 %v2701_v50  ;;  %v2780_v48 = vld [vmem:[%s4054_s1 + $0x574] ss:$8 sps:$4 sm:$0xff]   ;;  %v2775_v50 = vld [vmem:[%s4054_s1 + $0x170] ss:$8 sps:$4 sm:$0xff]  }
  0x2d   :  { %2075 = vmatprep.subr.bf16.mxu0 %v2703_v51  ;;  %v2778_v51 = vld [vmem:[%s4054_s1 + $0x570] ss:$8 sps:$4 sm:$0xff]  }
  0x2f   :  { %1912 = vmatpush1.bf16.msra.mxu1 %v2705_v53  ;;  %v2783_v53 = vld [vmem:[%s4054_s1 + $0x184] ss:$8 sps:$4 sm:$0xff]  }
  0x30   :  { %2076 = vmatpush1.bf16.msra.mxu0 %v2706_v55  ;;  %1913 = vmatprep.subr.bf16.mxu1 %v2707_v57  ;;  %v2781_v55 = vld [vmem:[%s4054_s1 + $0x180] ss:$8 sps:$4 sm:$0xff]  }
  0x31   :  { %2077 = vmatprep.subr.bf16.mxu0 %v2709_v58  ;;  %v2784_v57 = vld [vmem:[%s4054_s1 + $0x580] ss:$8 sps:$4 sm:$0xff]   ;;  %v2789_v58 = vld [vmem:[%s4054_s1 + $0x194] ss:$8 sps:$4 sm:$0xff]  }
  0x33   :  { %1914 = vmatpush1.bf16.msra.mxu1 %v2711_v63  ;;  %v2798_v63 = vld [vmem:[%s4054_s1 + $0x5a4] ss:$8 sps:$4 sm:$0xff]  }
  0x34   :  { %2078 = vmatpush1.bf16.msra.mxu0 %v2712_v0  ;;  %1915 = vmatprep.subr.bf16.mxu1 %v2713_v1  ;;  %v2793_v0 = vld [vmem:[%s4054_s1 + $0x1a0] ss:$8 sps:$4 sm:$0xff]  }
  0x35   :  { %2079 = vmatprep.subr.bf16.mxu0 %v2715_v2  ;;  %v2796_v1 = vld [vmem:[%s4054_s1 + $0x5a0] ss:$8 sps:$4 sm:$0xff]   ;;  %v2801_v2 = vld [vmem:[%s4054_s1 + $0x1b4] ss:$8 sps:$4 sm:$0xff]  }
  0x37   :  { %1916 = vmatpush1.bf16.msra.mxu1 %v2717_v4  ;;  %v2799_v4 = vld [vmem:[%s4054_s1 + $0x1b0] ss:$8 sps:$4 sm:$0xff]  }
  0x38   :  { %2080 = vmatpush1.bf16.msra.mxu0 %v2718_v5  ;;  %1917 = vmatprep.subr.bf16.mxu1 %v2719_v6  ;;  %v2802_v5 = vld [vmem:[%s4054_s1 + $0x5b0] ss:$8 sps:$4 sm:$0xff]   ;;  %v2807_v6 = vld [vmem:[%s4054_s1 + $0x1c4] ss:$8 sps:$4 sm:$0xff]  }
  0x39   :  { %2081 = vmatprep.subr.bf16.mxu0 %v2721_v7  ;;  %v2810_v7 = vld [vmem:[%s4054_s1 + $0x5c4] ss:$8 sps:$4 sm:$0xff]  }
  0x3b   :  { %1918 = vmatpush1.bf16.msra.mxu1 %v2723_v8  ;;  %v2805_v8 = vld [vmem:[%s4054_s1 + $0x1c0] ss:$8 sps:$4 sm:$0xff]  }
  0x3c   :  { %2082 = vmatpush1.bf16.msra.mxu0 %v2724_v9  ;;  %1919 = vmatprep.subr.bf16.mxu1 %v2725_v10  ;;  %v2808_v9 = vld [vmem:[%s4054_s1 + $0x5c0] ss:$8 sps:$4 sm:$0xff]   ;;  %v2813_v10 = vld [vmem:[%s4054_s1 + $0x1d4] ss:$8 sps:$4 sm:$0xff]  }
  0x3d   :  { %2083 = vmatprep.subr.bf16.mxu0 %v2727_v11  ;;  %v2816_v11 = vld [vmem:[%s4054_s1 + $0x5d4] ss:$8 sps:$4 sm:$0xff]  }
  0x3f   :  { %1920 = vmatpush1.bf16.msra.mxu1 %v2729_v12  ;;  %v2811_v12 = vld [vmem:[%s4054_s1 + $0x1d0] ss:$8 sps:$4 sm:$0xff]  }
  0x40   :  { %2084 = vmatpush1.bf16.msra.mxu0 %v2730_v13  ;;  %1930 = vmatprep.subr.bf16.mxu1 %v2734_v14  ;;  %v2814_v13 = vld [vmem:[%s4054_s1 + $0x5d0] ss:$8 sps:$4 sm:$0xff]   ;;  %v2819_v14 = vld [vmem:[%s4054_s1 + $0x1e4] ss:$8 sps:$4 sm:$0xff]  }
  0x41   :  { %2094 = vmatprep.subr.bf16.mxu0 %v2738_v15  ;;  %v2822_v15 = vld [vmem:[%s4054_s1 + $0x5e4] ss:$8 sps:$4 sm:$0xff]  }
  0x42   :  { %1922 = vmatmul.mubr.bf16.vlgmr.msra.gmra.mrb[0].mxu1 %v3315_v16 }
  0x43   :  { %2086 = vmatmul.mubr.bf16.vlgmr.msra.gmra.mrb[0].mxu0 %v3318_v17  ;;  %1931 = vmatpush1.bf16.msra.mxu1 %v2732_v18  ;;  %v311_v18 = vcombine.high %v3241_v52, %v3241_v52  ;;  %v2828_v52 = vld [vmem:[%s4054_s1 + $0x5f4] ss:$8 sps:$4 sm:$0xff]  }
  0x44   :  { %2095 = vmatpush1.bf16.msra.mxu0 %v2736_v19  ;;  %1932 = vmatprep.subr.bf16.mxu1 %v2741_v20  ;;  %v360_v19 = vcombine.high %v3254_v56, %v3254_v56  ;;  %v2817_v20 = vld [vmem:[%s4054_s1 + $0x1e0] ss:$8 sps:$4 sm:$0xff]  }
  0x45   :  { %2096 = vmatprep.subr.bf16.mxu0 %v2744_v21  ;;  %1962 = vmatprep.mubr.bf16.mxu1 %v358_v22  ;;  %v2820_v21 = vld [vmem:[%s4054_s1 + $0x5e0] ss:$8 sps:$4 sm:$0xff]   ;;  %v2825_v22 = vld [vmem:[%s4054_s1 + $0x1f4] ss:$8 sps:$4 sm:$0xff]   ;;  %v3507_v56 = vrot.slane %v311_v18, %v3230_v49  ;;  %v2895_v18 = vld [vmem:[%s4054_s1 + $0x2b0] ss:$8 sps:$4 sm:$0xff]  }
  0x46   :  { %2126 = vmatprep.mubr.bf16.mxu0 %v407_v23  ;;  %v3510_v23 = vrot.slane %v360_v19, %v3230_v49  ;;  %v2898_v19 = vld [vmem:[%s4054_s1 + $0x6b0] ss:$8 sps:$4 sm:$0xff]  }
  0x47   :  { %1933 = vmatpush1.bf16.msra.mxu1 %v2739_v24  ;;  %v2823_v24 = vld [vmem:[%s4054_s1 + $0x1f0] ss:$8 sps:$4 sm:$0xff]  }
  0x48   :  { %2097 = vmatpush1.bf16.msra.mxu0 %v2742_v25  ;;  %1934 = vmatprep.subr.bf16.mxu1 %v2747_v26  ;;  %v2826_v25 = vld [vmem:[%s4054_s1 + $0x5f0] ss:$8 sps:$4 sm:$0xff]   ;;  %v2831_v26 = vld [vmem:[%s4054_s1 + $0x204] ss:$8 sps:$4 sm:$0xff]  }
  0x49   :  { %2098 = vmatprep.subr.bf16.mxu0 %v2750_v27  ;;  %v2834_v27 = vld [vmem:[%s4054_s1 + $0x604] ss:$8 sps:$4 sm:$0xff]  }
  0x4b   :  { %1935 = vmatpush1.bf16.msra.mxu1 %v2745_v28  ;;  %v327_v28 = vcombine.high %v3507_v56, %v3507_v56 }
  0x4c   :  { %2099 = vmatpush1.bf16.msra.mxu0 %v2748_v29  ;;  %1936 = vmatprep.subr.bf16.mxu1 %v2753_v30  ;;  %v376_v29 = vcombine.high %v3510_v23, %v3510_v23  ;;  %v356_v30 = vcombine.high %v3315_v16, %v3315_v16  ;;  %v2840_v16 = vld [vmem:[%s4054_s1 + $0x614] ss:$8 sps:$4 sm:$0xff]  }
  0x4d   :  { %2100 = vmatprep.subr.bf16.mxu0 %v2756_v31  ;;  %v405_v31 = vcombine.high %v3318_v17, %v3318_v17  ;;  %v3545_v17 = vrot.slane %v327_v28, %v3230_v49  ;;  %v2915_v28 = vld [vmem:[%s4054_s1 + $0x2e4] ss:$8 sps:$4 sm:$0xff]  }
  0x4f   :  { %1937 = vmatpush1.bf16.msra.mxu1 %v2751_v32  ;;  %v2829_v32 = vld [vmem:[%s4054_s1 + $0x200] ss:$8 sps:$4 sm:$0xff]  }
  0x50   :  { %2101 = vmatpush1.bf16.msra.mxu0 %v2754_v33  ;;  %1938 = vmatprep.subr.bf16.mxu1 %v2759_v34  ;;  %v2832_v33 = vld [vmem:[%s4054_s1 + $0x600] ss:$8 sps:$4 sm:$0xff]   ;;  %v2837_v34 = vld [vmem:[%s4054_s1 + $0x214] ss:$8 sps:$4 sm:$0xff]  }
  0x51   :  { %2102 = vmatprep.subr.bf16.mxu0 %v2762_v35  ;;  %v3548_v35 = vrot.slane %v376_v29, %v3230_v49  ;;  %v2918_v29 = vld [vmem:[%s4054_s1 + $0x6e4] ss:$8 sps:$4 sm:$0xff]  }
  0x53   :  { %1939 = vmatpush1.bf16.msra.mxu1 %v2757_v36  ;;  %v2835_v36 = vld [vmem:[%s4054_s1 + $0x210] ss:$8 sps:$4 sm:$0xff]  }
  0x54   :  { %2103 = vmatpush1.bf16.msra.mxu0 %v2760_v37  ;;  %1940 = vmatprep.subr.bf16.mxu1 %v2765_v38  ;;  %v2838_v37 = vld [vmem:[%s4054_s1 + $0x610] ss:$8 sps:$4 sm:$0xff]   ;;  %v2843_v38 = vld [vmem:[%s4054_s1 + $0x224] ss:$8 sps:$4 sm:$0xff]  }
  0x55   :  { %2104 = vmatprep.subr.bf16.mxu0 %v2768_v39  ;;  %v2846_v39 = vld [vmem:[%s4054_s1 + $0x624] ss:$8 sps:$4 sm:$0xff]  }
  0x57   :  { %1941 = vmatpush1.bf16.msra.mxu1 %v2763_v40  ;;  %v2841_v40 = vld [vmem:[%s4054_s1 + $0x220] ss:$8 sps:$4 sm:$0xff]  }
  0x58   :  { %2105 = vmatpush1.bf16.msra.mxu0 %v2766_v41  ;;  %1942 = vmatprep.subr.bf16.mxu1 %v2771_v42  ;;  %v2844_v41 = vld [vmem:[%s4054_s1 + $0x620] ss:$8 sps:$4 sm:$0xff]   ;;  %v2849_v42 = vld [vmem:[%s4054_s1 + $0x234] ss:$8 sps:$4 sm:$0xff]  }
  0x59   :  { %2106 = vmatprep.subr.bf16.mxu0 %v2774_v44  ;;  %v2852_v44 = vld [vmem:[%s4054_s1 + $0x634] ss:$8 sps:$4 sm:$0xff]  }
  0x5b   :  { %1943 = vmatpush1.bf16.msra.mxu1 %v2769_v45  ;;  %v2847_v45 = vld [vmem:[%s4054_s1 + $0x230] ss:$8 sps:$4 sm:$0xff]  }
  0x5c   :  { %2107 = vmatpush1.bf16.msra.mxu0 %v2772_v46  ;;  %1944 = vmatprep.subr.bf16.mxu1 %v2777_v47  ;;  %v2850_v46 = vld [vmem:[%s4054_s1 + $0x630] ss:$8 sps:$4 sm:$0xff]   ;;  %v2855_v47 = vld [vmem:[%s4054_s1 + $0x244] ss:$8 sps:$4 sm:$0xff]  }
  0x5d   :  { %2108 = vmatprep.subr.bf16.mxu0 %v2780_v48  ;;  %v2858_v48 = vld [vmem:[%s4054_s1 + $0x644] ss:$8 sps:$4 sm:$0xff]  }
  0x5f   :  { %1945 = vmatpush1.bf16.msra.mxu1 %v2775_v50  ;;  %v2853_v50 = vld [vmem:[%s4054_s1 + $0x240] ss:$8 sps:$4 sm:$0xff]  }
  0x60   :  { %2109 = vmatpush1.bf16.msra.mxu0 %v2778_v51  ;;  %1946 = vmatprep.subr.bf16.mxu1 %v2783_v53  ;;  %v2856_v51 = vld [vmem:[%s4054_s1 + $0x640] ss:$8 sps:$4 sm:$0xff]   ;;  %v2861_v53 = vld [vmem:[%s4054_s1 + $0x254] ss:$8 sps:$4 sm:$0xff]  }
  0x61   :  { %2110 = vmatprep.subr.bf16.mxu0 %v2786_v54  ;;  %v2864_v54 = vld [vmem:[%s4054_s1 + $0x654] ss:$8 sps:$4 sm:$0xff]  }
  0x63   :  { %1947 = vmatpush1.bf16.msra.mxu1 %v2781_v55  ;;  %v2859_v55 = vld [vmem:[%s4054_s1 + $0x250] ss:$8 sps:$4 sm:$0xff]  }
  0x64   :  { %2111 = vmatpush1.bf16.msra.mxu0 %v2784_v57  ;;  %1948 = vmatprep.subr.bf16.mxu1 %v2789_v58  ;;  %v2862_v57 = vld [vmem:[%s4054_s1 + $0x650] ss:$8 sps:$4 sm:$0xff]   ;;  %v2867_v58 = vld [vmem:[%s4054_s1 + $0x264] ss:$8 sps:$4 sm:$0xff]  }
  0x65   :  { %2112 = vmatprep.subr.bf16.mxu0 %v2792_v59  ;;  %v2870_v59 = vld [vmem:[%s4054_s1 + $0x664] ss:$8 sps:$4 sm:$0xff]  }
  0x67   :  { %1949 = vmatpush1.bf16.msra.mxu1 %v2787_v60  ;;  %v2865_v60 = vld [vmem:[%s4054_s1 + $0x260] ss:$8 sps:$4 sm:$0xff]  }
  0x68   :  { %2113 = vmatpush1.bf16.msra.mxu0 %v2790_v61  ;;  %1950 = vmatprep.subr.bf16.mxu1 %v2795_v62  ;;  %v2868_v61 = vld [vmem:[%s4054_s1 + $0x660] ss:$8 sps:$4 sm:$0xff]   ;;  %v2873_v62 = vld [vmem:[%s4054_s1 + $0x274] ss:$8 sps:$4 sm:$0xff]  }
  0x69   :  { %2114 = vmatprep.subr.bf16.mxu0 %v2798_v63  ;;  %v2876_v63 = vld [vmem:[%s4054_s1 + $0x674] ss:$8 sps:$4 sm:$0xff]  }
  0x6b   :  { %1951 = vmatpush1.bf16.msra.mxu1 %v2793_v0  ;;  %v2871_v0 = vld [vmem:[%s4054_s1 + $0x270] ss:$8 sps:$4 sm:$0xff]  }
  0x6c   :  { %2115 = vmatpush1.bf16.msra.mxu0 %v2796_v1  ;;  %1952 = vmatprep.subr.bf16.mxu1 %v2801_v2  ;;  %v2874_v1 = vld [vmem:[%s4054_s1 + $0x670] ss:$8 sps:$4 sm:$0xff]   ;;  %v2879_v2 = vld [vmem:[%s4054_s1 + $0x284] ss:$8 sps:$4 sm:$0xff]  }
  0x6d   :  { %2116 = vmatprep.subr.bf16.mxu0 %v2804_v3  ;;  %v2882_v3 = vld [vmem:[%s4054_s1 + $0x684] ss:$8 sps:$4 sm:$0xff]  }
  0x6f   :  { %1953 = vmatpush1.bf16.msra.mxu1 %v2799_v4  ;;  %v2877_v4 = vld [vmem:[%s4054_s1 + $0x280] ss:$8 sps:$4 sm:$0xff]  }
  0x70   :  { %2117 = vmatpush1.bf16.msra.mxu0 %v2802_v5  ;;  %1954 = vmatprep.subr.bf16.mxu1 %v2807_v6  ;;  %v2880_v5 = vld [vmem:[%s4054_s1 + $0x680] ss:$8 sps:$4 sm:$0xff]   ;;  %v2885_v6 = vld [vmem:[%s4054_s1 + $0x294] ss:$8 sps:$4 sm:$0xff]  }
  0x71   :  { %2118 = vmatprep.subr.bf16.mxu0 %v2810_v7  ;;  %v2888_v7 = vld [vmem:[%s4054_s1 + $0x694] ss:$8 sps:$4 sm:$0xff]  }
  0x73   :  { %1955 = vmatpush1.bf16.msra.mxu1 %v2805_v8  ;;  %v2883_v8 = vld [vmem:[%s4054_s1 + $0x290] ss:$8 sps:$4 sm:$0xff]  }
  0x74   :  { %2119 = vmatpush1.bf16.msra.mxu0 %v2808_v9  ;;  %1956 = vmatprep.subr.bf16.mxu1 %v2813_v10  ;;  %v2886_v9 = vld [vmem:[%s4054_s1 + $0x690] ss:$8 sps:$4 sm:$0xff]   ;;  %v2891_v10 = vld [vmem:[%s4054_s1 + $0x2a4] ss:$8 sps:$4 sm:$0xff]  }
  0x75   :  { %2120 = vmatprep.subr.bf16.mxu0 %v2816_v11  ;;  %v2894_v11 = vld [vmem:[%s4054_s1 + $0x6a4] ss:$8 sps:$4 sm:$0xff]  }
  0x77   :  { %1957 = vmatpush1.bf16.msra.mxu1 %v2811_v12  ;;  %v2889_v12 = vld [vmem:[%s4054_s1 + $0x2a0] ss:$8 sps:$4 sm:$0xff]  }
  0x78   :  { %2121 = vmatpush1.bf16.msra.mxu0 %v2814_v13  ;;  %1958 = vmatprep.subr.bf16.mxu1 %v2819_v14  ;;  %v2892_v13 = vld [vmem:[%s4054_s1 + $0x6a0] ss:$8 sps:$4 sm:$0xff]   ;;  %v2897_v14 = vld [vmem:[%s4054_s1 + $0x2b4] ss:$8 sps:$4 sm:$0xff]  }
  0x79   :  { %2122 = vmatprep.subr.bf16.mxu0 %v2822_v15  ;;  %v2900_v15 = vld [vmem:[%s4054_s1 + $0x6b4] ss:$8 sps:$4 sm:$0xff]  }
  0x7b   :  { %1959 = vmatpush1.bf16.msra.mxu1 %v2817_v20  ;;  %v2903_v20 = vld [vmem:[%s4054_s1 + $0x2c4] ss:$8 sps:$4 sm:$0xff]  }
  0x7c   :  { %2123 = vmatpush1.bf16.msra.mxu0 %v2820_v21  ;;  %1960 = vmatprep.subr.bf16.mxu1 %v2825_v22  ;;  %v2906_v21 = vld [vmem:[%s4054_s1 + $0x6c4] ss:$8 sps:$4 sm:$0xff]   ;;  %v2901_v22 = vld [vmem:[%s4054_s1 + $0x2c0] ss:$8 sps:$4 sm:$0xff]  }
  0x7d   :  { %2124 = vmatprep.subr.bf16.mxu0 %v2828_v52  ;;  %v2904_v52 = vld [vmem:[%s4054_s1 + $0x6c0] ss:$8 sps:$4 sm:$0xff]  }
  0x7f   :  { %1961 = vmatpush1.bf16.msra.mxu1 %v2823_v24  ;;  %v2909_v24 = vld [vmem:[%s4054_s1 + $0x2d4] ss:$8 sps:$4 sm:$0xff]  }
  0x80   :  { %2125 = vmatpush1.bf16.msra.mxu0 %v2826_v25  ;;  %1971 = vmatprep.subr.bf16.mxu1 %v2831_v26  ;;  %v2912_v25 = vld [vmem:[%s4054_s1 + $0x6d4] ss:$8 sps:$4 sm:$0xff]   ;;  %v2907_v26 = vld [vmem:[%s4054_s1 + $0x2d0] ss:$8 sps:$4 sm:$0xff]  }
  0x81   :  { %2135 = vmatprep.subr.bf16.mxu0 %v2834_v27  ;;  %v2910_v27 = vld [vmem:[%s4054_s1 + $0x6d0] ss:$8 sps:$4 sm:$0xff]  }
  0x82   :  { %1963 = vmatmul.mubr.bf16.vlgmr.msra.gmra.mrb[0].mxu1 %v356_v30  ;;  %v2913_v30 = vld [vmem:[%s4054_s1 + $0x2e0] ss:$8 sps:$4 sm:$0xff]  }
  0x83   :  { %2127 = vmatmul.mubr.bf16.vlgmr.msra.gmra.mrb[0].mxu0 %v405_v31  ;;  %1972 = vmatpush1.bf16.msra.mxu1 %v2829_v32  ;;  %v2916_v31 = vld [vmem:[%s4054_s1 + $0x6e0] ss:$8 sps:$4 sm:$0xff]   ;;  %v2921_v32 = vld [vmem:[%s4054_s1 + $0x2f4] ss:$8 sps:$4 sm:$0xff]  }
  0x84   :  { %2136 = vmatpush1.bf16.msra.mxu0 %v2832_v33  ;;  %1973 = vmatprep.subr.bf16.mxu1 %v2837_v34  ;;  %v2924_v33 = vld [vmem:[%s4054_s1 + $0x6f4] ss:$8 sps:$4 sm:$0xff]   ;;  %v2919_v34 = vld [vmem:[%s4054_s1 + $0x2f0] ss:$8 sps:$4 sm:$0xff]  }
  0x85   :  { %2137 = vmatprep.subr.bf16.mxu0 %v2840_v16  ;;  %2003 = vmatprep.mubr.bf16.mxu1 %v3545_v17  ;;  %v2922_v16 = vld [vmem:[%s4054_s1 + $0x6f0] ss:$8 sps:$4 sm:$0xff]  }
  0x86   :  { %2167 = vmatprep.mubr.bf16.mxu0 %v3548_v35 }
  0x87   :  { %1974 = vmatpush1.bf16.msra.mxu1 %v2835_v36  ;;  %v2927_v36 = vld [vmem:[%s4054_s1 + $0x304] ss:$8 sps:$4 sm:$0xff]  }
  0x88   :  { %2138 = vmatpush1.bf16.msra.mxu0 %v2838_v37  ;;  %1975 = vmatprep.subr.bf16.mxu1 %v2843_v38  ;;  %v2930_v37 = vld [vmem:[%s4054_s1 + $0x704] ss:$8 sps:$4 sm:$0xff]   ;;  %v3734_v38 = vrot.slane %v3507_v56, %v3230_v49  ;;  %v2933_v56 = vld [vmem:[%s4054_s1 + $0x314] ss:$8 sps:$4 sm:$0xff]  }
  0x89   :  { %2139 = vmatprep.subr.bf16.mxu0 %v2846_v39  ;;  %v3738_v39 = vrot.slane %v3510_v23, %v3230_v49  ;;  %v2936_v23 = vld [vmem:[%s4054_s1 + $0x714] ss:$8 sps:$4 sm:$0xff]  }
  0x8b   :  { %1976 = vmatpush1.bf16.msra.mxu1 %v2841_v40  ;;  %v2925_v40 = vld [vmem:[%s4054_s1 + $0x300] ss:$8 sps:$4 sm:$0xff]  }
  0x8c   :  { %2140 = vmatpush1.bf16.msra.mxu0 %v2844_v41  ;;  %1977 = vmatprep.subr.bf16.mxu1 %v2849_v42  ;;  %v2928_v41 = vld [vmem:[%s4054_s1 + $0x700] ss:$8 sps:$4 sm:$0xff]   ;;  %v359_v42 = vcombine.high %v3545_v17, %v3545_v17  ;;  %v2939_v17 = vld [vmem:[%s4054_s1 + $0x324] ss:$8 sps:$4 sm:$0xff]  }
  0x8d   :  { %2141 = vmatprep.subr.bf16.mxu0 %v2852_v44  ;;  %v408_v44 = vcombine.high %v3548_v35, %v3548_v35  ;;  %v2942_v35 = vld [vmem:[%s4054_s1 + $0x724] ss:$8 sps:$4 sm:$0xff]  }
  0x8f   :  { %1978 = vmatpush1.bf16.msra.mxu1 %v2847_v45  ;;  %v2931_v45 = vld [vmem:[%s4054_s1 + $0x310] ss:$8 sps:$4 sm:$0xff]  }
  0x90   :  { %2142 = vmatpush1.bf16.msra.mxu0 %v2850_v46  ;;  %1979 = vmatprep.subr.bf16.mxu1 %v2855_v47  ;;  %v2934_v46 = vld [vmem:[%s4054_s1 + $0x710] ss:$8 sps:$4 sm:$0xff]   ;;  %v2937_v47 = vld [vmem:[%s4054_s1 + $0x320] ss:$8 sps:$4 sm:$0xff]  }
  0x91   :  { %2143 = vmatprep.subr.bf16.mxu0 %v2858_v48  ;;  %v2940_v48 = vld [vmem:[%s4054_s1 + $0x720] ss:$8 sps:$4 sm:$0xff]  }
  0x93   :  { %1980 = vmatpush1.bf16.msra.mxu1 %v2853_v50  ;;  %v2945_v50 = vld [vmem:[%s4054_s1 + $0x334] ss:$8 sps:$4 sm:$0xff]  }
  0x94   :  { %2144 = vmatpush1.bf16.msra.mxu0 %v2856_v51  ;;  %1981 = vmatprep.subr.bf16.mxu1 %v2861_v53  ;;  %v2948_v51 = vld [vmem:[%s4054_s1 + $0x734] ss:$8 sps:$4 sm:$0xff]   ;;  %v2943_v53 = vld [vmem:[%s4054_s1 + $0x330] ss:$8 sps:$4 sm:$0xff]  }
  0x95   :  { %2145 = vmatprep.subr.bf16.mxu0 %v2864_v54  ;;  %v2946_v54 = vld [vmem:[%s4054_s1 + $0x730] ss:$8 sps:$4 sm:$0xff]  }
  0x97   :  { %1982 = vmatpush1.bf16.msra.mxu1 %v2859_v55  ;;  %v2951_v55 = vld [vmem:[%s4054_s1 + $0x344] ss:$8 sps:$4 sm:$0xff]  }
  0x98   :  { %2146 = vmatpush1.bf16.msra.mxu0 %v2862_v57  ;;  %1983 = vmatprep.subr.bf16.mxu1 %v2867_v58  ;;  %v2954_v57 = vld [vmem:[%s4054_s1 + $0x744] ss:$8 sps:$4 sm:$0xff]   ;;  %v2949_v58 = vld [vmem:[%s4054_s1 + $0x340] ss:$8 sps:$4 sm:$0xff]  }
  0x99   :  { %2147 = vmatprep.subr.bf16.mxu0 %v2870_v59  ;;  %v2952_v59 = vld [vmem:[%s4054_s1 + $0x740] ss:$8 sps:$4 sm:$0xff]  }
  0x9b   :  { %1984 = vmatpush1.bf16.msra.mxu1 %v2865_v60  ;;  %v2957_v60 = vld [vmem:[%s4054_s1 + $0x354] ss:$8 sps:$4 sm:$0xff]  }
  0x9c   :  { %2148 = vmatpush1.bf16.msra.mxu0 %v2868_v61  ;;  %1985 = vmatprep.subr.bf16.mxu1 %v2873_v62  ;;  %v2960_v61 = vld [vmem:[%s4054_s1 + $0x754] ss:$8 sps:$4 sm:$0xff]   ;;  %v2955_v62 = vld [vmem:[%s4054_s1 + $0x350] ss:$8 sps:$4 sm:$0xff]  }
  0x9d   :  { %2149 = vmatprep.subr.bf16.mxu0 %v2876_v63  ;;  %v2958_v63 = vld [vmem:[%s4054_s1 + $0x750] ss:$8 sps:$4 sm:$0xff]  }
  0x9f   :  { %1986 = vmatpush1.bf16.msra.mxu1 %v2871_v0  ;;  %v2963_v0 = vld [vmem:[%s4054_s1 + $0x364] ss:$8 sps:$4 sm:$0xff]  }
  0xa0   :  { %2150 = vmatpush1.bf16.msra.mxu0 %v2874_v1  ;;  %1987 = vmatprep.subr.bf16.mxu1 %v2879_v2  ;;  %v2966_v1 = vld [vmem:[%s4054_s1 + $0x764] ss:$8 sps:$4 sm:$0xff]   ;;  %v2961_v2 = vld [vmem:[%s4054_s1 + $0x360] ss:$8 sps:$4 sm:$0xff]  }
  0xa1   :  { %2151 = vmatprep.subr.bf16.mxu0 %v2882_v3  ;;  %v2964_v3 = vld [vmem:[%s4054_s1 + $0x760] ss:$8 sps:$4 sm:$0xff]  }
  0xa3   :  { %1988 = vmatpush1.bf16.msra.mxu1 %v2877_v4  ;;  %v2969_v4 = vld [vmem:[%s4054_s1 + $0x374] ss:$8 sps:$4 sm:$0xff]  }
  0xa4   :  { %2152 = vmatpush1.bf16.msra.mxu0 %v2880_v5  ;;  %1989 = vmatprep.subr.bf16.mxu1 %v2885_v6  ;;  %v2972_v5 = vld [vmem:[%s4054_s1 + $0x774] ss:$8 sps:$4 sm:$0xff]   ;;  %v2967_v6 = vld [vmem:[%s4054_s1 + $0x370] ss:$8 sps:$4 sm:$0xff]  }
  0xa5   :  { %2153 = vmatprep.subr.bf16.mxu0 %v2888_v7  ;;  %v2970_v7 = vld [vmem:[%s4054_s1 + $0x770] ss:$8 sps:$4 sm:$0xff]  }
  0xa7   :  { %1990 = vmatpush1.bf16.msra.mxu1 %v2883_v8  ;;  %v2975_v8 = vld [vmem:[%s4054_s1 + $0x384] ss:$8 sps:$4 sm:$0xff]  }
  0xa8   :  { %2154 = vmatpush1.bf16.msra.mxu0 %v2886_v9  ;;  %1991 = vmatprep.subr.bf16.mxu1 %v2891_v10  ;;  %v2978_v9 = vld [vmem:[%s4054_s1 + $0x784] ss:$8 sps:$4 sm:$0xff]   ;;  %v2973_v10 = vld [vmem:[%s4054_s1 + $0x380] ss:$8 sps:$4 sm:$0xff]  }
  0xa9   :  { %2155 = vmatprep.subr.bf16.mxu0 %v2894_v11  ;;  %v2976_v11 = vld [vmem:[%s4054_s1 + $0x780] ss:$8 sps:$4 sm:$0xff]  }
  0xab   :  { %1992 = vmatpush1.bf16.msra.mxu1 %v2889_v12  ;;  %v2981_v12 = vld [vmem:[%s4054_s1 + $0x394] ss:$8 sps:$4 sm:$0xff]  }
  0xac   :  { %2156 = vmatpush1.bf16.msra.mxu0 %v2892_v13  ;;  %1993 = vmatprep.subr.bf16.mxu1 %v2897_v14  ;;  %v2984_v13 = vld [vmem:[%s4054_s1 + $0x794] ss:$8 sps:$4 sm:$0xff]   ;;  %v2979_v14 = vld [vmem:[%s4054_s1 + $0x390] ss:$8 sps:$4 sm:$0xff]  }
  0xad   :  { %2157 = vmatprep.subr.bf16.mxu0 %v2900_v15  ;;  %v2982_v15 = vld [vmem:[%s4054_s1 + $0x790] ss:$8 sps:$4 sm:$0xff]  }
  0xaf   :  { %1994 = vmatpush1.bf16.msra.mxu1 %v2895_v18  ;;  %v2987_v18 = vld [vmem:[%s4054_s1 + $0x3a4] ss:$8 sps:$4 sm:$0xff]  }
  0xb0   :  { %2158 = vmatpush1.bf16.msra.mxu0 %v2898_v19  ;;  %1995 = vmatprep.subr.bf16.mxu1 %v2903_v20  ;;  %v2990_v19 = vld [vmem:[%s4054_s1 + $0x7a4] ss:$8 sps:$4 sm:$0xff]   ;;  %v2985_v20 = vld [vmem:[%s4054_s1 + $0x3a0] ss:$8 sps:$4 sm:$0xff]  }
  0xb1   :  { %2159 = vmatprep.subr.bf16.mxu0 %v2906_v21  ;;  %v2988_v21 = vld [vmem:[%s4054_s1 + $0x7a0] ss:$8 sps:$4 sm:$0xff]  }
  0xb3   :  { %1996 = vmatpush1.bf16.msra.mxu1 %v2901_v22  ;;  %v2993_v22 = vld [vmem:[%s4054_s1 + $0x3b4] ss:$8 sps:$4 sm:$0xff]  }
  0xb4   :  { %2160 = vmatpush1.bf16.msra.mxu0 %v2904_v52  ;;  %1997 = vmatprep.subr.bf16.mxu1 %v2909_v24  ;;  %v2996_v52 = vld [vmem:[%s4054_s1 + $0x7b4] ss:$8 sps:$4 sm:$0xff]   ;;  %v2991_v24 = vld [vmem:[%s4054_s1 + $0x3b0] ss:$8 sps:$4 sm:$0xff]  }
  0xb5   :  { %2161 = vmatprep.subr.bf16.mxu0 %v2912_v25  ;;  %v2994_v25 = vld [vmem:[%s4054_s1 + $0x7b0] ss:$8 sps:$4 sm:$0xff]  }
  0xb7   :  { %1998 = vmatpush1.bf16.msra.mxu1 %v2907_v26  ;;  %v2999_v26 = vld [vmem:[%s4054_s1 + $0x3c4] ss:$8 sps:$4 sm:$0xff]  }
  0xb8   :  { %2162 = vmatpush1.bf16.msra.mxu0 %v2910_v27  ;;  %1999 = vmatprep.subr.bf16.mxu1 %v2915_v28  ;;  %v3002_v27 = vld [vmem:[%s4054_s1 + $0x7c4] ss:$8 sps:$4 sm:$0xff]   ;;  %v2997_v28 = vld [vmem:[%s4054_s1 + $0x3c0] ss:$8 sps:$4 sm:$0xff]  }
  0xb9   :  { %2163 = vmatprep.subr.bf16.mxu0 %v2918_v29  ;;  %v3000_v29 = vld [vmem:[%s4054_s1 + $0x7c0] ss:$8 sps:$4 sm:$0xff]  }
  0xbb   :  { %2000 = vmatpush1.bf16.msra.mxu1 %v2913_v30  ;;  %v3005_v30 = vld [vmem:[%s4054_s1 + $0x3d4] ss:$8 sps:$4 sm:$0xff]  }
  0xbc   :  { %2164 = vmatpush1.bf16.msra.mxu0 %v2916_v31  ;;  %2001 = vmatprep.subr.bf16.mxu1 %v2921_v32  ;;  %v3008_v31 = vld [vmem:[%s4054_s1 + $0x7d4] ss:$8 sps:$4 sm:$0xff]   ;;  %v3003_v32 = vld [vmem:[%s4054_s1 + $0x3d0] ss:$8 sps:$4 sm:$0xff]  }
  0xbd   :  { %2165 = vmatprep.subr.bf16.mxu0 %v2924_v33  ;;  %v3006_v33 = vld [vmem:[%s4054_s1 + $0x7d0] ss:$8 sps:$4 sm:$0xff]  }
  0xbf   :  { %2002 = vmatpush1.bf16.msra.mxu1 %v2919_v34  ;;  %v3011_v34 = vld [vmem:[%s4054_s1 + $0x3e4] ss:$8 sps:$4 sm:$0xff]  }
  0xc0   :  { %2166 = vmatpush1.bf16.msra.mxu0 %v2922_v16  ;;  %2012 = vmatprep.subr.bf16.mxu1 %v2927_v36  ;;  %v3014_v16 = vld [vmem:[%s4054_s1 + $0x7e4] ss:$8 sps:$4 sm:$0xff]   ;;  %v3009_v36 = vld [vmem:[%s4054_s1 + $0x3e0] ss:$8 sps:$4 sm:$0xff]  }
  0xc1   :  { %2176 = vmatprep.subr.bf16.mxu0 %v2930_v37  ;;  %v3012_v37 = vld [vmem:[%s4054_s1 + $0x7e0] ss:$8 sps:$4 sm:$0xff]  }
  0xc2   :  { %2004 = vmatmul.mubr.bf16.vlgmr.msra.gmra.mrb[0].mxu1 %v3734_v38 }
  0xc3   :  { %2168 = vmatmul.mubr.bf16.vlgmr.msra.gmra.mrb[0].mxu0 %v3738_v39  ;;  %2013 = vmatpush1.bf16.msra.mxu1 %v2925_v40  ;;  %v3017_v40 = vld [vmem:[%s4054_s1 + $0x3f4] ss:$8 sps:$4 sm:$0xff]  }
  0xc4   :  { %2177 = vmatpush1.bf16.msra.mxu0 %v2928_v41  ;;  %2014 = vmatprep.subr.bf16.mxu1 %v2933_v56  ;;  %v3020_v41 = vld [vmem:[%s4054_s1 + $0x7f4] ss:$8 sps:$4 sm:$0xff]   ;;  %v3929_v56 = vld.sshfl [vmem:[%s4055_s0 + $0x10] sm:$0x11 pattern:$0x75316420] }
  0xc5   :  { %2178 = vmatprep.subr.bf16.mxu0 %v2936_v23  ;;  %2044 = vmatprep.mubr.bf16.mxu1 %v359_v42  ;;  %v3015_v23 = vld [vmem:[%s4054_s1 + $0x3f0] ss:$8 sps:$4 sm:$0xff]  }
  0xc6   :  { %2208 = vmatprep.mubr.bf16.mxu0 %v408_v44  ;;  %v3018_v42 = vld [vmem:[%s4054_s1 + $0x7f0] ss:$8 sps:$4 sm:$0xff]   ;;  %v416_v44 = vcombine.high %v3929_v56, %v3929_v56 }
  0xc7   :  { %2015 = vmatpush1.bf16.msra.mxu1 %v2931_v45  ;;  %v3023_v45 = vld [vmem:[%s4054_s1 + $0x804] ss:$8 sps:$4 sm:$0xff]  }
  0xc8   :  { %2179 = vmatpush1.bf16.msra.mxu0 %v2934_v46  ;;  %2016 = vmatprep.subr.bf16.mxu1 %v2939_v17  ;;  %v357_v46 = vcombine.high %v3734_v38, %v3734_v38  ;;  %v406_v17 = vcombine.high %v3738_v39, %v3738_v39  ;;  %v3024_v38 = vld [vmem:[%s4054_s1 + $0x810] ss:$8 sps:$4 sm:$0xff]   ;;  %v3029_v39 = vld [vmem:[%s4054_s1 + $0x824] ss:$8 sps:$4 sm:$0xff]  }
  0xc9   :  { %2180 = vmatprep.subr.bf16.mxu0 %v2942_v35  ;;  %v3021_v35 = vld [vmem:[%s4054_s1 + $0x800] ss:$8 sps:$4 sm:$0xff]  }
  0xcb   :  { %2017 = vmatpush1.bf16.msra.mxu1 %v2937_v47  ;;  %v430_v47 = vrot.slane %v416_v44, %v3230_v49 }
  0xcc   :  { %2181 = vmatpush1.bf16.msra.mxu0 %v2940_v48  ;;  %2018 = vmatprep.subr.bf16.mxu1 %v2945_v50  ;;  %v3026_v48 = vld [vmem:[%s4054_s1 + $0x814] ss:$8 sps:$4 sm:$0xff]   ;;  %v3027_v50 = vld [vmem:[%s4054_s1 + $0x820] ss:$8 sps:$4 sm:$0xff]  }
  0xcd   :  { %2182 = vmatprep.subr.bf16.mxu0 %v2948_v51  ;;  %v3032_v51 = vld [vmem:[%s4054_s1 + $0x834] ss:$8 sps:$4 sm:$0xff]  }
  0xcf   :  { %2019 = vmatpush1.bf16.msra.mxu1 %v2943_v53  ;;  %v3030_v53 = vld [vmem:[%s4054_s1 + $0x830] ss:$8 sps:$4 sm:$0xff]  }
  0xd0   :  { %2183 = vmatpush1.bf16.msra.mxu0 %v2946_v54  ;;  %2020 = vmatprep.subr.bf16.mxu1 %v2951_v55  ;;  %v3035_v54 = vld [vmem:[%s4054_s1 + $0x844] ss:$8 sps:$4 sm:$0xff]   ;;  %v3033_v55 = vld [vmem:[%s4054_s1 + $0x840] ss:$8 sps:$4 sm:$0xff]  }
  0xd1   :  { %2184 = vmatprep.subr.bf16.mxu0 %v2954_v57  ;;  %v3038_v57 = vld [vmem:[%s4054_s1 + $0x854] ss:$8 sps:$4 sm:$0xff]  }
  0xd3   :  { %2021 = vmatpush1.bf16.msra.mxu1 %v2949_v58  ;;  %v3036_v58 = vld [vmem:[%s4054_s1 + $0x850] ss:$8 sps:$4 sm:$0xff]  }
  0xd4   :  { %2185 = vmatpush1.bf16.msra.mxu0 %v2952_v59  ;;  %2022 = vmatprep.subr.bf16.mxu1 %v2957_v60  ;;  %v3041_v59 = vld [vmem:[%s4054_s1 + $0x864] ss:$8 sps:$4 sm:$0xff]   ;;  %v3039_v60 = vld [vmem:[%s4054_s1 + $0x860] ss:$8 sps:$4 sm:$0xff]  }
  0xd5   :  { %2186 = vmatprep.subr.bf16.mxu0 %v2960_v61  ;;  %v3044_v61 = vld [vmem:[%s4054_s1 + $0x874] ss:$8 sps:$4 sm:$0xff]  }
  0xd7   :  { %2023 = vmatpush1.bf16.msra.mxu1 %v2955_v62  ;;  %v3042_v62 = vld [vmem:[%s4054_s1 + $0x870] ss:$8 sps:$4 sm:$0xff]  }
  0xd8   :  { %2187 = vmatpush1.bf16.msra.mxu0 %v2958_v63  ;;  %2024 = vmatprep.subr.bf16.mxu1 %v2963_v0  ;;  %v3047_v63 = vld [vmem:[%s4054_s1 + $0x884] ss:$8 sps:$4 sm:$0xff]   ;;  %v3045_v0 = vld [vmem:[%s4054_s1 + $0x880] ss:$8 sps:$4 sm:$0xff]  }
  0xd9   :  { %2188 = vmatprep.subr.bf16.mxu0 %v2966_v1  ;;  %v3050_v1 = vld [vmem:[%s4054_s1 + $0x894] ss:$8 sps:$4 sm:$0xff]  }
  0xdb   :  { %2025 = vmatpush1.bf16.msra.mxu1 %v2961_v2  ;;  %v3048_v2 = vld [vmem:[%s4054_s1 + $0x890] ss:$8 sps:$4 sm:$0xff]  }
  0xdc   :  { %2189 = vmatpush1.bf16.msra.mxu0 %v2964_v3  ;;  %2026 = vmatprep.subr.bf16.mxu1 %v2969_v4  ;;  %v3053_v3 = vld [vmem:[%s4054_s1 + $0x8a4] ss:$8 sps:$4 sm:$0xff]   ;;  %v3051_v4 = vld [vmem:[%s4054_s1 + $0x8a0] ss:$8 sps:$4 sm:$0xff]  }
  0xdd   :  { %2190 = vmatprep.subr.bf16.mxu0 %v2972_v5  ;;  %v3056_v5 = vld [vmem:[%s4054_s1 + $0x8b4] ss:$8 sps:$4 sm:$0xff]  }
  0xdf   :  { %2027 = vmatpush1.bf16.msra.mxu1 %v2967_v6  ;;  %v3054_v6 = vld [vmem:[%s4054_s1 + $0x8b0] ss:$8 sps:$4 sm:$0xff]  }
  0xe0   :  { %2191 = vmatpush1.bf16.msra.mxu0 %v2970_v7  ;;  %2028 = vmatprep.subr.bf16.mxu1 %v2975_v8  ;;  %v3059_v7 = vld [vmem:[%s4054_s1 + $0x8c4] ss:$8 sps:$4 sm:$0xff]   ;;  %v3057_v8 = vld [vmem:[%s4054_s1 + $0x8c0] ss:$8 sps:$4 sm:$0xff]  }
  0xe1   :  { %2192 = vmatprep.subr.bf16.mxu0 %v2978_v9  ;;  %v3062_v9 = vld [vmem:[%s4054_s1 + $0x8d4] ss:$8 sps:$4 sm:$0xff]  }
  0xe3   :  { %2029 = vmatpush1.bf16.msra.mxu1 %v2973_v10  ;;  %v3060_v10 = vld [vmem:[%s4054_s1 + $0x8d0] ss:$8 sps:$4 sm:$0xff]  }
  0xe4   :  { %2193 = vmatpush1.bf16.msra.mxu0 %v2976_v11  ;;  %2030 = vmatprep.subr.bf16.mxu1 %v2981_v12  ;;  %v3065_v11 = vld [vmem:[%s4054_s1 + $0x8e4] ss:$8 sps:$4 sm:$0xff]   ;;  %v3063_v12 = vld [vmem:[%s4054_s1 + $0x8e0] ss:$8 sps:$4 sm:$0xff]  }
  0xe5   :  { %2194 = vmatprep.subr.bf16.mxu0 %v2984_v13  ;;  %v3068_v13 = vld [vmem:[%s4054_s1 + $0x8f4] ss:$8 sps:$4 sm:$0xff]  }
  0xe7   :  { %2031 = vmatpush1.bf16.msra.mxu1 %v2979_v14  ;;  %v3066_v14 = vld [vmem:[%s4054_s1 + $0x8f0] ss:$8 sps:$4 sm:$0xff]  }
  0xe8   :  { %2195 = vmatpush1.bf16.msra.mxu0 %v2982_v15  ;;  %2032 = vmatprep.subr.bf16.mxu1 %v2987_v18  ;;  %v423_v15 = vrot.slane %v3929_v56, %v3230_v49 }
  0xe9   :  { %2196 = vmatprep.subr.bf16.mxu0 %v2990_v19 }
  0xeb   :  { %2033 = vmatpush1.bf16.msra.mxu1 %v2985_v20 }
  0xec   :  { %2197 = vmatpush1.bf16.msra.mxu0 %v2988_v21  ;;  %2034 = vmatprep.subr.bf16.mxu1 %v2993_v22  ;;  %v2262_v22 = vsub.s32 0, %v3212_v43 }
  0xed   :  { %2198 = vmatprep.subr.bf16.mxu0 %v2996_v52  ;;  %v2258_v52 = vld [vmem:[%s4056_s2] sm:$0x3] }
  0xef   :  { %2035 = vmatpush1.bf16.msra.mxu1 %v2991_v24  ;;  %v2266_v24 = vsub.s32 1, %v3212_v43 }
  0xf0   :  { %2199 = vmatpush1.bf16.msra.mxu0 %v2994_v25  ;;  %2036 = vmatprep.subr.bf16.mxu1 %v2999_v26  ;;  %v2272_v25 = vld [vmem:[%s4057_s3] sm:$0x3]  ;;  %v2263_v26 = vrot.slane %v2258_v52, %v2262_v22 }
  0xf1   :  { %2200 = vmatprep.subr.bf16.mxu0 %v3002_v27 }
  0xf3   :  { %2037 = vmatpush1.bf16.msra.mxu1 %v2997_v28  ;;  %v2267_v28 = vrot.slane %v2258_v52, %v2266_v24 }
  0xf4   :  { %2201 = vmatpush1.bf16.msra.mxu0 %v3000_v29  ;;  %2038 = vmatprep.subr.bf16.mxu1 %v3005_v30  ;;  %v2277_v30 = vrot.slane %v2272_v25, %v2262_v22 }
  0xf5   :  { %2202 = vmatprep.subr.bf16.mxu0 %v3008_v31 }
  0xf7   :  { %2039 = vmatpush1.bf16.msra.mxu1 %v3003_v32 }
  0xf8   :  { %2203 = vmatpush1.bf16.msra.mxu0 %v3006_v33  ;;  %2040 = vmatprep.subr.bf16.mxu1 %v3011_v34  ;;  %v2281_v33 = vrot.slane %v2272_v25, %v2266_v24 }
  0xf9   :  { %2204 = vmatprep.subr.bf16.mxu0 %v3014_v16 }
  0xfb   :  { %2041 = vmatpush1.bf16.msra.mxu1 %v3009_v36 }
  0xfc   :  { %2205 = vmatpush1.bf16.msra.mxu0 %v3012_v37  ;;  %2042 = vmatprep.subr.bf16.mxu1 %v3017_v40 }
  0xfd   :  { %2206 = vmatprep.subr.bf16.mxu0 %v3020_v41 }
  0xff   :  { %2043 = vmatpush1.bf16.msra.mxu1 %v3015_v23 }
 0x100   :  { %2207 = vmatpush1.bf16.msra.mxu0 %v3018_v42 }
 0x101   :  { %2217 = vmatprep.subr.bf16.mxu0 %v3023_v45 }
 0x102   :  { %2045 = vmatmul.mubr.bf16.vlgmr.msra.gmra.mrb[0].mxu1 %v357_v46 }
 0x103   :  { %2209 = vmatmul.mubr.bf16.vlgmr.msra.gmra.mrb[0].mxu0 %v406_v17 }
 0x104   :  { %2218 = vmatpush1.bf16.msra.mxu0 %v3021_v35  ;;  %2249 = vmatprep.mubr.bf16.mxu0 %v430_v47 }
 0x105   :  { %2219 = vmatprep.subr.bf16.mxu0 %v3026_v48 }
 0x108   :  { %2220 = vmatpush1.bf16.msra.mxu0 %v3024_v38 }
 0x109   :  { %2221 = vmatprep.subr.bf16.mxu0 %v3029_v39 }
 0x10c   :  { %2222 = vmatpush1.bf16.msra.mxu0 %v3027_v50 }
 0x10d   :  { %2223 = vmatprep.subr.bf16.mxu0 %v3032_v51 }
 0x110   :  { %2224 = vmatpush1.bf16.msra.mxu0 %v3030_v53 }
 0x111   :  { %2225 = vmatprep.subr.bf16.mxu0 %v3035_v54 }
 0x114   :  { %2226 = vmatpush1.bf16.msra.mxu0 %v3033_v55 }
 0x115   :  { %2227 = vmatprep.subr.bf16.mxu0 %v3038_v57 }
 0x118   :  { %2228 = vmatpush1.bf16.msra.mxu0 %v3036_v58 }
 0x119   :  { %2229 = vmatprep.subr.bf16.mxu0 %v3041_v59 }
 0x11c   :  { %2230 = vmatpush1.bf16.msra.mxu0 %v3039_v60 }
 0x11d   :  { %2231 = vmatprep.subr.bf16.mxu0 %v3044_v61 }
 0x120   :  { %2232 = vmatpush1.bf16.msra.mxu0 %v3042_v62 }
 0x121   :  { %2233 = vmatprep.subr.bf16.mxu0 %v3047_v63 }
 0x124   :  { %2234 = vmatpush1.bf16.msra.mxu0 %v3045_v0 }
 0x125   :  { %2235 = vmatprep.subr.bf16.mxu0 %v3050_v1 }
 0x128   :  { %2236 = vmatpush1.bf16.msra.mxu0 %v3048_v2 }
 0x129   :  { %2237 = vmatprep.subr.bf16.mxu0 %v3053_v3 }
 0x12c   :  { %2238 = vmatpush1.bf16.msra.mxu0 %v3051_v4 }
 0x12d   :  { %2239 = vmatprep.subr.bf16.mxu0 %v3056_v5 }
 0x130   :  { %2240 = vmatpush1.bf16.msra.mxu0 %v3054_v6 }
 0x131   :  { %2241 = vmatprep.subr.bf16.mxu0 %v3059_v7 }
 0x134   :  { %2242 = vmatpush1.bf16.msra.mxu0 %v3057_v8 }
 0x135   :  { %2243 = vmatprep.subr.bf16.mxu0 %v3062_v9 }
 0x138   :  { %2244 = vmatpush1.bf16.msra.mxu0 %v3060_v10 }
 0x139   :  { %2245 = vmatprep.subr.bf16.mxu0 %v3065_v11 }
 0x13c   :  { %2246 = vmatpush1.bf16.msra.mxu0 %v3063_v12 }
 0x13d   :  { %2247 = vmatprep.subr.bf16.mxu0 %v3068_v13 }
 0x140   :  { %2248 = vmatpush1.bf16.msra.mxu0 %v3066_v14 }
 0x143   :  { %2250 = vmatmul.mubr.bf16.vlgmr.msra.gmra.mrb[0].mxu0 %v423_v15 }
 0x1d5   :  { %v2046_v18 = vpop.f32.mrb[0].mxu1 }
 0x1d6   :  { %v2048_v19 = vpop.f32.mrb[1].mxu1 }
 0x1d7   :  { %v2050_v20 = vpop.f32.mrb[2].mxu1 }
 0x1d8   :  { %v2051_v21 = vpop.f32.mrb[3].mxu1 }
 0x216   :  { %v2251_v27 = vpop.f32.mrb[0].mxu0 }
 0x217   :  { %v2604_v29 = vadd.f32 %v2251_v27, %v2046_v18  ;;  %v2253_v31 = vpop.f32.mrb[1].mxu0 }
 0x218   :  { %v2605_v32 = vadd.f32 %v2253_v31, %v2048_v19  ;;  %v2255_v34 = vpop.f32.mrb[2].mxu0 }
 0x219   :  { %v2270_v16 = vmul.f32 %v2604_v29, %v2263_v26  ;;  %v2256_v36 = vpop.f32.mrb[3].mxu0 }
 0x21a   :  { %v2271_v37 = vmul.f32 %v2605_v32, %v2267_v28 }
 0x21b   :  { %v2284_v40 = vadd.f32 %v2277_v30, %v2270_v16 }
 0x21c   :  { %v2285_v41 = vadd.f32 %v2281_v33, %v2271_v37 }
 0x21d   :  { %v2286_v56 = vmax.f32 %v2284_v40, 0.0 }
 0x21e   :  { %v2287_v43 = vmax.f32 %v2285_v41, 0.0 }
 0x220   :  { %v2602_v23 = vpack.c.bf16 %v2287_v43, %v2286_v56 }
 0x222   :  { %v2299_v42 = vrot.slane %v2602_v23, %v3230_v49 }
 0x224   :  { %2603 = vst.sshfl [vmem:[%s4058_s4] sm:$0x5 pattern:$0x73625140] %v2299_v42 }

// kernel: _lambda_.74
= control target key start
LH: loop header
LB: loop body
LE: loop exit
PB: predicated region body
PF: predicated region fallthrough
CT: control target
= control target key end

     0   :  { %s1509_s15 = smov 0   ;;  %s1511_s16 = smov 0   ;;  %s1796_s0 = inlined_call_operand.vmem [shape: bf16[2,512], index: 0, kind: input, shape index: {}]   ;;  %s1797_s1 = inlined_call_operand.vmem [shape: bf16[512,1024], index: 1, kind: input, shape index: {}]   ;;  %s1798_s2 = inlined_call_operand.vmem [shape: f32[1,1024], index: 2, kind: input, shape index: {}]   ;;  %s1799_s3 = inlined_call_operand.vmem [shape: f32[1,1024], index: 3, kind: input, shape index: {}]   ;;  %s1800_s4 = inlined_call_operand.vmem [shape: bf16[2,1024], index: 4, kind: output, shape index: {}]  }
   0x1   :  { %s1513_s17 = smov 0   ;;  %s1515_s18 = smov 0  }
   0x2   :  { %s1517_s19 = smov 0  }
   0x3 LB: > { %s23_s20 = sadd.s32 1, %s1477_s18  ;;  %p66_p1 = scmp.ne.s32.totalorder %s1469_s16, %s1465_s15  ;;  %s1481_s19 = sphi %s1517_s19, %s14_s19   ;;  %s1477_s18 = sphi %s1515_s18, %s1804_s18   ;;  %s1473_s17 = sphi %s1513_s17, %s1803_s17   ;;  %s1469_s16 = sphi %s1511_s16, %s1802_s16   ;;  %s1465_s15 = sphi %s1509_s15, %s1801_s15  }
   0x4   : > { %p24_p0 = scmp.ge.s32.totalorder %s23_s20, 4  ;;  %p67_p2 = scmp.eq.s32.totalorder %s1481_s19, 0 }
   0x5   : > { %s59_s22 = sadd.s32 1, %s1469_s16  ;;  %p1225_p5 = scmp.ge.s32.totalorder %s1481_s19, 4 }
   0x6   : > { %s1806_s20 = smov (%p24_p0, %s23_s20), 0  ;;  %p68_p3 = por %p67_p2, %p66_p1 }
   0x7   : > { %s56_s21 = ssub.s32 %s1477_s18, %s1806_s20  ;;  %179 = sbr.rel (%p1225_p5) target bundleno = 82 (0x52), region = 20 }
   0x8   : > { %p57_p4 = scmp.eq.s32.totalorder %s56_s21, 0 }
   0xa   : > { %s1544_s23 = scalar_select %p57_p4, %s1469_s16, %s59_s22  }
   0xe   : > { %182 = sbr.rel (!%p68_p3) target bundleno = 82 (0x52), region = 24  ;;  %s184_s24 = sand.u32 (%p68_p3), 1, %s1469_s16  }
   0xf   : > { %s1303_s25 = sshll.u32 (%p68_p3), %s1477_s18, 3  ;;  %s1226_s26 = sshll.u32 (%p68_p3), %s184_s24, 9 }
  0x10   : > { %s1552_s29 = scalar_lea.vmem (%p68_p3), %s1797_s1, %s1303_s25  ;;  %s1557_s30 = scalar_lea.vmem (%p68_p3), [#allocation2], %s1226_s26 }
  0x11   : > { %v343_v0 = vld [vmem:[%s1552_s29] sm:$0xff] (%p68_p3) }
  0x12   : > { %v345_v1 = vld [vmem:[%s1552_s29 + $0x20] sm:$0xff] (%p68_p3)  ;;  %344 = vst [vmem:[%s1557_s30] sm:$0xff] (%p68_p3), %v343_v0 }
  0x13   : > { %v347_v2 = vld [vmem:[%s1552_s29 + $0x40] sm:$0xff] (%p68_p3)  ;;  %346 = vst [vmem:[%s1557_s30 + $0x8] sm:$0xff] (%p68_p3), %v345_v1 }
  0x14   : > { %348 = vst [vmem:[%s1557_s30 + $0x10] sm:$0xff] (%p68_p3), %v347_v2  ;;  %v349_v3 = vld [vmem:[%s1552_s29 + $0x60] sm:$0xff] (%p68_p3) }
  0x15   : > { %v351_v4 = vld [vmem:[%s1552_s29 + $0x80] sm:$0xff]  ;;  %350 = vst [vmem:[%s1557_s30 + $0x18] sm:$0xff] %v349_v3 }
  0x16   : > { %v353_v5 = vld [vmem:[%s1552_s29 + $0xa0] sm:$0xff]  ;;  %352 = vst [vmem:[%s1557_s30 + $0x20] sm:$0xff] %v351_v4 }
  0x17   : > { %354 = vst [vmem:[%s1557_s30 + $0x28] sm:$0xff] %v353_v5  ;;  %v355_v6 = vld [vmem:[%s1552_s29 + $0xc0] sm:$0xff] }
  0x18   : > { %v357_v7 = vld [vmem:[%s1552_s29 + $0xe0] sm:$0xff]  ;;  %356 = vst [vmem:[%s1557_s30 + $0x30] sm:$0xff] %v355_v6 }
  0x19   : > { %v359_v8 = vld [vmem:[%s1552_s29 + $0x100] sm:$0xff]  ;;  %358 = vst [vmem:[%s1557_s30 + $0x38] sm:$0xff] %v357_v7 }
  0x1a   : > { %360 = vst [vmem:[%s1557_s30 + $0x40] sm:$0xff] %v359_v8  ;;  %v361_v9 = vld [vmem:[%s1552_s29 + $0x120] sm:$0xff] }
  0x1b   : > { %v363_v10 = vld [vmem:[%s1552_s29 + $0x140] sm:$0xff]  ;;  %362 = vst [vmem:[%s1557_s30 + $0x48] sm:$0xff] %v361_v9 }
  0x1c   : > { %v365_v11 = vld [vmem:[%s1552_s29 + $0x160] sm:$0xff]  ;;  %364 = vst [vmem:[%s1557_s30 + $0x50] sm:$0xff] %v363_v10 }
  0x1d   : > { %366 = vst [vmem:[%s1557_s30 + $0x58] sm:$0xff] %v365_v11  ;;  %v367_v12 = vld [vmem:[%s1552_s29 + $0x180] sm:$0xff] }
  0x1e   : > { %v369_v13 = vld [vmem:[%s1552_s29 + $0x1a0] sm:$0xff]  ;;  %368 = vst [vmem:[%s1557_s30 + $0x60] sm:$0xff] %v367_v12 }
  0x1f   : > { %v371_v14 = vld [vmem:[%s1552_s29 + $0x1c0] sm:$0xff]  ;;  %370 = vst [vmem:[%s1557_s30 + $0x68] sm:$0xff] %v369_v13 }
  0x20   : > { %372 = vst [vmem:[%s1557_s30 + $0x70] sm:$0xff] %v371_v14  ;;  %v373_v15 = vld [vmem:[%s1552_s29 + $0x1e0] sm:$0xff] }
  0x21   : > { %v375_v16 = vld [vmem:[%s1552_s29 + $0x200] sm:$0xff]  ;;  %374 = vst [vmem:[%s1557_s30 + $0x78] sm:$0xff] %v373_v15 }
  0x22   : > { %v377_v17 = vld [vmem:[%s1552_s29 + $0x220] sm:$0xff]  ;;  %376 = vst [vmem:[%s1557_s30 + $0x80] sm:$0xff] %v375_v16 }
  0x23   : > { %378 = vst [vmem:[%s1557_s30 + $0x88] sm:$0xff] %v377_v17  ;;  %v379_v18 = vld [vmem:[%s1552_s29 + $0x240] sm:$0xff] }
  0x24   : > { %v381_v19 = vld [vmem:[%s1552_s29 + $0x260] sm:$0xff]  ;;  %380 = vst [vmem:[%s1557_s30 + $0x90] sm:$0xff] %v379_v18 }
  0x25   : > { %v383_v20 = vld [vmem:[%s1552_s29 + $0x280] sm:$0xff]  ;;  %382 = vst [vmem:[%s1557_s30 + $0x98] sm:$0xff] %v381_v19 }
  0x26   : > { %384 = vst [vmem:[%s1557_s30 + $0xa0] sm:$0xff] %v383_v20  ;;  %v385_v21 = vld [vmem:[%s1552_s29 + $0x2a0] sm:$0xff] }
  0x27   : > { %v387_v22 = vld [vmem:[%s1552_s29 + $0x2c0] sm:$0xff]  ;;  %386 = vst [vmem:[%s1557_s30 + $0xa8] sm:$0xff] %v385_v21 }
  0x28   : > { %v389_v23 = vld [vmem:[%s1552_s29 + $0x2e0] sm:$0xff]  ;;  %388 = vst [vmem:[%s1557_s30 + $0xb0] sm:$0xff] %v387_v22 }
  0x29   : > { %390 = vst [vmem:[%s1557_s30 + $0xb8] sm:$0xff] %v389_v23  ;;  %v391_v24 = vld [vmem:[%s1552_s29 + $0x300] sm:$0xff] }
  0x2a   : > { %v393_v25 = vld [vmem:[%s1552_s29 + $0x320] sm:$0xff]  ;;  %392 = vst [vmem:[%s1557_s30 + $0xc0] sm:$0xff] %v391_v24 }
  0x2b   : > { %v395_v26 = vld [vmem:[%s1552_s29 + $0x340] sm:$0xff]  ;;  %394 = vst [vmem:[%s1557_s30 + $0xc8] sm:$0xff] %v393_v25 }
  0x2c   : > { %396 = vst [vmem:[%s1557_s30 + $0xd0] sm:$0xff] %v395_v26  ;;  %v397_v27 = vld [vmem:[%s1552_s29 + $0x360] sm:$0xff] }
  0x2d   : > { %v399_v28 = vld [vmem:[%s1552_s29 + $0x380] sm:$0xff]  ;;  %398 = vst [vmem:[%s1557_s30 + $0xd8] sm:$0xff] %v397_v27 }
  0x2e   : > { %v401_v29 = vld [vmem:[%s1552_s29 + $0x3a0] sm:$0xff]  ;;  %400 = vst [vmem:[%s1557_s30 + $0xe0] sm:$0xff] %v399_v28 }
  0x2f   : > { %402 = vst [vmem:[%s1557_s30 + $0xe8] sm:$0xff] %v401_v29  ;;  %v403_v30 = vld [vmem:[%s1552_s29 + $0x3c0] sm:$0xff] }
  0x30   : > { %v405_v31 = vld [vmem:[%s1552_s29 + $0x3e0] sm:$0xff]  ;;  %404 = vst [vmem:[%s1557_s30 + $0xf0] sm:$0xff] %v403_v30 }
  0x31   : > { %v407_v32 = vld [vmem:[%s1552_s29 + $0x400] sm:$0xff]  ;;  %406 = vst [vmem:[%s1557_s30 + $0xf8] sm:$0xff] %v405_v31 }
  0x32   : > { %408 = vst [vmem:[%s1557_s30 + $0x100] sm:$0xff] %v407_v32  ;;  %v409_v33 = vld [vmem:[%s1552_s29 + $0x420] sm:$0xff] }
  0x33   : > { %v411_v34 = vld [vmem:[%s1552_s29 + $0x440] sm:$0xff]  ;;  %410 = vst [vmem:[%s1557_s30 + $0x108] sm:$0xff] %v409_v33 }
  0x34   : > { %v413_v35 = vld [vmem:[%s1552_s29 + $0x460] sm:$0xff]  ;;  %412 = vst [vmem:[%s1557_s30 + $0x110] sm:$0xff] %v411_v34 }
  0x35   : > { %414 = vst [vmem:[%s1557_s30 + $0x118] sm:$0xff] %v413_v35  ;;  %v415_v36 = vld [vmem:[%s1552_s29 + $0x480] sm:$0xff] }
  0x36   : > { %v417_v37 = vld [vmem:[%s1552_s29 + $0x4a0] sm:$0xff]  ;;  %416 = vst [vmem:[%s1557_s30 + $0x120] sm:$0xff] %v415_v36 }
  0x37   : > { %v419_v38 = vld [vmem:[%s1552_s29 + $0x4c0] sm:$0xff]  ;;  %418 = vst [vmem:[%s1557_s30 + $0x128] sm:$0xff] %v417_v37 }
  0x38   : > { %420 = vst [vmem:[%s1557_s30 + $0x130] sm:$0xff] %v419_v38  ;;  %v421_v39 = vld [vmem:[%s1552_s29 + $0x4e0] sm:$0xff] }
  0x39   : > { %v423_v40 = vld [vmem:[%s1552_s29 + $0x500] sm:$0xff]  ;;  %422 = vst [vmem:[%s1557_s30 + $0x138] sm:$0xff] %v421_v39 }
  0x3a   : > { %v425_v41 = vld [vmem:[%s1552_s29 + $0x520] sm:$0xff]  ;;  %424 = vst [vmem:[%s1557_s30 + $0x140] sm:$0xff] %v423_v40 }
  0x3b   : > { %426 = vst [vmem:[%s1557_s30 + $0x148] sm:$0xff] %v425_v41  ;;  %v427_v42 = vld [vmem:[%s1552_s29 + $0x540] sm:$0xff] }
  0x3c   : > { %v429_v43 = vld [vmem:[%s1552_s29 + $0x560] sm:$0xff]  ;;  %428 = vst [vmem:[%s1557_s30 + $0x150] sm:$0xff] %v427_v42 }
  0x3d   : > { %v431_v44 = vld [vmem:[%s1552_s29 + $0x580] sm:$0xff]  ;;  %430 = vst [vmem:[%s1557_s30 + $0x158] sm:$0xff] %v429_v43 }
  0x3e   : > { %432 = vst [vmem:[%s1557_s30 + $0x160] sm:$0xff] %v431_v44  ;;  %v433_v45 = vld [vmem:[%s1552_s29 + $0x5a0] sm:$0xff] }
  0x3f   : > { %v435_v46 = vld [vmem:[%s1552_s29 + $0x5c0] sm:$0xff]  ;;  %434 = vst [vmem:[%s1557_s30 + $0x168] sm:$0xff] %v433_v45 }
  0x40   : > { %v437_v47 = vld [vmem:[%s1552_s29 + $0x5e0] sm:$0xff]  ;;  %436 = vst [vmem:[%s1557_s30 + $0x170] sm:$0xff] %v435_v46 }
  0x41   : > { %438 = vst [vmem:[%s1557_s30 + $0x178] sm:$0xff] %v437_v47  ;;  %v439_v48 = vld [vmem:[%s1552_s29 + $0x600] sm:$0xff] }
  0x42   : > { %v441_v49 = vld [vmem:[%s1552_s29 + $0x620] sm:$0xff]  ;;  %440 = vst [vmem:[%s1557_s30 + $0x180] sm:$0xff] %v439_v48 }
  0x43   : > { %v443_v50 = vld [vmem:[%s1552_s29 + $0x640] sm:$0xff]  ;;  %442 = vst [vmem:[%s1557_s30 + $0x188] sm:$0xff] %v441_v49 }
  0x44   : > { %444 = vst [vmem:[%s1557_s30 + $0x190] sm:$0xff] %v443_v50  ;;  %v445_v51 = vld [vmem:[%s1552_s29 + $0x660] sm:$0xff] }
  0x45   : > { %v447_v52 = vld [vmem:[%s1552_s29 + $0x680] sm:$0xff]  ;;  %446 = vst [vmem:[%s1557_s30 + $0x198] sm:$0xff] %v445_v51 }
  0x46   : > { %v449_v53 = vld [vmem:[%s1552_s29 + $0x6a0] sm:$0xff]  ;;  %448 = vst [vmem:[%s1557_s30 + $0x1a0] sm:$0xff] %v447_v52 }
  0x47   : > { %450 = vst [vmem:[%s1557_s30 + $0x1a8] sm:$0xff] %v449_v53  ;;  %v451_v54 = vld [vmem:[%s1552_s29 + $0x6c0] sm:$0xff] }
  0x48   : > { %v453_v55 = vld [vmem:[%s1552_s29 + $0x6e0] sm:$0xff]  ;;  %452 = vst [vmem:[%s1557_s30 + $0x1b0] sm:$0xff] %v451_v54 }
  0x49   : > { %v455_v56 = vld [vmem:[%s1552_s29 + $0x700] sm:$0xff]  ;;  %454 = vst [vmem:[%s1557_s30 + $0x1b8] sm:$0xff] %v453_v55 }
  0x4a   : > { %456 = vst [vmem:[%s1557_s30 + $0x1c0] sm:$0xff] %v455_v56  ;;  %v457_v57 = vld [vmem:[%s1552_s29 + $0x720] sm:$0xff] }
  0x4b   : > { %v459_v58 = vld [vmem:[%s1552_s29 + $0x740] sm:$0xff]  ;;  %458 = vst [vmem:[%s1557_s30 + $0x1c8] sm:$0xff] %v457_v57 }
  0x4c   : > { %v461_v59 = vld [vmem:[%s1552_s29 + $0x760] sm:$0xff]  ;;  %460 = vst [vmem:[%s1557_s30 + $0x1d0] sm:$0xff] %v459_v58 }
  0x4d   : > { %462 = vst [vmem:[%s1557_s30 + $0x1d8] sm:$0xff] %v461_v59  ;;  %v463_v60 = vld [vmem:[%s1552_s29 + $0x780] sm:$0xff] }
  0x4e   : > { %v465_v61 = vld [vmem:[%s1552_s29 + $0x7a0] sm:$0xff]  ;;  %464 = vst [vmem:[%s1557_s30 + $0x1e0] sm:$0xff] %v463_v60 }
  0x4f   : > { %v467_v62 = vld [vmem:[%s1552_s29 + $0x7c0] sm:$0xff]  ;;  %466 = vst [vmem:[%s1557_s30 + $0x1e8] sm:$0xff] %v465_v61 }
  0x50   : > { %468 = vst [vmem:[%s1557_s30 + $0x1f0] sm:$0xff] %v467_v62  ;;  %v469_v63 = vld [vmem:[%s1552_s29 + $0x7e0] sm:$0xff] }
  0x51   : > { %470 = vst [vmem:[%s1557_s30 + $0x1f8] sm:$0xff] %v469_v63 }
  0x52 PF: > { %p1229_p6 = scmp.ge.s32.totalorder %s1481_s19, 1  ;;  %p491_p7 = scmp.lt.s32.totalorder %s1481_s19, 5 }
  0x54   : > { %p492_p8 = pnand %p1229_p6, %p491_p7 }
  0x55   : > { %s498_s5 = sand.u32 (!%p492_p8), 1, %s1465_s15   ;;  %v1690_v0 = vld.sshfl [vmem:[%s1796_s0] sm:$0x33 pattern:$0x75316420] (!%p492_p8)  ;;  %v639_v1 = vlaneseq (!%p492_p8)  ;;  %s1231_s10 = sshll.u32 (!%p492_p8), %s1473_s17, 1 }
  0x56   : > { %495 = sbr.rel (%p492_p8) target bundleno = 378 (0x17a), region = 70  ;;  %s1230_s8 = sshll.u32 (!%p492_p8), %s498_s5, 9  ;;  %v1483_v2 = vmov (!%p492_p8), 1966171168   ;;  %v635_v7 = vcombine.high (!%p492_p8), %v1690_v0, %v1690_v0 }
  0x57   : > { %v637_v3 = vunpack.c.l.s4 (!%p492_p8), %v1483_v2  ;;  %v1692_v4 = vshrl.u32 (!%p492_p8), %v639_v1, 7  ;;  %s1694_s9 = scalar_lea.vmem (!%p492_p8), [#allocation2], %s1230_s8  ;;  %p544_p9 = scmp.lt.s32.totalorder (!%p492_p8), %s1231_s10, 7 }
  0x58   : > { %v1347_v5 = vld [vmem:[%s1694_s9 + $0x4] ss:$8 sps:$4 sm:$0xff] (!%p492_p8)   ;;  %v1351_v9 = vld [vmem:[%s1694_s9] ss:$8 sps:$4 sm:$0xff] (!%p492_p8)   ;;  %v1353_v11 = vld [vmem:[%s1694_s9 + $0x14] ss:$8 sps:$4 sm:$0xff] (!%p492_p8)  }
  0x59   : > { %v1349_v6 = vld [vmem:[%s1694_s9 + $0x104] ss:$8 sps:$4 sm:$0xff] (!%p492_p8)   ;;  %v638_v8 = vunpack.c.0.s8 (!%p492_p8), %v637_v3  ;;  %976 = vmatprep.subr.bf16.mxu1 (!%p492_p8), %v1347_v5  ;;  %v1352_v10 = vld [vmem:[%s1694_s9 + $0x100] ss:$8 sps:$4 sm:$0xff] (!%p492_p8)   ;;  %v1355_v13 = vld [vmem:[%s1694_s9 + $0x114] ss:$8 sps:$4 sm:$0xff] (!%p492_p8)  }
  0x5a   : > { %1017 = vmatprep.subr.bf16.mxu0 (!%p492_p8), %v1349_v6  ;;  %977 = vmatpush1.bf16.msra.mxu1 (!%p492_p8), %v1351_v9  ;;  %v1357_v14 = vld [vmem:[%s1694_s9 + $0x10] ss:$8 sps:$4 sm:$0xff] (!%p492_p8)   ;;  %v1359_v17 = vld [vmem:[%s1694_s9 + $0x24] ss:$8 sps:$4 sm:$0xff] (!%p492_p8)   ;;  %v1363_v19 = vld [vmem:[%s1694_s9 + $0x20] ss:$8 sps:$4 sm:$0xff] (!%p492_p8)  }
  0x5b   : > { %v1704_v12 = vsub.s32 (!%p492_p8), %v638_v8, %v1692_v4  ;;  %1018 = vmatpush1.bf16.msra.mxu0 (!%p492_p8), %v1352_v10  ;;  %978 = vmatprep.subr.bf16.mxu1 (!%p492_p8), %v1353_v11  ;;  %v1358_v15 = vld [vmem:[%s1694_s9 + $0x110] ss:$8 sps:$4 sm:$0xff] (!%p492_p8)   ;;  %v1361_v18 = vld [vmem:[%s1694_s9 + $0x124] ss:$8 sps:$4 sm:$0xff] (!%p492_p8)   ;;  %v1364_v20 = vld [vmem:[%s1694_s9 + $0x120] ss:$8 sps:$4 sm:$0xff] (!%p492_p8)  }
  0x5c   : > { %1019 = vmatprep.subr.bf16.mxu0 (!%p492_p8), %v1355_v13  ;;  %v1365_v22 = vld [vmem:[%s1694_s9 + $0x34] ss:$8 sps:$4 sm:$0xff] (!%p492_p8)   ;;  %v1369_v24 = vld [vmem:[%s1694_s9 + $0x30] ss:$8 sps:$4 sm:$0xff] (!%p492_p8)   ;;  %v1371_v26 = vld [vmem:[%s1694_s9 + $0x44] ss:$8 sps:$4 sm:$0xff] (!%p492_p8)  }
  0x5d   : > { %v649_v16 = vrot.slane %v635_v7, %v1704_v12  ;;  %v1367_v23 = vld [vmem:[%s1694_s9 + $0x134] ss:$8 sps:$4 sm:$0xff]   ;;  %v1370_v25 = vld [vmem:[%s1694_s9 + $0x130] ss:$8 sps:$4 sm:$0xff]   ;;  %v1373_v27 = vld [vmem:[%s1694_s9 + $0x144] ss:$8 sps:$4 sm:$0xff]   ;;  %v642_v10 = vrot.slane %v1690_v0, %v1704_v12 }
  0x5e   : > { %979 = vmatpush1.bf16.msra.mxu1 %v1357_v14  ;;  %v1375_v28 = vld [vmem:[%s1694_s9 + $0x40] ss:$8 sps:$4 sm:$0xff]   ;;  %v1377_v30 = vld [vmem:[%s1694_s9 + $0x54] ss:$8 sps:$4 sm:$0xff]   ;;  %v1381_v32 = vld [vmem:[%s1694_s9 + $0x50] ss:$8 sps:$4 sm:$0xff]  }
  0x5f   : > { %1008 = vmatprep.mubr.bf16.mxu1 %v649_v16  ;;  %v651_v21 = vcombine.high %v649_v16, %v649_v16  ;;  %1020 = vmatpush1.bf16.msra.mxu0 %v1358_v15  ;;  %v1376_v29 = vld [vmem:[%s1694_s9 + $0x140] ss:$8 sps:$4 sm:$0xff]   ;;  %v1379_v31 = vld [vmem:[%s1694_s9 + $0x154] ss:$8 sps:$4 sm:$0xff]   ;;  %v1382_v33 = vld [vmem:[%s1694_s9 + $0x150] ss:$8 sps:$4 sm:$0xff]   ;;  %v650_v14 = vcombine.high %v642_v10, %v642_v10 }
  0x60   : > { %980 = vmatprep.subr.bf16.mxu1 %v1359_v17  ;;  %1021 = vmatprep.subr.bf16.mxu0 %v1361_v18  ;;  %v1383_v34 = vld [vmem:[%s1694_s9 + $0x64] ss:$8 sps:$4 sm:$0xff]   ;;  %v1387_v36 = vld [vmem:[%s1694_s9 + $0x60] ss:$8 sps:$4 sm:$0xff]   ;;  %v1389_v38 = vld [vmem:[%s1694_s9 + $0x74] ss:$8 sps:$4 sm:$0xff]  }
  0x61   : > { %1049 = vmatprep.mubr.bf16.mxu0 %v651_v21  ;;  %v1385_v35 = vld [vmem:[%s1694_s9 + $0x164] ss:$8 sps:$4 sm:$0xff]   ;;  %v1388_v37 = vld [vmem:[%s1694_s9 + $0x160] ss:$8 sps:$4 sm:$0xff]   ;;  %v1391_v39 = vld [vmem:[%s1694_s9 + $0x174] ss:$8 sps:$4 sm:$0xff]  }
  0x62   : > { %981 = vmatpush1.bf16.msra.mxu1 %v1363_v19  ;;  %v1393_v40 = vld [vmem:[%s1694_s9 + $0x70] ss:$8 sps:$4 sm:$0xff]   ;;  %v1395_v42 = vld [vmem:[%s1694_s9 + $0x84] ss:$8 sps:$4 sm:$0xff]   ;;  %v1399_v44 = vld [vmem:[%s1694_s9 + $0x80] ss:$8 sps:$4 sm:$0xff]  }
  0x63   : > { %1022 = vmatpush1.bf16.msra.mxu0 %v1364_v20  ;;  %982 = vmatprep.subr.bf16.mxu1 %v1365_v22  ;;  %v1394_v41 = vld [vmem:[%s1694_s9 + $0x170] ss:$8 sps:$4 sm:$0xff]   ;;  %v1397_v43 = vld [vmem:[%s1694_s9 + $0x184] ss:$8 sps:$4 sm:$0xff]   ;;  %v1400_v45 = vld [vmem:[%s1694_s9 + $0x180] ss:$8 sps:$4 sm:$0xff]  }
  0x64   : > { %1023 = vmatprep.subr.bf16.mxu0 %v1367_v23  ;;  %v1401_v46 = vld [vmem:[%s1694_s9 + $0x94] ss:$8 sps:$4 sm:$0xff]   ;;  %v1405_v48 = vld [vmem:[%s1694_s9 + $0x90] ss:$8 sps:$4 sm:$0xff]   ;;  %v1407_v50 = vld [vmem:[%s1694_s9 + $0xa4] ss:$8 sps:$4 sm:$0xff]  }
  0x65   : > { %v1403_v47 = vld [vmem:[%s1694_s9 + $0x194] ss:$8 sps:$4 sm:$0xff]   ;;  %v1406_v49 = vld [vmem:[%s1694_s9 + $0x190] ss:$8 sps:$4 sm:$0xff]   ;;  %v1409_v51 = vld [vmem:[%s1694_s9 + $0x1a4] ss:$8 sps:$4 sm:$0xff]  }
  0x66   : > { %983 = vmatpush1.bf16.msra.mxu1 %v1369_v24  ;;  %v1411_v52 = vld [vmem:[%s1694_s9 + $0xa0] ss:$8 sps:$4 sm:$0xff]   ;;  %v1413_v54 = vld [vmem:[%s1694_s9 + $0xb4] ss:$8 sps:$4 sm:$0xff]   ;;  %v1417_v56 = vld [vmem:[%s1694_s9 + $0xb0] ss:$8 sps:$4 sm:$0xff]  }
  0x67   : > { %1024 = vmatpush1.bf16.msra.mxu0 %v1370_v25  ;;  %984 = vmatprep.subr.bf16.mxu1 %v1371_v26  ;;  %v1412_v53 = vld [vmem:[%s1694_s9 + $0x1a0] ss:$8 sps:$4 sm:$0xff]   ;;  %v1415_v55 = vld [vmem:[%s1694_s9 + $0x1b4] ss:$8 sps:$4 sm:$0xff]   ;;  %v1418_v57 = vld [vmem:[%s1694_s9 + $0x1b0] ss:$8 sps:$4 sm:$0xff]  }
  0x68   : > { %1025 = vmatprep.subr.bf16.mxu0 %v1373_v27  ;;  %v1419_v58 = vld [vmem:[%s1694_s9 + $0xc4] ss:$8 sps:$4 sm:$0xff]   ;;  %v1423_v60 = vld [vmem:[%s1694_s9 + $0xc0] ss:$8 sps:$4 sm:$0xff]   ;;  %v1425_v62 = vld [vmem:[%s1694_s9 + $0xd4] ss:$8 sps:$4 sm:$0xff]  }
  0x69   : > { %v1421_v59 = vld [vmem:[%s1694_s9 + $0x1c4] ss:$8 sps:$4 sm:$0xff]   ;;  %v1424_v61 = vld [vmem:[%s1694_s9 + $0x1c0] ss:$8 sps:$4 sm:$0xff]   ;;  %v1427_v63 = vld [vmem:[%s1694_s9 + $0x1d4] ss:$8 sps:$4 sm:$0xff]  }
  0x6a   : > { %985 = vmatpush1.bf16.msra.mxu1 %v1375_v28  ;;  %v1429_v1 = vld [vmem:[%s1694_s9 + $0xd0] ss:$8 sps:$4 sm:$0xff]   ;;  %v1431_v3 = vld [vmem:[%s1694_s9 + $0xe4] ss:$8 sps:$4 sm:$0xff]   ;;  %v1435_v6 = vld [vmem:[%s1694_s9 + $0xe0] ss:$8 sps:$4 sm:$0xff]  }
  0x6b   : > { %1026 = vmatpush1.bf16.msra.mxu0 %v1376_v29  ;;  %986 = vmatprep.subr.bf16.mxu1 %v1377_v30  ;;  %v1430_v2 = vld [vmem:[%s1694_s9 + $0x1d0] ss:$8 sps:$4 sm:$0xff]   ;;  %v1433_v5 = vld [vmem:[%s1694_s9 + $0x1e4] ss:$8 sps:$4 sm:$0xff]   ;;  %v1436_v7 = vld [vmem:[%s1694_s9 + $0x1e0] ss:$8 sps:$4 sm:$0xff]  }
  0x6c   : > { %1027 = vmatprep.subr.bf16.mxu0 %v1379_v31  ;;  %v1437_v8 = vld [vmem:[%s1694_s9 + $0xf4] ss:$8 sps:$4 sm:$0xff]   ;;  %v1441_v11 = vld [vmem:[%s1694_s9 + $0xf0] ss:$8 sps:$4 sm:$0xff]   ;;  %s1808_s10 = smov (!%p544_p9, %s1231_s10), 7  ;;  %v1062_v0 = vsub.s32 0, %v1692_v4 }
  0x6d   : > { %v1439_v9 = vld [vmem:[%s1694_s9 + $0x1f4] ss:$8 sps:$4 sm:$0xff]   ;;  %v1442_v13 = vld [vmem:[%s1694_s9 + $0x1f0] ss:$8 sps:$4 sm:$0xff]   ;;  %s546_s13 = scalar_lea.vmem %s1798_s2, %s1808_s10  ;;  %s551_s21 = scalar_lea.vmem %s1799_s3, %s1808_s10  ;;  %v1066_v16 = vsub.s32 1, %v1692_v4 }
  0x6e   : > { %987 = vmatpush1.bf16.msra.mxu1 %v1381_v32  ;;  %v1058_v15 = vld [vmem:[%s546_s13] sm:$0x3]  ;;  %s560_s24 = scalar_lea.vmem %s1800_s4, %s1808_s10 }
  0x6f   : > { %1028 = vmatpush1.bf16.msra.mxu0 %v1382_v33  ;;  %988 = vmatprep.subr.bf16.mxu1 %v1383_v34  ;;  %v1072_v17 = vld [vmem:[%s551_s21] sm:$0x3]  ;;  %v1063_v18 = vrot.slane %v1058_v15, %v1062_v0  ;;  %v1067_v21 = vrot.slane %v1058_v15, %v1066_v16 }
  0x70   : > { %1029 = vmatprep.subr.bf16.mxu0 %v1385_v35  ;;  %v1077_v23 = vrot.slane %v1072_v17, %v1062_v0  ;;  %v1081_v27 = vrot.slane %v1072_v17, %v1066_v16 }
  0x72   : > { %989 = vmatpush1.bf16.msra.mxu1 %v1387_v36 }
  0x73   : > { %1030 = vmatpush1.bf16.msra.mxu0 %v1388_v37  ;;  %990 = vmatprep.subr.bf16.mxu1 %v1389_v38 }
  0x74   : > { %1031 = vmatprep.subr.bf16.mxu0 %v1391_v39 }
  0x76   : > { %991 = vmatpush1.bf16.msra.mxu1 %v1393_v40 }
  0x77   : > { %1032 = vmatpush1.bf16.msra.mxu0 %v1394_v41  ;;  %992 = vmatprep.subr.bf16.mxu1 %v1395_v42 }
  0x78   : > { %1033 = vmatprep.subr.bf16.mxu0 %v1397_v43 }
  0x7a   : > { %993 = vmatpush1.bf16.msra.mxu1 %v1399_v44 }
  0x7b   : > { %1034 = vmatpush1.bf16.msra.mxu0 %v1400_v45  ;;  %994 = vmatprep.subr.bf16.mxu1 %v1401_v46 }
  0x7c   : > { %1035 = vmatprep.subr.bf16.mxu0 %v1403_v47 }
  0x7e   : > { %995 = vmatpush1.bf16.msra.mxu1 %v1405_v48 }
  0x7f   : > { %1036 = vmatpush1.bf16.msra.mxu0 %v1406_v49  ;;  %996 = vmatprep.subr.bf16.mxu1 %v1407_v50 }
  0x80   : > { %1037 = vmatprep.subr.bf16.mxu0 %v1409_v51 }
  0x82   : > { %997 = vmatpush1.bf16.msra.mxu1 %v1411_v52 }
  0x83   : > { %1038 = vmatpush1.bf16.msra.mxu0 %v1412_v53  ;;  %998 = vmatprep.subr.bf16.mxu1 %v1413_v54 }
  0x84   : > { %1039 = vmatprep.subr.bf16.mxu0 %v1415_v55 }
  0x86   : > { %999 = vmatpush1.bf16.msra.mxu1 %v1417_v56 }
  0x87   : > { %1040 = vmatpush1.bf16.msra.mxu0 %v1418_v57  ;;  %1000 = vmatprep.subr.bf16.mxu1 %v1419_v58 }
  0x88   : > { %1041 = vmatprep.subr.bf16.mxu0 %v1421_v59 }
  0x8a   : > { %1001 = vmatpush1.bf16.msra.mxu1 %v1423_v60 }
  0x8b   : > { %1042 = vmatpush1.bf16.msra.mxu0 %v1424_v61  ;;  %1002 = vmatprep.subr.bf16.mxu1 %v1425_v62 }
  0x8c   : > { %1043 = vmatprep.subr.bf16.mxu0 %v1427_v63 }
  0x8e   : > { %1003 = vmatpush1.bf16.msra.mxu1 %v1429_v1 }
  0x8f   : > { %1044 = vmatpush1.bf16.msra.mxu0 %v1430_v2  ;;  %1004 = vmatprep.subr.bf16.mxu1 %v1431_v3 }
  0x90   : > { %1045 = vmatprep.subr.bf16.mxu0 %v1433_v5 }
  0x92   : > { %1005 = vmatpush1.bf16.msra.mxu1 %v1435_v6 }
  0x93   : > { %1046 = vmatpush1.bf16.msra.mxu0 %v1436_v7  ;;  %1006 = vmatprep.subr.bf16.mxu1 %v1437_v8 }
  0x94   : > { %1047 = vmatprep.subr.bf16.mxu0 %v1439_v9 }
  0x96   : > { %1007 = vmatpush1.bf16.msra.mxu1 %v1441_v11 }
  0x97   : > { %1048 = vmatpush1.bf16.msra.mxu0 %v1442_v13 }
  0x99   : > { %1009 = vmatmul.mubr.bf16.vlgmr.msra.gmra.mrb[0].mxu1 %v642_v10 }
  0x9a   : > { %1050 = vmatmul.mubr.bf16.vlgmr.msra.gmra.mrb[0].mxu0 %v650_v14 }
 0x16c   : > { %v1010_v19 = vpop.f32.mrb[0].mxu1 }
 0x16d   : > { %v1051_v20 = vpop.f32.mrb[0].mxu0  ;;  %v1012_v24 = vpop.f32.mrb[1].mxu1 }
 0x16e   : > { %v1052_v22 = vadd.f32 %v1051_v20, %v1010_v19  ;;  %v1053_v25 = vpop.f32.mrb[1].mxu0  ;;  %v1014_v28 = vpop.f32.mrb[2].mxu1 }
 0x16f   : > { %v1054_v26 = vadd.f32 %v1053_v25, %v1012_v24  ;;  %v1055_v29 = vpop.f32.mrb[2].mxu0  ;;  %v1015_v31 = vpop.f32.mrb[3].mxu1 }
 0x170   : > { %v1070_v30 = vmul.f32 %v1063_v18, %v1052_v22  ;;  %v1056_v32 = vpop.f32.mrb[3].mxu0 }
 0x171   : > { %v1071_v33 = vmul.f32 %v1067_v21, %v1054_v26 }
 0x172   : > { %v1084_v34 = vadd.f32 %v1077_v23, %v1070_v30 }
 0x173   : > { %v1085_v35 = vadd.f32 %v1081_v27, %v1071_v33 }
 0x175   : > { %v1299_v4 = vpack.c.bf16 %v1085_v35, %v1084_v34 }
 0x177   : > { %v1097_v36 = vrot.slane %v1299_v4, %v1704_v12 }
 0x179   : > { %1300 = vst.sshfl [vmem:[%s560_s24] sm:$0x5 pattern:$0x73625140] %v1097_v36 }
 0x17a PF: > { %s14_s19 = sadd.s32 1, %s1481_s19   ;;  %s1801_s15 = smov %s1469_s16 }
 0x17b   : > { %p11_p10 = scmp.ge.s32.totalorder %s14_s19, 6   ;;  %s1802_s16 = smov %s1544_s23 }
 0x17c   : > { %s1803_s17 = smov %s1477_s18  ;;  %s1804_s18 = smov %s1806_s20 }
 0x17d   :  { %13 = sbr.rel (!%p11_p10) target bundleno = 3 (0x3), region = 118 }

// kernel: _lambda_.75
= control target key start
LH: loop header
LB: loop body
LE: loop exit
PB: predicated region body
PF: predicated region fallthrough
CT: control target
= control target key end

     0   :  { %s1162_s18 = smov 0   ;;  %s1164_s19 = smov 0   ;;  %s1363_s0 = inlined_call_operand.vmem [shape: bf16[2,256], index: 0, kind: input, shape index: {}]   ;;  %s1364_s1 = inlined_call_operand.vmem [shape: bf16[256,1024], index: 1, kind: input, shape index: {}]   ;;  %s1365_s2 = inlined_call_operand.vmem [shape: f32[1,1024], index: 2, kind: input, shape index: {}]   ;;  %s1366_s3 = inlined_call_operand.vmem [shape: f32[1,1024], index: 3, kind: input, shape index: {}]   ;;  %s1367_s4 = inlined_call_operand.vmem [shape: bf16[2,1024], index: 4, kind: input, shape index: {}]   ;;  %s1368_s5 = inlined_call_operand.vmem [shape: bf16[2,1024], index: 5, kind: output, shape index: {}]  }
   0x1   :  { %s1166_s20 = smov 0   ;;  %s1168_s21 = smov 0  }
   0x2   :  { %s1170_s22 = smov 0  }
   0x3 LB: > { %s24_s23 = sadd.s32 1, %s1124_s21  ;;  %p67_p1 = scmp.ne.s32.totalorder %s1116_s19, %s1112_s18  ;;  %s1128_s22 = sphi %s1170_s22, %s15_s22   ;;  %s1124_s21 = sphi %s1168_s21, %s1372_s21   ;;  %s1120_s20 = sphi %s1166_s20, %s1371_s20   ;;  %s1116_s19 = sphi %s1164_s19, %s1370_s19   ;;  %s1112_s18 = sphi %s1162_s18, %s1369_s18  }
   0x4   : > { %p25_p0 = scmp.ge.s32.totalorder %s24_s23, 4  ;;  %p68_p2 = scmp.eq.s32.totalorder %s1128_s22, 0 }
   0x5   : > { %s60_s25 = sadd.s32 1, %s1116_s19  ;;  %p952_p5 = scmp.ge.s32.totalorder %s1128_s22, 4 }
   0x6   : > { %s1374_s23 = smov (%p25_p0, %s24_s23), 0  ;;  %p69_p3 = por %p68_p2, %p67_p1 }
   0x7   : > { %s57_s24 = ssub.s32 %s1124_s21, %s1374_s23  ;;  %208 = sbr.rel (%p952_p5) target bundleno = 50 (0x32), region = 20 }
   0x8   : > { %p58_p4 = scmp.eq.s32.totalorder %s57_s24, 0 }
   0xa   : > { %s1197_s26 = scalar_select %p58_p4, %s1116_s19, %s60_s25  }
   0xe   : > { %211 = sbr.rel (!%p69_p3) target bundleno = 50 (0x32), region = 24  ;;  %s213_s27 = sand.u32 (%p69_p3), 1, %s1116_s19  }
   0xf   : > { %s999_s28 = sshll.u32 (%p69_p3), %s1124_s21, 3  ;;  %s953_s29 = sshll.u32 (%p69_p3), %s213_s27, 8 }
  0x10   : > { %s1205_s7 = scalar_lea.vmem (%p69_p3), %s1364_s1, %s999_s28  ;;  %s1210_s8 = scalar_lea.vmem (%p69_p3), [#allocation2], %s953_s29 }
  0x11   : > { %v308_v0 = vld [vmem:[%s1205_s7] sm:$0xff] (%p69_p3) }
  0x12   : > { %v310_v1 = vld [vmem:[%s1205_s7 + $0x20] sm:$0xff] (%p69_p3)  ;;  %309 = vst [vmem:[%s1210_s8] sm:$0xff] (%p69_p3), %v308_v0 }
  0x13   : > { %v312_v2 = vld [vmem:[%s1205_s7 + $0x40] sm:$0xff] (%p69_p3)  ;;  %311 = vst [vmem:[%s1210_s8 + $0x8] sm:$0xff] (%p69_p3), %v310_v1 }
  0x14   : > { %313 = vst [vmem:[%s1210_s8 + $0x10] sm:$0xff] (%p69_p3), %v312_v2  ;;  %v314_v3 = vld [vmem:[%s1205_s7 + $0x60] sm:$0xff] (%p69_p3) }
  0x15   : > { %v316_v4 = vld [vmem:[%s1205_s7 + $0x80] sm:$0xff]  ;;  %315 = vst [vmem:[%s1210_s8 + $0x18] sm:$0xff] %v314_v3 }
  0x16   : > { %v318_v5 = vld [vmem:[%s1205_s7 + $0xa0] sm:$0xff]  ;;  %317 = vst [vmem:[%s1210_s8 + $0x20] sm:$0xff] %v316_v4 }
  0x17   : > { %319 = vst [vmem:[%s1210_s8 + $0x28] sm:$0xff] %v318_v5  ;;  %v320_v6 = vld [vmem:[%s1205_s7 + $0xc0] sm:$0xff] }
  0x18   : > { %v322_v7 = vld [vmem:[%s1205_s7 + $0xe0] sm:$0xff]  ;;  %321 = vst [vmem:[%s1210_s8 + $0x30] sm:$0xff] %v320_v6 }
  0x19   : > { %v324_v8 = vld [vmem:[%s1205_s7 + $0x100] sm:$0xff]  ;;  %323 = vst [vmem:[%s1210_s8 + $0x38] sm:$0xff] %v322_v7 }
  0x1a   : > { %325 = vst [vmem:[%s1210_s8 + $0x40] sm:$0xff] %v324_v8  ;;  %v326_v9 = vld [vmem:[%s1205_s7 + $0x120] sm:$0xff] }
  0x1b   : > { %v328_v10 = vld [vmem:[%s1205_s7 + $0x140] sm:$0xff]  ;;  %327 = vst [vmem:[%s1210_s8 + $0x48] sm:$0xff] %v326_v9 }
  0x1c   : > { %v330_v11 = vld [vmem:[%s1205_s7 + $0x160] sm:$0xff]  ;;  %329 = vst [vmem:[%s1210_s8 + $0x50] sm:$0xff] %v328_v10 }
  0x1d   : > { %331 = vst [vmem:[%s1210_s8 + $0x58] sm:$0xff] %v330_v11  ;;  %v332_v12 = vld [vmem:[%s1205_s7 + $0x180] sm:$0xff] }
  0x1e   : > { %v334_v13 = vld [vmem:[%s1205_s7 + $0x1a0] sm:$0xff]  ;;  %333 = vst [vmem:[%s1210_s8 + $0x60] sm:$0xff] %v332_v12 }
  0x1f   : > { %v336_v14 = vld [vmem:[%s1205_s7 + $0x1c0] sm:$0xff]  ;;  %335 = vst [vmem:[%s1210_s8 + $0x68] sm:$0xff] %v334_v13 }
  0x20   : > { %337 = vst [vmem:[%s1210_s8 + $0x70] sm:$0xff] %v336_v14  ;;  %v338_v15 = vld [vmem:[%s1205_s7 + $0x1e0] sm:$0xff] }
  0x21   : > { %v340_v16 = vld [vmem:[%s1205_s7 + $0x200] sm:$0xff]  ;;  %339 = vst [vmem:[%s1210_s8 + $0x78] sm:$0xff] %v338_v15 }
  0x22   : > { %v342_v17 = vld [vmem:[%s1205_s7 + $0x220] sm:$0xff]  ;;  %341 = vst [vmem:[%s1210_s8 + $0x80] sm:$0xff] %v340_v16 }
  0x23   : > { %343 = vst [vmem:[%s1210_s8 + $0x88] sm:$0xff] %v342_v17  ;;  %v344_v18 = vld [vmem:[%s1205_s7 + $0x240] sm:$0xff] }
  0x24   : > { %v346_v19 = vld [vmem:[%s1205_s7 + $0x260] sm:$0xff]  ;;  %345 = vst [vmem:[%s1210_s8 + $0x90] sm:$0xff] %v344_v18 }
  0x25   : > { %v348_v20 = vld [vmem:[%s1205_s7 + $0x280] sm:$0xff]  ;;  %347 = vst [vmem:[%s1210_s8 + $0x98] sm:$0xff] %v346_v19 }
  0x26   : > { %349 = vst [vmem:[%s1210_s8 + $0xa0] sm:$0xff] %v348_v20  ;;  %v350_v21 = vld [vmem:[%s1205_s7 + $0x2a0] sm:$0xff] }
  0x27   : > { %v352_v22 = vld [vmem:[%s1205_s7 + $0x2c0] sm:$0xff]  ;;  %351 = vst [vmem:[%s1210_s8 + $0xa8] sm:$0xff] %v350_v21 }
  0x28   : > { %v354_v23 = vld [vmem:[%s1205_s7 + $0x2e0] sm:$0xff]  ;;  %353 = vst [vmem:[%s1210_s8 + $0xb0] sm:$0xff] %v352_v22 }
  0x29   : > { %355 = vst [vmem:[%s1210_s8 + $0xb8] sm:$0xff] %v354_v23  ;;  %v356_v24 = vld [vmem:[%s1205_s7 + $0x300] sm:$0xff] }
  0x2a   : > { %v358_v25 = vld [vmem:[%s1205_s7 + $0x320] sm:$0xff]  ;;  %357 = vst [vmem:[%s1210_s8 + $0xc0] sm:$0xff] %v356_v24 }
  0x2b   : > { %v360_v26 = vld [vmem:[%s1205_s7 + $0x340] sm:$0xff]  ;;  %359 = vst [vmem:[%s1210_s8 + $0xc8] sm:$0xff] %v358_v25 }
  0x2c   : > { %361 = vst [vmem:[%s1210_s8 + $0xd0] sm:$0xff] %v360_v26  ;;  %v362_v27 = vld [vmem:[%s1205_s7 + $0x360] sm:$0xff] }
  0x2d   : > { %v364_v28 = vld [vmem:[%s1205_s7 + $0x380] sm:$0xff]  ;;  %363 = vst [vmem:[%s1210_s8 + $0xd8] sm:$0xff] %v362_v27 }
  0x2e   : > { %v366_v29 = vld [vmem:[%s1205_s7 + $0x3a0] sm:$0xff]  ;;  %365 = vst [vmem:[%s1210_s8 + $0xe0] sm:$0xff] %v364_v28 }
  0x2f   : > { %367 = vst [vmem:[%s1210_s8 + $0xe8] sm:$0xff] %v366_v29  ;;  %v368_v30 = vld [vmem:[%s1205_s7 + $0x3c0] sm:$0xff] }
  0x30   : > { %v370_v31 = vld [vmem:[%s1205_s7 + $0x3e0] sm:$0xff]  ;;  %369 = vst [vmem:[%s1210_s8 + $0xf0] sm:$0xff] %v368_v30 }
  0x31   : > { %371 = vst [vmem:[%s1210_s8 + $0xf8] sm:$0xff] %v370_v31 }
  0x32 PF: > { %p956_p6 = scmp.ge.s32.totalorder %s1128_s22, 1  ;;  %p404_p7 = scmp.lt.s32.totalorder %s1128_s22, 5 }
  0x34   : > { %p405_p8 = pnand %p956_p6, %p404_p7 }
  0x35   : > { %s411_s9 = sand.u32 (!%p405_p8), 1, %s1112_s18   ;;  %v1279_v32 = vld.sshfl [vmem:[%s1363_s0] sm:$0x11 pattern:$0x75316420] (!%p405_p8)  ;;  %v539_v33 = vlaneseq (!%p405_p8)  ;;  %s958_s14 = sshll.u32 (!%p405_p8), %s1120_s20, 1 }
  0x36   : > { %408 = sbr.rel (%p405_p8) target bundleno = 347 (0x15b), region = 74  ;;  %s957_s12 = sshll.u32 (!%p405_p8), %s411_s9, 8  ;;  %v1130_v34 = vmov (!%p405_p8), 1966171168   ;;  %v535_v39 = vcombine.high (!%p405_p8), %v1279_v32, %v1279_v32  ;;  %v1131_v10 = vmov (!%p405_p8), 1983009808  }
  0x37   : > { %v537_v35 = vunpack.c.l.s4 (!%p405_p8), %v1130_v34  ;;  %v1281_v36 = vshrl.u32 (!%p405_p8), %v539_v33, 7  ;;  %s1283_s13 = scalar_lea.vmem (!%p405_p8), [#allocation2], %s957_s12  ;;  %p467_p9 = scmp.lt.s32.totalorder (!%p405_p8), %s958_s14, 7  ;;  %v785_v11 = vunpack.c.l.s4 (!%p405_p8), %v1131_v10 }
  0x38   : > { %v1042_v37 = vld [vmem:[%s1283_s13 + $0x4] ss:$8 sps:$4 sm:$0xff] (!%p405_p8)   ;;  %v1044_v38 = vld [vmem:[%s1283_s13] ss:$8 sps:$4 sm:$0xff] (!%p405_p8)   ;;  %v1045_v41 = vld [vmem:[%s1283_s13 + $0x14] ss:$8 sps:$4 sm:$0xff] (!%p405_p8)  }
  0x39   : > { %v538_v40 = vunpack.c.0.s8 (!%p405_p8), %v537_v35  ;;  %712 = vmatprep.subr.bf16.mxu0 (!%p405_p8), %v1042_v37  ;;  %v1047_v42 = vld [vmem:[%s1283_s13 + $0x10] ss:$8 sps:$4 sm:$0xff] (!%p405_p8)   ;;  %v1048_v44 = vld [vmem:[%s1283_s13 + $0x24] ss:$8 sps:$4 sm:$0xff] (!%p405_p8)   ;;  %v1050_v46 = vld [vmem:[%s1283_s13 + $0x20] ss:$8 sps:$4 sm:$0xff] (!%p405_p8)   ;;  %v786_v12 = vunpack.c.0.s8 (!%p405_p8), %v785_v11 }
  0x3a   : > { %713 = vmatpush1.bf16.msra.mxu0 (!%p405_p8), %v1044_v38  ;;  %v1051_v47 = vld [vmem:[%s1283_s13 + $0x34] ss:$8 sps:$4 sm:$0xff] (!%p405_p8)   ;;  %v1053_v48 = vld [vmem:[%s1283_s13 + $0x30] ss:$8 sps:$4 sm:$0xff] (!%p405_p8)   ;;  %v1054_v49 = vld [vmem:[%s1283_s13 + $0x44] ss:$8 sps:$4 sm:$0xff] (!%p405_p8)  }
  0x3b   : > { %v1292_v43 = vsub.s32 (!%p405_p8), %v538_v40, %v1281_v36  ;;  %714 = vmatprep.subr.bf16.mxu0 (!%p405_p8), %v1045_v41  ;;  %v1056_v50 = vld [vmem:[%s1283_s13 + $0x40] ss:$8 sps:$4 sm:$0xff] (!%p405_p8)   ;;  %v1057_v51 = vld [vmem:[%s1283_s13 + $0x54] ss:$8 sps:$4 sm:$0xff] (!%p405_p8)   ;;  %v1059_v52 = vld [vmem:[%s1283_s13 + $0x50] ss:$8 sps:$4 sm:$0xff] (!%p405_p8)   ;;  %v789_v17 = vsub.s32 (!%p405_p8), %v786_v12, %v1281_v36 }
  0x3c   : > { %v1060_v53 = vld [vmem:[%s1283_s13 + $0x64] ss:$8 sps:$4 sm:$0xff] (!%p405_p8)   ;;  %v1062_v54 = vld [vmem:[%s1283_s13 + $0x60] ss:$8 sps:$4 sm:$0xff] (!%p405_p8)   ;;  %v1063_v55 = vld [vmem:[%s1283_s13 + $0x74] ss:$8 sps:$4 sm:$0xff] (!%p405_p8)  }
  0x3d   : > { %v549_v45 = vrot.slane %v535_v39, %v1292_v43  ;;  %v1065_v56 = vld [vmem:[%s1283_s13 + $0x70] ss:$8 sps:$4 sm:$0xff]   ;;  %v1066_v57 = vld [vmem:[%s1283_s13 + $0x84] ss:$8 sps:$4 sm:$0xff]   ;;  %v1068_v58 = vld [vmem:[%s1283_s13 + $0x80] ss:$8 sps:$4 sm:$0xff]   ;;  %v542_v9 = vrot.slane %v1279_v32, %v1292_v43 }
  0x3e   : > { %715 = vmatpush1.bf16.msra.mxu0 %v1047_v42  ;;  %v1069_v59 = vld [vmem:[%s1283_s13 + $0x94] ss:$8 sps:$4 sm:$0xff]   ;;  %v1071_v60 = vld [vmem:[%s1283_s13 + $0x90] ss:$8 sps:$4 sm:$0xff]   ;;  %v1072_v61 = vld [vmem:[%s1283_s13 + $0xa4] ss:$8 sps:$4 sm:$0xff]  }
  0x3f   : > { %744 = vmatprep.mubr.bf16.mxu0 %v549_v45  ;;  %716 = vmatprep.subr.bf16.mxu0 %v1048_v44  ;;  %v1074_v62 = vld [vmem:[%s1283_s13 + $0xa0] ss:$8 sps:$4 sm:$0xff]   ;;  %v1075_v63 = vld [vmem:[%s1283_s13 + $0xb4] ss:$8 sps:$4 sm:$0xff]   ;;  %v1077_v0 = vld [vmem:[%s1283_s13 + $0xb0] ss:$8 sps:$4 sm:$0xff]  }
  0x40   : > { %v1078_v1 = vld [vmem:[%s1283_s13 + $0xc4] ss:$8 sps:$4 sm:$0xff]   ;;  %v1080_v2 = vld [vmem:[%s1283_s13 + $0xc0] ss:$8 sps:$4 sm:$0xff]   ;;  %v1081_v3 = vld [vmem:[%s1283_s13 + $0xd4] ss:$8 sps:$4 sm:$0xff]  }
  0x41   : > { %v1083_v4 = vld [vmem:[%s1283_s13 + $0xd0] ss:$8 sps:$4 sm:$0xff]   ;;  %v1084_v5 = vld [vmem:[%s1283_s13 + $0xe4] ss:$8 sps:$4 sm:$0xff]   ;;  %v1086_v6 = vld [vmem:[%s1283_s13 + $0xe0] ss:$8 sps:$4 sm:$0xff]  }
  0x42   : > { %717 = vmatpush1.bf16.msra.mxu0 %v1050_v46  ;;  %v1087_v7 = vld [vmem:[%s1283_s13 + $0xf4] ss:$8 sps:$4 sm:$0xff]   ;;  %v1089_v8 = vld [vmem:[%s1283_s13 + $0xf0] ss:$8 sps:$4 sm:$0xff]   ;;  %s1376_s14 = smov (!%p467_p9, %s958_s14), 7  ;;  %v757_v14 = vsub.s32 0, %v1281_v36 }
  0x43   : > { %718 = vmatprep.subr.bf16.mxu0 %v1051_v47  ;;  %s483_s17 = scalar_lea.vmem %s1367_s4, %s1376_s14  ;;  %s469_s25 = scalar_lea.vmem %s1365_s2, %s1376_s14  ;;  %v761_v18 = vsub.s32 1, %v1281_v36 }
  0x44   : > { %v781_v13 = vld [vmem:[%s483_s17] sm:$0x3]  ;;  %s474_s28 = scalar_lea.vmem %s1366_s3, %s1376_s14  ;;  %s492_s6 = scalar_lea.vmem %s1368_s5, %s1376_s14 }
  0x45   : > { %v753_v15 = vld [vmem:[%s469_s25] sm:$0x3]  ;;  %v782_v16 = vunpack.c.l.bf16 %v781_v13 }
  0x46   : > { %719 = vmatpush1.bf16.msra.mxu0 %v1053_v48  ;;  %v767_v19 = vld [vmem:[%s474_s28] sm:$0x3]  ;;  %v758_v20 = vrot.slane %v753_v15, %v757_v14  ;;  %v762_v22 = vrot.slane %v753_v15, %v761_v18 }
  0x47   : > { %720 = vmatprep.subr.bf16.mxu0 %v1054_v49  ;;  %v790_v21 = vrot.slane %v782_v16, %v789_v17  ;;  %v772_v23 = vrot.slane %v767_v19, %v757_v14  ;;  %v776_v25 = vrot.slane %v767_v19, %v761_v18 }
  0x49   : > { %v791_v29 = vcombine.high %v790_v21, %v790_v21 }
  0x4a   : > { %721 = vmatpush1.bf16.msra.mxu0 %v1056_v50 }
  0x4b   : > { %722 = vmatprep.subr.bf16.mxu0 %v1057_v51 }
  0x4e   : > { %723 = vmatpush1.bf16.msra.mxu0 %v1059_v52 }
  0x4f   : > { %724 = vmatprep.subr.bf16.mxu0 %v1060_v53 }
  0x52   : > { %725 = vmatpush1.bf16.msra.mxu0 %v1062_v54 }
  0x53   : > { %726 = vmatprep.subr.bf16.mxu0 %v1063_v55 }
  0x56   : > { %727 = vmatpush1.bf16.msra.mxu0 %v1065_v56 }
  0x57   : > { %728 = vmatprep.subr.bf16.mxu0 %v1066_v57 }
  0x5a   : > { %729 = vmatpush1.bf16.msra.mxu0 %v1068_v58 }
  0x5b   : > { %730 = vmatprep.subr.bf16.mxu0 %v1069_v59 }
  0x5e   : > { %731 = vmatpush1.bf16.msra.mxu0 %v1071_v60 }
  0x5f   : > { %732 = vmatprep.subr.bf16.mxu0 %v1072_v61 }
  0x62   : > { %733 = vmatpush1.bf16.msra.mxu0 %v1074_v62 }
  0x63   : > { %734 = vmatprep.subr.bf16.mxu0 %v1075_v63 }
  0x66   : > { %735 = vmatpush1.bf16.msra.mxu0 %v1077_v0 }
  0x67   : > { %736 = vmatprep.subr.bf16.mxu0 %v1078_v1 }
  0x6a   : > { %737 = vmatpush1.bf16.msra.mxu0 %v1080_v2 }
  0x6b   : > { %738 = vmatprep.subr.bf16.mxu0 %v1081_v3 }
  0x6e   : > { %739 = vmatpush1.bf16.msra.mxu0 %v1083_v4 }
  0x6f   : > { %740 = vmatprep.subr.bf16.mxu0 %v1084_v5 }
  0x72   : > { %741 = vmatpush1.bf16.msra.mxu0 %v1086_v6 }
  0x73   : > { %742 = vmatprep.subr.bf16.mxu0 %v1087_v7 }
  0x76   : > { %743 = vmatpush1.bf16.msra.mxu0 %v1089_v8 }
  0x79   : > { %745 = vmatmul.mubr.bf16.vlgmr.msra.gmra.mrb[0].mxu0 %v542_v9 }
 0x14c   : > { %v746_v24 = vpop.f32.mrb[0].mxu0 }
 0x14d   : > { %v765_v26 = vmul.f32 %v758_v20, %v746_v24  ;;  %v748_v27 = vpop.f32.mrb[1].mxu0 }
 0x14e   : > { %v766_v28 = vmul.f32 %v762_v22, %v748_v27  ;;  %v750_v30 = vpop.f32.mrb[2].mxu0 }
 0x14f   : > { %v779_v31 = vadd.f32 %v772_v23, %v765_v26  ;;  %v751_v32 = vpop.f32.mrb[3].mxu0 }
 0x150   : > { %v780_v33 = vadd.f32 %v776_v25, %v766_v28 }
 0x151   : > { %v794_v34 = vadd.f32 %v790_v21, %v779_v31 }
 0x152   : > { %v795_v35 = vadd.f32 %v791_v29, %v780_v33 }
 0x153   : > { %v796_v37 = vmax.f32 %v794_v34, 0.0 }
 0x154   : > { %v797_v36 = vmax.f32 %v795_v35, 0.0 }
 0x156   : > { %v995_v38 = vpack.c.bf16 %v797_v36, %v796_v37 }
 0x158   : > { %v809_v39 = vrot.slane %v995_v38, %v1292_v43 }
 0x15a   : > { %996 = vst.sshfl [vmem:[%s492_s6] sm:$0x5 pattern:$0x73625140] %v809_v39 }
 0x15b PF: > { %s15_s22 = sadd.s32 1, %s1128_s22   ;;  %s1369_s18 = smov %s1116_s19 }
 0x15c   : > { %p12_p10 = scmp.ge.s32.totalorder %s15_s22, 6   ;;  %s1370_s19 = smov %s1197_s26 }
 0x15d   : > { %s1371_s20 = smov %s1124_s21  ;;  %s1372_s21 = smov %s1374_s23 }
 0x15e   :  { %14 = sbr.rel (!%p12_p10) target bundleno = 3 (0x3), region = 125 }

// kernel: _lambda_.86
= control target key start
LH: loop header
LB: loop body
LE: loop exit
PB: predicated region body
PF: predicated region fallthrough
CT: control target
= control target key end

     0   :  { %v475_v14 = vmov 1966171168   ;;  %v153_v16 = vlaneseq  ;;  %s946_s0 = inlined_call_operand.vmem [shape: bf16[2,1,1,9,256], index: 0, kind: input, shape index: {}, may-alias: {0,5}]   ;;  %s947_s1 = inlined_call_operand.vmem [shape: bf16[2,1024], index: 1, kind: input, shape index: {}]   ;;  %s948_s2 = inlined_call_operand.vmem [shape: bf16[1024,256], index: 2, kind: input, shape index: {}]   ;;  %s949_s3 = inlined_call_operand.vmem [shape: f32[1,256], index: 3, kind: input, shape index: {}]   ;;  %s950_s4 = inlined_call_operand.vmem [shape: f32[1,256], index: 4, kind: input, shape index: {}]   ;;  %s951_s5 = inlined_call_operand.vmem [shape: bf16[2,1,1,9,256], index: 5, kind: output, shape index: {}, may-alias: {0,5}]  }
   0x1   :  { %v21_v0 = vld [vmem:[%s948_s2 + $0x8] sm:$0xff]  ;;  %v20_v2 = vld [vmem:[%s948_s2] sm:$0xff]  ;;  %v23_v4 = vld [vmem:[%s948_s2 + $0x18] sm:$0xff]  ;;  %v151_v15 = vunpack.c.l.s4 %v475_v14 }
   0x2   :  { %v85_v1 = vld [vmem:[%s948_s2 + $0x208] sm:$0xff]  ;;  %206 = vmatprep.subr.bf16.mxu1 %v21_v0  ;;  %v84_v3 = vld [vmem:[%s948_s2 + $0x200] sm:$0xff]  ;;  %v87_v5 = vld [vmem:[%s948_s2 + $0x218] sm:$0xff]  ;;  %v560_v22 = vshrl.u32 %v153_v16, 7 }
   0x3   :  { %288 = vmatprep.subr.bf16.mxu0 %v85_v1  ;;  %207 = vmatpush1.bf16.msra.mxu1 %v20_v2  ;;  %v22_v6 = vld [vmem:[%s948_s2 + $0x10] sm:$0xff]  ;;  %v25_v8 = vld [vmem:[%s948_s2 + $0x28] sm:$0xff]  ;;  %v24_v10 = vld [vmem:[%s948_s2 + $0x20] sm:$0xff]  ;;  %v152_v21 = vunpack.c.0.s8 %v151_v15 }
   0x4   :  { %289 = vmatpush1.bf16.msra.mxu0 %v84_v3  ;;  %208 = vmatprep.subr.bf16.mxu1 %v23_v4  ;;  %v86_v7 = vld [vmem:[%s948_s2 + $0x210] sm:$0xff]  ;;  %v89_v9 = vld [vmem:[%s948_s2 + $0x228] sm:$0xff]  ;;  %v88_v11 = vld [vmem:[%s948_s2 + $0x220] sm:$0xff] }
   0x5   :  { %290 = vmatprep.subr.bf16.mxu0 %v87_v5  ;;  %v27_v12 = vld [vmem:[%s948_s2 + $0x38] sm:$0xff]  ;;  %v26_v17 = vld [vmem:[%s948_s2 + $0x30] sm:$0xff]  ;;  %v29_v19 = vld [vmem:[%s948_s2 + $0x48] sm:$0xff]  ;;  %v575_v27 = vsub.s32 %v152_v21, %v560_v22 }
   0x6   :  { %v91_v13 = vld [vmem:[%s948_s2 + $0x238] sm:$0xff]  ;;  %v90_v18 = vld [vmem:[%s948_s2 + $0x230] sm:$0xff]  ;;  %v93_v20 = vld [vmem:[%s948_s2 + $0x248] sm:$0xff] }
   0x7   :  { %209 = vmatpush1.bf16.msra.mxu1 %v22_v6  ;;  %v28_v23 = vld [vmem:[%s948_s2 + $0x40] sm:$0xff]  ;;  %v31_v25 = vld [vmem:[%s948_s2 + $0x58] sm:$0xff]  ;;  %v30_v28 = vld [vmem:[%s948_s2 + $0x50] sm:$0xff] }
   0x8   :  { %291 = vmatpush1.bf16.msra.mxu0 %v86_v7  ;;  %210 = vmatprep.subr.bf16.mxu1 %v25_v8  ;;  %v92_v24 = vld [vmem:[%s948_s2 + $0x240] sm:$0xff]  ;;  %v95_v26 = vld [vmem:[%s948_s2 + $0x258] sm:$0xff]  ;;  %v94_v29 = vld [vmem:[%s948_s2 + $0x250] sm:$0xff] }
   0x9   :  { %292 = vmatprep.subr.bf16.mxu0 %v89_v9  ;;  %v33_v30 = vld [vmem:[%s948_s2 + $0x68] sm:$0xff]  ;;  %v19_v32 = vld [vmem:[%s947_s1] sm:$0xff]  ;;  %v35_v37 = vld [vmem:[%s948_s2 + $0x78] sm:$0xff] }
   0xa   :  { %v97_v31 = vld [vmem:[%s948_s2 + $0x268] sm:$0xff]  ;;  %v593_v33 = vrot.slane %v19_v32, %v575_v27  ;;  %v149_v34 = vcombine.high %v19_v32, %v19_v32  ;;  %v32_v35 = vld [vmem:[%s948_s2 + $0x60] sm:$0xff]  ;;  %v99_v38 = vld [vmem:[%s948_s2 + $0x278] sm:$0xff] }
   0xb   :  { %211 = vmatpush1.bf16.msra.mxu1 %v24_v10  ;;  %v96_v36 = vld [vmem:[%s948_s2 + $0x260] sm:$0xff]  ;;  %v34_v43 = vld [vmem:[%s948_s2 + $0x70] sm:$0xff]  ;;  %v37_v45 = vld [vmem:[%s948_s2 + $0x88] sm:$0xff] }
   0xc   :  { %293 = vmatpush1.bf16.msra.mxu0 %v88_v11  ;;  %212 = vmatprep.subr.bf16.mxu1 %v27_v12  ;;  %v164_v39 = vcombine.high %v593_v33, %v593_v33  ;;  %v610_v40 = vrot.slane %v149_v34, %v575_v27  ;;  %v98_v44 = vld [vmem:[%s948_s2 + $0x270] sm:$0xff]  ;;  %v101_v46 = vld [vmem:[%s948_s2 + $0x288] sm:$0xff]  ;;  %v36_v48 = vld [vmem:[%s948_s2 + $0x80] sm:$0xff]  ;;  %v732_v16 = vrot.slane %v593_v33, %v575_v27 }
   0xd   :  { %294 = vmatprep.subr.bf16.mxu0 %v91_v13  ;;  %v100_v49 = vld [vmem:[%s948_s2 + $0x280] sm:$0xff]  ;;  %v39_v50 = vld [vmem:[%s948_s2 + $0x98] sm:$0xff]  ;;  %v38_v52 = vld [vmem:[%s948_s2 + $0x90] sm:$0xff] }
   0xe   :  { %v613_v41 = vrot.slane %v164_v39, %v575_v27  ;;  %v165_v42 = vcombine.high %v610_v40, %v610_v40  ;;  %v103_v51 = vld [vmem:[%s948_s2 + $0x298] sm:$0xff]  ;;  %v102_v53 = vld [vmem:[%s948_s2 + $0x290] sm:$0xff]  ;;  %v41_v54 = vld [vmem:[%s948_s2 + $0xa8] sm:$0xff] }
   0xf   :  { %213 = vmatpush1.bf16.msra.mxu1 %v26_v17  ;;  %v105_v55 = vld [vmem:[%s948_s2 + $0x2a8] sm:$0xff]  ;;  %v40_v56 = vld [vmem:[%s948_s2 + $0xa0] sm:$0xff]  ;;  %v43_v58 = vld [vmem:[%s948_s2 + $0xb8] sm:$0xff]  ;;  %v736_v17 = vrot.slane %v610_v40, %v575_v27 }
  0x10   :  { %295 = vmatpush1.bf16.msra.mxu0 %v90_v18  ;;  %214 = vmatprep.subr.bf16.mxu1 %v29_v19  ;;  %v631_v47 = vrot.slane %v165_v42, %v575_v27  ;;  %v104_v57 = vld [vmem:[%s948_s2 + $0x2a0] sm:$0xff]  ;;  %v107_v59 = vld [vmem:[%s948_s2 + $0x2b8] sm:$0xff]  ;;  %v42_v60 = vld [vmem:[%s948_s2 + $0xb0] sm:$0xff] }
  0x11   :  { %296 = vmatprep.subr.bf16.mxu0 %v93_v20  ;;  %238 = vmatprep.mubr.bf16.mxu1 %v613_v41  ;;  %v106_v61 = vld [vmem:[%s948_s2 + $0x2b0] sm:$0xff]  ;;  %v45_v62 = vld [vmem:[%s948_s2 + $0xc8] sm:$0xff]  ;;  %v44_v0 = vld [vmem:[%s948_s2 + $0xc0] sm:$0xff]  ;;  %v196_v20 = vcombine.high %v613_v41, %v613_v41 }
  0x12   :  { %320 = vmatprep.mubr.bf16.mxu0 %v631_v47  ;;  %v109_v63 = vld [vmem:[%s948_s2 + $0x2c8] sm:$0xff]  ;;  %v108_v1 = vld [vmem:[%s948_s2 + $0x2c0] sm:$0xff]  ;;  %v47_v2 = vld [vmem:[%s948_s2 + $0xd8] sm:$0xff]  ;;  %v197_v21 = vcombine.high %v631_v47, %v631_v47 }
  0x13   :  { %215 = vmatpush1.bf16.msra.mxu1 %v28_v23  ;;  %v111_v3 = vld [vmem:[%s948_s2 + $0x2d8] sm:$0xff]  ;;  %v46_v4 = vld [vmem:[%s948_s2 + $0xd0] sm:$0xff]  ;;  %v49_v6 = vld [vmem:[%s948_s2 + $0xe8] sm:$0xff] }
  0x14   :  { %297 = vmatpush1.bf16.msra.mxu0 %v92_v24  ;;  %216 = vmatprep.subr.bf16.mxu1 %v31_v25  ;;  %v110_v5 = vld [vmem:[%s948_s2 + $0x2d0] sm:$0xff]  ;;  %v113_v7 = vld [vmem:[%s948_s2 + $0x2e8] sm:$0xff]  ;;  %v48_v8 = vld [vmem:[%s948_s2 + $0xe0] sm:$0xff] }
  0x15   :  { %298 = vmatprep.subr.bf16.mxu0 %v95_v26  ;;  %v112_v9 = vld [vmem:[%s948_s2 + $0x2e0] sm:$0xff]  ;;  %v51_v10 = vld [vmem:[%s948_s2 + $0xf8] sm:$0xff]  ;;  %v50_v12 = vld [vmem:[%s948_s2 + $0xf0] sm:$0xff] }
  0x16   :  { %v115_v11 = vld [vmem:[%s948_s2 + $0x2f8] sm:$0xff]  ;;  %v114_v13 = vld [vmem:[%s948_s2 + $0x2f0] sm:$0xff]  ;;  %v53_v14 = vld [vmem:[%s948_s2 + $0x108] sm:$0xff] }
  0x17   :  { %217 = vmatpush1.bf16.msra.mxu1 %v30_v28  ;;  %v117_v15 = vld [vmem:[%s948_s2 + $0x308] sm:$0xff]  ;;  %v52_v18 = vld [vmem:[%s948_s2 + $0x100] sm:$0xff]  ;;  %v55_v23 = vld [vmem:[%s948_s2 + $0x118] sm:$0xff] }
  0x18   :  { %299 = vmatpush1.bf16.msra.mxu0 %v94_v29  ;;  %218 = vmatprep.subr.bf16.mxu1 %v33_v30  ;;  %v116_v19 = vld [vmem:[%s948_s2 + $0x300] sm:$0xff]  ;;  %v119_v24 = vld [vmem:[%s948_s2 + $0x318] sm:$0xff]  ;;  %v54_v25 = vld [vmem:[%s948_s2 + $0x110] sm:$0xff] }
  0x19   :  { %300 = vmatprep.subr.bf16.mxu0 %v97_v31  ;;  %v118_v26 = vld [vmem:[%s948_s2 + $0x310] sm:$0xff]  ;;  %v57_v28 = vld [vmem:[%s948_s2 + $0x128] sm:$0xff]  ;;  %v56_v30 = vld [vmem:[%s948_s2 + $0x120] sm:$0xff] }
  0x1a   :  { %v121_v29 = vld [vmem:[%s948_s2 + $0x328] sm:$0xff]  ;;  %v120_v31 = vld [vmem:[%s948_s2 + $0x320] sm:$0xff]  ;;  %v59_v32 = vld [vmem:[%s948_s2 + $0x138] sm:$0xff] }
  0x1b   :  { %219 = vmatpush1.bf16.msra.mxu1 %v32_v35  ;;  %v123_v33 = vld [vmem:[%s948_s2 + $0x338] sm:$0xff]  ;;  %v58_v34 = vld [vmem:[%s948_s2 + $0x130] sm:$0xff]  ;;  %v124_v39 = vld [vmem:[%s948_s2 + $0x340] sm:$0xff] }
  0x1c   :  { %301 = vmatpush1.bf16.msra.mxu0 %v96_v36  ;;  %220 = vmatprep.subr.bf16.mxu1 %v35_v37  ;;  %v122_v35 = vld [vmem:[%s948_s2 + $0x330] sm:$0xff]  ;;  %v61_v36 = vld [vmem:[%s948_s2 + $0x148] sm:$0xff]  ;;  %v63_v40 = vld [vmem:[%s948_s2 + $0x158] sm:$0xff] }
  0x1d   :  { %302 = vmatprep.subr.bf16.mxu0 %v99_v38  ;;  %v125_v37 = vld [vmem:[%s948_s2 + $0x348] sm:$0xff]  ;;  %v60_v38 = vld [vmem:[%s948_s2 + $0x140] sm:$0xff]  ;;  %v127_v41 = vld [vmem:[%s948_s2 + $0x358] sm:$0xff] }
  0x1e   :  { %v62_v42 = vld [vmem:[%s948_s2 + $0x150] sm:$0xff]  ;;  %v128_v47 = vld [vmem:[%s948_s2 + $0x360] sm:$0xff] }
  0x1f   :  { %221 = vmatpush1.bf16.msra.mxu1 %v34_v43  ;;  %v126_v43 = vld [vmem:[%s948_s2 + $0x350] sm:$0xff] }
  0x20   :  { %303 = vmatpush1.bf16.msra.mxu0 %v98_v44  ;;  %222 = vmatprep.subr.bf16.mxu1 %v37_v45  ;;  %v65_v44 = vld [vmem:[%s948_s2 + $0x168] sm:$0xff] }
  0x21   :  { %304 = vmatprep.subr.bf16.mxu0 %v101_v46  ;;  %v129_v45 = vld [vmem:[%s948_s2 + $0x368] sm:$0xff]  ;;  %v64_v46 = vld [vmem:[%s948_s2 + $0x160] sm:$0xff] }
  0x23   :  { %223 = vmatpush1.bf16.msra.mxu1 %v36_v48  ;;  %v67_v48 = vld [vmem:[%s948_s2 + $0x178] sm:$0xff] }
  0x24   :  { %305 = vmatpush1.bf16.msra.mxu0 %v100_v49  ;;  %224 = vmatprep.subr.bf16.mxu1 %v39_v50  ;;  %v131_v49 = vld [vmem:[%s948_s2 + $0x378] sm:$0xff]  ;;  %v66_v50 = vld [vmem:[%s948_s2 + $0x170] sm:$0xff] }
  0x25   :  { %306 = vmatprep.subr.bf16.mxu0 %v103_v51  ;;  %v130_v51 = vld [vmem:[%s948_s2 + $0x370] sm:$0xff] }
  0x27   :  { %225 = vmatpush1.bf16.msra.mxu1 %v38_v52  ;;  %v69_v52 = vld [vmem:[%s948_s2 + $0x188] sm:$0xff] }
  0x28   :  { %307 = vmatpush1.bf16.msra.mxu0 %v102_v53  ;;  %226 = vmatprep.subr.bf16.mxu1 %v41_v54  ;;  %v133_v53 = vld [vmem:[%s948_s2 + $0x388] sm:$0xff]  ;;  %v68_v54 = vld [vmem:[%s948_s2 + $0x180] sm:$0xff] }
  0x29   :  { %308 = vmatprep.subr.bf16.mxu0 %v105_v55  ;;  %v132_v55 = vld [vmem:[%s948_s2 + $0x380] sm:$0xff] }
  0x2b   :  { %227 = vmatpush1.bf16.msra.mxu1 %v40_v56  ;;  %v71_v56 = vld [vmem:[%s948_s2 + $0x198] sm:$0xff] }
  0x2c   :  { %309 = vmatpush1.bf16.msra.mxu0 %v104_v57  ;;  %228 = vmatprep.subr.bf16.mxu1 %v43_v58  ;;  %v135_v57 = vld [vmem:[%s948_s2 + $0x398] sm:$0xff]  ;;  %v70_v58 = vld [vmem:[%s948_s2 + $0x190] sm:$0xff] }
  0x2d   :  { %310 = vmatprep.subr.bf16.mxu0 %v107_v59  ;;  %v134_v59 = vld [vmem:[%s948_s2 + $0x390] sm:$0xff] }
  0x2f   :  { %229 = vmatpush1.bf16.msra.mxu1 %v42_v60  ;;  %v73_v60 = vld [vmem:[%s948_s2 + $0x1a8] sm:$0xff] }
  0x30   :  { %311 = vmatpush1.bf16.msra.mxu0 %v106_v61  ;;  %230 = vmatprep.subr.bf16.mxu1 %v45_v62  ;;  %v137_v61 = vld [vmem:[%s948_s2 + $0x3a8] sm:$0xff]  ;;  %v72_v62 = vld [vmem:[%s948_s2 + $0x1a0] sm:$0xff] }
  0x31   :  { %312 = vmatprep.subr.bf16.mxu0 %v109_v63  ;;  %v136_v63 = vld [vmem:[%s948_s2 + $0x3a0] sm:$0xff] }
  0x33   :  { %231 = vmatpush1.bf16.msra.mxu1 %v44_v0  ;;  %v75_v0 = vld [vmem:[%s948_s2 + $0x1b8] sm:$0xff] }
  0x34   :  { %313 = vmatpush1.bf16.msra.mxu0 %v108_v1  ;;  %232 = vmatprep.subr.bf16.mxu1 %v47_v2  ;;  %v139_v1 = vld [vmem:[%s948_s2 + $0x3b8] sm:$0xff]  ;;  %v74_v2 = vld [vmem:[%s948_s2 + $0x1b0] sm:$0xff] }
  0x35   :  { %314 = vmatprep.subr.bf16.mxu0 %v111_v3  ;;  %v138_v3 = vld [vmem:[%s948_s2 + $0x3b0] sm:$0xff] }
  0x37   :  { %233 = vmatpush1.bf16.msra.mxu1 %v46_v4  ;;  %v77_v4 = vld [vmem:[%s948_s2 + $0x1c8] sm:$0xff] }
  0x38   :  { %315 = vmatpush1.bf16.msra.mxu0 %v110_v5  ;;  %234 = vmatprep.subr.bf16.mxu1 %v49_v6  ;;  %v141_v5 = vld [vmem:[%s948_s2 + $0x3c8] sm:$0xff]  ;;  %v76_v6 = vld [vmem:[%s948_s2 + $0x1c0] sm:$0xff] }
  0x39   :  { %316 = vmatprep.subr.bf16.mxu0 %v113_v7  ;;  %v140_v7 = vld [vmem:[%s948_s2 + $0x3c0] sm:$0xff] }
  0x3b   :  { %235 = vmatpush1.bf16.msra.mxu1 %v48_v8  ;;  %v79_v8 = vld [vmem:[%s948_s2 + $0x1d8] sm:$0xff] }
  0x3c   :  { %317 = vmatpush1.bf16.msra.mxu0 %v112_v9  ;;  %236 = vmatprep.subr.bf16.mxu1 %v51_v10  ;;  %v143_v9 = vld [vmem:[%s948_s2 + $0x3d8] sm:$0xff]  ;;  %v78_v10 = vld [vmem:[%s948_s2 + $0x1d0] sm:$0xff] }
  0x3d   :  { %318 = vmatprep.subr.bf16.mxu0 %v115_v11  ;;  %v142_v11 = vld [vmem:[%s948_s2 + $0x3d0] sm:$0xff] }
  0x3f   :  { %237 = vmatpush1.bf16.msra.mxu1 %v50_v12  ;;  %v81_v12 = vld [vmem:[%s948_s2 + $0x1e8] sm:$0xff] }
  0x40   :  { %319 = vmatpush1.bf16.msra.mxu0 %v114_v13  ;;  %247 = vmatprep.subr.bf16.mxu1 %v53_v14  ;;  %v145_v13 = vld [vmem:[%s948_s2 + $0x3e8] sm:$0xff]  ;;  %v80_v14 = vld [vmem:[%s948_s2 + $0x1e0] sm:$0xff] }
  0x41   :  { %329 = vmatprep.subr.bf16.mxu0 %v117_v15  ;;  %v144_v15 = vld [vmem:[%s948_s2 + $0x3e0] sm:$0xff] }
  0x42   :  { %239 = vmatmul.mubr.bf16.vlgmr.msra.gmra.mrb[0].mxu1 %v732_v16 }
  0x43   :  { %321 = vmatmul.mubr.bf16.vlgmr.msra.gmra.mrb[0].mxu0 %v736_v17  ;;  %248 = vmatpush1.bf16.msra.mxu1 %v52_v18  ;;  %v83_v18 = vld [vmem:[%s948_s2 + $0x1f8] sm:$0xff] }
  0x44   :  { %330 = vmatpush1.bf16.msra.mxu0 %v116_v19  ;;  %249 = vmatprep.subr.bf16.mxu1 %v55_v23  ;;  %v147_v19 = vld [vmem:[%s948_s2 + $0x3f8] sm:$0xff]  ;;  %v194_v23 = vcombine.high %v732_v16, %v732_v16 }
  0x45   :  { %331 = vmatprep.subr.bf16.mxu0 %v119_v24  ;;  %279 = vmatprep.mubr.bf16.mxu1 %v196_v20  ;;  %v82_v20 = vld [vmem:[%s948_s2 + $0x1f0] sm:$0xff]  ;;  %v195_v24 = vcombine.high %v736_v17, %v736_v17 }
  0x46   :  { %361 = vmatprep.mubr.bf16.mxu0 %v197_v21  ;;  %v146_v21 = vld [vmem:[%s948_s2 + $0x3f0] sm:$0xff] }
  0x47   :  { %250 = vmatpush1.bf16.msra.mxu1 %v54_v25  ;;  %v374_v25 = vsub.s32 0, %v560_v22 }
  0x48   :  { %332 = vmatpush1.bf16.msra.mxu0 %v118_v26  ;;  %251 = vmatprep.subr.bf16.mxu1 %v57_v28  ;;  %v370_v26 = vld [vmem:[%s949_s3] sm:$0x3]  ;;  %v378_v28 = vsub.s32 1, %v560_v22 }
  0x49   :  { %333 = vmatprep.subr.bf16.mxu0 %v121_v29  ;;  %v384_v29 = vld [vmem:[%s950_s4] sm:$0x3]  ;;  %v375_v16 = vrot.slane %v370_v26, %v374_v25 }
  0x4a   :  { %v379_v17 = vrot.slane %v370_v26, %v378_v28 }
  0x4b   :  { %252 = vmatpush1.bf16.msra.mxu1 %v56_v30 }
  0x4c   :  { %334 = vmatpush1.bf16.msra.mxu0 %v120_v31  ;;  %253 = vmatprep.subr.bf16.mxu1 %v59_v32 }
  0x4d   :  { %335 = vmatprep.subr.bf16.mxu0 %v123_v33  ;;  %v389_v33 = vrot.slane %v384_v29, %v374_v25 }
  0x4f   :  { %254 = vmatpush1.bf16.msra.mxu1 %v58_v34 }
  0x50   :  { %336 = vmatpush1.bf16.msra.mxu0 %v122_v35  ;;  %255 = vmatprep.subr.bf16.mxu1 %v61_v36 }
  0x51   :  { %337 = vmatprep.subr.bf16.mxu0 %v125_v37  ;;  %v393_v37 = vrot.slane %v384_v29, %v378_v28 }
  0x53   :  { %256 = vmatpush1.bf16.msra.mxu1 %v60_v38 }
  0x54   :  { %338 = vmatpush1.bf16.msra.mxu0 %v124_v39  ;;  %257 = vmatprep.subr.bf16.mxu1 %v63_v40 }
  0x55   :  { %339 = vmatprep.subr.bf16.mxu0 %v127_v41 }
  0x57   :  { %258 = vmatpush1.bf16.msra.mxu1 %v62_v42 }
  0x58   :  { %340 = vmatpush1.bf16.msra.mxu0 %v126_v43  ;;  %259 = vmatprep.subr.bf16.mxu1 %v65_v44 }
  0x59   :  { %341 = vmatprep.subr.bf16.mxu0 %v129_v45 }
  0x5b   :  { %260 = vmatpush1.bf16.msra.mxu1 %v64_v46 }
  0x5c   :  { %342 = vmatpush1.bf16.msra.mxu0 %v128_v47  ;;  %261 = vmatprep.subr.bf16.mxu1 %v67_v48 }
  0x5d   :  { %343 = vmatprep.subr.bf16.mxu0 %v131_v49 }
  0x5f   :  { %262 = vmatpush1.bf16.msra.mxu1 %v66_v50 }
  0x60   :  { %344 = vmatpush1.bf16.msra.mxu0 %v130_v51  ;;  %263 = vmatprep.subr.bf16.mxu1 %v69_v52 }
  0x61   :  { %345 = vmatprep.subr.bf16.mxu0 %v133_v53 }
  0x63   :  { %264 = vmatpush1.bf16.msra.mxu1 %v68_v54 }
  0x64   :  { %346 = vmatpush1.bf16.msra.mxu0 %v132_v55  ;;  %265 = vmatprep.subr.bf16.mxu1 %v71_v56 }
  0x65   :  { %347 = vmatprep.subr.bf16.mxu0 %v135_v57 }
  0x67   :  { %266 = vmatpush1.bf16.msra.mxu1 %v70_v58 }
  0x68   :  { %348 = vmatpush1.bf16.msra.mxu0 %v134_v59  ;;  %267 = vmatprep.subr.bf16.mxu1 %v73_v60 }
  0x69   :  { %349 = vmatprep.subr.bf16.mxu0 %v137_v61 }
  0x6b   :  { %268 = vmatpush1.bf16.msra.mxu1 %v72_v62 }
  0x6c   :  { %350 = vmatpush1.bf16.msra.mxu0 %v136_v63  ;;  %269 = vmatprep.subr.bf16.mxu1 %v75_v0 }
  0x6d   :  { %351 = vmatprep.subr.bf16.mxu0 %v139_v1 }
  0x6f   :  { %270 = vmatpush1.bf16.msra.mxu1 %v74_v2 }
  0x70   :  { %352 = vmatpush1.bf16.msra.mxu0 %v138_v3  ;;  %271 = vmatprep.subr.bf16.mxu1 %v77_v4 }
  0x71   :  { %353 = vmatprep.subr.bf16.mxu0 %v141_v5 }
  0x73   :  { %272 = vmatpush1.bf16.msra.mxu1 %v76_v6 }
  0x74   :  { %354 = vmatpush1.bf16.msra.mxu0 %v140_v7  ;;  %273 = vmatprep.subr.bf16.mxu1 %v79_v8 }
  0x75   :  { %355 = vmatprep.subr.bf16.mxu0 %v143_v9 }
  0x77   :  { %274 = vmatpush1.bf16.msra.mxu1 %v78_v10 }
  0x78   :  { %356 = vmatpush1.bf16.msra.mxu0 %v142_v11  ;;  %275 = vmatprep.subr.bf16.mxu1 %v81_v12 }
  0x79   :  { %357 = vmatprep.subr.bf16.mxu0 %v145_v13 }
  0x7b   :  { %276 = vmatpush1.bf16.msra.mxu1 %v80_v14 }
  0x7c   :  { %358 = vmatpush1.bf16.msra.mxu0 %v144_v15  ;;  %277 = vmatprep.subr.bf16.mxu1 %v83_v18 }
  0x7d   :  { %359 = vmatprep.subr.bf16.mxu0 %v147_v19 }
  0x7f   :  { %278 = vmatpush1.bf16.msra.mxu1 %v82_v20 }
  0x80   :  { %360 = vmatpush1.bf16.msra.mxu0 %v146_v21 }
  0x82   :  { %280 = vmatmul.mubr.bf16.vlgmr.msra.gmra.mrb[0].mxu1 %v194_v23 }
  0x83   :  { %362 = vmatmul.mubr.bf16.vlgmr.msra.gmra.mrb[0].mxu0 %v195_v24 }
 0x155   :  { %v281_v30 = vpop.f32.mrb[0].mxu1 }
 0x156   :  { %v363_v31 = vpop.f32.mrb[0].mxu0  ;;  %v283_v34 = vpop.f32.mrb[1].mxu1 }
 0x157   :  { %v463_v32 = vadd.f32 %v363_v31, %v281_v30  ;;  %v365_v35 = vpop.f32.mrb[1].mxu0  ;;  %v285_v38 = vpop.f32.mrb[2].mxu1 }
 0x158   :  { %v464_v36 = vadd.f32 %v365_v35, %v283_v34  ;;  %v367_v39 = vpop.f32.mrb[2].mxu0  ;;  %v286_v41 = vpop.f32.mrb[3].mxu1 }
 0x159   :  { %v382_v40 = vmul.f32 %v463_v32, %v375_v16  ;;  %v368_v42 = vpop.f32.mrb[3].mxu0 }
 0x15a   :  { %v383_v22 = vmul.f32 %v464_v36, %v379_v17 }
 0x15b   :  { %v396_v43 = vadd.f32 %v389_v33, %v382_v40 }
 0x15c   :  { %v397_v44 = vadd.f32 %v393_v37, %v383_v22 }
 0x15d   :  { %v398_v45 = vmax.f32 %v396_v43, 0.0 }
 0x15e   :  { %v399_v46 = vmax.f32 %v397_v44, 0.0 }
 0x160   :  { %v460_v47 = vpack.c.bf16 %v399_v46, %v398_v45 }
 0x162   :  { %v411_v48 = vrot.slane %v460_v47, %v575_v27 }
 0x164   :  { %461 = vst.sshfl [vmem:[#allocation2] sm:$0x5 pattern:$0x73625140] %v411_v48 }
 0x16b   :  { %v438_v49 = vld [vmem:[#allocation2] sm:$0x3] }
 0x16c   :  { %462 = vst [vmem:[%s951_s5 + $0x8] sm:$0x3] %v438_v49 }

</bundles_post_ra>
